<compile_context>
chip_gen: v7x
topology: tpu7x:2x2x1
jax: 0.10.0
libtpu: 0.0.40
codegen_flags: <defaults>
</compile_context>

<pallas_src>
import functools
import math

import jax
import jax.numpy as jnp
from jax.experimental import pallas as pl
from jax.experimental.pallas import tpu as pltpu


# ---------------------------------------------------------------------------
# Fused kernel: one batch element per grid step.
# Layout everywhere is channel-major: rows = (sample, channel), lanes = H*W.
# ---------------------------------------------------------------------------
def _fused_kernel(x_ref, we_ref, be_ref, wq_ref, bq_ref, wk_ref, bk_ref,
                  wv_ref, bv_ref, wo_ref, bo_ref, out_ref, wc_ref, *, nc, c, cr):
    bf = jnp.bfloat16
    # Shared weights, read once per grid step and cast to bf16 for the MXU.
    we = we_ref[...].astype(bf)          # (Cr, C)   BN folded
    wq = wq_ref[...].astype(bf)          # (Cr, Cr)  1/sqrt(HW) folded
    wk = wk_ref[...].astype(bf)          # (Cr, Cr)
    wv = wv_ref[...].astype(bf)          # (Cr, Cr)
    wo = wo_ref[...].astype(bf)          # (C,  Cr)
    be = be_ref[...]                     # (Cr, 1) f32 (BN folded)
    bq = bq_ref[...]                     # (Cr, 1) f32 (scale folded)
    bk = bk_ref[...]
    bv = bv_ref[...]
    bo = bo_ref[...]                     # (C, 1) f32

    # ---- Phase 1: per-class embed(+BN+ReLU), q/k/v, attention (shared weights) ----
    # TODO(synk): convert to lax.fori_loop + a key-tiled online softmax (flash style)
    # once NC / HW are non-trivial so live VMEM stays O(tq*HW) instead of O(HW^2).
    for n in range(nc):
        x_n = x_ref[n * c:(n + 1) * c, :].astype(bf)                    # (C, HW)
        ce = jnp.dot(we, x_n, preferred_element_type=jnp.float32)
        ce = jnp.maximum(ce + be, 0.0).astype(bf)                       # (Cr, HW)
        q = (jnp.dot(wq, ce, preferred_element_type=jnp.float32) + bq).astype(bf)
        k = (jnp.dot(wk, ce, preferred_element_type=jnp.float32) + bk).astype(bf)
        v = (jnp.dot(wv, ce, preferred_element_type=jnp.float32) + bv).astype(bf)

        # relation[p, t] = sum_r q[r, p] * k[r, t]  (1/sqrt(HW) already inside q).
        rel = jax.lax.dot_general(
            q, k, dimension_numbers=(((0,), (0,)), ((), ())),
            preferred_element_type=jnp.float32)                         # (HW, HW)
        rel = rel - jnp.max(rel, axis=-1, keepdims=True)
        p = jnp.exp(rel)
        p = p * pl.reciprocal(jnp.sum(p, axis=-1, keepdims=True), approx=True)

        # weighted_class, channel-major: wc_n[r, pix] = sum_t v[r, t] * p[pix, t]
        wc_n = jax.lax.dot_general(
            v, p.astype(bf), dimension_numbers=(((1,), (1,)), ((), ())),
            preferred_element_type=jnp.float32)                         # (Cr, HW)

        # Fold torch's transpose/view/permute/view: scatter class n's rows to the
        # cr-major positions r*NC + n so out_conv can read contiguous blocks.
        # (A single pl.ds(n, Cr, stride=NC) store would fuse these; static row
        # stores keep lowering simple at small NC*Cr.)
        for r in range(cr):
            wc_ref[r * nc + n:r * nc + n + 1, :] = wc_n[r:r + 1, :]

    # ---- Phase 2: out_conv per output sample (shared Wo) + residual, one store each ----
    for m in range(nc):
        wc_m = wc_ref[m * cr:(m + 1) * cr, :].astype(bf)                # (Cr, HW) contiguous
        o = jnp.dot(wo, wc_m, preferred_element_type=jnp.float32) + bo  # (C, HW)
        out_ref[m * c:(m + 1) * c, :] = o + x_ref[m * c:(m + 1) * c, :]


# ---------------------------------------------------------------------------
# Operand packing: fold BN (eval mode, fresh stats) and the 1/sqrt(HW) scale.
# ---------------------------------------------------------------------------
def _pack_operands(params, hw):
    scale = 1.0 / math.sqrt(float(hw))
    # TODO(synk): fold real trained BatchNorm running stats / affine params here if
    # the module carries them; current fold assumes eval mode with fresh statistics.
    we = params["we"] * params["bn_scale"]
    be = params["be"] * params["bn_scale"]

    def col(b):
        return b.astype(jnp.float32)[:, None]

    f32 = jnp.float32
    return dict(
        we=we.astype(f32), be=col(be),
        wq=(params["wq"] * scale).astype(f32), bq=col(params["bq"] * scale),
        wk=params["wk"].astype(f32), bk=col(params["bk"]),
        wv=params["wv"].astype(f32), bv=col(params["bv"]),
        wo=params["wo"].astype(f32), bo=col(params["bo"]),
    )


# ---------------------------------------------------------------------------
# Wrapper
# ---------------------------------------------------------------------------
def class_relation_forward(x, params):
    B, C, NC, H, W = x.shape
    Cr = params["wq"].shape[0]
    HW = H * W
    ops = _pack_operands(params, HW)

    # torch: x.view(B*NC, C, H, W) is a pure row-major reinterpretation; per batch
    # element the (NC*C, HW) rows are already (sample, channel)-major.  Free reshape.
    x_k = x.reshape(B, NC * C, HW)

    def resident(name):
        return pl.BlockSpec(ops[name].shape, lambda b: (0, 0))

    # VMEM footprint: double-buffered in/out blocks + weights + wc scratch + the
    # largest in-flight temporaries (rel/p at HW^2 plus per-class tiles).
    block_bytes = NC * C * HW * 4
    weight_bytes = sum(int(v.size) * v.dtype.itemsize for v in ops.values())
    scratch_bytes = NC * Cr * HW * 4
    temp_bytes = 3 * HW * HW * 4 + 8 * Cr * HW * 4
    need = 2 * 2 * block_bytes + 2 * weight_bytes + scratch_bytes + temp_bytes
    vmem_limit = int(min(96 * 2**20, max(32 * 2**20, 2 * need)))

    cost = pl.CostEstimate(
        flops=int(2 * B * NC * HW * (Cr * C            # class_embed
                                     + 3 * Cr * Cr     # q, k, v
                                     + 2 * Cr * HW     # relation + weighting
                                     + C * Cr)),       # out_conv
        transcendentals=int(B * NC * HW * HW),
        bytes_accessed=int(2 * B * NC * C * HW * 4 + weight_bytes),
    )

    out_k = pl.pallas_call(
        functools.partial(_fused_kernel, nc=NC, c=C, cr=Cr),
        out_shape=jax.ShapeDtypeStruct((B, NC * C, HW), jnp.float32),
        grid=(B,),
        in_specs=[
            pl.BlockSpec((None, NC * C, HW), lambda b: (b, 0, 0)),
            resident("we"), resident("be"),
            resident("wq"), resident("bq"),
            resident("wk"), resident("bk"),
            resident("wv"), resident("bv"),
            resident("wo"), resident("bo"),
        ],
        out_specs=pl.BlockSpec((None, NC * C, HW), lambda b: (b, 0, 0)),
        scratch_shapes=[pltpu.VMEM((NC * Cr, HW), jnp.float32)],
        compiler_params=pltpu.CompilerParams(
            # TODO(synk): add a query-tile "parallel" grid axis (flash-style) for
            # large HW so both v7x TensorCores stay busy even when B is 1 or odd.
            dimension_semantics=("parallel",),
            vmem_limit_bytes=vmem_limit,
        ),
        cost_estimate=cost,
    )(x_k, ops["we"], ops["be"], ops["wq"], ops["bq"], ops["wk"], ops["bk"],
      ops["wv"], ops["bv"], ops["wo"], ops["bo"])

    # torch: out_conv(...).view(B, C, NC, H, W) + x -- the residual is already
    # added in-kernel in the equivalent flat layout; this reshape is free.
    return out_k.reshape(B, C, NC, H, W)


# ---------------------------------------------------------------------------
# Deterministic synthetic parameters (torch layout: (Cout, Cin) 1x1-conv weights).
# ---------------------------------------------------------------------------
def init_params(key, in_channels, reduction):
    C = in_channels
    Cr = C // reduction
    ks = jax.random.split(key, 10)

    def winit(k, cout, cin):
        return jax.random.normal(k, (cout, cin), jnp.float32) / jnp.sqrt(float(cin))

    def binit(k, cout):
        return 0.1 * jax.random.normal(k, (cout,), jnp.float32)

    eps = 1e-5
    return {
        "we": winit(ks[0], Cr, C), "be": binit(ks[1], Cr),
        "wq": winit(ks[2], Cr, Cr), "bq": binit(ks[3], Cr),
        "wk": winit(ks[4], Cr, Cr), "bk": binit(ks[5], Cr),
        "wv": winit(ks[6], Cr, Cr), "bv": binit(ks[7], Cr),
        "wo": winit(ks[8], C, Cr), "bo": binit(ks[9], C),
        # BatchNorm2d in eval mode with fresh stats: gamma=1, beta=0, mean=0, var=1.
        "bn_scale": jnp.float32(1.0 / math.sqrt(1.0 + eps)),
    }


# ---------------------------------------------------------------------------
# Pure-JAX f32 reference mirroring the PyTorch forward (NCHW).
# ---------------------------------------------------------------------------
def ref_forward(x, p):
    B, C, NC, H, W = x.shape
    Cr = p["wq"].shape[0]
    HW = H * W
    S = B * NC
    xr = x.reshape(S, C, H, W)

    def conv1x1(inp, w, b):
        return jnp.einsum("schw,oc->sohw", inp, w) + b[None, :, None, None]

    ce = conv1x1(xr, p["we"], p["be"]) * p["bn_scale"]
    ce = jnp.maximum(ce, 0.0)
    q = conv1x1(ce, p["wq"], p["bq"]).reshape(B, NC, Cr, HW)
    k = conv1x1(ce, p["wk"], p["bk"]).reshape(B, NC, Cr, HW)
    v = conv1x1(ce, p["wv"], p["bv"]).reshape(B, NC, Cr, HW)
    rel = jnp.einsum("bncp,bncr->bnpr", q, k) / math.sqrt(HW)
    rel = jax.nn.softmax(rel, axis=-1)
    wt = jnp.einsum("bnpr,bncr->bnpc", rel, v)                 # (B, NC, HW, Cr)
    wt = jnp.transpose(wt, (0, 1, 3, 2)).reshape(B, NC, Cr, H, W)
    wt = jnp.transpose(wt, (0, 2, 1, 3, 4)).reshape(S, Cr, H, W)
    out = conv1x1(wt, p["wo"], p["bo"]).reshape(B, C, NC, H, W)
    return out + x


if __name__ == "__main__":
    # HW = 256 (multiple of 128) so every output store is lane-dense / unmasked.
    B, C, NC, H, W = 2, 32, 4, 16, 16
    reduction = 4

    key = jax.random.PRNGKey(0)
    kx, kp = jax.random.split(key)
    x = jax.random.normal(kx, (B, C, NC, H, W), jnp.float32)
    params = init_params(kp, C, reduction)

    out = jax.jit(class_relation_forward)(x, params)
    out = jax.block_until_ready(out)

    ref = ref_forward(x, params)
    assert out.shape == (B, C, NC, H, W)
    err = float(jnp.max(jnp.abs(out - ref)))
    # Tolerance sized for bf16 MXU inputs (f32 accumulation) + approx reciprocal.
    assert jnp.allclose(out, ref, rtol=5e-2, atol=5e-2), f"max abs err {err}"

    print("KERNEL_OK")
</pallas_src>

<mosaic_0001>
module attributes {stable_mosaic.version = 11 : i64} {
  func.func @_fused_kernel(%arg0: i32, %arg1: memref<1x128x256xf32, #tpu.memory_space<vmem>>, %arg2: memref<8x32xf32, #tpu.memory_space<vmem>>, %arg3: memref<8x1xf32, #tpu.memory_space<vmem>>, %arg4: memref<8x8xf32, #tpu.memory_space<vmem>>, %arg5: memref<8x1xf32, #tpu.memory_space<vmem>>, %arg6: memref<8x8xf32, #tpu.memory_space<vmem>>, %arg7: memref<8x1xf32, #tpu.memory_space<vmem>>, %arg8: memref<8x8xf32, #tpu.memory_space<vmem>>, %arg9: memref<8x1xf32, #tpu.memory_space<vmem>>, %arg10: memref<32x8xf32, #tpu.memory_space<vmem>>, %arg11: memref<32x1xf32, #tpu.memory_space<vmem>>, %arg12: memref<1x128x256xf32, #tpu.memory_space<vmem>>, %arg13: memref<32x256xf32, #tpu.memory_space<vmem>>) attributes {dimension_semantics = [#tpu.dimension_semantics<parallel>], iteration_bounds = array<i64: 2>, scalar_prefetch = 0 : i64, scratch_operands = 1 : i64, tpu.core_type = #tpu.core_type<tc>, window_params = [{transform_indices = @transform_0, window_bounds = array<i64: 1, 128, 256>}, {pipeline_mode = #tpu.pipeline_mode<synchronous>, transform_indices = @transform_1, window_bounds = array<i64: 8, 32>}, {pipeline_mode = #tpu.pipeline_mode<synchronous>, transform_indices = @transform_2, window_bounds = array<i64: 8, 1>}, {pipeline_mode = #tpu.pipeline_mode<synchronous>, transform_indices = @transform_3, window_bounds = array<i64: 8, 8>}, {pipeline_mode = #tpu.pipeline_mode<synchronous>, transform_indices = @transform_4, window_bounds = array<i64: 8, 1>}, {pipeline_mode = #tpu.pipeline_mode<synchronous>, transform_indices = @transform_5, window_bounds = array<i64: 8, 8>}, {pipeline_mode = #tpu.pipeline_mode<synchronous>, transform_indices = @transform_6, window_bounds = array<i64: 8, 1>}, {pipeline_mode = #tpu.pipeline_mode<synchronous>, transform_indices = @transform_7, window_bounds = array<i64: 8, 8>}, {pipeline_mode = #tpu.pipeline_mode<synchronous>, transform_indices = @transform_8, window_bounds = array<i64: 8, 1>}, {pipeline_mode = #tpu.pipeline_mode<synchronous>, transform_indices = @transform_9, window_bounds = array<i64: 32, 8>}, {pipeline_mode = #tpu.pipeline_mode<synchronous>, transform_indices = @transform_10, window_bounds = array<i64: 32, 1>}, {transform_indices = @transform_11, window_bounds = array<i64: 1, 128, 256>}]} {
    %c0 = arith.constant 0 : index
    %c0_0 = arith.constant 0 : index
    %0 = vector.load %arg2[%c0, %c0_0] : memref<8x32xf32, #tpu.memory_space<vmem>>, vector<8x32xf32>
    %1 = arith.truncf %0 : vector<8x32xf32> to vector<8x32xbf16>
    %c0_1 = arith.constant 0 : index
    %c0_2 = arith.constant 0 : index
    %2 = vector.load %arg4[%c0_1, %c0_2] : memref<8x8xf32, #tpu.memory_space<vmem>>, vector<8x8xf32>
    %3 = arith.truncf %2 : vector<8x8xf32> to vector<8x8xbf16>
    %c0_3 = arith.constant 0 : index
    %c0_4 = arith.constant 0 : index
    %4 = vector.load %arg6[%c0_3, %c0_4] : memref<8x8xf32, #tpu.memory_space<vmem>>, vector<8x8xf32>
    %5 = arith.truncf %4 : vector<8x8xf32> to vector<8x8xbf16>
    %c0_5 = arith.constant 0 : index
    %c0_6 = arith.constant 0 : index
    %6 = vector.load %arg8[%c0_5, %c0_6] : memref<8x8xf32, #tpu.memory_space<vmem>>, vector<8x8xf32>
    %7 = arith.truncf %6 : vector<8x8xf32> to vector<8x8xbf16>
    %c0_7 = arith.constant 0 : index
    %c0_8 = arith.constant 0 : index
    %8 = vector.load %arg10[%c0_7, %c0_8] : memref<32x8xf32, #tpu.memory_space<vmem>>, vector<32x8xf32>
    %9 = arith.truncf %8 : vector<32x8xf32> to vector<32x8xbf16>
    %c0_9 = arith.constant 0 : index
    %c0_10 = arith.constant 0 : index
    %10 = vector.load %arg3[%c0_9, %c0_10] : memref<8x1xf32, #tpu.memory_space<vmem>>, vector<8x1xf32>
    %c0_11 = arith.constant 0 : index
    %c0_12 = arith.constant 0 : index
    %11 = vector.load %arg5[%c0_11, %c0_12] : memref<8x1xf32, #tpu.memory_space<vmem>>, vector<8x1xf32>
    %c0_13 = arith.constant 0 : index
    %c0_14 = arith.constant 0 : index
    %12 = vector.load %arg7[%c0_13, %c0_14] : memref<8x1xf32, #tpu.memory_space<vmem>>, vector<8x1xf32>
    %c0_15 = arith.constant 0 : index
    %c0_16 = arith.constant 0 : index
    %13 = vector.load %arg9[%c0_15, %c0_16] : memref<8x1xf32, #tpu.memory_space<vmem>>, vector<8x1xf32>
    %c0_17 = arith.constant 0 : index
    %c0_18 = arith.constant 0 : index
    %14 = vector.load %arg11[%c0_17, %c0_18] : memref<32x1xf32, #tpu.memory_space<vmem>>, vector<32x1xf32>
    %c0_19 = arith.constant 0 : index
    %c0_20 = arith.constant 0 : index
    %c0_21 = arith.constant 0 : index
    %15 = vector.load %arg1[%c0_19, %c0_20, %c0_21] : memref<1x128x256xf32, #tpu.memory_space<vmem>>, vector<1x32x256xf32>
    %16 = vector.shape_cast %15 : vector<1x32x256xf32> to vector<32x256xf32>
    %17 = arith.truncf %16 : vector<32x256xf32> to vector<32x256xbf16>
    %cst = arith.constant dense<0.000000e+00> : vector<8x256xf32>
    %18 = tpu.matmul %1, %17, %cst {dimension_numbers = #tpu.dot_dimension_numbers<[1], [0], [0], [1], [0, 0, 1, 1], [], []>} : vector<8x32xbf16>, vector<32x256xbf16>, vector<8x256xf32> -> vector<8x256xf32>
    %19 = vector.broadcast %10 : vector<8x1xf32> to vector<8x256xf32>
    %20 = arith.addf %18, %19 : vector<8x256xf32>
    %cst_22 = arith.constant 0.000000e+00 : f32
    %21 = vector.broadcast %cst_22 : f32 to vector<8x256xf32>
    %22 = arith.maximumf %20, %21 : vector<8x256xf32>
    %23 = arith.truncf %22 : vector<8x256xf32> to vector<8x256xbf16>
    %cst_23 = arith.constant dense<0.000000e+00> : vector<8x256xf32>
    %24 = tpu.matmul %3, %23, %cst_23 {dimension_numbers = #tpu.dot_dimension_numbers<[1], [0], [0], [1], [0, 0, 1, 1], [], []>} : vector<8x8xbf16>, vector<8x256xbf16>, vector<8x256xf32> -> vector<8x256xf32>
    %25 = vector.broadcast %11 : vector<8x1xf32> to vector<8x256xf32>
    %26 = arith.addf %24, %25 : vector<8x256xf32>
    %27 = arith.truncf %26 : vector<8x256xf32> to vector<8x256xbf16>
    %cst_24 = arith.constant dense<0.000000e+00> : vector<8x256xf32>
    %28 = tpu.matmul %5, %23, %cst_24 {dimension_numbers = #tpu.dot_dimension_numbers<[1], [0], [0], [1], [0, 0, 1, 1], [], []>} : vector<8x8xbf16>, vector<8x256xbf16>, vector<8x256xf32> -> vector<8x256xf32>
    %29 = vector.broadcast %12 : vector<8x1xf32> to vector<8x256xf32>
    %30 = arith.addf %28, %29 : vector<8x256xf32>
    %31 = arith.truncf %30 : vector<8x256xf32> to vector<8x256xbf16>
    %cst_25 = arith.constant dense<0.000000e+00> : vector<8x256xf32>
    %32 = tpu.matmul %7, %23, %cst_25 {dimension_numbers = #tpu.dot_dimension_numbers<[1], [0], [0], [1], [0, 0, 1, 1], [], []>} : vector<8x8xbf16>, vector<8x256xbf16>, vector<8x256xf32> -> vector<8x256xf32>
    %33 = vector.broadcast %13 : vector<8x1xf32> to vector<8x256xf32>
    %34 = arith.addf %32, %33 : vector<8x256xf32>
    %35 = arith.truncf %34 : vector<8x256xf32> to vector<8x256xbf16>
    %cst_26 = arith.constant dense<0.000000e+00> : vector<256x256xf32>
    %36 = tpu.matmul %27, %31, %cst_26 {dimension_numbers = #tpu.dot_dimension_numbers<[0], [0], [1], [1], [0, 1, 1, 1], [], []>} : vector<8x256xbf16>, vector<8x256xbf16>, vector<256x256xf32> -> vector<256x256xf32>
    %cst_27 = arith.constant dense<0xFF800000> : vector<256xf32>
    %37 = vector.multi_reduction <maximumf>, %36, %cst_27 [1] : vector<256x256xf32> to vector<256xf32>
    %38 = vector.shape_cast %37 : vector<256xf32> to vector<256x1xf32>
    %39 = vector.broadcast %38 : vector<256x1xf32> to vector<256x256xf32>
    %40 = arith.subf %36, %39 : vector<256x256xf32>
    %41 = math.exp %40 : vector<256x256xf32>
    %cst_28 = arith.constant dense<0.000000e+00> : vector<256xf32>
    %42 = vector.multi_reduction <add>, %41, %cst_28 [1] : vector<256x256xf32> to vector<256xf32>
    %43 = vector.shape_cast %42 : vector<256xf32> to vector<256x1xf32>
    %44 = tpu.reciprocal %43 {approx = true} : vector<256x1xf32> -> vector<256x1xf32>
    %45 = vector.broadcast %44 : vector<256x1xf32> to vector<256x256xf32>
    %46 = arith.mulf %41, %45 : vector<256x256xf32>
    %47 = arith.truncf %46 : vector<256x256xf32> to vector<256x256xbf16>
    %cst_29 = arith.constant dense<0.000000e+00> : vector<8x256xf32>
    %48 = tpu.matmul %35, %47, %cst_29 {dimension_numbers = #tpu.dot_dimension_numbers<[1], [1], [0], [0], [0, 0, 1, 0], [], []>} : vector<8x256xbf16>, vector<256x256xbf16>, vector<8x256xf32> -> vector<8x256xf32>
    %49 = vector.extract_strided_slice %48 {offsets = [0, 0], sizes = [1, 256], strides = [1, 1]} : vector<8x256xf32> to vector<1x256xf32>
    %c0_30 = arith.constant 0 : index
    %c0_31 = arith.constant 0 : index
    %50 = vector.load %arg13[%c0_30, %c0_31] : memref<32x256xf32, #tpu.memory_space<vmem>>, vector<1x256xf32>
    tpu.vector_store %arg13[%c0_30, %c0_31], %49 {strides = array<i32>} : memref<32x256xf32, #tpu.memory_space<vmem>>, vector<1x256xf32>,
    %51 = vector.extract_strided_slice %48 {offsets = [1, 0], sizes = [1, 256], strides = [1, 1]} : vector<8x256xf32> to vector<1x256xf32>
    %c4 = arith.constant 4 : index
    %c0_32 = arith.constant 0 : index
    %52 = vector.load %arg13[%c4, %c0_32] : memref<32x256xf32, #tpu.memory_space<vmem>>, vector<1x256xf32>
    tpu.vector_store %arg13[%c4, %c0_32], %51 {strides = array<i32>} : memref<32x256xf32, #tpu.memory_space<vmem>>, vector<1x256xf32>,
    %53 = vector.extract_strided_slice %48 {offsets = [2, 0], sizes = [1, 256], strides = [1, 1]} : vector<8x256xf32> to vector<1x256xf32>
    %c8 = arith.constant 8 : index
    %c0_33 = arith.constant 0 : index
    %54 = vector.load %arg13[%c8, %c0_33] : memref<32x256xf32, #tpu.memory_space<vmem>>, vector<1x256xf32>
    tpu.vector_store %arg13[%c8, %c0_33], %53 {strides = array<i32>} : memref<32x256xf32, #tpu.memory_space<vmem>>, vector<1x256xf32>,
    %55 = vector.extract_strided_slice %48 {offsets = [3, 0], sizes = [1, 256], strides = [1, 1]} : vector<8x256xf32> to vector<1x256xf32>
    %c12 = arith.constant 12 : index
    %c0_34 = arith.constant 0 : index
    %56 = vector.load %arg13[%c12, %c0_34] : memref<32x256xf32, #tpu.memory_space<vmem>>, vector<1x256xf32>
    tpu.vector_store %arg13[%c12, %c0_34], %55 {strides = array<i32>} : memref<32x256xf32, #tpu.memory_space<vmem>>, vector<1x256xf32>,
    %57 = vector.extract_strided_slice %48 {offsets = [4, 0], sizes = [1, 256], strides = [1, 1]} : vector<8x256xf32> to vector<1x256xf32>
    %c16 = arith.constant 16 : index
    %c0_35 = arith.constant 0 : index
    %58 = vector.load %arg13[%c16, %c0_35] : memref<32x256xf32, #tpu.memory_space<vmem>>, vector<1x256xf32>
    tpu.vector_store %arg13[%c16, %c0_35], %57 {strides = array<i32>} : memref<32x256xf32, #tpu.memory_space<vmem>>, vector<1x256xf32>,
    %59 = vector.extract_strided_slice %48 {offsets = [5, 0], sizes = [1, 256], strides = [1, 1]} : vector<8x256xf32> to vector<1x256xf32>
    %c20 = arith.constant 20 : index
    %c0_36 = arith.constant 0 : index
    %60 = vector.load %arg13[%c20, %c0_36] : memref<32x256xf32, #tpu.memory_space<vmem>>, vector<1x256xf32>
    tpu.vector_store %arg13[%c20, %c0_36], %59 {strides = array<i32>} : memref<32x256xf32, #tpu.memory_space<vmem>>, vector<1x256xf32>,
    %61 = vector.extract_strided_slice %48 {offsets = [6, 0], sizes = [1, 256], strides = [1, 1]} : vector<8x256xf32> to vector<1x256xf32>
    %c24 = arith.constant 24 : index
    %c0_37 = arith.constant 0 : index
    %62 = vector.load %arg13[%c24, %c0_37] : memref<32x256xf32, #tpu.memory_space<vmem>>, vector<1x256xf32>
    tpu.vector_store %arg13[%c24, %c0_37], %61 {strides = array<i32>} : memref<32x256xf32, #tpu.memory_space<vmem>>, vector<1x256xf32>,
    %63 = vector.extract_strided_slice %48 {offsets = [7, 0], sizes = [1, 256], strides = [1, 1]} : vector<8x256xf32> to vector<1x256xf32>
    %c28 = arith.constant 28 : index
    %c0_38 = arith.constant 0 : index
    %64 = vector.load %arg13[%c28, %c0_38] : memref<32x256xf32, #tpu.memory_space<vmem>>, vector<1x256xf32>
    tpu.vector_store %arg13[%c28, %c0_38], %63 {strides = array<i32>} : memref<32x256xf32, #tpu.memory_space<vmem>>, vector<1x256xf32>,
    %c0_39 = arith.constant 0 : index
    %c32 = arith.constant 32 : index
    %c0_40 = arith.constant 0 : index
    %65 = vector.load %arg1[%c0_39, %c32, %c0_40] : memref<1x128x256xf32, #tpu.memory_space<vmem>>, vector<1x32x256xf32>
    %66 = vector.shape_cast %65 : vector<1x32x256xf32> to vector<32x256xf32>
    %67 = arith.truncf %66 : vector<32x256xf32> to vector<32x256xbf16>
    %cst_41 = arith.constant dense<0.000000e+00> : vector<8x256xf32>
    %68 = tpu.matmul %1, %67, %cst_41 {dimension_numbers = #tpu.dot_dimension_numbers<[1], [0], [0], [1], [0, 0, 1, 1], [], []>} : vector<8x32xbf16>, vector<32x256xbf16>, vector<8x256xf32> -> vector<8x256xf32>
    %69 = vector.broadcast %10 : vector<8x1xf32> to vector<8x256xf32>
    %70 = arith.addf %68, %69 : vector<8x256xf32>
    %cst_42 = arith.constant 0.000000e+00 : f32
    %71 = vector.broadcast %cst_42 : f32 to vector<8x256xf32>
    %72 = arith.maximumf %70, %71 : vector<8x256xf32>
    %73 = arith.truncf %72 : vector<8x256xf32> to vector<8x256xbf16>
    %cst_43 = arith.constant dense<0.000000e+00> : vector<8x256xf32>
    %74 = tpu.matmul %3, %73, %cst_43 {dimension_numbers = #tpu.dot_dimension_numbers<[1], [0], [0], [1], [0, 0, 1, 1], [], []>} : vector<8x8xbf16>, vector<8x256xbf16>, vector<8x256xf32> -> vector<8x256xf32>
    %75 = vector.broadcast %11 : vector<8x1xf32> to vector<8x256xf32>
    %76 = arith.addf %74, %75 : vector<8x256xf32>
    %77 = arith.truncf %76 : vector<8x256xf32> to vector<8x256xbf16>
    %cst_44 = arith.constant dense<0.000000e+00> : vector<8x256xf32>
    %78 = tpu.matmul %5, %73, %cst_44 {dimension_numbers = #tpu.dot_dimension_numbers<[1], [0], [0], [1], [0, 0, 1, 1], [], []>} : vector<8x8xbf16>, vector<8x256xbf16>, vector<8x256xf32> -> vector<8x256xf32>
    %79 = vector.broadcast %12 : vector<8x1xf32> to vector<8x256xf32>
    %80 = arith.addf %78, %79 : vector<8x256xf32>
    %81 = arith.truncf %80 : vector<8x256xf32> to vector<8x256xbf16>
    %cst_45 = arith.constant dense<0.000000e+00> : vector<8x256xf32>
    %82 = tpu.matmul %7, %73, %cst_45 {dimension_numbers = #tpu.dot_dimension_numbers<[1], [0], [0], [1], [0, 0, 1, 1], [], []>} : vector<8x8xbf16>, vector<8x256xbf16>, vector<8x256xf32> -> vector<8x256xf32>
    %83 = vector.broadcast %13 : vector<8x1xf32> to vector<8x256xf32>
    %84 = arith.addf %82, %83 : vector<8x256xf32>
    %85 = arith.truncf %84 : vector<8x256xf32> to vector<8x256xbf16>
    %cst_46 = arith.constant dense<0.000000e+00> : vector<256x256xf32>
    %86 = tpu.matmul %77, %81, %cst_46 {dimension_numbers = #tpu.dot_dimension_numbers<[0], [0], [1], [1], [0, 1, 1, 1], [], []>} : vector<8x256xbf16>, vector<8x256xbf16>, vector<256x256xf32> -> vector<256x256xf32>
    %cst_47 = arith.constant dense<0xFF800000> : vector<256xf32>
    %87 = vector.multi_reduction <maximumf>, %86, %cst_47 [1] : vector<256x256xf32> to vector<256xf32>
    %88 = vector.shape_cast %87 : vector<256xf32> to vector<256x1xf32>
    %89 = vector.broadcast %88 : vector<256x1xf32> to vector<256x256xf32>
    %90 = arith.subf %86, %89 : vector<256x256xf32>
    %91 = math.exp %90 : vector<256x256xf32>
    %cst_48 = arith.constant dense<0.000000e+00> : vector<256xf32>
    %92 = vector.multi_reduction <add>, %91, %cst_48 [1] : vector<256x256xf32> to vector<256xf32>
    %93 = vector.shape_cast %92 : vector<256xf32> to vector<256x1xf32>
    %94 = tpu.reciprocal %93 {approx = true} : vector<256x1xf32> -> vector<256x1xf32>
    %95 = vector.broadcast %94 : vector<256x1xf32> to vector<256x256xf32>
    %96 = arith.mulf %91, %95 : vector<256x256xf32>
    %97 = arith.truncf %96 : vector<256x256xf32> to vector<256x256xbf16>
    %cst_49 = arith.constant dense<0.000000e+00> : vector<8x256xf32>
    %98 = tpu.matmul %85, %97, %cst_49 {dimension_numbers = #tpu.dot_dimension_numbers<[1], [1], [0], [0], [0, 0, 1, 0], [], []>} : vector<8x256xbf16>, vector<256x256xbf16>, vector<8x256xf32> -> vector<8x256xf32>
    %99 = vector.extract_strided_slice %98 {offsets = [0, 0], sizes = [1, 256], strides = [1, 1]} : vector<8x256xf32> to vector<1x256xf32>
    %c1 = arith.constant 1 : index
    %c0_50 = arith.constant 0 : index
    %100 = vector.load %arg13[%c1, %c0_50] : memref<32x256xf32, #tpu.memory_space<vmem>>, vector<1x256xf32>
    tpu.vector_store %arg13[%c1, %c0_50], %99 {strides = array<i32>} : memref<32x256xf32, #tpu.memory_space<vmem>>, vector<1x256xf32>,
    %101 = vector.extract_strided_slice %98 {offsets = [1, 0], sizes = [1, 256], strides = [1, 1]} : vector<8x256xf32> to vector<1x256xf32>
    %c5 = arith.constant 5 : index
    %c0_51 = arith.constant 0 : index
    %102 = vector.load %arg13[%c5, %c0_51] : memref<32x256xf32, #tpu.memory_space<vmem>>, vector<1x256xf32>
    tpu.vector_store %arg13[%c5, %c0_51], %101 {strides = array<i32>} : memref<32x256xf32, #tpu.memory_space<vmem>>, vector<1x256xf32>,
    %103 = vector.extract_strided_slice %98 {offsets = [2, 0], sizes = [1, 256], strides = [1, 1]} : vector<8x256xf32> to vector<1x256xf32>
    %c9 = arith.constant 9 : index
    %c0_52 = arith.constant 0 : index
    %104 = vector.load %arg13[%c9, %c0_52] : memref<32x256xf32, #tpu.memory_space<vmem>>, vector<1x256xf32>
    tpu.vector_store %arg13[%c9, %c0_52], %103 {strides = array<i32>} : memref<32x256xf32, #tpu.memory_space<vmem>>, vector<1x256xf32>,
    %105 = vector.extract_strided_slice %98 {offsets = [3, 0], sizes = [1, 256], strides = [1, 1]} : vector<8x256xf32> to vector<1x256xf32>
    %c13 = arith.constant 13 : index
    %c0_53 = arith.constant 0 : index
    %106 = vector.load %arg13[%c13, %c0_53] : memref<32x256xf32, #tpu.memory_space<vmem>>, vector<1x256xf32>
    tpu.vector_store %arg13[%c13, %c0_53], %105 {strides = array<i32>} : memref<32x256xf32, #tpu.memory_space<vmem>>, vector<1x256xf32>,
    %107 = vector.extract_strided_slice %98 {offsets = [4, 0], sizes = [1, 256], strides = [1, 1]} : vector<8x256xf32> to vector<1x256xf32>
    %c17 = arith.constant 17 : index
    %c0_54 = arith.constant 0 : index
    %108 = vector.load %arg13[%c17, %c0_54] : memref<32x256xf32, #tpu.memory_space<vmem>>, vector<1x256xf32>
    tpu.vector_store %arg13[%c17, %c0_54], %107 {strides = array<i32>} : memref<32x256xf32, #tpu.memory_space<vmem>>, vector<1x256xf32>,
    %109 = vector.extract_strided_slice %98 {offsets = [5, 0], sizes = [1, 256], strides = [1, 1]} : vector<8x256xf32> to vector<1x256xf32>
    %c21 = arith.constant 21 : index
    %c0_55 = arith.constant 0 : index
    %110 = vector.load %arg13[%c21, %c0_55] : memref<32x256xf32, #tpu.memory_space<vmem>>, vector<1x256xf32>
    tpu.vector_store %arg13[%c21, %c0_55], %109 {strides = array<i32>} : memref<32x256xf32, #tpu.memory_space<vmem>>, vector<1x256xf32>,
    %111 = vector.extract_strided_slice %98 {offsets = [6, 0], sizes = [1, 256], strides = [1, 1]} : vector<8x256xf32> to vector<1x256xf32>
    %c25 = arith.constant 25 : index
    %c0_56 = arith.constant 0 : index
    %112 = vector.load %arg13[%c25, %c0_56] : memref<32x256xf32, #tpu.memory_space<vmem>>, vector<1x256xf32>
    tpu.vector_store %arg13[%c25, %c0_56], %111 {strides = array<i32>} : memref<32x256xf32, #tpu.memory_space<vmem>>, vector<1x256xf32>,
    %113 = vector.extract_strided_slice %98 {offsets = [7, 0], sizes = [1, 256], strides = [1, 1]} : vector<8x256xf32> to vector<1x256xf32>
    %c29 = arith.constant 29 : index
    %c0_57 = arith.constant 0 : index
    %114 = vector.load %arg13[%c29, %c0_57] : memref<32x256xf32, #tpu.memory_space<vmem>>, vector<1x256xf32>
    tpu.vector_store %arg13[%c29, %c0_57], %113 {strides = array<i32>} : memref<32x256xf32, #tpu.memory_space<vmem>>, vector<1x256xf32>,
    %c0_58 = arith.constant 0 : index
    %c64 = arith.constant 64 : index
    %c0_59 = arith.constant 0 : index
    %115 = vector.load %arg1[%c0_58, %c64, %c0_59] : memref<1x128x256xf32, #tpu.memory_space<vmem>>, vector<1x32x256xf32>
    %116 = vector.shape_cast %115 : vector<1x32x256xf32> to vector<32x256xf32>
    %117 = arith.truncf %116 : vector<32x256xf32> to vector<32x256xbf16>
    %cst_60 = arith.constant dense<0.000000e+00> : vector<8x256xf32>
    %118 = tpu.matmul %1, %117, %cst_60 {dimension_numbers = #tpu.dot_dimension_numbers<[1], [0], [0], [1], [0, 0, 1, 1], [], []>} : vector<8x32xbf16>, vector<32x256xbf16>, vector<8x256xf32> -> vector<8x256xf32>
    %119 = vector.broadcast %10 : vector<8x1xf32> to vector<8x256xf32>
    %120 = arith.addf %118, %119 : vector<8x256xf32>
    %cst_61 = arith.constant 0.000000e+00 : f32
    %121 = vector.broadcast %cst_61 : f32 to vector<8x256xf32>
    %122 = arith.maximumf %120, %121 : vector<8x256xf32>
    %123 = arith.truncf %122 : vector<8x256xf32> to vector<8x256xbf16>
    %cst_62 = arith.constant dense<0.000000e+00> : vector<8x256xf32>
    %124 = tpu.matmul %3, %123, %cst_62 {dimension_numbers = #tpu.dot_dimension_numbers<[1], [0], [0], [1], [0, 0, 1, 1], [], []>} : vector<8x8xbf16>, vector<8x256xbf16>, vector<8x256xf32> -> vector<8x256xf32>
    %125 = vector.broadcast %11 : vector<8x1xf32> to vector<8x256xf32>
    %126 = arith.addf %124, %125 : vector<8x256xf32>
    %127 = arith.truncf %126 : vector<8x256xf32> to vector<8x256xbf16>
    %cst_63 = arith.constant dense<0.000000e+00> : vector<8x256xf32>
    %128 = tpu.matmul %5, %123, %cst_63 {dimension_numbers = #tpu.dot_dimension_numbers<[1], [0], [0], [1], [0, 0, 1, 1], [], []>} : vector<8x8xbf16>, vector<8x256xbf16>, vector<8x256xf32> -> vector<8x256xf32>
    %129 = vector.broadcast %12 : vector<8x1xf32> to vector<8x256xf32>
    %130 = arith.addf %128, %129 : vector<8x256xf32>
    %131 = arith.truncf %130 : vector<8x256xf32> to vector<8x256xbf16>
    %cst_64 = arith.constant dense<0.000000e+00> : vector<8x256xf32>
    %132 = tpu.matmul %7, %123, %cst_64 {dimension_numbers = #tpu.dot_dimension_numbers<[1], [0], [0], [1], [0, 0, 1, 1], [], []>} : vector<8x8xbf16>, vector<8x256xbf16>, vector<8x256xf32> -> vector<8x256xf32>
    %133 = vector.broadcast %13 : vector<8x1xf32> to vector<8x256xf32>
    %134 = arith.addf %132, %133 : vector<8x256xf32>
    %135 = arith.truncf %134 : vector<8x256xf32> to vector<8x256xbf16>
    %cst_65 = arith.constant dense<0.000000e+00> : vector<256x256xf32>
    %136 = tpu.matmul %127, %131, %cst_65 {dimension_numbers = #tpu.dot_dimension_numbers<[0], [0], [1], [1], [0, 1, 1, 1], [], []>} : vector<8x256xbf16>, vector<8x256xbf16>, vector<256x256xf32> -> vector<256x256xf32>
    %cst_66 = arith.constant dense<0xFF800000> : vector<256xf32>
    %137 = vector.multi_reduction <maximumf>, %136, %cst_66 [1] : vector<256x256xf32> to vector<256xf32>
    %138 = vector.shape_cast %137 : vector<256xf32> to vector<256x1xf32>
    %139 = vector.broadcast %138 : vector<256x1xf32> to vector<256x256xf32>
    %140 = arith.subf %136, %139 : vector<256x256xf32>
    %141 = math.exp %140 : vector<256x256xf32>
    %cst_67 = arith.constant dense<0.000000e+00> : vector<256xf32>
    %142 = vector.multi_reduction <add>, %141, %cst_67 [1] : vector<256x256xf32> to vector<256xf32>
    %143 = vector.shape_cast %142 : vector<256xf32> to vector<256x1xf32>
    %144 = tpu.reciprocal %143 {approx = true} : vector<256x1xf32> -> vector<256x1xf32>
    %145 = vector.broadcast %144 : vector<256x1xf32> to vector<256x256xf32>
    %146 = arith.mulf %141, %145 : vector<256x256xf32>
    %147 = arith.truncf %146 : vector<256x256xf32> to vector<256x256xbf16>
    %cst_68 = arith.constant dense<0.000000e+00> : vector<8x256xf32>
    %148 = tpu.matmul %135, %147, %cst_68 {dimension_numbers = #tpu.dot_dimension_numbers<[1], [1], [0], [0], [0, 0, 1, 0], [], []>} : vector<8x256xbf16>, vector<256x256xbf16>, vector<8x256xf32> -> vector<8x256xf32>
    %149 = vector.extract_strided_slice %148 {offsets = [0, 0], sizes = [1, 256], strides = [1, 1]} : vector<8x256xf32> to vector<1x256xf32>
    %c2 = arith.constant 2 : index
    %c0_69 = arith.constant 0 : index
    %150 = vector.load %arg13[%c2, %c0_69] : memref<32x256xf32, #tpu.memory_space<vmem>>, vector<1x256xf32>
    tpu.vector_store %arg13[%c2, %c0_69], %149 {strides = array<i32>} : memref<32x256xf32, #tpu.memory_space<vmem>>, vector<1x256xf32>,
    %151 = vector.extract_strided_slice %148 {offsets = [1, 0], sizes = [1, 256], strides = [1, 1]} : vector<8x256xf32> to vector<1x256xf32>
    %c6 = arith.constant 6 : index
    %c0_70 = arith.constant 0 : index
    %152 = vector.load %arg13[%c6, %c0_70] : memref<32x256xf32, #tpu.memory_space<vmem>>, vector<1x256xf32>
    tpu.vector_store %arg13[%c6, %c0_70], %151 {strides = array<i32>} : memref<32x256xf32, #tpu.memory_space<vmem>>, vector<1x256xf32>,
    %153 = vector.extract_strided_slice %148 {offsets = [2, 0], sizes = [1, 256], strides = [1, 1]} : vector<8x256xf32> to vector<1x256xf32>
    %c10 = arith.constant 10 : index
    %c0_71 = arith.constant 0 : index
    %154 = vector.load %arg13[%c10, %c0_71] : memref<32x256xf32, #tpu.memory_space<vmem>>, vector<1x256xf32>
    tpu.vector_store %arg13[%c10, %c0_71], %153 {strides = array<i32>} : memref<32x256xf32, #tpu.memory_space<vmem>>, vector<1x256xf32>,
    %155 = vector.extract_strided_slice %148 {offsets = [3, 0], sizes = [1, 256], strides = [1, 1]} : vector<8x256xf32> to vector<1x256xf32>
    %c14 = arith.constant 14 : index
    %c0_72 = arith.constant 0 : index
    %156 = vector.load %arg13[%c14, %c0_72] : memref<32x256xf32, #tpu.memory_space<vmem>>, vector<1x256xf32>
    tpu.vector_store %arg13[%c14, %c0_72], %155 {strides = array<i32>} : memref<32x256xf32, #tpu.memory_space<vmem>>, vector<1x256xf32>,
    %157 = vector.extract_strided_slice %148 {offsets = [4, 0], sizes = [1, 256], strides = [1, 1]} : vector<8x256xf32> to vector<1x256xf32>
    %c18 = arith.constant 18 : index
    %c0_73 = arith.constant 0 : index
    %158 = vector.load %arg13[%c18, %c0_73] : memref<32x256xf32, #tpu.memory_space<vmem>>, vector<1x256xf32>
    tpu.vector_store %arg13[%c18, %c0_73], %157 {strides = array<i32>} : memref<32x256xf32, #tpu.memory_space<vmem>>, vector<1x256xf32>,
    %159 = vector.extract_strided_slice %148 {offsets = [5, 0], sizes = [1, 256], strides = [1, 1]} : vector<8x256xf32> to vector<1x256xf32>
    %c22 = arith.constant 22 : index
    %c0_74 = arith.constant 0 : index
    %160 = vector.load %arg13[%c22, %c0_74] : memref<32x256xf32, #tpu.memory_space<vmem>>, vector<1x256xf32>
    tpu.vector_store %arg13[%c22, %c0_74], %159 {strides = array<i32>} : memref<32x256xf32, #tpu.memory_space<vmem>>, vector<1x256xf32>,
    %161 = vector.extract_strided_slice %148 {offsets = [6, 0], sizes = [1, 256], strides = [1, 1]} : vector<8x256xf32> to vector<1x256xf32>
    %c26 = arith.constant 26 : index
    %c0_75 = arith.constant 0 : index
    %162 = vector.load %arg13[%c26, %c0_75] : memref<32x256xf32, #tpu.memory_space<vmem>>, vector<1x256xf32>
    tpu.vector_store %arg13[%c26, %c0_75], %161 {strides = array<i32>} : memref<32x256xf32, #tpu.memory_space<vmem>>, vector<1x256xf32>,
    %163 = vector.extract_strided_slice %148 {offsets = [7, 0], sizes = [1, 256], strides = [1, 1]} : vector<8x256xf32> to vector<1x256xf32>
    %c30 = arith.constant 30 : index
    %c0_76 = arith.constant 0 : index
    %164 = vector.load %arg13[%c30, %c0_76] : memref<32x256xf32, #tpu.memory_space<vmem>>, vector<1x256xf32>
    tpu.vector_store %arg13[%c30, %c0_76], %163 {strides = array<i32>} : memref<32x256xf32, #tpu.memory_space<vmem>>, vector<1x256xf32>,
    %c0_77 = arith.constant 0 : index
    %c96 = arith.constant 96 : index
    %c0_78 = arith.constant 0 : index
    %165 = vector.load %arg1[%c0_77, %c96, %c0_78] : memref<1x128x256xf32, #tpu.memory_space<vmem>>, vector<1x32x256xf32>
    %166 = vector.shape_cast %165 : vector<1x32x256xf32> to vector<32x256xf32>
    %167 = arith.truncf %166 : vector<32x256xf32> to vector<32x256xbf16>
    %cst_79 = arith.constant dense<0.000000e+00> : vector<8x256xf32>
    %168 = tpu.matmul %1, %167, %cst_79 {dimension_numbers = #tpu.dot_dimension_numbers<[1], [0], [0], [1], [0, 0, 1, 1], [], []>} : vector<8x32xbf16>, vector<32x256xbf16>, vector<8x256xf32> -> vector<8x256xf32>
    %169 = vector.broadcast %10 : vector<8x1xf32> to vector<8x256xf32>
    %170 = arith.addf %168, %169 : vector<8x256xf32>
    %cst_80 = arith.constant 0.000000e+00 : f32
    %171 = vector.broadcast %cst_80 : f32 to vector<8x256xf32>
    %172 = arith.maximumf %170, %171 : vector<8x256xf32>
    %173 = arith.truncf %172 : vector<8x256xf32> to vector<8x256xbf16>
    %cst_81 = arith.constant dense<0.000000e+00> : vector<8x256xf32>
    %174 = tpu.matmul %3, %173, %cst_81 {dimension_numbers = #tpu.dot_dimension_numbers<[1], [0], [0], [1], [0, 0, 1, 1], [], []>} : vector<8x8xbf16>, vector<8x256xbf16>, vector<8x256xf32> -> vector<8x256xf32>
    %175 = vector.broadcast %11 : vector<8x1xf32> to vector<8x256xf32>
    %176 = arith.addf %174, %175 : vector<8x256xf32>
    %177 = arith.truncf %176 : vector<8x256xf32> to vector<8x256xbf16>
    %cst_82 = arith.constant dense<0.000000e+00> : vector<8x256xf32>
    %178 = tpu.matmul %5, %173, %cst_82 {dimension_numbers = #tpu.dot_dimension_numbers<[1], [0], [0], [1], [0, 0, 1, 1], [], []>} : vector<8x8xbf16>, vector<8x256xbf16>, vector<8x256xf32> -> vector<8x256xf32>
    %179 = vector.broadcast %12 : vector<8x1xf32> to vector<8x256xf32>
    %180 = arith.addf %178, %179 : vector<8x256xf32>
    %181 = arith.truncf %180 : vector<8x256xf32> to vector<8x256xbf16>
    %cst_83 = arith.constant dense<0.000000e+00> : vector<8x256xf32>
    %182 = tpu.matmul %7, %173, %cst_83 {dimension_numbers = #tpu.dot_dimension_numbers<[1], [0], [0], [1], [0, 0, 1, 1], [], []>} : vector<8x8xbf16>, vector<8x256xbf16>, vector<8x256xf32> -> vector<8x256xf32>
    %183 = vector.broadcast %13 : vector<8x1xf32> to vector<8x256xf32>
    %184 = arith.addf %182, %183 : vector<8x256xf32>
    %185 = arith.truncf %184 : vector<8x256xf32> to vector<8x256xbf16>
    %cst_84 = arith.constant dense<0.000000e+00> : vector<256x256xf32>
    %186 = tpu.matmul %177, %181, %cst_84 {dimension_numbers = #tpu.dot_dimension_numbers<[0], [0], [1], [1], [0, 1, 1, 1], [], []>} : vector<8x256xbf16>, vector<8x256xbf16>, vector<256x256xf32> -> vector<256x256xf32>
    %cst_85 = arith.constant dense<0xFF800000> : vector<256xf32>
    %187 = vector.multi_reduction <maximumf>, %186, %cst_85 [1] : vector<256x256xf32> to vector<256xf32>
    %188 = vector.shape_cast %187 : vector<256xf32> to vector<256x1xf32>
    %189 = vector.broadcast %188 : vector<256x1xf32> to vector<256x256xf32>
    %190 = arith.subf %186, %189 : vector<256x256xf32>
    %191 = math.exp %190 : vector<256x256xf32>
    %cst_86 = arith.constant dense<0.000000e+00> : vector<256xf32>
    %192 = vector.multi_reduction <add>, %191, %cst_86 [1] : vector<256x256xf32> to vector<256xf32>
    %193 = vector.shape_cast %192 : vector<256xf32> to vector<256x1xf32>
    %194 = tpu.reciprocal %193 {approx = true} : vector<256x1xf32> -> vector<256x1xf32>
    %195 = vector.broadcast %194 : vector<256x1xf32> to vector<256x256xf32>
    %196 = arith.mulf %191, %195 : vector<256x256xf32>
    %197 = arith.truncf %196 : vector<256x256xf32> to vector<256x256xbf16>
    %cst_87 = arith.constant dense<0.000000e+00> : vector<8x256xf32>
    %198 = tpu.matmul %185, %197, %cst_87 {dimension_numbers = #tpu.dot_dimension_numbers<[1], [1], [0], [0], [0, 0, 1, 0], [], []>} : vector<8x256xbf16>, vector<256x256xbf16>, vector<8x256xf32> -> vector<8x256xf32>
    %199 = vector.extract_strided_slice %198 {offsets = [0, 0], sizes = [1, 256], strides = [1, 1]} : vector<8x256xf32> to vector<1x256xf32>
    %c3 = arith.constant 3 : index
    %c0_88 = arith.constant 0 : index
    %200 = vector.load %arg13[%c3, %c0_88] : memref<32x256xf32, #tpu.memory_space<vmem>>, vector<1x256xf32>
    tpu.vector_store %arg13[%c3, %c0_88], %199 {strides = array<i32>} : memref<32x256xf32, #tpu.memory_space<vmem>>, vector<1x256xf32>,
    %201 = vector.extract_strided_slice %198 {offsets = [1, 0], sizes = [1, 256], strides = [1, 1]} : vector<8x256xf32> to vector<1x256xf32>
    %c7 = arith.constant 7 : index
    %c0_89 = arith.constant 0 : index
    %202 = vector.load %arg13[%c7, %c0_89] : memref<32x256xf32, #tpu.memory_space<vmem>>, vector<1x256xf32>
    tpu.vector_store %arg13[%c7, %c0_89], %201 {strides = array<i32>} : memref<32x256xf32, #tpu.memory_space<vmem>>, vector<1x256xf32>,
    %203 = vector.extract_strided_slice %198 {offsets = [2, 0], sizes = [1, 256], strides = [1, 1]} : vector<8x256xf32> to vector<1x256xf32>
    %c11 = arith.constant 11 : index
    %c0_90 = arith.constant 0 : index
    %204 = vector.load %arg13[%c11, %c0_90] : memref<32x256xf32, #tpu.memory_space<vmem>>, vector<1x256xf32>
    tpu.vector_store %arg13[%c11, %c0_90], %203 {strides = array<i32>} : memref<32x256xf32, #tpu.memory_space<vmem>>, vector<1x256xf32>,
    %205 = vector.extract_strided_slice %198 {offsets = [3, 0], sizes = [1, 256], strides = [1, 1]} : vector<8x256xf32> to vector<1x256xf32>
    %c15 = arith.constant 15 : index
    %c0_91 = arith.constant 0 : index
    %206 = vector.load %arg13[%c15, %c0_91] : memref<32x256xf32, #tpu.memory_space<vmem>>, vector<1x256xf32>
    tpu.vector_store %arg13[%c15, %c0_91], %205 {strides = array<i32>} : memref<32x256xf32, #tpu.memory_space<vmem>>, vector<1x256xf32>,
    %207 = vector.extract_strided_slice %198 {offsets = [4, 0], sizes = [1, 256], strides = [1, 1]} : vector<8x256xf32> to vector<1x256xf32>
    %c19 = arith.constant 19 : index
    %c0_92 = arith.constant 0 : index
    %208 = vector.load %arg13[%c19, %c0_92] : memref<32x256xf32, #tpu.memory_space<vmem>>, vector<1x256xf32>
    tpu.vector_store %arg13[%c19, %c0_92], %207 {strides = array<i32>} : memref<32x256xf32, #tpu.memory_space<vmem>>, vector<1x256xf32>,
    %209 = vector.extract_strided_slice %198 {offsets = [5, 0], sizes = [1, 256], strides = [1, 1]} : vector<8x256xf32> to vector<1x256xf32>
    %c23 = arith.constant 23 : index
    %c0_93 = arith.constant 0 : index
    %210 = vector.load %arg13[%c23, %c0_93] : memref<32x256xf32, #tpu.memory_space<vmem>>, vector<1x256xf32>
    tpu.vector_store %arg13[%c23, %c0_93], %209 {strides = array<i32>} : memref<32x256xf32, #tpu.memory_space<vmem>>, vector<1x256xf32>,
    %211 = vector.extract_strided_slice %198 {offsets = [6, 0], sizes = [1, 256], strides = [1, 1]} : vector<8x256xf32> to vector<1x256xf32>
    %c27 = arith.constant 27 : index
    %c0_94 = arith.constant 0 : index
    %212 = vector.load %arg13[%c27, %c0_94] : memref<32x256xf32, #tpu.memory_space<vmem>>, vector<1x256xf32>
    tpu.vector_store %arg13[%c27, %c0_94], %211 {strides = array<i32>} : memref<32x256xf32, #tpu.memory_space<vmem>>, vector<1x256xf32>,
    %213 = vector.extract_strided_slice %198 {offsets = [7, 0], sizes = [1, 256], strides = [1, 1]} : vector<8x256xf32> to vector<1x256xf32>
    %c31 = arith.constant 31 : index
    %c0_95 = arith.constant 0 : index
    %214 = vector.load %arg13[%c31, %c0_95] : memref<32x256xf32, #tpu.memory_space<vmem>>, vector<1x256xf32>
    tpu.vector_store %arg13[%c31, %c0_95], %213 {strides = array<i32>} : memref<32x256xf32, #tpu.memory_space<vmem>>, vector<1x256xf32>,
    %c0_96 = arith.constant 0 : index
    %c0_97 = arith.constant 0 : index
    %215 = vector.load %arg13[%c0_96, %c0_97] : memref<32x256xf32, #tpu.memory_space<vmem>>, vector<8x256xf32>
    %216 = arith.truncf %215 : vector<8x256xf32> to vector<8x256xbf16>
    %cst_98 = arith.constant dense<0.000000e+00> : vector<32x256xf32>
    %217 = tpu.matmul %9, %216, %cst_98 {dimension_numbers = #tpu.dot_dimension_numbers<[1], [0], [0], [1], [0, 0, 1, 1], [], []>} : vector<32x8xbf16>, vector<8x256xbf16>, vector<32x256xf32> -> vector<32x256xf32>
    %218 = vector.broadcast %14 : vector<32x1xf32> to vector<32x256xf32>
    %219 = arith.addf %217, %218 : vector<32x256xf32>
    %c0_99 = arith.constant 0 : index
    %c0_100 = arith.constant 0 : index
    %c0_101 = arith.constant 0 : index
    %220 = vector.load %arg1[%c0_99, %c0_100, %c0_101] : memref<1x128x256xf32, #tpu.memory_space<vmem>>, vector<1x32x256xf32>
    %221 = vector.shape_cast %220 : vector<1x32x256xf32> to vector<32x256xf32>
    %222 = arith.addf %219, %221 : vector<32x256xf32>
    %c0_102 = arith.constant 0 : index
    %c0_103 = arith.constant 0 : index
    %c0_104 = arith.constant 0 : index
    %223 = vector.load %arg12[%c0_102, %c0_103, %c0_104] : memref<1x128x256xf32, #tpu.memory_space<vmem>>, vector<1x32x256xf32>
    %224 = vector.shape_cast %223 : vector<1x32x256xf32> to vector<32x256xf32>
    %225 = vector.shape_cast %222 : vector<32x256xf32> to vector<1x32x256xf32>
    tpu.vector_store %arg12[%c0_102, %c0_103, %c0_104], %225 {strides = array<i32>} : memref<1x128x256xf32, #tpu.memory_space<vmem>>, vector<1x32x256xf32>,
    %c8_105 = arith.constant 8 : index
    %c0_106 = arith.constant 0 : index
    %226 = vector.load %arg13[%c8_105, %c0_106] : memref<32x256xf32, #tpu.memory_space<vmem>>, vector<8x256xf32>
    %227 = arith.truncf %226 : vector<8x256xf32> to vector<8x256xbf16>
    %cst_107 = arith.constant dense<0.000000e+00> : vector<32x256xf32>
    %228 = tpu.matmul %9, %227, %cst_107 {dimension_numbers = #tpu.dot_dimension_numbers<[1], [0], [0], [1], [0, 0, 1, 1], [], []>} : vector<32x8xbf16>, vector<8x256xbf16>, vector<32x256xf32> -> vector<32x256xf32>
    %229 = vector.broadcast %14 : vector<32x1xf32> to vector<32x256xf32>
    %230 = arith.addf %228, %229 : vector<32x256xf32>
    %c0_108 = arith.constant 0 : index
    %c32_109 = arith.constant 32 : index
    %c0_110 = arith.constant 0 : index
    %231 = vector.load %arg1[%c0_108, %c32_109, %c0_110] : memref<1x128x256xf32, #tpu.memory_space<vmem>>, vector<1x32x256xf32>
    %232 = vector.shape_cast %231 : vector<1x32x256xf32> to vector<32x256xf32>
    %233 = arith.addf %230, %232 : vector<32x256xf32>
    %c0_111 = arith.constant 0 : index
    %c32_112 = arith.constant 32 : index
    %c0_113 = arith.constant 0 : index
    %234 = vector.load %arg12[%c0_111, %c32_112, %c0_113] : memref<1x128x256xf32, #tpu.memory_space<vmem>>, vector<1x32x256xf32>
    %235 = vector.shape_cast %234 : vector<1x32x256xf32> to vector<32x256xf32>
    %236 = vector.shape_cast %233 : vector<32x256xf32> to vector<1x32x256xf32>
    tpu.vector_store %arg12[%c0_111, %c32_112, %c0_113], %236 {strides = array<i32>} : memref<1x128x256xf32, #tpu.memory_space<vmem>>, vector<1x32x256xf32>,
    %c16_114 = arith.constant 16 : index
    %c0_115 = arith.constant 0 : index
    %237 = vector.load %arg13[%c16_114, %c0_115] : memref<32x256xf32, #tpu.memory_space<vmem>>, vector<8x256xf32>
    %238 = arith.truncf %237 : vector<8x256xf32> to vector<8x256xbf16>
    %cst_116 = arith.constant dense<0.000000e+00> : vector<32x256xf32>
    %239 = tpu.matmul %9, %238, %cst_116 {dimension_numbers = #tpu.dot_dimension_numbers<[1], [0], [0], [1], [0, 0, 1, 1], [], []>} : vector<32x8xbf16>, vector<8x256xbf16>, vector<32x256xf32> -> vector<32x256xf32>
    %240 = vector.broadcast %14 : vector<32x1xf32> to vector<32x256xf32>
    %241 = arith.addf %239, %240 : vector<32x256xf32>
    %c0_117 = arith.constant 0 : index
    %c64_118 = arith.constant 64 : index
    %c0_119 = arith.constant 0 : index
    %242 = vector.load %arg1[%c0_117, %c64_118, %c0_119] : memref<1x128x256xf32, #tpu.memory_space<vmem>>, vector<1x32x256xf32>
    %243 = vector.shape_cast %242 : vector<1x32x256xf32> to vector<32x256xf32>
    %244 = arith.addf %241, %243 : vector<32x256xf32>
    %c0_120 = arith.constant 0 : index
    %c64_121 = arith.constant 64 : index
    %c0_122 = arith.constant 0 : index
    %245 = vector.load %arg12[%c0_120, %c64_121, %c0_122] : memref<1x128x256xf32, #tpu.memory_space<vmem>>, vector<1x32x256xf32>
    %246 = vector.shape_cast %245 : vector<1x32x256xf32> to vector<32x256xf32>
    %247 = vector.shape_cast %244 : vector<32x256xf32> to vector<1x32x256xf32>
    tpu.vector_store %arg12[%c0_120, %c64_121, %c0_122], %247 {strides = array<i32>} : memref<1x128x256xf32, #tpu.memory_space<vmem>>, vector<1x32x256xf32>,
    %c24_123 = arith.constant 24 : index
    %c0_124 = arith.constant 0 : index
    %248 = vector.load %arg13[%c24_123, %c0_124] : memref<32x256xf32, #tpu.memory_space<vmem>>, vector<8x256xf32>
    %249 = arith.truncf %248 : vector<8x256xf32> to vector<8x256xbf16>
    %cst_125 = arith.constant dense<0.000000e+00> : vector<32x256xf32>
    %250 = tpu.matmul %9, %249, %cst_125 {dimension_numbers = #tpu.dot_dimension_numbers<[1], [0], [0], [1], [0, 0, 1, 1], [], []>} : vector<32x8xbf16>, vector<8x256xbf16>, vector<32x256xf32> -> vector<32x256xf32>
    %251 = vector.broadcast %14 : vector<32x1xf32> to vector<32x256xf32>
    %252 = arith.addf %250, %251 : vector<32x256xf32>
    %c0_126 = arith.constant 0 : index
    %c96_127 = arith.constant 96 : index
    %c0_128 = arith.constant 0 : index
    %253 = vector.load %arg1[%c0_126, %c96_127, %c0_128] : memref<1x128x256xf32, #tpu.memory_space<vmem>>, vector<1x32x256xf32>
    %254 = vector.shape_cast %253 : vector<1x32x256xf32> to vector<32x256xf32>
    %255 = arith.addf %252, %254 : vector<32x256xf32>
    %c0_129 = arith.constant 0 : index
    %c96_130 = arith.constant 96 : index
    %c0_131 = arith.constant 0 : index
    %256 = vector.load %arg12[%c0_129, %c96_130, %c0_131] : memref<1x128x256xf32, #tpu.memory_space<vmem>>, vector<1x32x256xf32>
    %257 = vector.shape_cast %256 : vector<1x32x256xf32> to vector<32x256xf32>
    %258 = vector.shape_cast %255 : vector<32x256xf32> to vector<1x32x256xf32>
    tpu.vector_store %arg12[%c0_129, %c96_130, %c0_131], %258 {strides = array<i32>} : memref<1x128x256xf32, #tpu.memory_space<vmem>>, vector<1x32x256xf32>,
    return
  }
  func.func @transform_0(%arg0: i32) -> (i32, i32, i32) {
    %c0_i32 = arith.constant 0 : i32
    %c0_i32_0 = arith.constant 0 : i32
    %c0_i32_1 = arith.constant 0 : i32
    return %arg0, %c0_i32, %c0_i32_0 : i32, i32, i32
  }
  func.func @transform_1(%arg0: i32) -> (i32, i32) {
    %c0_i32 = arith.constant 0 : i32
    %c0_i32_0 = arith.constant 0 : i32
    %c0_i32_1 = arith.constant 0 : i32
    return %c0_i32, %c0_i32_0 : i32, i32
  }
  func.func @transform_2(%arg0: i32) -> (i32, i32) {
    %c0_i32 = arith.constant 0 : i32
    %c0_i32_0 = arith.constant 0 : i32
    %c0_i32_1 = arith.constant 0 : i32
    return %c0_i32, %c0_i32_0 : i32, i32
  }
  func.func @transform_3(%arg0: i32) -> (i32, i32) {
    %c0_i32 = arith.constant 0 : i32
    %c0_i32_0 = arith.constant 0 : i32
    %c0_i32_1 = arith.constant 0 : i32
    return %c0_i32, %c0_i32_0 : i32, i32
  }
  func.func @transform_4(%arg0: i32) -> (i32, i32) {
    %c0_i32 = arith.constant 0 : i32
    %c0_i32_0 = arith.constant 0 : i32
    %c0_i32_1 = arith.constant 0 : i32
    return %c0_i32, %c0_i32_0 : i32, i32
  }
  func.func @transform_5(%arg0: i32) -> (i32, i32) {
    %c0_i32 = arith.constant 0 : i32
    %c0_i32_0 = arith.constant 0 : i32
    %c0_i32_1 = arith.constant 0 : i32
    return %c0_i32, %c0_i32_0 : i32, i32
  }
  func.func @transform_6(%arg0: i32) -> (i32, i32) {
    %c0_i32 = arith.constant 0 : i32
    %c0_i32_0 = arith.constant 0 : i32
    %c0_i32_1 = arith.constant 0 : i32
    return %c0_i32, %c0_i32_0 : i32, i32
  }
  func.func @transform_7(%arg0: i32) -> (i32, i32) {
    %c0_i32 = arith.constant 0 : i32
    %c0_i32_0 = arith.constant 0 : i32
    %c0_i32_1 = arith.constant 0 : i32
    return %c0_i32, %c0_i32_0 : i32, i32
  }
  func.func @transform_8(%arg0: i32) -> (i32, i32) {
    %c0_i32 = arith.constant 0 : i32
    %c0_i32_0 = arith.constant 0 : i32
    %c0_i32_1 = arith.constant 0 : i32
    return %c0_i32, %c0_i32_0 : i32, i32
  }
  func.func @transform_9(%arg0: i32) -> (i32, i32) {
    %c0_i32 = arith.constant 0 : i32
    %c0_i32_0 = arith.constant 0 : i32
    %c0_i32_1 = arith.constant 0 : i32
    return %c0_i32, %c0_i32_0 : i32, i32
  }
  func.func @transform_10(%arg0: i32) -> (i32, i32) {
    %c0_i32 = arith.constant 0 : i32
    %c0_i32_0 = arith.constant 0 : i32
    %c0_i32_1 = arith.constant 0 : i32
    return %c0_i32, %c0_i32_0 : i32, i32
  }
  func.func @transform_11(%arg0: i32) -> (i32, i32, i32) {
    %c0_i32 = arith.constant 0 : i32
    %c0_i32_0 = arith.constant 0 : i32
    %c0_i32_1 = arith.constant 0 : i32
    return %arg0, %c0_i32, %c0_i32_0 : i32, i32, i32
  }
}

</mosaic_0001>

<bundles_post_ra>
// kernel: class_relation_forward.1
= control target key start
LH: loop header
LB: loop body
LE: loop exit
PB: predicated region body
PF: predicated region fallthrough
CT: control target
= control target key end

     0   :  { %s6280_s17 = smov 0   ;;  %s9049_s0 = inlined_call_operand.vmem [shape: f32[2,128,256], index: 0, kind: input, shape index: {}]   ;;  %s9050_s1 = inlined_call_operand.vmem [shape: f32[8,32], index: 1, kind: input, shape index: {}]   ;;  %s9051_s2 = inlined_call_operand.vmem [shape: f32[8,1], index: 2, kind: input, shape index: {}]   ;;  %s9052_s3 = inlined_call_operand.vmem [shape: f32[8,8], index: 3, kind: input, shape index: {}]   ;;  %s9053_s4 = inlined_call_operand.vmem [shape: f32[8,1], index: 4, kind: input, shape index: {}]   ;;  %s9054_s5 = inlined_call_operand.vmem [shape: f32[8,8], index: 5, kind: input, shape index: {}]   ;;  %s9055_s6 = inlined_call_operand.vmem [shape: f32[8,1], index: 6, kind: input, shape index: {}]   ;;  %s9056_s7 = inlined_call_operand.vmem [shape: f32[8,8], index: 7, kind: input, shape index: {}]   ;;  %s9057_s8 = inlined_call_operand.vmem [shape: f32[8,1], index: 8, kind: input, shape index: {}]   ;;  %s9058_s9 = inlined_call_operand.vmem [shape: f32[32,8], index: 9, kind: input, shape index: {}]   ;;  %s9059_s10 = inlined_call_operand.vmem [shape: f32[32,1], index: 10, kind: input, shape index: {}]   ;;  %s9060_s11 = inlined_call_operand.vmem [shape: f32[2,128,256], index: 11, kind: output, shape index: {}]  }
   0x1 LB: > { %s5309_s18 = sadd.s32 4294967295, %s6216_s17   ;;  %p5313_p0 = scmp.ge.s32.totalorder %s6216_s17, 1  ;;  %s6216_s17 = sphi %s6280_s17, %s21_s17  }
   0x2   : > { %p337_p1 = scmp.lt.s32.totalorder %s6216_s17, 3 }
   0x4   : > { %p338_p2 = pnand %p5313_p0, %p337_p1 }
   0x6   : > { %341 = sbr.rel (%p338_p2) target bundleno = 4962 (0x1362), region = 64 }
   0xd   : > { %p377_p3 = scmp.lt.s32.totalorder %s5309_s18, 1  ;;  %v402_v0 = vld [vmem:[%s9051_s2] sm:$0xff]  ;;  %v9061_v1 = vmov 0   ;;  %vm427_vm0 = vcmask 261120   ;;  %vm485_vm1 = vcmask 1043456   ;;  %vm481_vm2 = vcmask 64512  }
   0xe   : > { %463 = vmatprep.mubr.bf16.mxu0 %v9061_v1  ;;  %5440 = vset.pattern.permute.xlu0 %v9061_v1  ;;  %v403_v2 = vld [vmem:[%s9053_s4] sm:$0xff] }
   0xf   : > { %s9540_s18 = smov (!%p377_p3, %s5309_s18), 1  ;;  %424 = vperm.xlu0 %5440, %v402_v0   ;;  %524 = vmatprep.mubr.bf16.mxu1 %v9061_v1  ;;  %v388_v15 = vld [vmem:[%s9050_s1] sm:$0xff] }
  0x10   : > { %5441 = vset.pattern.permute.xlu1 %v9061_v1  ;;  %s5428_s23 = sshll.u32 %s9540_s18, 8  ;;  %v6319_v16 = vpack.c.bf16 %v388_v15, %v388_v15  ;;  %v404_v17 = vld [vmem:[%s9055_s6] sm:$0xff] }
  0x11   : > { %s6306_s26 = scalar_lea.vmem %s9049_s0, %s5428_s23  ;;  %537 = vperm.xlu1 %5441, %v404_v17   ;;  %v390_v28 = vld [vmem:[%s9052_s3] sm:$0xff]  ;;  %s8947_s27 = scalar_lea.vmem %s9060_s11, %s5428_s23 }
  0x12   : > { %v411_v3 = vld [vmem:[%s6306_s26 + $0x8] sm:$0xff]  ;;  %v413_v4 = vld [vmem:[%s6306_s26 + $0x18] sm:$0xff]  ;;  %v410_v5 = vld [vmem:[%s6306_s26] sm:$0xff]  ;;  %9221 = vst [vmem:[#allocation3_spill] sm:$0xff] %v6319_v16  ;;  %v6337_v31 = vpack.c.bf16 %v390_v28, %v390_v28 }
  0x13   : > { %478 = vperm.xlu0 %5440, %v403_v2   ;;  %v419_v6 = vpack.c.bf16 %v413_v4, %v411_v3  ;;  %v412_v7 = vld [vmem:[%s6306_s26 + $0x10] sm:$0xff]  ;;  %v415_v8 = vld [vmem:[%s6306_s26 + $0x28] sm:$0xff]  ;;  %v417_v9 = vld [vmem:[%s6306_s26 + $0x38] sm:$0xff] }
  0x14   : > { %v418_v10 = vpack.c.bf16 %v412_v7, %v410_v5  ;;  %v421_v11 = vpack.c.bf16 %v417_v9, %v415_v8  ;;  %v414_v12 = vld [vmem:[%s6306_s26 + $0x20] sm:$0xff]  ;;  %v416_v13 = vld [vmem:[%s6306_s26 + $0x30] sm:$0xff]  ;;  %9223 = vst [vmem:[#allocation5_spill] sm:$0xff] %v6337_v31  ;;  %v1557_v53 = vld [vmem:[%s6306_s26 + $0x48] sm:$0xff] }
  0x15   : > { %431 = vmatprep.subr.bf16.mxu0 %v419_v6  ;;  %v420_v14 = vpack.c.bf16 %v416_v13, %v414_v12  ;;  %v392_v32 = vld [vmem:[%s9054_s5] sm:$0xff]  ;;  %v1559_v54 = vld [vmem:[%s6306_s26 + $0x58] sm:$0xff]  ;;  %v1558_v57 = vld [vmem:[%s6306_s26 + $0x50] sm:$0xff] }
  0x16   : > { %432 = vmatpush1.bf16.msra.mxu0 %v418_v10  ;;  %v6346_v33 = vpack.c.bf16 %v392_v32, %v392_v32  ;;  %v1565_v55 = vpack.c.bf16 %v1559_v54, %v1557_v53  ;;  %v1556_v56 = vld [vmem:[%s6306_s26 + $0x40] sm:$0xff]  ;;  %v1561_v58 = vld [vmem:[%s6306_s26 + $0x68] sm:$0xff]  ;;  %v1563_v59 = vld [vmem:[%s6306_s26 + $0x78] sm:$0xff] }
  0x17   : > { %433 = vmatprep.subr.bf16.mxu0 %v421_v11  ;;  %v1564_v60 = vpack.c.bf16 %v1558_v57, %v1556_v56  ;;  %v1567_v61 = vpack.c.bf16 %v1563_v59, %v1561_v58  ;;  %v1560_v62 = vld [vmem:[%s6306_s26 + $0x60] sm:$0xff]  ;;  %v1562_v63 = vld [vmem:[%s6306_s26 + $0x70] sm:$0xff] }
  0x18   : > { %9224 = vst [vmem:[#allocation6_spill] sm:$0xff] %v6346_v33  ;;  %v1566_v2 = vpack.c.bf16 %v1562_v63, %v1560_v62 }
  0x1a   : > { %434 = vmatpush1.bf16.msra.mxu0 %v420_v14 }
  0x1d   : > { %5318 = vmatmul.mubr.msk.bf16.vlgmr.msra.gmra.mrb[0].mxu0 %vm427_vm0, %v6319_v16 }
  0x1e   : > { %626 = vmatprep.mubr.bf16.mxu0 %v9061_v1 }
  0x8e   : > { %v6327_v18 = vpop.permute.xlu0 %424 }
  0x8f   : > { %9222 = vst [vmem:[#allocation4_spill] sm:$0xff] %v6327_v18 }
  0x90   : > { %v6355_v43 = vpop.permute.xlu1 %537 }
  0x91   : > { %9226 = vst [vmem:[#allocation8_spill] sm:$0xff] %v6355_v43 }
  0x92   : > { %v6351_v34 = vpop.permute.xlu0 %478 }
  0x93   : > { %9225 = vst [vmem:[#allocation7_spill] sm:$0xff] %v6351_v34 }
  0xf0   : > { %v465_v19 = vpop.f32.mrb[0].mxu0 }
  0xf1   : > { %v466_v20 = vadd.f32 %v465_v19, %v6327_v18  ;;  %v467_v21 = vpop.f32.mrb[1].mxu0 }
  0xf2   : > { %v468_v22 = vadd.f32 %v467_v21, %v6327_v18  ;;  %v469_v23 = vpop.f32.mrb[2].mxu0 }
  0xf3   : > { %v472_v24 = vmax.f32 %v466_v20, 0.0  ;;  %v470_v25 = vpop.f32.mrb[3].mxu0 }
  0xf4   : > { %v473_v26 = vmax.f32 %v468_v22, 0.0 }
  0xf5   : > { %v474_v27 = vpack.c.bf16 %v472_v24, %v472_v24 }
  0xf6   : > { %v475_v29 = vpack.c.bf16 %v473_v26, %v473_v26 }
  0xf7   : > { %v487_v30 = vsel %vm485_vm1, %v474_v27, 0 }
  0xf8   : > { %5319 = vmatprep.subr.msk.bf16.mxu1 %vm485_vm1, %v475_v29  ;;  %5323 = vmatprep.subr.msk.bf16.mxu0 %vm485_vm1, %v475_v29 }
  0xf9   : > { %493 = vmatpush1.bf16.msra.mxu1 %v487_v30  ;;  %595 = vmatpush1.bf16.msra.mxu0 %v487_v30 }
  0xfa   : > { %5321 = vmatprep.subr.msk.bf16.mxu1 %vm485_vm1, %v475_v29 }
  0xfc   : > { %5320 = vmatmul.mubr.msk.bf16.vlgmr.msra.gmra.mrb[0].mxu1 %vm481_vm2, %v6337_v31 }
  0xfd   : > { %544 = vmatpush1.bf16.msra.mxu1 %v487_v30  ;;  %575 = vmatprep.mubr.bf16.mxu1 %v9061_v1 }
 0x104   : > { %5322 = vmatmul.mubr.msk.bf16.vlgmr.msra.gmra.mrb[4].mxu1 %vm481_vm2, %v6346_v33 }
 0x105   : > { %755 = vmatprep.mubr.bf16.mxu1 %v9061_v1 }
 0x1cf   : > { %v526_v35 = vpop.f32.mrb[0].mxu1 }
 0x1d0   : > { %v527_v36 = vadd.f32 %v526_v35, %v6351_v34  ;;  %v528_v37 = vpop.f32.mrb[1].mxu1 }
 0x1d1   : > { %v529_v38 = vadd.f32 %v528_v37, %v6351_v34  ;;  %v530_v39 = vpop.f32.mrb[2].mxu1 }
 0x1d2   : > { %v531_v40 = vpop.f32.mrb[3].mxu1  ;;  %v533_v41 = vpack.c.bf16 %v527_v36, %v527_v36 }
 0x1d3   : > { %v534_v42 = vpack.c.bf16 %v529_v38, %v529_v38 }
 0x1d4   : > { %637 = vxpose.xlu1.c.b16.start.end [1/1] (short) %v533_v41, 128 }
 0x1d5   : > { %653 = vxpose.xlu0.c.b16.start.end [1/1] (short) %v534_v42, 128 }
 0x1d7   : > { %v577_v44 = vpop.f32.mrb[4].mxu1 }
 0x1d8   : > { %v579_v45 = vpop.f32.mrb[5].mxu1  ;;  %v578_v46 = vadd.f32 %v577_v44, %v6355_v43 }
 0x1d9   : > { %v581_v47 = vpop.f32.mrb[6].mxu1  ;;  %v580_v48 = vadd.f32 %v579_v45, %v6355_v43 }
 0x1da   : > { %v582_v49 = vpop.f32.mrb[7].mxu1  ;;  %v584_v50 = vpack.c.bf16 %v578_v46, %v578_v46 }
 0x1db   : > { %v585_v51 = vpack.c.bf16 %v580_v48, %v580_v48 }
 0x1dc   : > { %v718_v52 = vsel %vm485_vm1, %v584_v50, 0 }
 0x1dd   : > { %5325 = vmatprep.subr.msk.bf16.mxu1 %vm485_vm1, %v585_v51 }
 0x1de   : > { %724 = vmatpush1.bf16.msra.mxu1 %v718_v52 }
 0x1df   : > { %1568 = vmatprep.subr.bf16.mxu1 %v1565_v55 }
 0x23a   : > { %v645_v0 = vpop.trf.xlu1 }
 0x23b   : > { %5326 = vmatmul.mubr.msk.bf16.vlgmr.msra.gmra.mrb[8].mxu1 %vm481_vm2, %v645_v0  ;;  %v661_v10 = vpop.trf.xlu0 }
 0x23c   : > { %765 = vmatprep.mubr.bf16.mxu1 %v9061_v1  ;;  %1569 = vmatpush1.bf16.msra.mxu1 %v1564_v60 }
 0x23d   : > { %1570 = vmatprep.subr.bf16.mxu1 %v1567_v61 }
 0x23e   : > { %v646_v3 = vpop.trf.xlu1 }
 0x23f   : > { %v662_v11 = vpop.trf.xlu0 }
 0x240   : > { %1571 = vmatpush1.bf16.msra.mxu1 %v1566_v2 }
 0x242   : > { %v647_v4 = vpop.trf.xlu1 }
 0x243   : > { %5327 = vmatmul.mubr.msk.bf16.gmra.mrb[12].mxu1 %vm481_vm2, %v646_v3  ;;  %v663_v12 = vpop.trf.xlu0 }
 0x244   : > { %775 = vmatprep.mubr.bf16.mxu1 %v9061_v1 }
 0x246   : > { %v648_v5 = vpop.trf.xlu1 }
 0x247   : > { %v664_v13 = vpop.trf.xlu0 }
 0x24a   : > { %v649_v6 = vpop.trf.xlu1 }
 0x24b   : > { %5328 = vmatmul.mubr.msk.bf16.gmra.mrb[16].mxu1 %vm481_vm2, %v647_v4  ;;  %v665_v14 = vpop.trf.xlu0 }
 0x24c   : > { %785 = vmatprep.mubr.bf16.mxu1 %v9061_v1 }
 0x24e   : > { %v650_v7 = vpop.trf.xlu1 }
 0x24f   : > { %v666_v15 = vpop.trf.xlu0 }
 0x252   : > { %v651_v8 = vpop.trf.xlu1 }
 0x253   : > { %5329 = vmatmul.mubr.msk.bf16.gmra.mrb[20].mxu1 %vm481_vm2, %v648_v5  ;;  %v667_v17 = vpop.trf.xlu0 }
 0x254   : > { %795 = vmatprep.mubr.bf16.mxu1 %v9061_v1 }
 0x256   : > { %v652_v9 = vpop.trf.xlu1 }
 0x257   : > { %v668_v19 = vpop.trf.xlu0 }
 0x25b   : > { %5330 = vmatmul.mubr.msk.bf16.gmra.mrb[24].mxu1 %vm481_vm2, %v649_v6 }
 0x25c   : > { %805 = vmatprep.mubr.bf16.mxu1 %v9061_v1 }
 0x263   : > { %5331 = vmatmul.mubr.msk.bf16.gmra.mrb[28].mxu1 %vm481_vm2, %v650_v7 }
 0x264   : > { %815 = vmatprep.mubr.bf16.mxu1 %v9061_v1 }
 0x26b   : > { %5332 = vmatmul.mubr.msk.bf16.gmra.mrb[32].mxu1 %vm481_vm2, %v651_v8 }
 0x26c   : > { %825 = vmatprep.mubr.bf16.mxu1 %v9061_v1 }
 0x273   : > { %5333 = vmatmul.mubr.msk.bf16.gmra.mrb[36].mxu1 %vm481_vm2, %v652_v9 }
 0x274   : > { %835 = vmatprep.mubr.bf16.mxu1 %v9061_v1 }
 0x27b   : > { %5334 = vmatmul.mubr.msk.bf16.gmra.mrb[40].mxu1 %vm481_vm2, %v661_v10 }
 0x27c   : > { %845 = vmatprep.mubr.bf16.mxu1 %v9061_v1 }
 0x283   : > { %5335 = vmatmul.mubr.msk.bf16.gmra.mrb[44].mxu1 %vm481_vm2, %v662_v11 }
 0x284   : > { %855 = vmatprep.mubr.bf16.mxu1 %v9061_v1 }
 0x28b   : > { %5336 = vmatmul.mubr.msk.bf16.gmra.mrb[48].mxu1 %vm481_vm2, %v663_v12 }
 0x28c   : > { %865 = vmatprep.mubr.bf16.mxu1 %v9061_v1 }
 0x293   : > { %5337 = vmatmul.mubr.msk.bf16.gmra.mrb[52].mxu1 %vm481_vm2, %v664_v13 }
 0x294   : > { %875 = vmatprep.mubr.bf16.mxu1 %v9061_v1 }
 0x29b   : > { %5338 = vmatmul.mubr.msk.bf16.gmra.mrb[56].mxu1 %vm481_vm2, %v665_v14 }
 0x29c   : > { %885 = vmatprep.mubr.bf16.mxu1 %v9061_v1 }
 0x2a3   : > { %5339 = vmatmul.mubr.msk.bf16.gmra.mrb[60].mxu1 %vm481_vm2, %v666_v15 }
 0x2a4   : > { %895 = vmatprep.mubr.bf16.mxu1 %v9061_v1 }
 0x2ab   : > { %5340 = vmatmul.mubr.msk.bf16.gmra.mrb[64].mxu1 %vm481_vm2, %v667_v17 }
 0x2ac   : > { %905 = vmatprep.mubr.bf16.mxu1 %v9061_v1 }
 0x2b3   : > { %5341 = vmatmul.mubr.msk.bf16.gmra.mrb[68].mxu1 %vm481_vm2, %v668_v19 }
 0x2b4   : > { %1600 = vmatprep.mubr.bf16.mxu1 %v9061_v1 }
 0x2bb   : > { %5342 = vmatmul.mubr.msk.bf16.vlgmr.msra.gmra.mrb[72].mxu1 %vm427_vm0, %v6319_v16 }
 0x2bc   : > { %1694 = vmatprep.mubr.bf16.mxu1 %v9061_v1 }
 0x30e   : > { %v6404_v20 = vpop.f32.mrb[8].mxu1 }
 0x30f   : > { %v6406_v21 = vpop.f32.mrb[9].mxu1 }
 0x310   : > { %v6408_v22 = vpop.f32.mrb[10].mxu1  ;;  %v916_v23 = vmax.f32 %v6404_v20, %v6406_v21 }
 0x311   : > { %v6412_v24 = vpop.f32.mrb[11].mxu1 }
 0x312   : > { %917 = vmax.xlane.f32.xlu0 %v916_v23  ;;  %v919_v25 = vmax.f32 %v6408_v22, %v6412_v24 }
 0x314   : > { %920 = vmax.xlane.f32.xlu1 %v919_v25 }
 0x316   : > { %v6416_v26 = vpop.f32.mrb[12].mxu1 }
 0x317   : > { %v6418_v27 = vpop.f32.mrb[13].mxu1 }
 0x318   : > { %v6420_v28 = vpop.f32.mrb[14].mxu1  ;;  %v922_v29 = vmax.f32 %v6416_v26, %v6418_v27 }
 0x319   : > { %v6424_v30 = vpop.f32.mrb[15].mxu1 }
 0x31a   : > { %923 = vmax.xlane.f32.xlu0 %v922_v29  ;;  %v925_v32 = vmax.f32 %v6420_v28, %v6424_v30 }
 0x31c   : > { %926 = vmax.xlane.f32.xlu1 %v925_v32 }
 0x31e   : > { %v6428_v35 = vpop.f32.mrb[16].mxu1 }
 0x31f   : > { %v6430_v36 = vpop.f32.mrb[17].mxu1 }
 0x320   : > { %v6432_v37 = vpop.f32.mrb[18].mxu1  ;;  %v928_v38 = vmax.f32 %v6428_v35, %v6430_v36 }
 0x321   : > { %v6436_v39 = vpop.f32.mrb[19].mxu1 }
 0x322   : > { %929 = vmax.xlane.f32.xlu0 %v928_v38  ;;  %v931_v40 = vmax.f32 %v6432_v37, %v6436_v39 }
 0x324   : > { %932 = vmax.xlane.f32.xlu1 %v931_v40 }
 0x326   : > { %v6440_v41 = vpop.f32.mrb[20].mxu1 }
 0x327   : > { %v6442_v42 = vpop.f32.mrb[21].mxu1 }
 0x328   : > { %v6444_v44 = vpop.f32.mrb[22].mxu1  ;;  %v934_v45 = vmax.f32 %v6440_v41, %v6442_v42 }
 0x329   : > { %v6448_v46 = vpop.f32.mrb[23].mxu1 }
 0x32a   : > { %935 = vmax.xlane.f32.xlu0 %v934_v45  ;;  %v937_v47 = vmax.f32 %v6444_v44, %v6448_v46 }
 0x32c   : > { %938 = vmax.xlane.f32.xlu1 %v937_v47 }
 0x32e   : > { %v6452_v48 = vpop.f32.mrb[24].mxu1 }
 0x32f   : > { %v6454_v49 = vpop.f32.mrb[25].mxu1 }
 0x330   : > { %v6456_v50 = vpop.f32.mrb[26].mxu1  ;;  %v940_v51 = vmax.f32 %v6452_v48, %v6454_v49 }
 0x331   : > { %v6460_v52 = vpop.f32.mrb[27].mxu1 }
 0x332   : > { %941 = vmax.xlane.f32.xlu0 %v940_v51  ;;  %v943_v53 = vmax.f32 %v6456_v50, %v6460_v52 }
 0x334   : > { %944 = vmax.xlane.f32.xlu1 %v943_v53 }
 0x336   : > { %v6464_v54 = vpop.f32.mrb[28].mxu1 }
 0x337   : > { %v6466_v55 = vpop.f32.mrb[29].mxu1 }
 0x338   : > { %v6468_v56 = vpop.f32.mrb[30].mxu1  ;;  %v946_v57 = vmax.f32 %v6464_v54, %v6466_v55 }
 0x339   : > { %v6472_v58 = vpop.f32.mrb[31].mxu1 }
 0x33a   : > { %947 = vmax.xlane.f32.xlu0 %v946_v57  ;;  %v949_v59 = vmax.f32 %v6468_v56, %v6472_v58 }
 0x33c   : > { %950 = vmax.xlane.f32.xlu1 %v949_v59 }
 0x33e   : > { %v6476_v60 = vpop.f32.mrb[32].mxu1 }
 0x33f   : > { %v6478_v61 = vpop.f32.mrb[33].mxu1 }
 0x340   : > { %v6480_v62 = vpop.f32.mrb[34].mxu1  ;;  %v952_v63 = vmax.f32 %v6476_v60, %v6478_v61 }
 0x341   : > { %v6484_v0 = vpop.f32.mrb[35].mxu1 }
 0x342   : > { %953 = vmax.xlane.f32.xlu0 %v952_v63  ;;  %v955_v2 = vmax.f32 %v6480_v62, %v6484_v0 }
 0x344   : > { %956 = vmax.xlane.f32.xlu1 %v955_v2 }
 0x346   : > { %v6488_v3 = vpop.f32.mrb[36].mxu1 }
 0x347   : > { %v6490_v4 = vpop.f32.mrb[37].mxu1 }
 0x348   : > { %v6492_v5 = vpop.f32.mrb[38].mxu1  ;;  %v958_v6 = vmax.f32 %v6488_v3, %v6490_v4 }
 0x349   : > { %v6496_v7 = vpop.f32.mrb[39].mxu1 }
 0x34a   : > { %959 = vmax.xlane.f32.xlu0 %v958_v6  ;;  %v961_v8 = vmax.f32 %v6492_v5, %v6496_v7 }
 0x34c   : > { %962 = vmax.xlane.f32.xlu1 %v961_v8 }
 0x34e   : > { %v6500_v9 = vpop.f32.mrb[40].mxu1 }
 0x34f   : > { %v6502_v10 = vpop.f32.mrb[41].mxu1 }
 0x350   : > { %9227 = vst [vmem:[#allocation9_spill] sm:$0xff] %v6502_v10  ;;  %v6504_v11 = vpop.f32.mrb[42].mxu1  ;;  %v964_v12 = vmax.f32 %v6500_v9, %v6502_v10 }
 0x351   : > { %9228 = vst [vmem:[#allocation10_spill] sm:$0xff] %v6504_v11  ;;  %v6508_v13 = vpop.f32.mrb[43].mxu1 }
 0x352   : > { %9229 = vst [vmem:[#allocation11_spill] sm:$0xff] %v6508_v13  ;;  %965 = vmax.xlane.f32.xlu0 %v964_v12  ;;  %v967_v14 = vmax.f32 %v6504_v11, %v6508_v13 }
 0x354   : > { %968 = vmax.xlane.f32.xlu1 %v967_v14 }
 0x356   : > { %v6512_v15 = vpop.f32.mrb[44].mxu1 }
 0x357   : > { %9230 = vst [vmem:[#allocation12_spill] sm:$0xff] %v6512_v15  ;;  %v6514_v17 = vpop.f32.mrb[45].mxu1 }
 0x358   : > { %9231 = vst [vmem:[#allocation13_spill] sm:$0xff] %v6514_v17  ;;  %v6516_v19 = vpop.f32.mrb[46].mxu1  ;;  %v970_v23 = vmax.f32 %v6512_v15, %v6514_v17 }
 0x359   : > { %9232 = vst [vmem:[#allocation14_spill] sm:$0xff] %v6516_v19  ;;  %v6520_v25 = vpop.f32.mrb[47].mxu1 }
 0x35a   : > { %9233 = vst [vmem:[#allocation15_spill] sm:$0xff] %v6520_v25  ;;  %971 = vmax.xlane.f32.xlu0 %v970_v23  ;;  %v973_v29 = vmax.f32 %v6516_v19, %v6520_v25 }
 0x35c   : > { %974 = vmax.xlane.f32.xlu1 %v973_v29 }
 0x35e   : > { %v6524_v32 = vpop.f32.mrb[48].mxu1 }
 0x35f   : > { %9234 = vst [vmem:[#allocation16_spill] sm:$0xff] %v6524_v32  ;;  %v6526_v38 = vpop.f32.mrb[49].mxu1 }
 0x360   : > { %9235 = vst [vmem:[#allocation17_spill] sm:$0xff] %v6526_v38  ;;  %v6528_v40 = vpop.f32.mrb[50].mxu1  ;;  %v976_v45 = vmax.f32 %v6524_v32, %v6526_v38 }
 0x361   : > { %9236 = vst [vmem:[#allocation18_spill] sm:$0xff] %v6528_v40  ;;  %v6532_v47 = vpop.f32.mrb[51].mxu1 }
 0x362   : > { %9237 = vst [vmem:[#allocation19_spill] sm:$0xff] %v6532_v47  ;;  %977 = vmax.xlane.f32.xlu0 %v976_v45  ;;  %v979_v51 = vmax.f32 %v6528_v40, %v6532_v47  ;;  %v394_v45 = vld [vmem:[%s9056_s7] sm:$0xff] }
 0x363   : > { %v6599_v38 = vpack.c.bf16 %v394_v45, %v394_v45 }
 0x364   : > { %980 = vmax.xlane.f32.xlu1 %v979_v51 }
 0x365   : > { %9242 = vst [vmem:[#allocation24_spill] sm:$0xff] %v6599_v38  ;;  %5324 = vmatmul.mubr.msk.bf16.vlgmr.msra.gmra.mrb[4].mxu0 %vm481_vm2, %v6599_v38 }
 0x366   : > { %v6536_v53 = vpop.f32.mrb[52].mxu1 }
 0x367   : > { %9238 = vst [vmem:[#allocation20_spill] sm:$0xff] %v6536_v53  ;;  %v6538_v57 = vpop.f32.mrb[53].mxu1 }
 0x368   : > { %9239 = vst [vmem:[#allocation21_spill] sm:$0xff] %v6538_v57  ;;  %v6540_v59 = vpop.f32.mrb[54].mxu1  ;;  %v982_v63 = vmax.f32 %v6536_v53, %v6538_v57 }
 0x369   : > { %9240 = vst [vmem:[#allocation22_spill] sm:$0xff] %v6540_v59  ;;  %v6544_v2 = vpop.f32.mrb[55].mxu1 }
 0x36a   : > { %9241 = vst [vmem:[#allocation23_spill] sm:$0xff] %v6544_v2  ;;  %983 = vmax.xlane.f32.xlu0 %v982_v63  ;;  %v985_v6 = vmax.f32 %v6540_v59, %v6544_v2 }
 0x36c   : > { %986 = vmax.xlane.f32.xlu1 %v985_v6 }
 0x36e   : > { %v6548_v8 = vpop.f32.mrb[56].mxu1 }
 0x36f   : > { %v6550_v12 = vpop.f32.mrb[57].mxu1 }
 0x370   : > { %v6552_v14 = vpop.f32.mrb[58].mxu1 }
 0x371   : > { %v6556_v29 = vpop.f32.mrb[59].mxu1 }
 0x376   : > { %v6560_v51 = vpop.f32.mrb[60].mxu1 }
 0x377   : > { %v6562_v63 = vpop.f32.mrb[61].mxu1 }
 0x378   : > { %v6564_v1 = vpop.f32.mrb[62].mxu1 }
 0x379   : > { %v6568_v16 = vpop.f32.mrb[63].mxu1 }
 0x37e   : > { %v6572_v23 = vpop.f32.mrb[64].mxu1 }
 0x37f   : > { %v6574_v31 = vpop.f32.mrb[65].mxu1 }
 0x380   : > { %v6576_v43 = vpop.f32.mrb[66].mxu1 }
 0x381   : > { %v6580_v2 = vpop.f32.mrb[67].mxu1 }
 0x386   : > { %v6584_v6 = vpop.f32.mrb[68].mxu1 }
 0x387   : > { %v6586_v57 = vpop.f32.mrb[69].mxu1 }
 0x388   : > { %v6588_v53 = vpop.f32.mrb[70].mxu1 }
 0x389   : > { %v6592_v47 = vpop.f32.mrb[71].mxu1 }
 0x38e   : > { %v1602_v59 = vpop.f32.mrb[72].mxu1 }
 0x38f   : > { %v1603_v32 = vadd.f32 %v1602_v59, %v6327_v18  ;;  %v1604_v25 = vpop.f32.mrb[73].mxu1  ;;  %v9245_v59 = vmov 0  }
 0x390   : > { %v1605_v34 = vadd.f32 %v1604_v25, %v6327_v18  ;;  %v1606_v19 = vpop.f32.mrb[74].mxu1 }
 0x391   : > { %v1609_v17 = vmax.f32 %v1603_v32, 0.0  ;;  %v1607_v15 = vpop.f32.mrb[75].mxu1 }
 0x392   : > { %v1610_v13 = vmax.f32 %v1605_v34, 0.0 }
 0x393   : > { %v1611_v40 = vpack.c.bf16 %v1609_v17, %v1609_v17 }
 0x394   : > { %v6605_v11 = vpack.c.bf16 %v1610_v13, %v1610_v13 }
 0x395   : > { %v6608_v10 = vsel %vm485_vm1, %v1611_v40, 0 }
 0x396   : > { %9243 = vst [vmem:[#allocation25_spill] sm:$0xff] %v6605_v11  ;;  %9244 = vst [vmem:[#allocation26_spill] sm:$0xff] %v6608_v10  ;;  %5345 = vmatprep.subr.msk.bf16.mxu1 %vm485_vm1, %v6605_v11 }
 0x397   : > { %1663 = vmatpush1.bf16.msra.mxu1 %v6608_v10 }
 0x39a   : > { %5346 = vmatmul.mubr.msk.bf16.vlgmr.msra.gmra.mrb[76].mxu1 %vm481_vm2, %v6346_v33 }
 0x39b   : > { %1866 = vmatprep.mubr.bf16.mxu1 %v9245_v59 }
 0x39f   : > { %v918_v19 = vpop.xlane.xlu0 %917 }
 0x3a0   : > { %v1012_v15 = vsub.f32 %v6404_v20, %v918_v19  ;;  %v1013_v34 = vsub.f32 %v6406_v21, %v918_v19 }
 0x3a1   : > { %v921_v13 = vpop.xlane.xlu1 %920 }
 0x3a2   : > { %v1076_v17 = vmul.f32 1.442695, %v1012_v15  ;;  %v1078_v25 = vmul.f32 1.442695, %v1013_v34  ;;  %v1014_v32 = vsub.f32 %v6408_v22, %v921_v13  ;;  %v1015_v40 = vsub.f32 %v6412_v24, %v921_v13 }
 0x3a4   : > { %5442 = vpow2.f32 %v1076_v17  ;;  %v1080_v45 = vmul.f32 1.442695, %v1014_v32  ;;  %v1082_v18 = vmul.f32 1.442695, %v1015_v40 }
 0x3a5   : > { %5444 = vpow2.f32 %v1078_v25 }
 0x3a6   : > { %5446 = vpow2.f32 %v1080_v45 }
 0x3a7   : > { %5448 = vpow2.f32 %v1082_v18  ;;  %v924_v33 = vpop.xlane.xlu0 %923 }
 0x3a8   : > { %v1016_v38 = vsub.f32 %v6416_v26, %v924_v33  ;;  %v1017_v20 = vsub.f32 %v6418_v27, %v924_v33 }
 0x3a9   : > { %v927_v59 = vpop.xlane.xlu1 %926 }
 0x3aa   : > { %v1084_v21 = vmul.f32 1.442695, %v1016_v38  ;;  %v1086_v19 = vmul.f32 1.442695, %v1017_v20  ;;  %v1018_v15 = vsub.f32 %v6420_v28, %v927_v59  ;;  %v1019_v22 = vsub.f32 %v6424_v30, %v927_v59 }
 0x3ac   : > { %5450 = vpow2.f32 %v1084_v21  ;;  %v1088_v24 = vmul.f32 1.442695, %v1018_v15  ;;  %v1090_v34 = vmul.f32 1.442695, %v1019_v22  ;;  %v9246_v21 = vmax.f32 %v6548_v8, %v6550_v12 }
 0x3ad   : > { %5452 = vpow2.f32 %v1086_v19 }
 0x3ae   : > { %v6624_v13 = vpop.eup %5442  ;;  %5454 = vpow2.f32 %v1088_v24 }
 0x3af   : > { %v6626_v18 = vpop.eup %5444  ;;  %5456 = vpow2.f32 %v1090_v34  ;;  %v930_v26 = vpop.xlane.xlu0 %929 }
 0x3b0   : > { %v6628_v17 = vpop.eup %5446  ;;  %v1020_v33 = vsub.f32 %v6428_v35, %v930_v26  ;;  %v1021_v27 = vsub.f32 %v6430_v36, %v930_v26  ;;  %v1204_v28 = vadd.f32 %v6626_v18, %v6624_v13  ;;  %v9247_v26 = vmax.f32 %v6552_v14, %v6556_v29 }
 0x3b1   : > { %v6634_v30 = vpop.eup %5448  ;;  %v933_v38 = vpop.xlane.xlu1 %932 }
 0x3b2   : > { %v1092_v59 = vmul.f32 1.442695, %v1020_v33  ;;  %v1094_v25 = vmul.f32 1.442695, %v1021_v27  ;;  %1205 = vadd.xlane.f32.xlu0 %v1204_v28  ;;  %v1022_v32 = vsub.f32 %v6432_v37, %v933_v38  ;;  %v1023_v40 = vsub.f32 %v6436_v39, %v933_v38 }
 0x3b3   : > { %v1207_v45 = vadd.f32 %v6634_v30, %v6628_v17 }
 0x3b4   : > { %5458 = vpow2.f32 %v1092_v59  ;;  %v1096_v35 = vmul.f32 1.442695, %v1022_v32  ;;  %v1098_v20 = vmul.f32 1.442695, %v1023_v40  ;;  %v9248_v40 = vmax.f32 %v6560_v51, %v6562_v63 }
 0x3b5   : > { %5460 = vpow2.f32 %v1094_v25  ;;  %1208 = vadd.xlane.f32.xlu1 %v1207_v45 }
 0x3b6   : > { %v6640_v36 = vpop.eup %5450  ;;  %5462 = vpow2.f32 %v1096_v35  ;;  %989 = vmax.xlane.f32.xlu0 %v9246_v21 }
 0x3b7   : > { %v6645_v19 = vpop.eup %5452  ;;  %5464 = vpow2.f32 %v1098_v20  ;;  %v936_v37 = vpop.xlane.xlu0 %935 }
 0x3b8   : > { %v6647_v39 = vpop.eup %5454  ;;  %v1024_v15 = vsub.f32 %v6440_v41, %v936_v37  ;;  %v1025_v22 = vsub.f32 %v6442_v42, %v936_v37  ;;  %v1210_v24 = vadd.f32 %v6645_v19, %v6640_v36 }
 0x3b9   : > { %v6653_v34 = vpop.eup %5456  ;;  %992 = vmax.xlane.f32.xlu1 %v9247_v26  ;;  %v939_v33 = vpop.xlane.xlu1 %938 }
 0x3ba   : > { %v1100_v27 = vmul.f32 1.442695, %v1024_v15  ;;  %v1102_v28 = vmul.f32 1.442695, %v1025_v22  ;;  %1211 = vadd.xlane.f32.xlu0 %v1210_v24  ;;  %v1026_v38 = vsub.f32 %v6444_v44, %v939_v33  ;;  %v1027_v59 = vsub.f32 %v6448_v46, %v939_v33 }
 0x3bb   : > { %v1213_v41 = vadd.f32 %v6653_v34, %v6647_v39  ;;  %v9249_v15 = vmax.f32 %v6564_v1, %v6568_v16 }
 0x3bc   : > { %5466 = vpow2.f32 %v1100_v27  ;;  %v1104_v42 = vmul.f32 1.442695, %v1026_v38  ;;  %v1106_v25 = vmul.f32 1.442695, %v1027_v59  ;;  %v9250_v59 = vmax.f32 %v6572_v23, %v6574_v31 }
 0x3bd   : > { %5468 = vpow2.f32 %v1102_v28  ;;  %1214 = vadd.xlane.f32.xlu1 %v1213_v41 }
 0x3be   : > { %v6662_v32 = vpop.eup %5458  ;;  %5470 = vpow2.f32 %v1104_v42  ;;  %995 = vmax.xlane.f32.xlu0 %v9248_v40 }
 0x3bf   : > { %v6667_v45 = vpop.eup %5460  ;;  %5472 = vpow2.f32 %v1106_v25  ;;  %v942_v44 = vpop.xlane.xlu0 %941 }
 0x3c0   : > { %v6669_v46 = vpop.eup %5462  ;;  %v1028_v35 = vsub.f32 %v6452_v48, %v942_v44  ;;  %v1029_v20 = vsub.f32 %v6454_v49, %v942_v44  ;;  %v1216_v21 = vadd.f32 %v6667_v45, %v6662_v32 }
 0x3c1   : > { %v6675_v37 = vpop.eup %5464  ;;  %998 = vmax.xlane.f32.xlu1 %v9249_v15  ;;  %v945_v22 = vpop.xlane.xlu1 %944 }
 0x3c2   : > { %v1108_v24 = vmul.f32 1.442695, %v1028_v35  ;;  %v1110_v26 = vmul.f32 1.442695, %v1029_v20  ;;  %1217 = vadd.xlane.f32.xlu0 %v1216_v21  ;;  %v1030_v33 = vsub.f32 %v6456_v50, %v945_v22  ;;  %v1031_v27 = vsub.f32 %v6460_v52, %v945_v22 }
 0x3c3   : > { %v1219_v48 = vadd.f32 %v6675_v37, %v6669_v46  ;;  %v9251_v35 = vmax.f32 %v6576_v43, %v6580_v2 }
 0x3c4   : > { %5474 = vpow2.f32 %v1108_v24  ;;  %v1112_v49 = vmul.f32 1.442695, %v1030_v33  ;;  %v1114_v28 = vmul.f32 1.442695, %v1031_v27  ;;  %v9252_v27 = vmax.f32 %v6584_v6, %v6586_v57 }
 0x3c5   : > { %5476 = vpow2.f32 %v1110_v26  ;;  %1220 = vadd.xlane.f32.xlu1 %v1219_v48 }
 0x3c6   : > { %v6684_v38 = vpop.eup %5466  ;;  %5478 = vpow2.f32 %v1112_v49  ;;  %1001 = vmax.xlane.f32.xlu0 %v9250_v59 }
 0x3c7   : > { %v6689_v41 = vpop.eup %5468  ;;  %5480 = vpow2.f32 %v1114_v28  ;;  %v948_v50 = vpop.xlane.xlu0 %947 }
 0x3c8   : > { %v6691_v52 = vpop.eup %5470  ;;  %v1032_v42 = vsub.f32 %v6464_v54, %v948_v50  ;;  %v1033_v25 = vsub.f32 %v6466_v55, %v948_v50  ;;  %v1222_v40 = vadd.f32 %v6689_v41, %v6684_v38 }
 0x3c9   : > { %v6697_v44 = vpop.eup %5472  ;;  %1004 = vmax.xlane.f32.xlu1 %v9251_v35  ;;  %v951_v20 = vpop.xlane.xlu1 %950 }
 0x3ca   : > { %v1116_v21 = vmul.f32 1.442695, %v1032_v42  ;;  %v1118_v15 = vmul.f32 1.442695, %v1033_v25  ;;  %1223 = vadd.xlane.f32.xlu0 %v1222_v40  ;;  %v1034_v22 = vsub.f32 %v6468_v56, %v951_v20  ;;  %v1035_v24 = vsub.f32 %v6472_v58, %v951_v20 }
 0x3cb   : > { %v1225_v54 = vadd.f32 %v6697_v44, %v6691_v52  ;;  %v9253_v42 = vmax.f32 %v6588_v53, %v6592_v47 }
 0x3cc   : > { %5482 = vpow2.f32 %v1116_v21  ;;  %v1120_v55 = vmul.f32 1.442695, %v1034_v22  ;;  %v1122_v26 = vmul.f32 1.442695, %v1035_v24 }
 0x3cd   : > { %5484 = vpow2.f32 %v1118_v15  ;;  %1226 = vadd.xlane.f32.xlu1 %v1225_v54 }
 0x3ce   : > { %v6706_v33 = vpop.eup %5474  ;;  %5486 = vpow2.f32 %v1120_v55  ;;  %1007 = vmax.xlane.f32.xlu0 %v9252_v27 }
 0x3cf   : > { %v6711_v48 = vpop.eup %5476  ;;  %5488 = vpow2.f32 %v1122_v26  ;;  %v954_v56 = vpop.xlane.xlu0 %953 }
 0x3d0   : > { %v6713_v58 = vpop.eup %5478  ;;  %v1036_v49 = vsub.f32 %v6476_v60, %v954_v56  ;;  %v1037_v28 = vsub.f32 %v6478_v61, %v954_v56  ;;  %v1228_v59 = vadd.f32 %v6711_v48, %v6706_v33 }
 0x3d1   : > { %v6719_v50 = vpop.eup %5480  ;;  %1010 = vmax.xlane.f32.xlu1 %v9253_v42  ;;  %v957_v25 = vpop.xlane.xlu1 %956 }
 0x3d2   : > { %v1124_v40 = vmul.f32 1.442695, %v1036_v49  ;;  %v1126_v35 = vmul.f32 1.442695, %v1037_v28  ;;  %1229 = vadd.xlane.f32.xlu0 %v1228_v59  ;;  %v1038_v20 = vsub.f32 %v6480_v62, %v957_v25  ;;  %v1039_v21 = vsub.f32 %v6484_v0, %v957_v25 }
 0x3d3   : > { %v1231_v60 = vadd.f32 %v6719_v50, %v6713_v58 }
 0x3d4   : > { %5490 = vpow2.f32 %v1124_v40  ;;  %v1128_v61 = vmul.f32 1.442695, %v1038_v20  ;;  %v1130_v15 = vmul.f32 1.442695, %v1039_v21 }
 0x3d5   : > { %5492 = vpow2.f32 %v1126_v35  ;;  %1232 = vadd.xlane.f32.xlu1 %v1231_v60 }
 0x3d6   : > { %v6728_v22 = vpop.eup %5482  ;;  %5494 = vpow2.f32 %v1128_v61 }
 0x3d7   : > { %v6730_v24 = vpop.eup %5484  ;;  %5496 = vpow2.f32 %v1130_v15  ;;  %v960_v54 = vpop.xlane.xlu0 %959 }
 0x3d8   : > { %v6732_v55 = vpop.eup %5486  ;;  %v1040_v62 = vsub.f32 %v6488_v3, %v960_v54  ;;  %v1041_v0 = vsub.f32 %v6490_v4, %v960_v54  ;;  %v1234_v26 = vadd.f32 %v6730_v24, %v6728_v22 }
 0x3d9   : > { %v6738_v27 = vpop.eup %5488  ;;  %v963_v56 = vpop.xlane.xlu1 %962 }
 0x3da   : > { %v1132_v49 = vmul.f32 1.442695, %v1040_v62  ;;  %v1134_v28 = vmul.f32 1.442695, %v1041_v0  ;;  %1235 = vadd.xlane.f32.xlu0 %v1234_v26  ;;  %v1042_v59 = vsub.f32 %v6492_v5, %v963_v56  ;;  %v1043_v42 = vsub.f32 %v6496_v7, %v963_v56  ;;  %v9254_v7 = vld [vmem:[#allocation9_spill] sm:$0xff]  ;;  %v9255_v26 = vld [vmem:[#allocation10_spill] sm:$0xff] }
 0x3db   : > { %v1237_v25 = vadd.f32 %v6738_v27, %v6732_v55 }
 0x3dc   : > { %5498 = vpow2.f32 %v1132_v49  ;;  %v1136_v3 = vmul.f32 1.442695, %v1042_v59  ;;  %v1138_v40 = vmul.f32 1.442695, %v1043_v42  ;;  %v9256_v49 = vld [vmem:[#allocation11_spill] sm:$0xff] }
 0x3dd   : > { %5500 = vpow2.f32 %v1134_v28  ;;  %1238 = vadd.xlane.f32.xlu1 %v1237_v25 }
 0x3de   : > { %v6744_v4 = vpop.eup %5490  ;;  %5502 = vpow2.f32 %v1136_v3 }
 0x3df   : > { %v6746_v35 = vpop.eup %5492  ;;  %5504 = vpow2.f32 %v1138_v40  ;;  %v966_v20 = vpop.xlane.xlu0 %965 }
 0x3e0   : > { %v6748_v21 = vpop.eup %5494  ;;  %v1044_v5 = vsub.f32 %v6500_v9, %v966_v20  ;;  %v1045_v60 = vsub.f32 %v9254_v7, %v966_v20  ;;  %v1240_v61 = vadd.f32 %v6746_v35, %v6744_v4 }
 0x3e1   : > { %v6754_v15 = vpop.eup %5496  ;;  %v969_v54 = vpop.xlane.xlu1 %968 }
 0x3e2   : > { %v1140_v62 = vmul.f32 1.442695, %v1044_v5  ;;  %v1142_v0 = vmul.f32 1.442695, %v1045_v60  ;;  %1241 = vadd.xlane.f32.xlu0 %v1240_v61  ;;  %v1046_v56 = vsub.f32 %v9255_v26, %v969_v54  ;;  %v1047_v28 = vsub.f32 %v9256_v49, %v969_v54  ;;  %v9259_v5 = vld [vmem:[#allocation12_spill] sm:$0xff]  ;;  %v9260_v60 = vld [vmem:[#allocation13_spill] sm:$0xff] }
 0x3e3   : > { %v1243_v59 = vadd.f32 %v6754_v15, %v6748_v21  ;;  %v9262_v49 = vld [vmem:[#allocation14_spill] sm:$0xff] }
 0x3e4   : > { %5506 = vpow2.f32 %v1140_v62  ;;  %v1144_v9 = vmul.f32 1.442695, %v1046_v56  ;;  %v1146_v42 = vmul.f32 1.442695, %v1047_v28 }
 0x3e5   : > { %5508 = vpow2.f32 %v1142_v0  ;;  %1244 = vadd.xlane.f32.xlu1 %v1243_v59  ;;  %v9263_v59 = vld [vmem:[#allocation15_spill] sm:$0xff] }
 0x3e6   : > { %v6760_v25 = vpop.eup %5498  ;;  %5510 = vpow2.f32 %v1144_v9 }
 0x3e7   : > { %9257 = vst [vmem:[#allocation9_spill] sm:$0xff] %v6760_v25  ;;  %v6762_v3 = vpop.eup %5500  ;;  %5512 = vpow2.f32 %v1146_v42  ;;  %v972_v40 = vpop.xlane.xlu0 %971 }
 0x3e8   : > { %v6764_v20 = vpop.eup %5502  ;;  %v1048_v7 = vsub.f32 %v9259_v5, %v972_v40  ;;  %v1049_v61 = vsub.f32 %v9260_v60, %v972_v40  ;;  %v1246_v54 = vadd.f32 %v6762_v3, %v6760_v25  ;;  %v9271_v25 = vld [vmem:[#allocation19_spill] sm:$0xff] }
 0x3e9   : > { %9258 = vst [vmem:[#allocation10_spill] sm:$0xff] %v6764_v20  ;;  %v6770_v62 = vpop.eup %5504  ;;  %v975_v0 = vpop.xlane.xlu1 %974 }
 0x3ea   : > { %9261 = vst [vmem:[#allocation11_spill] sm:$0xff] %v6770_v62  ;;  %v1148_v26 = vmul.f32 1.442695, %v1048_v7  ;;  %v1150_v56 = vmul.f32 1.442695, %v1049_v61  ;;  %1247 = vadd.xlane.f32.xlu0 %v1246_v54  ;;  %v1050_v28 = vsub.f32 %v9262_v49, %v975_v0  ;;  %v1051_v9 = vsub.f32 %v9263_v59, %v975_v0  ;;  %v9267_v54 = vld [vmem:[#allocation16_spill] sm:$0xff] }
 0x3eb   : > { %v1249_v42 = vadd.f32 %v6770_v62, %v6764_v20  ;;  %v9268_v0 = vld [vmem:[#allocation17_spill] sm:$0xff] }
 0x3ec   : > { %5514 = vpow2.f32 %v1148_v26  ;;  %v1152_v5 = vmul.f32 1.442695, %v1050_v28  ;;  %v1154_v10 = vmul.f32 1.442695, %v1051_v9 }
 0x3ed   : > { %5516 = vpow2.f32 %v1150_v56  ;;  %1250 = vadd.xlane.f32.xlu1 %v1249_v42 }
 0x3ee   : > { %v6776_v40 = vpop.eup %5506  ;;  %5518 = vpow2.f32 %v1152_v5  ;;  %v9270_v5 = vld [vmem:[#allocation18_spill] sm:$0xff] }
 0x3ef   : > { %9264 = vst [vmem:[#allocation12_spill] sm:$0xff] %v6776_v40  ;;  %v6778_v60 = vpop.eup %5508  ;;  %5520 = vpow2.f32 %v1154_v10  ;;  %v978_v7 = vpop.xlane.xlu0 %977 }
 0x3f0   : > { %9265 = vst [vmem:[#allocation13_spill] sm:$0xff] %v6778_v60  ;;  %v6780_v61 = vpop.eup %5510  ;;  %v1052_v49 = vsub.f32 %v9267_v54, %v978_v7  ;;  %v1053_v59 = vsub.f32 %v9268_v0, %v978_v7  ;;  %v1252_v26 = vadd.f32 %v6778_v60, %v6776_v40 }
 0x3f1   : > { %9266 = vst [vmem:[#allocation14_spill] sm:$0xff] %v6780_v61  ;;  %v6786_v28 = vpop.eup %5512  ;;  %v981_v56 = vpop.xlane.xlu1 %980 }
 0x3f2   : > { %9269 = vst [vmem:[#allocation15_spill] sm:$0xff] %v6786_v28  ;;  %v1156_v9 = vmul.f32 1.442695, %v1052_v49  ;;  %v1158_v42 = vmul.f32 1.442695, %v1053_v59  ;;  %1253 = vadd.xlane.f32.xlu0 %v1252_v26  ;;  %v1054_v11 = vsub.f32 %v9270_v5, %v981_v56  ;;  %v1055_v10 = vsub.f32 %v9271_v25, %v981_v56  ;;  %v9272_v26 = vld [vmem:[#allocation20_spill] sm:$0xff] }
 0x3f3   : > { %v1255_v20 = vadd.f32 %v6786_v28, %v6780_v61  ;;  %v9273_v25 = vld [vmem:[#allocation21_spill] sm:$0xff]  ;;  %v9275_v61 = vld [vmem:[#allocation23_spill] sm:$0xff] }
 0x3f4   : > { %5522 = vpow2.f32 %v1156_v9  ;;  %v1160_v54 = vmul.f32 1.442695, %v1054_v11  ;;  %v1162_v62 = vmul.f32 1.442695, %v1055_v10 }
 0x3f5   : > { %5524 = vpow2.f32 %v1158_v42  ;;  %1256 = vadd.xlane.f32.xlu1 %v1255_v20 }
 0x3f6   : > { %v6792_v7 = vpop.eup %5514  ;;  %5526 = vpow2.f32 %v1160_v54  ;;  %v9274_v54 = vld [vmem:[#allocation22_spill] sm:$0xff] }
 0x3f7   : > { %v6794_v0 = vpop.eup %5516  ;;  %5528 = vpow2.f32 %v1162_v62  ;;  %v984_v49 = vpop.xlane.xlu0 %983 }
 0x3f8   : > { %v6796_v59 = vpop.eup %5518  ;;  %v1056_v5 = vsub.f32 %v9272_v26, %v984_v49  ;;  %v1057_v56 = vsub.f32 %v9273_v25, %v984_v49  ;;  %v1258_v9 = vadd.f32 %v6794_v0, %v6792_v7 }
 0x3f9   : > { %v6802_v11 = vpop.eup %5520  ;;  %v987_v42 = vpop.xlane.xlu1 %986 }
 0x3fa   : > { %v1164_v20 = vmul.f32 1.442695, %v1056_v5  ;;  %v1166_v10 = vmul.f32 1.442695, %v1057_v56  ;;  %1259 = vadd.xlane.f32.xlu0 %v1258_v9  ;;  %v1058_v40 = vsub.f32 %v9274_v54, %v987_v42  ;;  %v1059_v62 = vsub.f32 %v9275_v61, %v987_v42 }
 0x3fb   : > { %v1261_v28 = vadd.f32 %v6802_v11, %v6796_v59 }
 0x3fc   : > { %5530 = vpow2.f32 %v1164_v20  ;;  %v1168_v26 = vmul.f32 1.442695, %v1058_v40  ;;  %v1170_v60 = vmul.f32 1.442695, %v1059_v62 }
 0x3fd   : > { %5532 = vpow2.f32 %v1166_v10  ;;  %1262 = vadd.xlane.f32.xlu1 %v1261_v28 }
 0x3fe   : > { %v6808_v49 = vpop.eup %5522  ;;  %5534 = vpow2.f32 %v1168_v26 }
 0x3ff   : > { %9276 = vst [vmem:[#allocation16_spill] sm:$0xff] %v6808_v49  ;;  %v6810_v25 = vpop.eup %5524  ;;  %5536 = vpow2.f32 %v1170_v60 }
 0x400   : > { %v6812_v5 = vpop.eup %5526  ;;  %v1264_v56 = vadd.f32 %v6810_v25, %v6808_v49 }
 0x401   : > { %9277 = vst [vmem:[#allocation17_spill] sm:$0xff] %v6812_v5  ;;  %v6816_v61 = vpop.eup %5528 }
 0x402   : > { %9278 = vst [vmem:[#allocation18_spill] sm:$0xff] %v6816_v61  ;;  %1265 = vadd.xlane.f32.xlu0 %v1264_v56  ;;  %v1267_v40 = vadd.f32 %v6816_v61, %v6812_v5 }
 0x404   : > { %1268 = vadd.xlane.f32.xlu1 %v1267_v40 }
 0x406   : > { %v6820_v9 = vpop.eup %5530 }
 0x407   : > { %9279 = vst [vmem:[#allocation19_spill] sm:$0xff] %v6820_v9  ;;  %v6822_v28 = vpop.eup %5532 }
 0x408   : > { %9280 = vst [vmem:[#allocation20_spill] sm:$0xff] %v6822_v28  ;;  %v6824_v42 = vpop.eup %5534  ;;  %v1270_v60 = vadd.f32 %v6822_v28, %v6820_v9 }
 0x409   : > { %9281 = vst [vmem:[#allocation21_spill] sm:$0xff] %v6824_v42  ;;  %v6828_v20 = vpop.eup %5536 }
 0x40a   : > { %9282 = vst [vmem:[#allocation22_spill] sm:$0xff] %v6828_v20  ;;  %1271 = vadd.xlane.f32.xlu0 %v1270_v60  ;;  %v1273_v10 = vadd.f32 %v6828_v20, %v6824_v42 }
 0x40c   : > { %1274 = vadd.xlane.f32.xlu1 %v1273_v10 }
 0x43f   : > { %v1206_v54 = vpop.xlane.xlu0 %1205 }
 0x440   : > { %5538 = vrcp.f32 %v1206_v54 }
 0x442   : > { %v1209_v62 = vpop.xlane.xlu1 %1208 }
 0x443   : > { %5540 = vrcp.f32 %v1209_v62  ;;  %v990_v26 = vpop.xlane.xlu0 %989 }
 0x444   : > { %v1060_v56 = vsub.f32 %v6548_v8, %v990_v26  ;;  %v1061_v40 = vsub.f32 %v6550_v12, %v990_v26 }
 0x446   : > { %v1172_v49 = vmul.f32 1.442695, %v1060_v56  ;;  %v1174_v5 = vmul.f32 1.442695, %v1061_v40  ;;  %v993_v61 = vpop.xlane.xlu1 %992 }
 0x447   : > { %v1062_v9 = vsub.f32 %v6552_v14, %v993_v61  ;;  %v1063_v60 = vsub.f32 %v6556_v29, %v993_v61  ;;  %v1212_v28 = vpop.xlane.xlu0 %1211 }
 0x448   : > { %5542 = vpow2.f32 %v1172_v49 }
 0x449   : > { %5544 = vpow2.f32 %v1174_v5  ;;  %v1176_v10 = vmul.f32 1.442695, %v1062_v9  ;;  %v1178_v42 = vmul.f32 1.442695, %v1063_v60 }
 0x44a   : > { %v5539_v54 = vpop.eup %5538  ;;  %5546 = vrcp.f32 %v1212_v28  ;;  %v1215_v62 = vpop.xlane.xlu1 %1214 }
 0x44b   : > { %5548 = vpow2.f32 %v1176_v10  ;;  %v996_v20 = vpop.xlane.xlu0 %995  ;;  %v1333_v14 = vmul.f32 %v5539_v54, %v6626_v18  ;;  %v1332_v29 = vmul.f32 %v5539_v54, %v6624_v13 }
 0x44c   : > { %5550 = vpow2.f32 %v1178_v42  ;;  %v1064_v8 = vsub.f32 %v6560_v51, %v996_v20  ;;  %v1065_v12 = vsub.f32 %v6562_v63, %v996_v20 }
 0x44d   : > { %v5541_v26 = vpop.eup %5540  ;;  %5552 = vrcp.f32 %v1215_v62 }
 0x44e   : > { %v1180_v49 = vmul.f32 1.442695, %v1064_v8  ;;  %v1182_v5 = vmul.f32 1.442695, %v1065_v12  ;;  %v999_v61 = vpop.xlane.xlu1 %998  ;;  %v1335_v9 = vmul.f32 %v5541_v26, %v6634_v30  ;;  %v1334_v28 = vmul.f32 %v5541_v26, %v6628_v17 }
 0x44f   : > { %v1066_v56 = vsub.f32 %v6564_v1, %v999_v61  ;;  %v1067_v42 = vsub.f32 %v6568_v16, %v999_v61  ;;  %v1218_v51 = vpop.xlane.xlu0 %1217 }
 0x450   : > { %5554 = vpow2.f32 %v1180_v49  ;;  %v1397_v63 = vpack.c.bf16 %v1335_v9, %v1333_v14  ;;  %v1396_v20 = vpack.c.bf16 %v1334_v28, %v1332_v29 }
 0x451   : > { %5556 = vpow2.f32 %v1182_v5  ;;  %v1184_v40 = vmul.f32 1.442695, %v1066_v56  ;;  %v1186_v18 = vmul.f32 1.442695, %v1067_v42 }
 0x452   : > { %v6844_v60 = vpop.eup %5542  ;;  %5558 = vrcp.f32 %v1218_v51  ;;  %1428 = vmatprep.subr.bf16.mxu0 %v1397_v63  ;;  %v1221_v13 = vpop.xlane.xlu1 %1220 }
 0x453   : > { %v6846_v10 = vpop.eup %5544  ;;  %5560 = vpow2.f32 %v1184_v40  ;;  %1429 = vmatpush1.bf16.xpose.msra.mxu0 %v1396_v20  ;;  %v1002_v17 = vpop.xlane.xlu0 %1001 }
 0x454   : > { %v5547_v1 = vpop.eup %5546  ;;  %5562 = vpow2.f32 %v1186_v18  ;;  %v1068_v16 = vsub.f32 %v6572_v23, %v1002_v17  ;;  %v1069_v30 = vsub.f32 %v6574_v31, %v1002_v17  ;;  %v1276_v54 = vadd.f32 %v6846_v10, %v6844_v60 }
 0x455   : > { %v6852_v62 = vpop.eup %5548  ;;  %5564 = vrcp.f32 %v1221_v13  ;;  %v1337_v61 = vmul.f32 %v5547_v1, %v6645_v19  ;;  %v1336_v28 = vmul.f32 %v5547_v1, %v6640_v36 }
 0x456   : > { %v6854_v8 = vpop.eup %5550  ;;  %v1188_v12 = vmul.f32 1.442695, %v1068_v16  ;;  %v1190_v26 = vmul.f32 1.442695, %v1069_v30  ;;  %1277 = vadd.xlane.f32.xlu0 %v1276_v54  ;;  %v1005_v14 = vpop.xlane.xlu1 %1004 }
 0x457   : > { %v5553_v29 = vpop.eup %5552  ;;  %v1070_v49 = vsub.f32 %v6576_v43, %v1005_v14  ;;  %v1071_v5 = vsub.f32 %v6580_v2, %v1005_v14  ;;  %v1224_v23 = vpop.xlane.xlu0 %1223  ;;  %v1279_v31 = vadd.f32 %v6854_v8, %v6852_v62 }
 0x458   : > { %5566 = vpow2.f32 %v1188_v12  ;;  %v1339_v9 = vmul.f32 %v5553_v29, %v6653_v34  ;;  %v1338_v56 = vmul.f32 %v5553_v29, %v6647_v39 }
 0x459   : > { %5568 = vpow2.f32 %v1190_v26  ;;  %v1192_v42 = vmul.f32 1.442695, %v1070_v49  ;;  %v1194_v51 = vmul.f32 1.442695, %v1071_v5  ;;  %1280 = vadd.xlane.f32.xlu1 %v1279_v31 }
 0x45a   : > { %v6864_v43 = vpop.eup %5554  ;;  %5570 = vrcp.f32 %v1224_v23  ;;  %v1399_v2 = vpack.c.bf16 %v1339_v9, %v1337_v61  ;;  %v1227_v63 = vpop.xlane.xlu1 %1226  ;;  %v1398_v20 = vpack.c.bf16 %v1338_v56, %v1336_v28 }
 0x45b   : > { %v6866_v40 = vpop.eup %5556  ;;  %5572 = vpow2.f32 %v1192_v42  ;;  %v1008_v19 = vpop.xlane.xlu0 %1007 }
 0x45c   : > { %v5559_v18 = vpop.eup %5558  ;;  %5574 = vpow2.f32 %v1194_v51  ;;  %1430 = vmatprep.subr.bf16.mxu0 %v1399_v2  ;;  %v1072_v36 = vsub.f32 %v6584_v6, %v1008_v19  ;;  %v1073_v39 = vsub.f32 %v6586_v57, %v1008_v19  ;;  %v1282_v34 = vadd.f32 %v6866_v40, %v6864_v43 }
 0x45d   : > { %v6872_v13 = vpop.eup %5560  ;;  %5576 = vrcp.f32 %v1227_v63  ;;  %1431 = vmatpush1.bf16.xpose.msra.mxu0 %v1398_v20  ;;  %v1341_v14 = vmul.f32 %v5559_v18, %v6667_v45  ;;  %v1340_v49 = vmul.f32 %v5559_v18, %v6662_v32 }
 0x45e   : > { %v6874_v17 = vpop.eup %5562  ;;  %v1196_v1 = vmul.f32 1.442695, %v1072_v36  ;;  %v1198_v16 = vmul.f32 1.442695, %v1073_v39  ;;  %1283 = vadd.xlane.f32.xlu0 %v1282_v34  ;;  %v1011_v30 = vpop.xlane.xlu1 %1010 }
 0x45f   : > { %v5565_v54 = vpop.eup %5564  ;;  %v1074_v12 = vsub.f32 %v6588_v53, %v1011_v30  ;;  %v1075_v6 = vsub.f32 %v6592_v47, %v1011_v30  ;;  %v1230_v26 = vpop.xlane.xlu0 %1229  ;;  %v1285_v57 = vadd.f32 %v6874_v17, %v6872_v13  ;;  %v9283_v30 = vld [vmem:[#allocation8_spill] sm:$0xff] }
 0x460   : > { %5578 = vpow2.f32 %v1196_v1  ;;  %v1343_v29 = vmul.f32 %v5565_v54, %v6675_v37  ;;  %v1342_v5 = vmul.f32 %v5565_v54, %v6669_v46 }
 0x461   : > { %5580 = vpow2.f32 %v1198_v16  ;;  %v1200_v23 = vmul.f32 1.442695, %v1074_v12  ;;  %v1202_v31 = vmul.f32 1.442695, %v1075_v6  ;;  %1286 = vadd.xlane.f32.xlu1 %v1285_v57 }
 0x462   : > { %v6884_v53 = vpop.eup %5566  ;;  %5582 = vrcp.f32 %v1230_v26  ;;  %v1401_v47 = vpack.c.bf16 %v1343_v29, %v1341_v14  ;;  %v1233_v61 = vpop.xlane.xlu1 %1232  ;;  %v1400_v9 = vpack.c.bf16 %v1342_v5, %v1340_v49 }
 0x463   : > { %v6886_v28 = vpop.eup %5568  ;;  %5584 = vpow2.f32 %v1200_v23 }
 0x464   : > { %v5571_v45 = vpop.eup %5570  ;;  %5586 = vpow2.f32 %v1202_v31  ;;  %1432 = vmatprep.subr.bf16.mxu0 %v1401_v47  ;;  %v1288_v32 = vadd.f32 %v6886_v28, %v6884_v53 }
 0x465   : > { %v6890_v46 = vpop.eup %5572  ;;  %5588 = vrcp.f32 %v1233_v61  ;;  %1433 = vmatpush1.bf16.xpose.msra.mxu0 %v1400_v9  ;;  %v1345_v2 = vmul.f32 %v5571_v45, %v6689_v41  ;;  %v1344_v20 = vmul.f32 %v5571_v45, %v6684_v38 }
 0x466   : > { %v6892_v37 = vpop.eup %5574  ;;  %1289 = vadd.xlane.f32.xlu0 %v1288_v32 }
 0x467   : > { %v5577_v56 = vpop.eup %5576  ;;  %v1236_v42 = vpop.xlane.xlu0 %1235  ;;  %v1291_v51 = vadd.f32 %v6892_v37, %v6890_v46 }
 0x468   : > { %v1347_v63 = vmul.f32 %v5577_v56, %v6697_v44  ;;  %v1346_v19 = vmul.f32 %v5577_v56, %v6691_v52  ;;  %5590 = vrcp.f32 %v1236_v42 }
 0x469   : > { %1292 = vadd.xlane.f32.xlu1 %v1291_v51 }
 0x46a   : > { %v6900_v18 = vpop.eup %5578  ;;  %v1403_v36 = vpack.c.bf16 %v1347_v63, %v1345_v2  ;;  %v1239_v39 = vpop.xlane.xlu1 %1238  ;;  %v1402_v34 = vpack.c.bf16 %v1346_v19, %v1344_v20 }
 0x46b   : > { %v6902_v1 = vpop.eup %5580  ;;  %5592 = vrcp.f32 %v1239_v39 }
 0x46c   : > { %v5583_v16 = vpop.eup %5582  ;;  %1434 = vmatprep.subr.bf16.mxu0 %v1403_v36  ;;  %v1294_v41 = vadd.f32 %v6902_v1, %v6900_v18 }
 0x46d   : > { %v6906_v44 = vpop.eup %5584  ;;  %1435 = vmatpush1.bf16.xpose.msra.mxu0 %v1402_v34  ;;  %v1696_v38 = vpop.f32.mrb[76].mxu1  ;;  %v1349_v29 = vmul.f32 %v5583_v16, %v6711_v48  ;;  %v1348_v31 = vmul.f32 %v5583_v16, %v6706_v33 }
 0x46e   : > { %v6908_v52 = vpop.eup %5586  ;;  %1295 = vadd.xlane.f32.xlu0 %v1294_v41  ;;  %v1697_v54 = vadd.f32 %v1696_v38, %v9283_v30  ;;  %v1698_v12 = vpop.f32.mrb[77].mxu1 }
 0x46f   : > { %v5589_v6 = vpop.eup %5588  ;;  %v1242_v26 = vpop.xlane.xlu0 %1241  ;;  %v1699_v57 = vadd.f32 %v1698_v12, %v9283_v30  ;;  %v1297_v14 = vadd.f32 %v6908_v52, %v6906_v44 }
 0x470   : > { %v1700_v49 = vpop.f32.mrb[78].mxu1  ;;  %v1703_v5 = vpack.c.bf16 %v1697_v54, %v1697_v54  ;;  %v1351_v23 = vmul.f32 %v5589_v6, %v6719_v50  ;;  %v1350_v47 = vmul.f32 %v5589_v6, %v6713_v58  ;;  %5594 = vrcp.f32 %v1242_v26  ;;  %v6928_v38 = vpop.f32.mrb[4].mxu0  ;;  %v405_v6 = vld [vmem:[%s9057_s8] sm:$0xff] }
 0x471   : > { %v1701_v61 = vpop.f32.mrb[79].mxu1  ;;  %v1704_v9 = vpack.c.bf16 %v1699_v57, %v1699_v57  ;;  %1298 = vadd.xlane.f32.xlu1 %v1297_v14  ;;  %v6930_v54 = vpop.f32.mrb[5].mxu0  ;;  %v9284_v14 = vld [vmem:[#allocation11_spill] sm:$0xff]  ;;  %v9285_v49 = vld [vmem:[#allocation10_spill] sm:$0xff] }
 0x472   : > { %v1829_v45 = vsel %vm485_vm1, %v1703_v5, 0  ;;  %v1405_v32 = vpack.c.bf16 %v1351_v23, %v1349_v29  ;;  %v1245_v56 = vpop.xlane.xlu1 %1244  ;;  %v1404_v42 = vpack.c.bf16 %v1350_v47, %v1348_v31  ;;  %v5591_v51 = vpop.eup %5590  ;;  %v9286_v31 = vld [vmem:[#allocation9_spill] sm:$0xff] }
 0x473   : > { %5596 = vrcp.f32 %v1245_v56  ;;  %5349 = vmatprep.subr.msk.bf16.mxu1 %vm485_vm1, %v1704_v9  ;;  %v1353_v33 = vmul.f32 %v5591_v51, %v6730_v24  ;;  %v1352_v63 = vmul.f32 %v5591_v51, %v6728_v22  ;;  %v632_v26 = vpop.f32.mrb[6].mxu0 }
 0x474   : > { %1436 = vmatprep.subr.bf16.mxu0 %v1405_v32  ;;  %1835 = vmatpush1.bf16.msra.mxu1 %v1829_v45 }
 0x475   : > { %v5593_v48 = vpop.eup %5592  ;;  %1437 = vmatpush1.bf16.xpose.msra.mxu0 %v1404_v42  ;;  %v9287_v42 = vld [vmem:[#allocation13_spill] sm:$0xff] }
 0x476   : > { %v1355_v58 = vmul.f32 %v5593_v48, %v6738_v27  ;;  %v1354_v50 = vmul.f32 %v5593_v48, %v6732_v55  ;;  %v9288_v48 = vld [vmem:[#allocation15_spill] sm:$0xff] }
 0x477   : > { %v1248_v2 = vpop.xlane.xlu0 %1247 }
 0x478   : > { %v1407_v20 = vpack.c.bf16 %v1355_v58, %v1353_v33  ;;  %5598 = vrcp.f32 %v1248_v2  ;;  %v1406_v19 = vpack.c.bf16 %v1354_v50, %v1352_v63  ;;  %v9289_v33 = vld [vmem:[#allocation14_spill] sm:$0xff]  ;;  %v9290_v2 = vld [vmem:[#allocation12_spill] sm:$0xff] }
 0x47a   : > { %1438 = vmatprep.subr.bf16.mxu0 %v1407_v20  ;;  %v1251_v36 = vpop.xlane.xlu1 %1250  ;;  %v5595_v39 = vpop.eup %5594 }
 0x47b   : > { %5600 = vrcp.f32 %v1251_v36  ;;  %v1357_v16 = vmul.f32 %v5595_v39, %v6746_v35  ;;  %v1356_v55 = vmul.f32 %v5595_v39, %v6744_v4 }
 0x47d   : > { %v5597_v34 = vpop.eup %5596  ;;  %1439 = vmatpush1.bf16.xpose.msra.mxu0 %v1406_v19 }
 0x47e   : > { %v1359_v24 = vmul.f32 %v5597_v34, %v6754_v15  ;;  %v1358_v27 = vmul.f32 %v5597_v34, %v6748_v21  ;;  %v633_v15 = vpop.f32.mrb[7].mxu0 }
 0x47f   : > { %v1254_v41 = vpop.xlane.xlu0 %1253 }
 0x480   : > { %v1409_v22 = vpack.c.bf16 %v1359_v24, %v1357_v16  ;;  %5602 = vrcp.f32 %v1254_v41  ;;  %v1408_v12 = vpack.c.bf16 %v1358_v27, %v1356_v55 }
 0x482   : > { %1440 = vmatprep.subr.bf16.mxu0 %v1409_v22  ;;  %v1257_v35 = vpop.xlane.xlu1 %1256  ;;  %v5599_v57 = vpop.eup %5598 }
 0x483   : > { %5604 = vrcp.f32 %v1257_v35  ;;  %v1361_v4 = vmul.f32 %v5599_v57, %v6762_v3  ;;  %v1360_v47 = vmul.f32 %v5599_v57, %v9286_v31  ;;  %v9291_v57 = vld [vmem:[#allocation18_spill] sm:$0xff] }
 0x484   : > { %588 = vperm.xlu0 %5440, %v405_v6   ;;  %v9295_v31 = vld [vmem:[#allocation22_spill] sm:$0xff] }
 0x485   : > { %v5601_v21 = vpop.eup %5600  ;;  %1441 = vmatpush1.bf16.xpose.msra.mxu0 %v1408_v12 }
 0x486   : > { %v1363_v29 = vmul.f32 %v5601_v21, %v9284_v14  ;;  %v1362_v5 = vmul.f32 %v5601_v21, %v9285_v49  ;;  %v9292_v21 = vld [vmem:[#allocation17_spill] sm:$0xff] }
 0x487   : > { %v1260_v23 = vpop.xlane.xlu0 %1259 }
 0x488   : > { %v1411_v61 = vpack.c.bf16 %v1363_v29, %v1361_v4  ;;  %5606 = vrcp.f32 %v1260_v23  ;;  %v1410_v9 = vpack.c.bf16 %v1362_v5, %v1360_v47  ;;  %v9294_v5 = vld [vmem:[#allocation20_spill] sm:$0xff] }
 0x48a   : > { %1442 = vmatprep.subr.bf16.mxu0 %v1411_v61  ;;  %v1263_v45 = vpop.xlane.xlu1 %1262  ;;  %v5603_v32 = vpop.eup %5602  ;;  %v9296_v61 = vld [vmem:[#allocation21_spill] sm:$0xff] }
 0x48b   : > { %5608 = vrcp.f32 %v1263_v45  ;;  %v1365_v51 = vmul.f32 %v5603_v32, %v9287_v42  ;;  %v1364_v63 = vmul.f32 %v5603_v32, %v9290_v2 }
 0x48d   : > { %v5605_v56 = vpop.eup %5604  ;;  %1443 = vmatpush1.bf16.xpose.msra.mxu0 %v1410_v9 }
 0x48e   : > { %v1367_v3 = vmul.f32 %v5605_v56, %v9288_v48  ;;  %v1366_v58 = vmul.f32 %v5605_v56, %v9289_v33 }
 0x48f   : > { %v1266_v50 = vpop.xlane.xlu0 %1265 }
 0x490   : > { %5610 = vrcp.f32 %v1266_v50  ;;  %v1413_v20 = vpack.c.bf16 %v1367_v3, %v1365_v51  ;;  %v1412_v36 = vpack.c.bf16 %v1366_v58, %v1364_v63 }
 0x491   : > { %v1269_v19 = vpop.xlane.xlu1 %1268 }
 0x492   : > { %1444 = vmatprep.subr.bf16.mxu0 %v1413_v20  ;;  %5612 = vrcp.f32 %v1269_v19  ;;  %v5607_v39 = vpop.eup %5606 }
 0x493   : > { %v1369_v16 = vmul.f32 %v5607_v39, %v6794_v0  ;;  %v1368_v55 = vmul.f32 %v5607_v39, %v6792_v7 }
 0x495   : > { %v5609_v34 = vpop.eup %5608  ;;  %1445 = vmatpush1.bf16.xpose.msra.mxu0 %v1412_v36 }
 0x496   : > { %v1371_v24 = vmul.f32 %v5609_v34, %v6802_v11  ;;  %v1370_v27 = vmul.f32 %v5609_v34, %v6796_v59  ;;  %v9293_v59 = vld [vmem:[#allocation16_spill] sm:$0xff] }
 0x497   : > { %v1272_v41 = vpop.xlane.xlu0 %1271 }
 0x498   : > { %5614 = vrcp.f32 %v1272_v41  ;;  %v1415_v22 = vpack.c.bf16 %v1371_v24, %v1369_v16  ;;  %v1414_v6 = vpack.c.bf16 %v1370_v27, %v1368_v55 }
 0x499   : > { %v1275_v12 = vpop.xlane.xlu1 %1274 }
 0x49a   : > { %v5611_v26 = vpop.eup %5610  ;;  %1446 = vmatprep.subr.bf16.mxu0 %v1415_v22  ;;  %5616 = vrcp.f32 %v1275_v12 }
 0x49b   : > { %v1373_v15 = vmul.f32 %v5611_v26, %v6810_v25  ;;  %v1372_v14 = vmul.f32 %v5611_v26, %v9293_v59  ;;  %v9297_v25 = vld [vmem:[#allocation19_spill] sm:$0xff] }
 0x49c   : > { %v5613_v35 = vpop.eup %5612 }
 0x49d   : > { %1447 = vmatpush1.bf16.xpose.msra.mxu0 %v1414_v6  ;;  %v1375_v0 = vmul.f32 %v5613_v35, %v9291_v57  ;;  %v1374_v11 = vmul.f32 %v5613_v35, %v9292_v21 }
 0x49f   : > { %v1417_v4 = vpack.c.bf16 %v1375_v0, %v1373_v15  ;;  %v1416_v7 = vpack.c.bf16 %v1374_v11, %v1372_v14  ;;  %v9299_v14 = vld [vmem:[#allocation25_spill] sm:$0xff] }
 0x4a1   : > { %1448 = vmatprep.subr.bf16.mxu0 %v1417_v4 }
 0x4a2   : > { %v5615_v29 = vpop.eup %5614 }
 0x4a3   : > { %v1377_v23 = vmul.f32 %v5615_v29, %v9294_v5  ;;  %v1376_v32 = vmul.f32 %v5615_v29, %v9297_v25  ;;  %v9300_v29 = vld [vmem:[#allocation26_spill] sm:$0xff] }
 0x4a4   : > { %v5617_v49 = vpop.eup %5616 }
 0x4a5   : > { %1449 = vmatpush1.bf16.xpose.msra.mxu0 %v1416_v7  ;;  %v1379_v47 = vmul.f32 %v5617_v49, %v9295_v31  ;;  %v1378_v9 = vmul.f32 %v5617_v49, %v9296_v61  ;;  %v1475_v49 = vlaneseq }
 0x4a7   : > { %v1419_v45 = vpack.c.bf16 %v1379_v47, %v1377_v23  ;;  %v1418_v56 = vpack.c.bf16 %v1378_v9, %v1376_v32  ;;  %v1476_v23 = vshrl.u32 %v1475_v49, 7  ;;  %vm6993_vm3 = vcmp.lt.s32.totalorder %v1475_v49, 256 }
 0x4a9   : > { %1450 = vmatprep.subr.bf16.mxu0 %v1419_v45 }
 0x4ad   : > { %1451 = vmatpush1.bf16.xpose.msra.mxu0 %v1418_v56 }
 0x4e3   : > { %v1278_v42 = vpop.xlane.xlu0 %1277 }
 0x4e4   : > { %5618 = vrcp.f32 %v1278_v42 }
 0x4e6   : > { %v1281_v51 = vpop.xlane.xlu1 %1280 }
 0x4e7   : > { %5620 = vrcp.f32 %v1281_v51  ;;  %v9305_v51 = vmov 0 }
 0x4e8   : > { %v9306_v51 = vsel %vm6993_vm3, 4294967295, %v9305_v51 }
 0x4e9   : > { %9307 = vst [vmem:[#allocation10_spill] sm:$0xff] %v9306_v51 }
 0x4eb   : > { %v1284_v48 = vpop.xlane.xlu0 %1283 }
 0x4ec   : > { %5622 = vrcp.f32 %v1284_v48 }
 0x4ee   : > { %v1287_v3 = vpop.xlane.xlu1 %1286  ;;  %v5619_v33 = vpop.eup %5618 }
 0x4ef   : > { %5624 = vrcp.f32 %v1287_v3  ;;  %v1381_v50 = vmul.f32 %v5619_v33, %v6846_v10  ;;  %v1380_v63 = vmul.f32 %v5619_v33, %v6844_v60 }
 0x4f1   : > { %v5621_v58 = vpop.eup %5620 }
 0x4f2   : > { %v1383_v2 = vmul.f32 %v5621_v58, %v6854_v8  ;;  %v1382_v20 = vmul.f32 %v5621_v58, %v6852_v62 }
 0x4f3   : > { %v1290_v19 = vpop.xlane.xlu0 %1289 }
 0x4f4   : > { %v1421_v36 = vpack.c.bf16 %v1383_v2, %v1381_v50  ;;  %v1420_v39 = vpack.c.bf16 %v1382_v20, %v1380_v63  ;;  %5626 = vrcp.f32 %v1290_v19 }
 0x4f6   : > { %1452 = vmatprep.subr.bf16.mxu0 %v1421_v36  ;;  %v1293_v34 = vpop.xlane.xlu1 %1292  ;;  %v5623_v16 = vpop.eup %5622  ;;  %v9308_v36 = vld [vmem:[#allocation7_spill] sm:$0xff] }
 0x4f7   : > { %5628 = vrcp.f32 %v1293_v34  ;;  %1453 = vmatpush1.bf16.xpose.msra.mxu0 %v1420_v39  ;;  %v1385_v27 = vmul.f32 %v5623_v16, %v6866_v40  ;;  %v1384_v8 = vmul.f32 %v5623_v16, %v6864_v43 }
 0x4f9   : > { %v5625_v24 = vpop.eup %5624 }
 0x4fa   : > { %v1387_v10 = vmul.f32 %v5625_v24, %v6874_v17  ;;  %v1386_v60 = vmul.f32 %v5625_v24, %v6872_v13 }
 0x4fb   : > { %v1296_v41 = vpop.xlane.xlu0 %1295 }
 0x4fc   : > { %v1423_v62 = vpack.c.bf16 %v1387_v10, %v1385_v27  ;;  %v1422_v55 = vpack.c.bf16 %v1386_v60, %v1384_v8  ;;  %5630 = vrcp.f32 %v1296_v41 }
 0x4fe   : > { %1454 = vmatprep.subr.bf16.mxu0 %v1423_v62  ;;  %v1299_v22 = vpop.xlane.xlu1 %1298  ;;  %v5627_v12 = vpop.eup %5626 }
 0x4ff   : > { %5632 = vrcp.f32 %v1299_v22  ;;  %1455 = vmatpush1.bf16.xpose.msra.mxu0 %v1422_v55  ;;  %v1389_v26 = vmul.f32 %v5627_v12, %v6886_v28  ;;  %v1388_v17 = vmul.f32 %v5627_v12, %v6884_v53 }
 0x501   : > { %v5629_v6 = vpop.eup %5628 }
 0x502   : > { %v1391_v40 = vmul.f32 %v5629_v6, %v6892_v37  ;;  %v1390_v43 = vmul.f32 %v5629_v6, %v6890_v46 }
 0x503   : > { %v6967_v35 = vpop.permute.xlu0 %588 }
 0x504   : > { %9298 = vst [vmem:[#allocation23_spill] sm:$0xff] %v6967_v35  ;;  %v1425_v13 = vpack.c.bf16 %v1391_v40, %v1389_v26  ;;  %v1424_v15 = vpack.c.bf16 %v1390_v43, %v1388_v17  ;;  %v631_v57 = vadd.f32 %v6930_v54, %v6967_v35  ;;  %v629_v54 = vadd.f32 %v6928_v38, %v6967_v35  ;;  %v2665_v40 = vld [vmem:[%s6306_s26 + $0x88] sm:$0xff]  ;;  %v2667_v17 = vld [vmem:[%s6306_s26 + $0x98] sm:$0xff] }
 0x505   : > { %v2673_v43 = vpack.c.bf16 %v2667_v17, %v2665_v40 }
 0x506   : > { %1456 = vmatprep.subr.bf16.mxu0 %v1425_v13  ;;  %v636_v0 = vpack.c.bf16 %v631_v57, %v631_v57  ;;  %v5631_v21 = vpop.eup %5630  ;;  %v635_v7 = vpack.c.bf16 %v629_v54, %v629_v54  ;;  %v2664_v13 = vld [vmem:[%s6306_s26 + $0x80] sm:$0xff]  ;;  %v2669_v57 = vld [vmem:[%s6306_s26 + $0xa8] sm:$0xff] }
 0x507   : > { %1457 = vmatpush1.bf16.xpose.msra.mxu0 %v1424_v15  ;;  %v1393_v28 = vmul.f32 %v5631_v21, %v6902_v1  ;;  %v1392_v53 = vmul.f32 %v5631_v21, %v6900_v18  ;;  %v9301_v1 = vmov 0   ;;  %v9302_v18 = vld [vmem:[#allocation5_spill] sm:$0xff]  ;;  %2676 = vmatprep.subr.bf16.mxu1 %v2673_v43 }
 0x508   : > { %1460 = vmatprep.mubr.bf16.mxu0 %v636_v0  ;;  %v2666_v15 = vld [vmem:[%s6306_s26 + $0x90] sm:$0xff]  ;;  %v2671_v0 = vld [vmem:[%s6306_s26 + $0xb8] sm:$0xff] }
 0x509   : > { %v5633_v11 = vpop.eup %5632  ;;  %v2672_v21 = vpack.c.bf16 %v2666_v15, %v2664_v13 }
 0x50a   : > { %v1395_v37 = vmul.f32 %v5633_v11, %v6908_v52  ;;  %v1394_v46 = vmul.f32 %v5633_v11, %v6906_v44  ;;  %v9303_v44 = vld [vmem:[#allocation24_spill] sm:$0xff]  ;;  %v6219_v52 = vmov 1966171168   ;;  %v2675_v11 = vpack.c.bf16 %v2671_v0, %v2669_v57 }
 0x50b   : > { %v1473_v38 = vunpack.c.l.s4 %v6219_v52 }
 0x50c   : > { %v1427_v4 = vpack.c.bf16 %v1395_v37, %v1393_v28  ;;  %v1426_v59 = vpack.c.bf16 %v1394_v46, %v1392_v53  ;;  %v2668_v28 = vld [vmem:[%s6306_s26 + $0xa0] sm:$0xff]  ;;  %v2670_v37 = vld [vmem:[%s6306_s26 + $0xb0] sm:$0xff] }
 0x50d   : > { %v1474_v5 = vunpack.c.0.s8 %v1473_v38  ;;  %v2674_v46 = vpack.c.bf16 %v2670_v37, %v2668_v28 }
 0x50e   : > { %1458 = vmatprep.subr.bf16.mxu0 %v1427_v4 }
 0x50f   : > { %1459 = vmatpush1.bf16.xpose.msra.mxu0 %v1426_v59  ;;  %v6989_v47 = vsub.s32 %v1474_v5, %v1476_v23 }
 0x510   : > { %5343 = vmatprep.subr.msk.bf16.mxu0 %vm485_vm1, %v9299_v14 }
 0x511   : > { %9304 = vst [vmem:[#allocation11_spill] sm:$0xff] %v6989_v47 }
 0x516   : > { %1461 = vmatmul.mubr.bf16.vlgmr.msra.gmra.mrb[8].mxu0 %v635_v7 }
 0x517   : > { %1620 = vmatpush1.bf16.msra.mxu0 %v9300_v29  ;;  %1651 = vmatprep.mubr.bf16.mxu0 %v9301_v1 }
 0x518   : > { %5347 = vmatprep.subr.msk.bf16.mxu0 %vm485_vm1, %v9299_v14 }
 0x51e   : > { %5344 = vmatmul.mubr.msk.bf16.vlgmr.msra.gmra.mrb[12].mxu0 %vm481_vm2, %v9302_v18 }
 0x51f   : > { %1706 = vmatpush1.bf16.msra.mxu0 %v9300_v29  ;;  %1737 = vmatprep.mubr.bf16.mxu0 %v9301_v1 }
 0x526   : > { %5348 = vmatmul.mubr.msk.bf16.vlgmr.msra.gmra.mrb[16].mxu0 %vm481_vm2, %v9303_v44 }
 0x5e9   : > { %v1462_v31 = vpop.f32.mrb[8].mxu0 }
 0x5ea   : > { %v1464_v61 = vpop.f32.mrb[9].mxu0 }
 0x5eb   : > { %v1471_v9 = vcombine.low %v1462_v31, %v1464_v61  ;;  %v1515_v45 = vcombine.high %v1462_v31, %v1464_v61  ;;  %v1466_v25 = vpop.f32.mrb[10].mxu0 }
 0x5ec   : > { %v1467_v32 = vpop.f32.mrb[11].mxu0  ;;  %v9310_v25 = vld [vmem:[#allocation3_spill] sm:$0xff] }
 0x5ed   : > { %v1478_v56 = vrot.slane %v1471_v9, %v6989_v47  ;;  %v1522_v42 = vrot.slane %v1515_v45, %v6989_v47 }
 0x5ef   : > { %v1485_v48 = vrot.slane %v1478_v56, %v6989_v47  ;;  %v1493_v3 = vcombine.high %v1478_v56, %v1478_v56  ;;  %v1529_v33 = vrot.slane %v1522_v42, %v6989_v47  ;;  %v1534_v58 = vcombine.high %v1522_v42, %v1522_v42 }
 0x5f1   : > { %1491 = vst.msk [vmem:[#allocation2] ss:$8 sm:$0x3] %vm6993_vm3, %v1485_v48  ;;  %v1500_v50 = vrot.slane %v1493_v3, %v6989_v47  ;;  %v1505_v2 = vcombine.high %v1485_v48, %v1485_v48  ;;  %1532 = vst.msk [vmem:[#allocation2 + $0x20] ss:$8 sm:$0x3] %vm6993_vm3, %v1529_v33  ;;  %v1541_v63 = vrot.slane %v1534_v58, %v6989_v47 }
 0x5f2   : > { %v1546_v20 = vcombine.high %v1529_v33, %v1529_v33  ;;  %v1653_v19 = vpop.f32.mrb[12].mxu0 }
 0x5f3   : > { %v1654_v39 = vadd.f32 %v1653_v19, %v9308_v36  ;;  %v1655_v34 = vpop.f32.mrb[13].mxu0  ;;  %1503 = vst.msk [vmem:[#allocation2 + $0x4] ss:$8 sm:$0x3] %vm6993_vm3, %v1500_v50  ;;  %v1510_v16 = vcombine.high %v1500_v50, %v1500_v50  ;;  %v1551_v24 = vcombine.high %v1541_v63, %v1541_v63 }
 0x5f4   : > { %1508 = vst.msk [vmem:[#allocation2 + $0x10] ss:$8 sm:$0x3] %vm6993_vm3, %v1505_v2  ;;  %1544 = vst.msk [vmem:[#allocation2 + $0x24] ss:$8 sm:$0x3] %vm6993_vm3, %v1541_v63  ;;  %v1656_v27 = vadd.f32 %v1655_v34, %v9308_v36 }
 0x5f5   : > { %1549 = vst.msk [vmem:[#allocation2 + $0x30] ss:$8 sm:$0x3] %vm6993_vm3, %v1546_v20  ;;  %v1657_v10 = vpop.f32.mrb[14].mxu0  ;;  %v1660_v8 = vpack.c.bf16 %v1654_v39, %v1654_v39  ;;  %v9328_v36 = vld [vmem:[#allocation6_spill] sm:$0xff] }
 0x5f6   : > { %v1658_v60 = vpop.f32.mrb[15].mxu0  ;;  %1513 = vst.msk [vmem:[#allocation2 + $0x14] ss:$8 sm:$0x3] %vm6993_vm3, %v1510_v16  ;;  %v1661_v41 = vpack.c.bf16 %v1656_v27, %v1656_v27 }
 0x5f7   : > { %1554 = vst.msk [vmem:[#allocation2 + $0x34] ss:$8 sm:$0x3] %vm6993_vm3, %v1551_v24  ;;  %1748 = vxpose.xlu1.c.b16.start.end [1/1] (short) %v1660_v8, 128 }
 0x5f8   : > { %1764 = vxpose.xlu0.c.b16.start.end [1/1] (short) %v1661_v41, 128 }
 0x5f9   : > { %v7019_v62 = vpop.f32.mrb[16].mxu0 }
 0x5fa   : > { %9309 = vst [vmem:[#allocation9_spill] sm:$0xff] %v7019_v62  ;;  %v1741_v55 = vpop.f32.mrb[17].mxu0 }
 0x5fb   : > { %v1742_v22 = vadd.f32 %v1741_v55, %v6967_v35  ;;  %v1743_v12 = vpop.f32.mrb[18].mxu0 }
 0x5fc   : > { %v1744_v6 = vpop.f32.mrb[19].mxu0 }
 0x5fd   : > { %v1747_v26 = vpack.c.bf16 %v1742_v22, %v1742_v22 }
 0x5ff   : > { %2571 = vmatprep.mubr.bf16.mxu0 %v1747_v26 }
 0x65d   : > { %v1756_v53 = vpop.trf.xlu1 }
 0x65e   : > { %5350 = vmatmul.mubr.msk.bf16.vlgmr.msra.gmra.mrb[80].mxu1 %vm481_vm2, %v1756_v53  ;;  %v1772_v38 = vpop.trf.xlu0 }
 0x65f   : > { %1876 = vmatprep.mubr.bf16.mxu1 %v9301_v1  ;;  %2677 = vmatpush1.bf16.msra.mxu1 %v2672_v21 }
 0x660   : > { %2678 = vmatprep.subr.bf16.mxu1 %v2675_v11 }
 0x661   : > { %v1757_v4 = vpop.trf.xlu1 }
 0x662   : > { %v1773_v49 = vpop.trf.xlu0 }
 0x663   : > { %2679 = vmatpush1.bf16.msra.mxu1 %v2674_v46 }
 0x665   : > { %v1758_v59 = vpop.trf.xlu1 }
 0x666   : > { %5351 = vmatmul.mubr.msk.bf16.gmra.mrb[84].mxu1 %vm481_vm2, %v1757_v4  ;;  %v1774_v5 = vpop.trf.xlu0 }
 0x667   : > { %1886 = vmatprep.mubr.bf16.mxu1 %v9301_v1 }
 0x669   : > { %v1759_v14 = vpop.trf.xlu1 }
 0x66a   : > { %v1775_v23 = vpop.trf.xlu0 }
 0x66d   : > { %v1760_v54 = vpop.trf.xlu1 }
 0x66e   : > { %5352 = vmatmul.mubr.msk.bf16.gmra.mrb[88].mxu1 %vm481_vm2, %v1758_v59  ;;  %v1776_v31 = vpop.trf.xlu0 }
 0x66f   : > { %1896 = vmatprep.mubr.bf16.mxu1 %v9301_v1 }
 0x671   : > { %v1761_v7 = vpop.trf.xlu1 }
 0x672   : > { %v1777_v61 = vpop.trf.xlu0 }
 0x675   : > { %v1762_v29 = vpop.trf.xlu1 }
 0x676   : > { %5353 = vmatmul.mubr.msk.bf16.gmra.mrb[92].mxu1 %vm481_vm2, %v1759_v14  ;;  %v1778_v9 = vpop.trf.xlu0 }
 0x677   : > { %1906 = vmatprep.mubr.bf16.mxu1 %v9301_v1 }
 0x679   : > { %v1763_v52 = vpop.trf.xlu1 }
 0x67a   : > { %v1779_v45 = vpop.trf.xlu0 }
 0x67e   : > { %5354 = vmatmul.mubr.msk.bf16.gmra.mrb[96].mxu1 %vm481_vm2, %v1760_v54 }
 0x67f   : > { %1916 = vmatprep.mubr.bf16.mxu1 %v9301_v1 }
 0x686   : > { %5355 = vmatmul.mubr.msk.bf16.gmra.mrb[100].mxu1 %vm481_vm2, %v1761_v7 }
 0x687   : > { %1926 = vmatprep.mubr.bf16.mxu1 %v9301_v1 }
 0x68e   : > { %5356 = vmatmul.mubr.msk.bf16.gmra.mrb[104].mxu1 %vm481_vm2, %v1762_v29 }
 0x68f   : > { %1936 = vmatprep.mubr.bf16.mxu1 %v9301_v1 }
 0x696   : > { %5357 = vmatmul.mubr.msk.bf16.gmra.mrb[108].mxu1 %vm481_vm2, %v1763_v52 }
 0x697   : > { %1946 = vmatprep.mubr.bf16.mxu1 %v9301_v1 }
 0x69e   : > { %5358 = vmatmul.mubr.msk.bf16.gmra.mrb[112].mxu1 %vm481_vm2, %v1772_v38 }
 0x69f   : > { %1956 = vmatprep.mubr.bf16.mxu1 %v9301_v1 }
 0x6a6   : > { %5359 = vmatmul.mubr.msk.bf16.gmra.mrb[116].mxu1 %vm481_vm2, %v1773_v49 }
 0x6a7   : > { %1966 = vmatprep.mubr.bf16.mxu1 %v9301_v1 }
 0x6ae   : > { %5360 = vmatmul.mubr.msk.bf16.gmra.mrb[120].mxu1 %vm481_vm2, %v1774_v5 }
 0x6af   : > { %1976 = vmatprep.mubr.bf16.mxu1 %v9301_v1 }
 0x6b6   : > { %5361 = vmatmul.mubr.msk.bf16.gmra.mrb[124].mxu1 %vm481_vm2, %v1775_v23 }
 0x6b7   : > { %1986 = vmatprep.mubr.bf16.mxu1 %v9301_v1 }
 0x6be   : > { %5362 = vmatmul.mubr.msk.bf16.gmra.mrb[128].mxu1 %vm481_vm2, %v1776_v31 }
 0x6bf   : > { %1996 = vmatprep.mubr.bf16.mxu1 %v9301_v1 }
 0x6c6   : > { %5363 = vmatmul.mubr.msk.bf16.gmra.mrb[132].mxu1 %vm481_vm2, %v1777_v61 }
 0x6c7   : > { %2006 = vmatprep.mubr.bf16.mxu1 %v9301_v1 }
 0x6ce   : > { %5364 = vmatmul.mubr.msk.bf16.gmra.mrb[136].mxu1 %vm481_vm2, %v1778_v9 }
 0x6cf   : > { %2016 = vmatprep.mubr.bf16.mxu1 %v9301_v1 }
 0x6d6   : > { %5365 = vmatmul.mubr.msk.bf16.gmra.mrb[140].mxu1 %vm481_vm2, %v1779_v45 }
 0x6d7   : > { %2708 = vmatprep.mubr.bf16.mxu1 %v9301_v1 }
 0x6de   : > { %5366 = vmatmul.mubr.msk.bf16.vlgmr.msra.gmra.mrb[144].mxu1 %vm427_vm0, %v9310_v25 }
 0x6df   : > { %2802 = vmatprep.mubr.bf16.mxu1 %v9301_v1 }
 0x731   : > { %v7065_v32 = vpop.f32.mrb[80].mxu1 }
 0x732   : > { %v7067_v56 = vpop.f32.mrb[81].mxu1 }
 0x733   : > { %v2027_v42 = vmax.f32 %v7065_v32, %v7067_v56  ;;  %v7071_v48 = vpop.f32.mrb[82].mxu1 }
 0x734   : > { %v7073_v3 = vpop.f32.mrb[83].mxu1 }
 0x735   : > { %v2030_v33 = vmax.f32 %v7071_v48, %v7073_v3  ;;  %2028 = vmax.xlane.f32.xlu1 %v2027_v42 }
 0x737   : > { %2031 = vmax.xlane.f32.xlu0 %v2030_v33 }
 0x739   : > { %v7077_v58 = vpop.f32.mrb[84].mxu1 }
 0x73a   : > { %v7079_v50 = vpop.f32.mrb[85].mxu1 }
 0x73b   : > { %v2033_v2 = vmax.f32 %v7077_v58, %v7079_v50  ;;  %v7083_v63 = vpop.f32.mrb[86].mxu1 }
 0x73c   : > { %v7085_v20 = vpop.f32.mrb[87].mxu1 }
 0x73d   : > { %v2036_v19 = vmax.f32 %v7083_v63, %v7085_v20  ;;  %2034 = vmax.xlane.f32.xlu1 %v2033_v2 }
 0x741   : > { %2037 = vmax.xlane.f32.xlu1 %v2036_v19  ;;  %v7089_v39 = vpop.f32.mrb[88].mxu1 }
 0x742   : > { %v7091_v34 = vpop.f32.mrb[89].mxu1 }
 0x743   : > { %v2039_v16 = vmax.f32 %v7089_v39, %v7091_v34  ;;  %v7095_v24 = vpop.f32.mrb[90].mxu1 }
 0x744   : > { %v7097_v27 = vpop.f32.mrb[91].mxu1 }
 0x745   : > { %v2042_v10 = vmax.f32 %v7095_v24, %v7097_v27  ;;  %2040 = vmax.xlane.f32.xlu0 %v2039_v16 }
 0x747   : > { %2043 = vmax.xlane.f32.xlu1 %v2042_v10 }
 0x749   : > { %v7101_v8 = vpop.f32.mrb[92].mxu1 }
 0x74a   : > { %v7103_v60 = vpop.f32.mrb[93].mxu1 }
 0x74b   : > { %v2045_v41 = vmax.f32 %v7101_v8, %v7103_v60  ;;  %v7107_v55 = vpop.f32.mrb[94].mxu1 }
 0x74c   : > { %v7109_v22 = vpop.f32.mrb[95].mxu1 }
 0x74d   : > { %v2048_v12 = vmax.f32 %v7107_v55, %v7109_v22  ;;  %2046 = vmax.xlane.f32.xlu0 %v2045_v41 }
 0x74f   : > { %2049 = vmax.xlane.f32.xlu1 %v2048_v12 }
 0x751   : > { %v7113_v6 = vpop.f32.mrb[96].mxu1 }
 0x752   : > { %v7115_v26 = vpop.f32.mrb[97].mxu1 }
 0x753   : > { %v2051_v40 = vmax.f32 %v7113_v6, %v7115_v26  ;;  %v7119_v17 = vpop.f32.mrb[98].mxu1 }
 0x754   : > { %v7121_v43 = vpop.f32.mrb[99].mxu1 }
 0x755   : > { %v2054_v13 = vmax.f32 %v7119_v17, %v7121_v43  ;;  %2052 = vmax.xlane.f32.xlu0 %v2051_v40 }
 0x757   : > { %2055 = vmax.xlane.f32.xlu1 %v2054_v13 }
 0x759   : > { %v7125_v15 = vpop.f32.mrb[100].mxu1 }
 0x75a   : > { %v7127_v57 = vpop.f32.mrb[101].mxu1 }
 0x75b   : > { %v2057_v0 = vmax.f32 %v7125_v15, %v7127_v57  ;;  %v7131_v21 = vpop.f32.mrb[102].mxu1 }
 0x75c   : > { %v7133_v11 = vpop.f32.mrb[103].mxu1 }
 0x75d   : > { %v2060_v28 = vmax.f32 %v7131_v21, %v7133_v11  ;;  %2058 = vmax.xlane.f32.xlu0 %v2057_v0 }
 0x75f   : > { %2061 = vmax.xlane.f32.xlu1 %v2060_v28 }
 0x761   : > { %v7137_v37 = vpop.f32.mrb[104].mxu1 }
 0x762   : > { %v7139_v53 = vpop.f32.mrb[105].mxu1 }
 0x763   : > { %v2063_v46 = vmax.f32 %v7137_v37, %v7139_v53  ;;  %v7143_v4 = vpop.f32.mrb[106].mxu1 }
 0x764   : > { %v7145_v59 = vpop.f32.mrb[107].mxu1 }
 0x765   : > { %v2066_v14 = vmax.f32 %v7143_v4, %v7145_v59  ;;  %2064 = vmax.xlane.f32.xlu0 %v2063_v46 }
 0x767   : > { %2067 = vmax.xlane.f32.xlu1 %v2066_v14 }
 0x769   : > { %v7149_v54 = vpop.f32.mrb[108].mxu1 }
 0x76a   : > { %v7151_v7 = vpop.f32.mrb[109].mxu1 }
 0x76b   : > { %v2069_v29 = vmax.f32 %v7149_v54, %v7151_v7  ;;  %v7155_v52 = vpop.f32.mrb[110].mxu1 }
 0x76c   : > { %v7157_v38 = vpop.f32.mrb[111].mxu1 }
 0x76d   : > { %v2072_v49 = vmax.f32 %v7155_v52, %v7157_v38  ;;  %2070 = vmax.xlane.f32.xlu0 %v2069_v29 }
 0x76f   : > { %2073 = vmax.xlane.f32.xlu1 %v2072_v49 }
 0x771   : > { %v7161_v5 = vpop.f32.mrb[112].mxu1 }
 0x772   : > { %v7163_v23 = vpop.f32.mrb[113].mxu1 }
 0x773   : > { %v2075_v31 = vmax.f32 %v7161_v5, %v7163_v23  ;;  %v7167_v61 = vpop.f32.mrb[114].mxu1 }
 0x774   : > { %9311 = vst [vmem:[#allocation13_spill] sm:$0xff] %v7167_v61  ;;  %v7169_v9 = vpop.f32.mrb[115].mxu1 }
 0x775   : > { %9312 = vst [vmem:[#allocation15_spill] sm:$0xff] %v7169_v9  ;;  %v2078_v45 = vmax.f32 %v7167_v61, %v7169_v9  ;;  %2076 = vmax.xlane.f32.xlu0 %v2075_v31 }
 0x777   : > { %2079 = vmax.xlane.f32.xlu1 %v2078_v45 }
 0x779   : > { %v7173_v42 = vpop.f32.mrb[116].mxu1 }
 0x77a   : > { %9313 = vst [vmem:[#allocation14_spill] sm:$0xff] %v7173_v42  ;;  %v7175_v33 = vpop.f32.mrb[117].mxu1 }
 0x77b   : > { %9314 = vst [vmem:[#allocation12_spill] sm:$0xff] %v7175_v33  ;;  %v2081_v2 = vmax.f32 %v7173_v42, %v7175_v33  ;;  %v7179_v19 = vpop.f32.mrb[118].mxu1 }
 0x77c   : > { %9315 = vst [vmem:[#allocation18_spill] sm:$0xff] %v7179_v19  ;;  %v7181_v16 = vpop.f32.mrb[119].mxu1 }
 0x77d   : > { %9316 = vst [vmem:[#allocation17_spill] sm:$0xff] %v7181_v16  ;;  %v2084_v10 = vmax.f32 %v7179_v19, %v7181_v16  ;;  %2082 = vmax.xlane.f32.xlu0 %v2081_v2 }
 0x77f   : > { %2085 = vmax.xlane.f32.xlu1 %v2084_v10 }
 0x781   : > { %v7185_v41 = vpop.f32.mrb[120].mxu1 }
 0x782   : > { %9317 = vst [vmem:[#allocation16_spill] sm:$0xff] %v7185_v41  ;;  %v7187_v12 = vpop.f32.mrb[121].mxu1 }
 0x783   : > { %9318 = vst [vmem:[#allocation20_spill] sm:$0xff] %v7187_v12  ;;  %v2087_v40 = vmax.f32 %v7185_v41, %v7187_v12  ;;  %v7191_v13 = vpop.f32.mrb[122].mxu1 }
 0x784   : > { %9319 = vst [vmem:[#allocation22_spill] sm:$0xff] %v7191_v13  ;;  %v7193_v0 = vpop.f32.mrb[123].mxu1 }
 0x785   : > { %9320 = vst [vmem:[#allocation21_spill] sm:$0xff] %v7193_v0  ;;  %v2090_v28 = vmax.f32 %v7191_v13, %v7193_v0  ;;  %2088 = vmax.xlane.f32.xlu0 %v2087_v40  ;;  %v9325_v13 = vld [vmem:[#allocation4_spill] sm:$0xff] }
 0x787   : > { %2091 = vmax.xlane.f32.xlu1 %v2090_v28 }
 0x789   : > { %v7197_v46 = vpop.f32.mrb[124].mxu1 }
 0x78a   : > { %9321 = vst [vmem:[#allocation19_spill] sm:$0xff] %v7197_v46  ;;  %v7199_v14 = vpop.f32.mrb[125].mxu1 }
 0x78b   : > { %9322 = vst [vmem:[#allocation25_spill] sm:$0xff] %v7199_v14  ;;  %v2093_v29 = vmax.f32 %v7197_v46, %v7199_v14  ;;  %v7203_v49 = vpop.f32.mrb[126].mxu1 }
 0x78c   : > { %9323 = vst [vmem:[#allocation26_spill] sm:$0xff] %v7203_v49  ;;  %v7205_v31 = vpop.f32.mrb[127].mxu1 }
 0x78d   : > { %9324 = vst [vmem:[#allocation27_spill] sm:$0xff] %v7205_v31  ;;  %v2096_v45 = vmax.f32 %v7203_v49, %v7205_v31  ;;  %2094 = vmax.xlane.f32.xlu0 %v2093_v29 }
 0x78f   : > { %2097 = vmax.xlane.f32.xlu1 %v2096_v45 }
 0x791   : > { %v7209_v2 = vpop.f32.mrb[128].mxu1 }
 0x792   : > { %v7211_v10 = vpop.f32.mrb[129].mxu1 }
 0x793   : > { %v7215_v28 = vpop.f32.mrb[130].mxu1 }
 0x794   : > { %v7217_v25 = vpop.f32.mrb[131].mxu1 }
 0x799   : > { %v7221_v51 = vpop.f32.mrb[132].mxu1 }
 0x79a   : > { %v7223_v47 = vpop.f32.mrb[133].mxu1 }
 0x79b   : > { %v7227_v45 = vpop.f32.mrb[134].mxu1 }
 0x79c   : > { %v7229_v44 = vpop.f32.mrb[135].mxu1 }
 0x7a1   : > { %v7233_v18 = vpop.f32.mrb[136].mxu1 }
 0x7a2   : > { %v7235_v62 = vpop.f32.mrb[137].mxu1 }
 0x7a3   : > { %v7239_v35 = vpop.f32.mrb[138].mxu1 }
 0x7a4   : > { %v7241_v30 = vpop.f32.mrb[139].mxu1 }
 0x7a9   : > { %v7245_v31 = vpop.f32.mrb[140].mxu1 }
 0x7aa   : > { %v7247_v49 = vpop.f32.mrb[141].mxu1 }
 0x7ab   : > { %v7251_v14 = vpop.f32.mrb[142].mxu1 }
 0x7ac   : > { %v7253_v46 = vpop.f32.mrb[143].mxu1 }
 0x7b1   : > { %v2710_v0 = vpop.f32.mrb[144].mxu1 }
 0x7b2   : > { %v2711_v12 = vadd.f32 %v2710_v0, %v9325_v13  ;;  %v2712_v41 = vpop.f32.mrb[145].mxu1 }
 0x7b3   : > { %v2713_v29 = vadd.f32 %v2712_v41, %v9325_v13  ;;  %v2714_v16 = vpop.f32.mrb[146].mxu1 }
 0x7b4   : > { %v2717_v19 = vmax.f32 %v2711_v12, 0.0  ;;  %v2715_v33 = vpop.f32.mrb[147].mxu1 }
 0x7b5   : > { %v2718_v42 = vmax.f32 %v2713_v29, 0.0 }
 0x7b6   : > { %v2719_v9 = vpack.c.bf16 %v2717_v19, %v2717_v19 }
 0x7b7   : > { %v7259_v61 = vpack.c.bf16 %v2718_v42, %v2718_v42 }
 0x7b8   : > { %v7262_v40 = vsel %vm485_vm1, %v2719_v9, 0 }
 0x7b9   : > { %9326 = vst [vmem:[#allocation28_spill] sm:$0xff] %v7259_v61  ;;  %9327 = vst [vmem:[#allocation29_spill] sm:$0xff] %v7262_v40  ;;  %5369 = vmatprep.subr.msk.bf16.mxu1 %vm485_vm1, %v7259_v61 }
 0x7ba   : > { %2771 = vmatpush1.bf16.msra.mxu1 %v7262_v40 }
 0x7bd   : > { %5370 = vmatmul.mubr.msk.bf16.vlgmr.msra.gmra.mrb[148].mxu1 %vm481_vm2, %v9328_v36 }
 0x7be   : > { %2974 = vmatprep.mubr.bf16.mxu1 %v9301_v1 }
 0x7c2   : > { %v2029_v16 = vpop.xlane.xlu1 %2028 }
 0x7c3   : > { %v2123_v33 = vsub.f32 %v7065_v32, %v2029_v16  ;;  %v2124_v19 = vsub.f32 %v7067_v56, %v2029_v16 }
 0x7c4   : > { %v2032_v42 = vpop.xlane.xlu0 %2031 }
 0x7c5   : > { %v2187_v41 = vmul.f32 1.442695, %v2123_v33  ;;  %v2189_v12 = vmul.f32 1.442695, %v2124_v19  ;;  %v2125_v9 = vsub.f32 %v7071_v48, %v2032_v42  ;;  %v2126_v0 = vsub.f32 %v7073_v3, %v2032_v42 }
 0x7c7   : > { %5634 = vpow2.f32 %v2187_v41  ;;  %v2191_v29 = vmul.f32 1.442695, %v2125_v9  ;;  %v2193_v13 = vmul.f32 1.442695, %v2126_v0 }
 0x7c8   : > { %5636 = vpow2.f32 %v2189_v12 }
 0x7c9   : > { %5638 = vpow2.f32 %v2191_v29 }
 0x7ca   : > { %5640 = vpow2.f32 %v2193_v13  ;;  %v2035_v36 = vpop.xlane.xlu1 %2034 }
 0x7cb   : > { %v2127_v1 = vsub.f32 %v7077_v58, %v2035_v36  ;;  %v2128_v32 = vsub.f32 %v7079_v50, %v2035_v36 }
 0x7cd   : > { %v2195_v40 = vmul.f32 1.442695, %v2127_v1  ;;  %v2197_v56 = vmul.f32 1.442695, %v2128_v32 }
 0x7ce   : > { %v2038_v16 = vpop.xlane.xlu1 %2037 }
 0x7cf   : > { %5642 = vpow2.f32 %v2195_v40  ;;  %v2129_v33 = vsub.f32 %v7083_v63, %v2038_v16  ;;  %v2130_v48 = vsub.f32 %v7085_v20, %v2038_v16 }
 0x7d0   : > { %5644 = vpow2.f32 %v2197_v56  ;;  %v9329_v56 = vmax.f32 %v7209_v2, %v7211_v10 }
 0x7d1   : > { %v7278_v3 = vpop.eup %5634  ;;  %v2199_v19 = vmul.f32 1.442695, %v2129_v33  ;;  %v2201_v42 = vmul.f32 1.442695, %v2130_v48 }
 0x7d2   : > { %v7280_v41 = vpop.eup %5636  ;;  %v2041_v13 = vpop.xlane.xlu0 %2040 }
 0x7d3   : > { %v7282_v12 = vpop.eup %5638  ;;  %5646 = vpow2.f32 %v2199_v19  ;;  %v2131_v1 = vsub.f32 %v7089_v39, %v2041_v13  ;;  %v2132_v36 = vsub.f32 %v7091_v34, %v2041_v13  ;;  %v2315_v58 = vadd.f32 %v7280_v41, %v7278_v3 }
 0x7d4   : > { %v7288_v50 = vpop.eup %5640  ;;  %5648 = vpow2.f32 %v2201_v42  ;;  %v2044_v63 = vpop.xlane.xlu1 %2043  ;;  %v9330_v19 = vmax.f32 %v7215_v28, %v7217_v25 }
 0x7d5   : > { %v2203_v20 = vmul.f32 1.442695, %v2131_v1  ;;  %v2205_v40 = vmul.f32 1.442695, %v2132_v36  ;;  %2316 = vadd.xlane.f32.xlu0 %v2315_v58  ;;  %v2133_v9 = vsub.f32 %v7095_v24, %v2044_v63  ;;  %v2134_v0 = vsub.f32 %v7097_v27, %v2044_v63 }
 0x7d6   : > { %v2318_v29 = vadd.f32 %v7288_v50, %v7282_v12 }
 0x7d7   : > { %5650 = vpow2.f32 %v2203_v20  ;;  %v2207_v39 = vmul.f32 1.442695, %v2133_v9  ;;  %v2209_v34 = vmul.f32 1.442695, %v2134_v0  ;;  %v9331_v0 = vmax.f32 %v7221_v51, %v7223_v47 }
 0x7d8   : > { %5652 = vpow2.f32 %v2205_v40  ;;  %2319 = vadd.xlane.f32.xlu1 %v2318_v29 }
 0x7d9   : > { %v7294_v32 = vpop.eup %5642  ;;  %5654 = vpow2.f32 %v2207_v39  ;;  %2100 = vmax.xlane.f32.xlu0 %v9329_v56 }
 0x7da   : > { %v7299_v16 = vpop.eup %5644  ;;  %5656 = vpow2.f32 %v2209_v34  ;;  %v2047_v24 = vpop.xlane.xlu0 %2046 }
 0x7db   : > { %v2135_v27 = vsub.f32 %v7101_v8, %v2047_v24  ;;  %v2136_v33 = vsub.f32 %v7103_v60, %v2047_v24  ;;  %v2321_v48 = vadd.f32 %v7299_v16, %v7294_v32 }
 0x7dc   : > { %2103 = vmax.xlane.f32.xlu1 %v9330_v19  ;;  %v2050_v42 = vpop.xlane.xlu1 %2049  ;;  %v9332_v19 = vmax.f32 %v7227_v45, %v7229_v44 }
 0x7dd   : > { %v7308_v13 = vpop.eup %5646  ;;  %v2211_v1 = vmul.f32 1.442695, %v2135_v27  ;;  %v2213_v36 = vmul.f32 1.442695, %v2136_v33  ;;  %2322 = vadd.xlane.f32.xlu0 %v2321_v48  ;;  %v2137_v58 = vsub.f32 %v7107_v55, %v2050_v42  ;;  %v2138_v63 = vsub.f32 %v7109_v22, %v2050_v42 }
 0x7de   : > { %v7312_v8 = vpop.eup %5648 }
 0x7df   : > { %5658 = vpow2.f32 %v2211_v1  ;;  %v2215_v60 = vmul.f32 1.442695, %v2137_v58  ;;  %v2217_v20 = vmul.f32 1.442695, %v2138_v63  ;;  %v2324_v40 = vadd.f32 %v7312_v8, %v7308_v13 }
 0x7e0   : > { %5660 = vpow2.f32 %v2213_v36  ;;  %v9333_v63 = vmax.f32 %v7233_v18, %v7235_v62 }
 0x7e1   : > { %v7316_v9 = vpop.eup %5650  ;;  %5662 = vpow2.f32 %v2215_v60  ;;  %2106 = vmax.xlane.f32.xlu0 %v9331_v0  ;;  %2325 = vadd.xlane.f32.xlu1 %v2324_v40 }
 0x7e2   : > { %v7321_v55 = vpop.eup %5652  ;;  %5664 = vpow2.f32 %v2217_v20  ;;  %v2053_v22 = vpop.xlane.xlu0 %2052 }
 0x7e3   : > { %v7323_v29 = vpop.eup %5654  ;;  %v2139_v39 = vsub.f32 %v7113_v6, %v2053_v22  ;;  %v2140_v34 = vsub.f32 %v7115_v26, %v2053_v22  ;;  %v2327_v56 = vadd.f32 %v7321_v55, %v7316_v9 }
 0x7e4   : > { %v7329_v24 = vpop.eup %5656  ;;  %v2056_v27 = vpop.xlane.xlu1 %2055 }
 0x7e5   : > { %v2219_v33 = vmul.f32 1.442695, %v2139_v39  ;;  %v2221_v48 = vmul.f32 1.442695, %v2140_v34  ;;  %2328 = vadd.xlane.f32.xlu0 %v2327_v56  ;;  %2109 = vmax.xlane.f32.xlu1 %v9332_v19  ;;  %v2141_v42 = vsub.f32 %v7119_v17, %v2056_v27  ;;  %v2142_v1 = vsub.f32 %v7121_v43, %v2056_v27 }
 0x7e6   : > { %v2330_v36 = vadd.f32 %v7329_v24, %v7323_v29  ;;  %v9334_v27 = vmax.f32 %v7239_v35, %v7241_v30 }
 0x7e7   : > { %5666 = vpow2.f32 %v2219_v33  ;;  %v2223_v6 = vmul.f32 1.442695, %v2141_v42  ;;  %v2225_v26 = vmul.f32 1.442695, %v2142_v1  ;;  %v9335_v1 = vmax.f32 %v7245_v31, %v7247_v49 }
 0x7e8   : > { %5668 = vpow2.f32 %v2221_v48 }
 0x7e9   : > { %v7338_v58 = vpop.eup %5658  ;;  %5670 = vpow2.f32 %v2223_v6  ;;  %2112 = vmax.xlane.f32.xlu0 %v9333_v63  ;;  %2331 = vadd.xlane.f32.xlu1 %v2330_v36 }
 0x7ea   : > { %v7343_v60 = vpop.eup %5660  ;;  %5672 = vpow2.f32 %v2225_v26  ;;  %v2059_v17 = vpop.xlane.xlu0 %2058 }
 0x7eb   : > { %v7345_v43 = vpop.eup %5662  ;;  %v2143_v20 = vsub.f32 %v7125_v15, %v2059_v17  ;;  %v2144_v40 = vsub.f32 %v7127_v57, %v2059_v17  ;;  %v2333_v0 = vadd.f32 %v7343_v60, %v7338_v58 }
 0x7ec   : > { %v7351_v22 = vpop.eup %5664  ;;  %v2062_v39 = vpop.xlane.xlu1 %2061 }
 0x7ed   : > { %v2227_v34 = vmul.f32 1.442695, %v2143_v20  ;;  %v2229_v56 = vmul.f32 1.442695, %v2144_v40  ;;  %2334 = vadd.xlane.f32.xlu0 %v2333_v0  ;;  %2115 = vmax.xlane.f32.xlu1 %v9334_v27  ;;  %v2145_v33 = vsub.f32 %v7131_v21, %v2062_v39  ;;  %v2146_v48 = vsub.f32 %v7133_v11, %v2062_v39 }
 0x7ee   : > { %v2336_v19 = vadd.f32 %v7351_v22, %v7345_v43  ;;  %v9336_v39 = vmax.f32 %v7251_v14, %v7253_v46 }
 0x7ef   : > { %5674 = vpow2.f32 %v2227_v34  ;;  %v2231_v15 = vmul.f32 1.442695, %v2145_v33  ;;  %v2233_v57 = vmul.f32 1.442695, %v2146_v48 }
 0x7f0   : > { %5676 = vpow2.f32 %v2229_v56 }
 0x7f1   : > { %v7360_v42 = vpop.eup %5666  ;;  %5678 = vpow2.f32 %v2231_v15  ;;  %2118 = vmax.xlane.f32.xlu0 %v9335_v1  ;;  %2337 = vadd.xlane.f32.xlu1 %v2336_v19 }
 0x7f2   : > { %v7365_v6 = vpop.eup %5668  ;;  %5680 = vpow2.f32 %v2233_v57  ;;  %v2065_v21 = vpop.xlane.xlu0 %2064 }
 0x7f3   : > { %v7367_v11 = vpop.eup %5670  ;;  %v2147_v26 = vsub.f32 %v7137_v37, %v2065_v21  ;;  %v2148_v36 = vsub.f32 %v7139_v53, %v2065_v21  ;;  %v2339_v63 = vadd.f32 %v7365_v6, %v7360_v42 }
 0x7f4   : > { %v7373_v17 = vpop.eup %5672  ;;  %v2068_v20 = vpop.xlane.xlu1 %2067 }
 0x7f5   : > { %v2235_v40 = vmul.f32 1.442695, %v2147_v26  ;;  %v2237_v0 = vmul.f32 1.442695, %v2148_v36  ;;  %2340 = vadd.xlane.f32.xlu0 %v2339_v63  ;;  %2121 = vmax.xlane.f32.xlu1 %v9336_v39  ;;  %v2149_v34 = vsub.f32 %v7143_v4, %v2068_v20  ;;  %v2150_v56 = vsub.f32 %v7145_v59, %v2068_v20 }
 0x7f6   : > { %v2342_v27 = vadd.f32 %v7373_v17, %v7367_v11 }
 0x7f7   : > { %5682 = vpow2.f32 %v2235_v40  ;;  %v2239_v37 = vmul.f32 1.442695, %v2149_v34  ;;  %v2241_v53 = vmul.f32 1.442695, %v2150_v56 }
 0x7f8   : > { %5684 = vpow2.f32 %v2237_v0 }
 0x7f9   : > { %v7382_v33 = vpop.eup %5674  ;;  %5686 = vpow2.f32 %v2239_v37  ;;  %2343 = vadd.xlane.f32.xlu1 %v2342_v27 }
 0x7fa   : > { %v7384_v48 = vpop.eup %5676  ;;  %5688 = vpow2.f32 %v2241_v53  ;;  %v2071_v15 = vpop.xlane.xlu0 %2070 }
 0x7fb   : > { %v7386_v57 = vpop.eup %5678  ;;  %v2151_v4 = vsub.f32 %v7149_v54, %v2071_v15  ;;  %v2152_v59 = vsub.f32 %v7151_v7, %v2071_v15  ;;  %v2345_v19 = vadd.f32 %v7384_v48, %v7382_v33 }
 0x7fc   : > { %v7392_v1 = vpop.eup %5680  ;;  %v2074_v21 = vpop.xlane.xlu1 %2073 }
 0x7fd   : > { %v2243_v26 = vmul.f32 1.442695, %v2151_v4  ;;  %v2245_v36 = vmul.f32 1.442695, %v2152_v59  ;;  %2346 = vadd.xlane.f32.xlu0 %v2345_v19  ;;  %v2153_v63 = vsub.f32 %v7155_v52, %v2074_v21  ;;  %v2154_v20 = vsub.f32 %v7157_v38, %v2074_v21  ;;  %v9337_v59 = vld [vmem:[#allocation13_spill] sm:$0xff]  ;;  %v9338_v21 = vld [vmem:[#allocation15_spill] sm:$0xff] }
 0x7fe   : > { %v2348_v40 = vadd.f32 %v7392_v1, %v7386_v57 }
 0x7ff   : > { %5690 = vpow2.f32 %v2243_v26  ;;  %v2247_v54 = vmul.f32 1.442695, %v2153_v63  ;;  %v2249_v0 = vmul.f32 1.442695, %v2154_v20 }
 0x800   : > { %5692 = vpow2.f32 %v2245_v36  ;;  %2349 = vadd.xlane.f32.xlu1 %v2348_v40 }
 0x801   : > { %v7398_v7 = vpop.eup %5682  ;;  %5694 = vpow2.f32 %v2247_v54 }
 0x802   : > { %v7400_v39 = vpop.eup %5684  ;;  %5696 = vpow2.f32 %v2249_v0  ;;  %v2077_v34 = vpop.xlane.xlu0 %2076  ;;  %v9341_v0 = vld [vmem:[#allocation14_spill] sm:$0xff] }
 0x803   : > { %v7402_v56 = vpop.eup %5686  ;;  %v2155_v52 = vsub.f32 %v7161_v5, %v2077_v34  ;;  %v2156_v38 = vsub.f32 %v7163_v23, %v2077_v34  ;;  %v2351_v37 = vadd.f32 %v7400_v39, %v7398_v7 }
 0x804   : > { %v7408_v53 = vpop.eup %5688  ;;  %v2080_v27 = vpop.xlane.xlu1 %2079 }
 0x805   : > { %v2251_v15 = vmul.f32 1.442695, %v2155_v52  ;;  %v2253_v4 = vmul.f32 1.442695, %v2156_v38  ;;  %2352 = vadd.xlane.f32.xlu0 %v2351_v37  ;;  %v2157_v19 = vsub.f32 %v9337_v59, %v2080_v27  ;;  %v2158_v26 = vsub.f32 %v9338_v21, %v2080_v27  ;;  %v9342_v52 = vld [vmem:[#allocation12_spill] sm:$0xff] }
 0x806   : > { %v2354_v36 = vadd.f32 %v7408_v53, %v7402_v56 }
 0x807   : > { %5698 = vpow2.f32 %v2251_v15  ;;  %v2255_v5 = vmul.f32 1.442695, %v2157_v19  ;;  %v2257_v63 = vmul.f32 1.442695, %v2158_v26  ;;  %v9344_v19 = vld [vmem:[#allocation18_spill] sm:$0xff]  ;;  %v9345_v26 = vld [vmem:[#allocation17_spill] sm:$0xff] }
 0x808   : > { %5700 = vpow2.f32 %v2253_v4  ;;  %2355 = vadd.xlane.f32.xlu1 %v2354_v36 }
 0x809   : > { %v7414_v23 = vpop.eup %5690  ;;  %5702 = vpow2.f32 %v2255_v5 }
 0x80a   : > { %9339 = vst [vmem:[#allocation13_spill] sm:$0xff] %v7414_v23  ;;  %v7416_v20 = vpop.eup %5692  ;;  %5704 = vpow2.f32 %v2257_v63  ;;  %v2083_v40 = vpop.xlane.xlu0 %2082 }
 0x80b   : > { %v7418_v54 = vpop.eup %5694  ;;  %v2159_v34 = vsub.f32 %v9341_v0, %v2083_v40  ;;  %v2160_v38 = vsub.f32 %v9342_v52, %v2083_v40  ;;  %v2357_v37 = vadd.f32 %v7416_v20, %v7414_v23  ;;  %v9353_v23 = vld [vmem:[#allocation21_spill] sm:$0xff] }
 0x80c   : > { %9340 = vst [vmem:[#allocation15_spill] sm:$0xff] %v7418_v54  ;;  %v7424_v27 = vpop.eup %5696  ;;  %v2086_v15 = vpop.xlane.xlu1 %2085 }
 0x80d   : > { %9343 = vst [vmem:[#allocation14_spill] sm:$0xff] %v7424_v27  ;;  %v2259_v4 = vmul.f32 1.442695, %v2159_v34  ;;  %v2261_v59 = vmul.f32 1.442695, %v2160_v38  ;;  %2358 = vadd.xlane.f32.xlu0 %v2357_v37  ;;  %v2161_v21 = vsub.f32 %v9344_v19, %v2086_v15  ;;  %v2162_v36 = vsub.f32 %v9345_v26, %v2086_v15  ;;  %v9349_v37 = vld [vmem:[#allocation16_spill] sm:$0xff] }
 0x80e   : > { %v2360_v5 = vadd.f32 %v7424_v27, %v7418_v54  ;;  %v9350_v15 = vld [vmem:[#allocation20_spill] sm:$0xff] }
 0x80f   : > { %5706 = vpow2.f32 %v2259_v4  ;;  %v2263_v63 = vmul.f32 1.442695, %v2161_v21  ;;  %v2265_v0 = vmul.f32 1.442695, %v2162_v36 }
 0x810   : > { %5708 = vpow2.f32 %v2261_v59  ;;  %2361 = vadd.xlane.f32.xlu1 %v2360_v5 }
 0x811   : > { %v7430_v40 = vpop.eup %5698  ;;  %5710 = vpow2.f32 %v2263_v63  ;;  %v9352_v63 = vld [vmem:[#allocation22_spill] sm:$0xff] }
 0x812   : > { %9346 = vst [vmem:[#allocation12_spill] sm:$0xff] %v7430_v40  ;;  %v7432_v52 = vpop.eup %5700  ;;  %5712 = vpow2.f32 %v2265_v0  ;;  %v2089_v34 = vpop.xlane.xlu0 %2088 }
 0x813   : > { %9347 = vst [vmem:[#allocation18_spill] sm:$0xff] %v7432_v52  ;;  %v7434_v38 = vpop.eup %5702  ;;  %v2163_v19 = vsub.f32 %v9349_v37, %v2089_v34  ;;  %v2164_v26 = vsub.f32 %v9350_v15, %v2089_v34  ;;  %v2363_v4 = vadd.f32 %v7432_v52, %v7430_v40 }
 0x814   : > { %9348 = vst [vmem:[#allocation17_spill] sm:$0xff] %v7434_v38  ;;  %v7440_v21 = vpop.eup %5704  ;;  %v2092_v59 = vpop.xlane.xlu1 %2091 }
 0x815   : > { %9351 = vst [vmem:[#allocation16_spill] sm:$0xff] %v7440_v21  ;;  %v2267_v36 = vmul.f32 1.442695, %v2163_v19  ;;  %v2269_v5 = vmul.f32 1.442695, %v2164_v26  ;;  %2364 = vadd.xlane.f32.xlu0 %v2363_v4  ;;  %v2165_v61 = vsub.f32 %v9352_v63, %v2092_v59  ;;  %v2166_v0 = vsub.f32 %v9353_v23, %v2092_v59  ;;  %v9354_v4 = vld [vmem:[#allocation19_spill] sm:$0xff] }
 0x816   : > { %v2366_v54 = vadd.f32 %v7440_v21, %v7434_v38  ;;  %v9355_v23 = vld [vmem:[#allocation25_spill] sm:$0xff]  ;;  %v9357_v38 = vld [vmem:[#allocation27_spill] sm:$0xff] }
 0x817   : > { %5714 = vpow2.f32 %v2267_v36  ;;  %v2271_v37 = vmul.f32 1.442695, %v2165_v61  ;;  %v2273_v27 = vmul.f32 1.442695, %v2166_v0 }
 0x818   : > { %5716 = vpow2.f32 %v2269_v5  ;;  %2367 = vadd.xlane.f32.xlu1 %v2366_v54 }
 0x819   : > { %v7446_v34 = vpop.eup %5706  ;;  %5718 = vpow2.f32 %v2271_v37  ;;  %v9356_v37 = vld [vmem:[#allocation26_spill] sm:$0xff] }
 0x81a   : > { %v7448_v15 = vpop.eup %5708  ;;  %5720 = vpow2.f32 %v2273_v27  ;;  %v2095_v19 = vpop.xlane.xlu0 %2094 }
 0x81b   : > { %v7450_v26 = vpop.eup %5710  ;;  %v2167_v63 = vsub.f32 %v9354_v4, %v2095_v19  ;;  %v2168_v59 = vsub.f32 %v9355_v23, %v2095_v19  ;;  %v2369_v36 = vadd.f32 %v7448_v15, %v7446_v34 }
 0x81c   : > { %v7456_v61 = vpop.eup %5712  ;;  %v2098_v5 = vpop.xlane.xlu1 %2097 }
 0x81d   : > { %v2275_v54 = vmul.f32 1.442695, %v2167_v63  ;;  %v2277_v0 = vmul.f32 1.442695, %v2168_v59  ;;  %2370 = vadd.xlane.f32.xlu0 %v2369_v36  ;;  %v2169_v40 = vsub.f32 %v9356_v37, %v2098_v5  ;;  %v2170_v27 = vsub.f32 %v9357_v38, %v2098_v5 }
 0x81e   : > { %v2372_v21 = vadd.f32 %v7456_v61, %v7450_v26 }
 0x81f   : > { %5722 = vpow2.f32 %v2275_v54  ;;  %v2279_v4 = vmul.f32 1.442695, %v2169_v40  ;;  %v2281_v52 = vmul.f32 1.442695, %v2170_v27 }
 0x820   : > { %5724 = vpow2.f32 %v2277_v0  ;;  %2373 = vadd.xlane.f32.xlu1 %v2372_v21 }
 0x821   : > { %v7462_v19 = vpop.eup %5714  ;;  %5726 = vpow2.f32 %v2279_v4 }
 0x822   : > { %9358 = vst [vmem:[#allocation20_spill] sm:$0xff] %v7462_v19  ;;  %v7464_v23 = vpop.eup %5716  ;;  %5728 = vpow2.f32 %v2281_v52 }
 0x823   : > { %v7466_v63 = vpop.eup %5718  ;;  %v2375_v59 = vadd.f32 %v7464_v23, %v7462_v19 }
 0x824   : > { %9359 = vst [vmem:[#allocation22_spill] sm:$0xff] %v7466_v63  ;;  %v7470_v38 = vpop.eup %5720 }
 0x825   : > { %9360 = vst [vmem:[#allocation21_spill] sm:$0xff] %v7470_v38  ;;  %2376 = vadd.xlane.f32.xlu0 %v2375_v59  ;;  %v2378_v40 = vadd.f32 %v7470_v38, %v7466_v63 }
 0x827   : > { %2379 = vadd.xlane.f32.xlu1 %v2378_v40 }
 0x829   : > { %v7474_v36 = vpop.eup %5722 }
 0x82a   : > { %9361 = vst [vmem:[#allocation19_spill] sm:$0xff] %v7474_v36  ;;  %v7476_v21 = vpop.eup %5724 }
 0x82b   : > { %9362 = vst [vmem:[#allocation25_spill] sm:$0xff] %v7476_v21  ;;  %v7478_v5 = vpop.eup %5726  ;;  %v2381_v52 = vadd.f32 %v7476_v21, %v7474_v36 }
 0x82c   : > { %9363 = vst [vmem:[#allocation26_spill] sm:$0xff] %v7478_v5  ;;  %v7482_v54 = vpop.eup %5728 }
 0x82d   : > { %9364 = vst [vmem:[#allocation27_spill] sm:$0xff] %v7482_v54  ;;  %2382 = vadd.xlane.f32.xlu0 %v2381_v52  ;;  %v2384_v0 = vadd.f32 %v7482_v54, %v7478_v5 }
 0x82f   : > { %2385 = vadd.xlane.f32.xlu1 %v2384_v0 }
 0x862   : > { %v2317_v37 = vpop.xlane.xlu0 %2316 }
 0x863   : > { %5730 = vrcp.f32 %v2317_v37 }
 0x865   : > { %v2320_v27 = vpop.xlane.xlu1 %2319 }
 0x866   : > { %5732 = vrcp.f32 %v2320_v27  ;;  %v2101_v4 = vpop.xlane.xlu0 %2100 }
 0x867   : > { %v2171_v59 = vsub.f32 %v7209_v2, %v2101_v4  ;;  %v2172_v40 = vsub.f32 %v7211_v10, %v2101_v4 }
 0x869   : > { %v2283_v19 = vmul.f32 1.442695, %v2171_v59  ;;  %v2285_v63 = vmul.f32 1.442695, %v2172_v40  ;;  %v2104_v38 = vpop.xlane.xlu1 %2103 }
 0x86a   : > { %v2173_v36 = vsub.f32 %v7215_v28, %v2104_v38  ;;  %v2174_v52 = vsub.f32 %v7217_v25, %v2104_v38  ;;  %v2323_v21 = vpop.xlane.xlu0 %2322 }
 0x86b   : > { %5734 = vpow2.f32 %v2283_v19 }
 0x86c   : > { %5736 = vpow2.f32 %v2285_v63  ;;  %v2287_v0 = vmul.f32 1.442695, %v2173_v36  ;;  %v2289_v5 = vmul.f32 1.442695, %v2174_v52 }
 0x86d   : > { %v5731_v37 = vpop.eup %5730  ;;  %5738 = vrcp.f32 %v2323_v21 }
 0x86e   : > { %5740 = vpow2.f32 %v2287_v0  ;;  %v2107_v27 = vpop.xlane.xlu0 %2106  ;;  %v2326_v54 = vpop.xlane.xlu1 %2325  ;;  %v2444_v28 = vmul.f32 %v5731_v37, %v7280_v41  ;;  %v2443_v59 = vmul.f32 %v5731_v37, %v7278_v3 }
 0x86f   : > { %5742 = vpow2.f32 %v2289_v5  ;;  %v2175_v2 = vsub.f32 %v7221_v51, %v2107_v27  ;;  %v2176_v10 = vsub.f32 %v7223_v47, %v2107_v27 }
 0x870   : > { %v5733_v4 = vpop.eup %5732  ;;  %5744 = vrcp.f32 %v2326_v54 }
 0x871   : > { %v2291_v25 = vmul.f32 1.442695, %v2175_v2  ;;  %v2293_v38 = vmul.f32 1.442695, %v2176_v10  ;;  %v2446_v19 = vmul.f32 %v5733_v4, %v7288_v50  ;;  %v2445_v63 = vmul.f32 %v5733_v4, %v7282_v12 }
 0x872   : > { %v2329_v36 = vpop.xlane.xlu0 %2328  ;;  %v2110_v21 = vpop.xlane.xlu1 %2109 }
 0x873   : > { %5746 = vpow2.f32 %v2291_v25  ;;  %v2177_v5 = vsub.f32 %v7227_v45, %v2110_v21  ;;  %v2178_v51 = vsub.f32 %v7229_v44, %v2110_v21  ;;  %v2508_v47 = vpack.c.bf16 %v2446_v19, %v2444_v28 }
 0x874   : > { %5748 = vpow2.f32 %v2293_v38  ;;  %v2507_v54 = vpack.c.bf16 %v2445_v63, %v2443_v59 }
 0x875   : > { %v7498_v40 = vpop.eup %5734  ;;  %5750 = vrcp.f32 %v2329_v36  ;;  %v2295_v41 = vmul.f32 1.442695, %v2177_v5  ;;  %v2297_v52 = vmul.f32 1.442695, %v2178_v51  ;;  %2539 = vmatprep.subr.bf16.mxu0 %v2508_v47 }
 0x876   : > { %v7500_v50 = vpop.eup %5736  ;;  %2540 = vmatpush1.bf16.xpose.msra.mxu0 %v2507_v54  ;;  %v2113_v12 = vpop.xlane.xlu0 %2112 }
 0x877   : > { %v2332_v0 = vpop.xlane.xlu1 %2331  ;;  %v5739_v3 = vpop.eup %5738  ;;  %5752 = vpow2.f32 %v2295_v41  ;;  %v2179_v45 = vsub.f32 %v7233_v18, %v2113_v12  ;;  %v2180_v44 = vsub.f32 %v7235_v62, %v2113_v12  ;;  %v2387_v37 = vadd.f32 %v7500_v50, %v7498_v40 }
 0x878   : > { %v7506_v27 = vpop.eup %5740  ;;  %5754 = vpow2.f32 %v2297_v52  ;;  %v2448_v62 = vmul.f32 %v5739_v3, %v7299_v16  ;;  %v2447_v21 = vmul.f32 %v5739_v3, %v7294_v32 }
 0x879   : > { %v7508_v2 = vpop.eup %5742  ;;  %v2299_v10 = vmul.f32 1.442695, %v2179_v45  ;;  %v2301_v4 = vmul.f32 1.442695, %v2180_v44  ;;  %5756 = vrcp.f32 %v2332_v0  ;;  %2388 = vadd.xlane.f32.xlu0 %v2387_v37 }
 0x87a   : > { %v5745_v28 = vpop.eup %5744  ;;  %v2335_v25 = vpop.xlane.xlu0 %2334  ;;  %v2390_v38 = vadd.f32 %v7508_v2, %v7506_v27 }
 0x87b   : > { %v2116_v18 = vpop.xlane.xlu1 %2115  ;;  %5758 = vpow2.f32 %v2299_v10  ;;  %v2450_v36 = vmul.f32 %v5745_v28, %v7312_v8  ;;  %v2449_v59 = vmul.f32 %v5745_v28, %v7308_v13 }
 0x87c   : > { %v2181_v19 = vsub.f32 %v7239_v35, %v2116_v18  ;;  %v2182_v63 = vsub.f32 %v7241_v30, %v2116_v18  ;;  %5760 = vpow2.f32 %v2301_v4  ;;  %2391 = vadd.xlane.f32.xlu1 %v2390_v38 }
 0x87d   : > { %v7518_v5 = vpop.eup %5746  ;;  %v2510_v54 = vpack.c.bf16 %v2450_v36, %v2448_v62  ;;  %5762 = vrcp.f32 %v2335_v25  ;;  %v2509_v52 = vpack.c.bf16 %v2449_v59, %v2447_v21 }
 0x87e   : > { %v2303_v51 = vmul.f32 1.442695, %v2181_v19  ;;  %v2305_v47 = vmul.f32 1.442695, %v2182_v63  ;;  %v7520_v41 = vpop.eup %5748  ;;  %v2119_v16 = vpop.xlane.xlu0 %2118 }
 0x87f   : > { %v2338_v35 = vpop.xlane.xlu1 %2337  ;;  %v5751_v30 = vpop.eup %5750  ;;  %v2183_v8 = vsub.f32 %v7245_v31, %v2119_v16  ;;  %v2184_v12 = vsub.f32 %v7247_v49, %v2119_v16  ;;  %2541 = vmatprep.subr.bf16.mxu0 %v2510_v54  ;;  %v2393_v32 = vadd.f32 %v7520_v41, %v7518_v5 }
 0x880   : > { %5764 = vpow2.f32 %v2303_v51  ;;  %2542 = vmatpush1.bf16.xpose.msra.mxu0 %v2509_v52  ;;  %v2452_v37 = vmul.f32 %v5751_v30, %v7321_v55  ;;  %v2451_v38 = vmul.f32 %v5751_v30, %v7316_v9 }
 0x881   : > { %5766 = vpow2.f32 %v2305_v47  ;;  %v7526_v13 = vpop.eup %5752  ;;  %v2307_v0 = vmul.f32 1.442695, %v2183_v8  ;;  %v2309_v3 = vmul.f32 1.442695, %v2184_v12  ;;  %2394 = vadd.xlane.f32.xlu0 %v2393_v32 }
 0x882   : > { %5768 = vrcp.f32 %v2338_v35  ;;  %v7528_v45 = vpop.eup %5754  ;;  %v2341_v49 = vpop.xlane.xlu0 %2340 }
 0x883   : > { %v2122_v44 = vpop.xlane.xlu1 %2121  ;;  %v5757_v31 = vpop.eup %5756  ;;  %5770 = vpow2.f32 %v2307_v0  ;;  %v2396_v28 = vadd.f32 %v7528_v45, %v7526_v13 }
 0x884   : > { %v2185_v10 = vsub.f32 %v7251_v14, %v2122_v44  ;;  %v2186_v4 = vsub.f32 %v7253_v46, %v2122_v44  ;;  %5772 = vpow2.f32 %v2309_v3  ;;  %v2454_v25 = vmul.f32 %v5757_v31, %v7329_v24 }
 0x885   : > { %v2453_v18 = vmul.f32 %v5757_v31, %v7323_v29  ;;  %v7538_v62 = vpop.eup %5758  ;;  %2397 = vadd.xlane.f32.xlu1 %v2396_v28  ;;  %5774 = vrcp.f32 %v2341_v49 }
 0x886   : > { %v2311_v55 = vmul.f32 1.442695, %v2185_v10  ;;  %v2313_v19 = vmul.f32 1.442695, %v2186_v4  ;;  %v7540_v63 = vpop.eup %5760  ;;  %v2512_v14 = vpack.c.bf16 %v2454_v25, %v2452_v37 }
 0x887   : > { %v2344_v46 = vpop.xlane.xlu1 %2343  ;;  %v2511_v36 = vpack.c.bf16 %v2453_v18, %v2451_v38  ;;  %v2399_v21 = vadd.f32 %v7540_v63, %v7538_v62  ;;  %v5763_v24 = vpop.eup %5762 }
 0x888   : > { %5776 = vpow2.f32 %v2311_v55  ;;  %2543 = vmatprep.subr.bf16.mxu0 %v2512_v14  ;;  %v2456_v54 = vmul.f32 %v5763_v24, %v7343_v60  ;;  %v2455_v35 = vmul.f32 %v5763_v24, %v7338_v58  ;;  %v9365_v58 = vld [vmem:[#allocation8_spill] sm:$0xff] }
 0x889   : > { %5778 = vpow2.f32 %v2313_v19  ;;  %2544 = vmatpush1.bf16.xpose.msra.mxu0 %v2511_v36  ;;  %2400 = vadd.xlane.f32.xlu0 %v2399_v21 }
 0x88a   : > { %v7544_v9 = vpop.eup %5764  ;;  %5780 = vrcp.f32 %v2344_v46  ;;  %v2347_v59 = vpop.xlane.xlu0 %2346 }
 0x88b   : > { %v7546_v29 = vpop.eup %5766  ;;  %5782 = vrcp.f32 %v2347_v59 }
 0x88c   : > { %v5769_v51 = vpop.eup %5768  ;;  %v2402_v47 = vadd.f32 %v7546_v29, %v7544_v9 }
 0x88d   : > { %v2458_v16 = vmul.f32 %v5769_v51, %v7351_v22  ;;  %v2457_v52 = vmul.f32 %v5769_v51, %v7345_v43  ;;  %v7554_v30 = vpop.eup %5770  ;;  %v2350_v8 = vpop.xlane.xlu1 %2349 }
 0x88e   : > { %2403 = vadd.xlane.f32.xlu1 %v2402_v47  ;;  %v7556_v12 = vpop.eup %5772  ;;  %5784 = vrcp.f32 %v2350_v8 }
 0x88f   : > { %v2514_v32 = vpack.c.bf16 %v2458_v16, %v2456_v54  ;;  %v2513_v0 = vpack.c.bf16 %v2457_v52, %v2455_v35  ;;  %v2405_v3 = vadd.f32 %v7556_v12, %v7554_v30  ;;  %v5775_v60 = vpop.eup %5774 }
 0x890   : > { %v2804_v44 = vpop.f32.mrb[148].mxu1  ;;  %v2460_v18 = vmul.f32 %v5775_v60, %v7365_v6  ;;  %v2459_v55 = vmul.f32 %v5775_v60, %v7360_v42 }
 0x891   : > { %2545 = vmatprep.subr.bf16.mxu0 %v2514_v32  ;;  %2406 = vadd.xlane.f32.xlu0 %v2405_v3  ;;  %v2805_v43 = vadd.f32 %v2804_v44, %v9365_v58  ;;  %v2806_v37 = vpop.f32.mrb[149].mxu1 }
 0x892   : > { %v7560_v22 = vpop.eup %5776  ;;  %2546 = vmatpush1.bf16.xpose.msra.mxu0 %v2513_v0  ;;  %v2807_v49 = vadd.f32 %v2806_v37, %v9365_v58  ;;  %v2353_v10 = vpop.xlane.xlu0 %2352 }
 0x893   : > { %v7563_v31 = vpop.eup %5778  ;;  %v2808_v4 = vpop.f32.mrb[150].mxu1  ;;  %v2811_v25 = vpack.c.bf16 %v2805_v43, %v2805_v43  ;;  %5786 = vrcp.f32 %v2353_v10 }
 0x894   : > { %v5781_v28 = vpop.eup %5780  ;;  %v2408_v38 = vadd.f32 %v7563_v31, %v7560_v22  ;;  %v2809_v19 = vpop.f32.mrb[151].mxu1  ;;  %v2812_v14 = vpack.c.bf16 %v2807_v49, %v2807_v49  ;;  %v9366_v4 = vld [vmem:[#allocation14_spill] sm:$0xff] }
 0x895   : > { %v2462_v46 = vmul.f32 %v5781_v28, %v7373_v17  ;;  %v2461_v36 = vmul.f32 %v5781_v28, %v7367_v11  ;;  %v2937_v21 = vsel %vm485_vm1, %v2811_v25, 0  ;;  %v2356_v24 = vpop.xlane.xlu1 %2355  ;;  %v5783_v59 = vpop.eup %5782  ;;  %v9367_v25 = vld [vmem:[#allocation15_spill] sm:$0xff] }
 0x896   : > { %2409 = vadd.xlane.f32.xlu1 %v2408_v38  ;;  %5788 = vrcp.f32 %v2356_v24  ;;  %5373 = vmatprep.subr.msk.bf16.mxu1 %vm485_vm1, %v2812_v14  ;;  %v2464_v42 = vmul.f32 %v5783_v59, %v7384_v48  ;;  %v2463_v52 = vmul.f32 %v5783_v59, %v7382_v33 }
 0x897   : > { %v2516_v51 = vpack.c.bf16 %v2462_v46, %v2460_v18  ;;  %v2515_v47 = vpack.c.bf16 %v2461_v36, %v2459_v55  ;;  %2943 = vmatpush1.bf16.msra.mxu1 %v2937_v21  ;;  %v9368_v18 = vld [vmem:[#allocation13_spill] sm:$0xff]  ;;  %v9369_v46 = vld [vmem:[#allocation18_spill] sm:$0xff]  ;;  %v9370_v21 = vld [vmem:[#allocation16_spill] sm:$0xff] }
 0x898   : > { %v5785_v6 = vpop.eup %5784 }
 0x899   : > { %2547 = vmatprep.subr.bf16.mxu0 %v2516_v51  ;;  %v2466_v17 = vmul.f32 %v5785_v6, %v7392_v1  ;;  %v2465_v16 = vmul.f32 %v5785_v6, %v7386_v57  ;;  %v9371_v51 = vld [vmem:[#allocation17_spill] sm:$0xff] }
 0x89a   : > { %2548 = vmatpush1.bf16.xpose.msra.mxu0 %v2515_v47  ;;  %v2359_v54 = vpop.xlane.xlu0 %2358 }
 0x89b   : > { %v2518_v11 = vpack.c.bf16 %v2466_v17, %v2464_v42  ;;  %5790 = vrcp.f32 %v2359_v54  ;;  %v2517_v32 = vpack.c.bf16 %v2465_v16, %v2463_v52  ;;  %v9372_v42 = vld [vmem:[#allocation12_spill] sm:$0xff] }
 0x89d   : > { %2549 = vmatprep.subr.bf16.mxu0 %v2518_v11  ;;  %v2362_v35 = vpop.xlane.xlu1 %2361  ;;  %v5787_v8 = vpop.eup %5786 }
 0x89e   : > { %5792 = vrcp.f32 %v2362_v35  ;;  %v2468_v3 = vmul.f32 %v5787_v8, %v7400_v39  ;;  %v2467_v43 = vmul.f32 %v5787_v8, %v7398_v7 }
 0x8a0   : > { %v5789_v0 = vpop.eup %5788 }
 0x8a1   : > { %v2470_v48 = vmul.f32 %v5789_v0, %v7408_v53  ;;  %v2469_v44 = vmul.f32 %v5789_v0, %v7402_v56 }
 0x8a2   : > { %2550 = vmatpush1.bf16.xpose.msra.mxu0 %v2517_v32  ;;  %v2365_v60 = vpop.xlane.xlu0 %2364 }
 0x8a3   : > { %v2520_v1 = vpack.c.bf16 %v2470_v48, %v2468_v3  ;;  %5794 = vrcp.f32 %v2365_v60  ;;  %v2519_v33 = vpack.c.bf16 %v2469_v44, %v2467_v43  ;;  %v9373_v43 = vld [vmem:[#allocation21_spill] sm:$0xff] }
 0x8a5   : > { %2551 = vmatprep.subr.bf16.mxu0 %v2520_v1  ;;  %v2368_v57 = vpop.xlane.xlu1 %2367  ;;  %v5791_v37 = vpop.eup %5790 }
 0x8a6   : > { %5796 = vrcp.f32 %v2368_v57  ;;  %v2472_v10 = vmul.f32 %v5791_v37, %v7416_v20  ;;  %v2471_v55 = vmul.f32 %v5791_v37, %v9368_v18  ;;  %v9379_v18 = vld [vmem:[#allocation19_spill] sm:$0xff] }
 0x8a8   : > { %v5793_v49 = vpop.eup %5792 }
 0x8a9   : > { %v2474_v39 = vmul.f32 %v5793_v49, %v9366_v4  ;;  %v2473_v38 = vmul.f32 %v5793_v49, %v9367_v25  ;;  %v9377_v25 = vld [vmem:[#allocation27_spill] sm:$0xff] }
 0x8aa   : > { %2552 = vmatpush1.bf16.xpose.msra.mxu0 %v2519_v33  ;;  %v2371_v28 = vpop.xlane.xlu0 %2370 }
 0x8ab   : > { %v2522_v53 = vpack.c.bf16 %v2474_v39, %v2472_v10  ;;  %5798 = vrcp.f32 %v2371_v28  ;;  %v2521_v7 = vpack.c.bf16 %v2473_v38, %v2471_v55  ;;  %v9375_v10 = vld [vmem:[#allocation20_spill] sm:$0xff]  ;;  %v9376_v28 = vld [vmem:[#allocation25_spill] sm:$0xff] }
 0x8ad   : > { %2553 = vmatprep.subr.bf16.mxu0 %v2522_v53  ;;  %v2374_v56 = vpop.xlane.xlu1 %2373  ;;  %v5795_v19 = vpop.eup %5794 }
 0x8ae   : > { %5800 = vrcp.f32 %v2374_v56  ;;  %v2476_v36 = vmul.f32 %v5795_v19, %v9369_v46  ;;  %v2475_v17 = vmul.f32 %v5795_v19, %v9372_v42  ;;  %v9378_v56 = vld [vmem:[#allocation26_spill] sm:$0xff] }
 0x8b0   : > { %v5797_v14 = vpop.eup %5796 }
 0x8b1   : > { %v2478_v20 = vmul.f32 %v5797_v14, %v9370_v21  ;;  %v2477_v47 = vmul.f32 %v5797_v14, %v9371_v51 }
 0x8b2   : > { %2554 = vmatpush1.bf16.xpose.msra.mxu0 %v2521_v7  ;;  %v2377_v24 = vpop.xlane.xlu0 %2376 }
 0x8b3   : > { %5802 = vrcp.f32 %v2377_v24  ;;  %v2524_v59 = vpack.c.bf16 %v2478_v20, %v2476_v36  ;;  %v2523_v11 = vpack.c.bf16 %v2477_v47, %v2475_v17 }
 0x8b4   : > { %v2380_v6 = vpop.xlane.xlu1 %2379 }
 0x8b5   : > { %2555 = vmatprep.subr.bf16.mxu0 %v2524_v59  ;;  %5804 = vrcp.f32 %v2380_v6  ;;  %v5799_v54 = vpop.eup %5798 }
 0x8b6   : > { %v2480_v35 = vmul.f32 %v5799_v54, %v7448_v15  ;;  %v2479_v60 = vmul.f32 %v5799_v54, %v7446_v34 }
 0x8b8   : > { %v5801_v16 = vpop.eup %5800 }
 0x8b9   : > { %v2482_v52 = vmul.f32 %v5801_v16, %v7456_v61  ;;  %v2481_v0 = vmul.f32 %v5801_v16, %v7450_v26  ;;  %v9374_v61 = vld [vmem:[#allocation22_spill] sm:$0xff] }
 0x8ba   : > { %2556 = vmatpush1.bf16.xpose.msra.mxu0 %v2523_v11  ;;  %v2383_v8 = vpop.xlane.xlu0 %2382 }
 0x8bb   : > { %5806 = vrcp.f32 %v2383_v8  ;;  %v2526_v32 = vpack.c.bf16 %v2482_v52, %v2480_v35  ;;  %v2525_v44 = vpack.c.bf16 %v2481_v0, %v2479_v60 }
 0x8bc   : > { %v2386_v3 = vpop.xlane.xlu1 %2385 }
 0x8bd   : > { %v5803_v48 = vpop.eup %5802  ;;  %2557 = vmatprep.subr.bf16.mxu0 %v2526_v32  ;;  %5808 = vrcp.f32 %v2386_v3 }
 0x8be   : > { %v2484_v57 = vmul.f32 %v5803_v48, %v7464_v23  ;;  %v2483_v26 = vmul.f32 %v5803_v48, %v9375_v10  ;;  %v9383_v10 = vld [vmem:[#allocation29_spill] sm:$0xff] }
 0x8bf   : > { %v5805_v1 = vpop.eup %5804 }
 0x8c0   : > { %v2486_v37 = vmul.f32 %v5805_v1, %v9373_v43  ;;  %v2485_v33 = vmul.f32 %v5805_v1, %v9374_v61 }
 0x8c2   : > { %2558 = vmatpush1.bf16.xpose.msra.mxu0 %v2525_v44  ;;  %v2528_v15 = vpack.c.bf16 %v2486_v37, %v2484_v57  ;;  %v2527_v39 = vpack.c.bf16 %v2485_v33, %v2483_v26  ;;  %v9382_v33 = vld [vmem:[#allocation28_spill] sm:$0xff] }
 0x8c4   : > { %2559 = vmatprep.subr.bf16.mxu0 %v2528_v15 }
 0x8c5   : > { %v5807_v49 = vpop.eup %5806 }
 0x8c6   : > { %v2488_v53 = vmul.f32 %v5807_v49, %v9376_v28  ;;  %v2487_v55 = vmul.f32 %v5807_v49, %v9379_v18 }
 0x8c7   : > { %v5809_v4 = vpop.eup %5808 }
 0x8c8   : > { %v2490_v34 = vmul.f32 %v5809_v4, %v9377_v25  ;;  %v2489_v23 = vmul.f32 %v5809_v4, %v9378_v56  ;;  %v9387_v25 = vld [vmem:[#allocation11_spill] sm:$0xff] }
 0x8ca   : > { %2560 = vmatpush1.bf16.xpose.msra.mxu0 %v2527_v39  ;;  %v2530_v38 = vpack.c.bf16 %v2490_v34, %v2488_v53  ;;  %v2529_v19 = vpack.c.bf16 %v2489_v23, %v2487_v55 }
 0x8cc   : > { %2561 = vmatprep.subr.bf16.mxu0 %v2530_v38 }
 0x8d2   : > { %2562 = vmatpush1.bf16.xpose.msra.mxu0 %v2529_v19 }
 0x906   : > { %v2389_v7 = vpop.xlane.xlu0 %2388 }
 0x907   : > { %5810 = vrcp.f32 %v2389_v7 }
 0x909   : > { %v2392_v14 = vpop.xlane.xlu1 %2391 }
 0x90a   : > { %5812 = vrcp.f32 %v2392_v14 }
 0x90e   : > { %v2395_v46 = vpop.xlane.xlu0 %2394 }
 0x90f   : > { %5814 = vrcp.f32 %v2395_v46 }
 0x911   : > { %v5811_v36 = vpop.eup %5810 }
 0x912   : > { %v2398_v21 = vpop.xlane.xlu1 %2397  ;;  %v2492_v24 = vmul.f32 %v5811_v36, %v7500_v50  ;;  %v2491_v51 = vmul.f32 %v5811_v36, %v7498_v40 }
 0x913   : > { %5816 = vrcp.f32 %v2398_v21 }
 0x914   : > { %v5813_v20 = vpop.eup %5812 }
 0x915   : > { %v2494_v59 = vmul.f32 %v5813_v20, %v7508_v2  ;;  %v2493_v47 = vmul.f32 %v5813_v20, %v7506_v27  ;;  %v9389_v20 = vld [vmem:[#allocation7_spill] sm:$0xff] }
 0x916   : > { %v2401_v6 = vpop.xlane.xlu0 %2400 }
 0x917   : > { %v2532_v42 = vpack.c.bf16 %v2494_v59, %v2492_v24  ;;  %v2531_v17 = vpack.c.bf16 %v2493_v47, %v2491_v51  ;;  %5818 = vrcp.f32 %v2401_v6 }
 0x919   : > { %2563 = vmatprep.subr.bf16.mxu0 %v2532_v42  ;;  %v5815_v11 = vpop.eup %5814 }
 0x91a   : > { %2564 = vmatpush1.bf16.xpose.msra.mxu0 %v2531_v17  ;;  %v2496_v52 = vmul.f32 %v5815_v11, %v7520_v41  ;;  %v2495_v2 = vmul.f32 %v5815_v11, %v7518_v5 }
 0x91b   : > { %v2404_v54 = vpop.xlane.xlu1 %2403 }
 0x91c   : > { %5820 = vrcp.f32 %v2404_v54 }
 0x91d   : > { %v5817_v16 = vpop.eup %5816 }
 0x91e   : > { %v2407_v35 = vpop.xlane.xlu0 %2406  ;;  %v2498_v50 = vmul.f32 %v5817_v16, %v7528_v45  ;;  %v2497_v40 = vmul.f32 %v5817_v16, %v7526_v13 }
 0x91f   : > { %5822 = vrcp.f32 %v2407_v35 }
 0x920   : > { %v2534_v27 = vpack.c.bf16 %v2498_v50, %v2496_v52  ;;  %v2533_v8 = vpack.c.bf16 %v2497_v40, %v2495_v2 }
 0x921   : > { %v5819_v0 = vpop.eup %5818 }
 0x922   : > { %2565 = vmatprep.subr.bf16.mxu0 %v2534_v27  ;;  %v2500_v48 = vmul.f32 %v5819_v0, %v7540_v63  ;;  %v2499_v41 = vmul.f32 %v5819_v0, %v7538_v62  ;;  %v9380_v62 = vld [vmem:[#allocation23_spill] sm:$0xff]  ;;  %v3773_v27 = vld [vmem:[%s6306_s26 + $0xc8] sm:$0xff] }
 0x923   : > { %v2410_v32 = vpop.xlane.xlu1 %2409  ;;  %2566 = vmatpush1.bf16.xpose.msra.mxu0 %v2533_v8  ;;  %v3775_v8 = vld [vmem:[%s6306_s26 + $0xd8] sm:$0xff]  ;;  %v3772_v0 = vld [vmem:[%s6306_s26 + $0xc0] sm:$0xff] }
 0x924   : > { %5824 = vrcp.f32 %v2410_v32  ;;  %v3781_v32 = vpack.c.bf16 %v3775_v8, %v3773_v27 }
 0x926   : > { %v5821_v3 = vpop.eup %5820  ;;  %3784 = vmatprep.subr.bf16.mxu1 %v3781_v32 }
 0x927   : > { %v2502_v60 = vmul.f32 %v5821_v3, %v7546_v29  ;;  %v2501_v45 = vmul.f32 %v5821_v3, %v7544_v9  ;;  %v9381_v9 = vld [vmem:[#allocation9_spill] sm:$0xff] }
 0x928   : > { %v1740_v61 = vadd.f32 %v9381_v9, %v9380_v62  ;;  %v3774_v3 = vld [vmem:[%s6306_s26 + $0xd0] sm:$0xff] }
 0x929   : > { %v2536_v5 = vpack.c.bf16 %v2502_v60, %v2500_v48  ;;  %v2535_v1 = vpack.c.bf16 %v2501_v45, %v2499_v41  ;;  %v5823_v13 = vpop.eup %5822  ;;  %v3777_v48 = vld [vmem:[%s6306_s26 + $0xe8] sm:$0xff]  ;;  %v3779_v60 = vld [vmem:[%s6306_s26 + $0xf8] sm:$0xff]  ;;  %v3780_v41 = vpack.c.bf16 %v3774_v3, %v3772_v0 }
 0x92a   : > { %v2504_v57 = vmul.f32 %v5823_v13, %v7556_v12  ;;  %v2503_v37 = vmul.f32 %v5823_v13, %v7554_v30  ;;  %v1746_v49 = vpack.c.bf16 %v1740_v61, %v1740_v61  ;;  %v9384_v12 = vmov 0   ;;  %v9385_v30 = vld [vmem:[#allocation5_spill] sm:$0xff] }
 0x92b   : > { %2567 = vmatprep.subr.bf16.mxu0 %v2536_v5  ;;  %v3783_v45 = vpack.c.bf16 %v3779_v60, %v3777_v48  ;;  %v3776_v5 = vld [vmem:[%s6306_s26 + $0xe0] sm:$0xff] }
 0x92c   : > { %2568 = vmatpush1.bf16.xpose.msra.mxu0 %v2535_v1  ;;  %v3778_v1 = vld [vmem:[%s6306_s26 + $0xf0] sm:$0xff] }
 0x92e   : > { %v5825_v44 = vpop.eup %5824 }
 0x92f   : > { %v2506_v43 = vmul.f32 %v5825_v44, %v7563_v31  ;;  %v2505_v63 = vmul.f32 %v5825_v44, %v7560_v22  ;;  %v9386_v22 = vld [vmem:[#allocation24_spill] sm:$0xff]  ;;  %v3782_v44 = vpack.c.bf16 %v3778_v1, %v3776_v5 }
 0x931   : > { %v2538_v15 = vpack.c.bf16 %v2506_v43, %v2504_v57  ;;  %v2537_v29 = vpack.c.bf16 %v2505_v63, %v2503_v37 }
 0x933   : > { %2569 = vmatprep.subr.bf16.mxu0 %v2538_v15 }
 0x934   : > { %2570 = vmatpush1.bf16.xpose.msra.mxu0 %v2537_v29 }
 0x935   : > { %5367 = vmatprep.subr.msk.bf16.mxu0 %vm485_vm1, %v9382_v33 }
 0x93b   : > { %2572 = vmatmul.mubr.bf16.vlgmr.msra.gmra.mrb[20].mxu0 %v1746_v49 }
 0x93c   : > { %2728 = vmatpush1.bf16.msra.mxu0 %v9383_v10  ;;  %2759 = vmatprep.mubr.bf16.mxu0 %v9384_v12 }
 0x93d   : > { %5371 = vmatprep.subr.msk.bf16.mxu0 %vm485_vm1, %v9382_v33 }
 0x943   : > { %5368 = vmatmul.mubr.msk.bf16.vlgmr.msra.gmra.mrb[24].mxu0 %vm481_vm2, %v9385_v30 }
 0x944   : > { %2814 = vmatpush1.bf16.msra.mxu0 %v9383_v10  ;;  %2845 = vmatprep.mubr.bf16.mxu0 %v9384_v12 }
 0x94b   : > { %5372 = vmatmul.mubr.msk.bf16.vlgmr.msra.gmra.mrb[28].mxu0 %vm481_vm2, %v9386_v22 }
 0xa0e   : > { %v2573_v31 = vpop.f32.mrb[20].mxu0 }
 0xa0f   : > { %v2575_v26 = vpop.f32.mrb[21].mxu0 }
 0xa10   : > { %v2582_v4 = vcombine.low %v2573_v31, %v2575_v26  ;;  %v2623_v39 = vcombine.high %v2573_v31, %v2575_v26  ;;  %v2577_v28 = vpop.f32.mrb[22].mxu0 }
 0xa11   : > { %v2578_v53 = vpop.f32.mrb[23].mxu0  ;;  %v9391_v28 = vld [vmem:[#allocation3_spill] sm:$0xff] }
 0xa12   : > { %v2589_v34 = vrot.slane %v2582_v4, %v9387_v25  ;;  %v2630_v38 = vrot.slane %v2623_v39, %v9387_v25 }
 0xa14   : > { %v2596_v56 = vrot.slane %v2589_v34, %v9387_v25  ;;  %v2601_v23 = vcombine.high %v2589_v34, %v2589_v34  ;;  %v2637_v18 = vrot.slane %v2630_v38, %v9387_v25  ;;  %v2642_v55 = vcombine.high %v2630_v38, %v2630_v38 }
 0xa16   : > { %2599 = vst.msk [vmem:[#allocation2 + $0x1] ss:$8 sm:$0x3] %vm6993_vm3, %v2596_v56  ;;  %v2608_v7 = vrot.slane %v2601_v23, %v9387_v25  ;;  %v2613_v14 = vcombine.high %v2596_v56, %v2596_v56  ;;  %2640 = vst.msk [vmem:[#allocation2 + $0x21] ss:$8 sm:$0x3] %vm6993_vm3, %v2637_v18  ;;  %v2649_v46 = vrot.slane %v2642_v55, %v9387_v25 }
 0xa17   : > { %v2654_v36 = vcombine.high %v2637_v18, %v2637_v18  ;;  %v2761_v21 = vpop.f32.mrb[24].mxu0 }
 0xa18   : > { %v2762_v24 = vadd.f32 %v2761_v21, %v9389_v20  ;;  %v2763_v59 = vpop.f32.mrb[25].mxu0  ;;  %2611 = vst.msk [vmem:[#allocation2 + $0x5] ss:$8 sm:$0x3] %vm6993_vm3, %v2608_v7  ;;  %v2618_v51 = vcombine.high %v2608_v7, %v2608_v7  ;;  %v2659_v47 = vcombine.high %v2649_v46, %v2649_v46 }
 0xa19   : > { %2616 = vst.msk [vmem:[#allocation2 + $0x11] ss:$8 sm:$0x3] %vm6993_vm3, %v2613_v14  ;;  %2652 = vst.msk [vmem:[#allocation2 + $0x25] ss:$8 sm:$0x3] %vm6993_vm3, %v2649_v46  ;;  %v2764_v6 = vadd.f32 %v2763_v59, %v9389_v20 }
 0xa1a   : > { %2657 = vst.msk [vmem:[#allocation2 + $0x31] ss:$8 sm:$0x3] %vm6993_vm3, %v2654_v36  ;;  %v2765_v42 = vpop.f32.mrb[26].mxu0  ;;  %v2768_v17 = vpack.c.bf16 %v2762_v24, %v2762_v24  ;;  %v9409_v20 = vld [vmem:[#allocation6_spill] sm:$0xff] }
 0xa1b   : > { %v2766_v54 = vpop.f32.mrb[27].mxu0  ;;  %2621 = vst.msk [vmem:[#allocation2 + $0x15] ss:$8 sm:$0x3] %vm6993_vm3, %v2618_v51  ;;  %v2769_v11 = vpack.c.bf16 %v2764_v6, %v2764_v6 }
 0xa1c   : > { %2662 = vst.msk [vmem:[#allocation2 + $0x35] ss:$8 sm:$0x3] %vm6993_vm3, %v2659_v47  ;;  %2856 = vxpose.xlu0.c.b16.start.end [1/1] (short) %v2768_v17, 128 }
 0xa1d   : > { %2872 = vxpose.xlu1.c.b16.start.end [1/1] (short) %v2769_v11, 128 }
 0xa1e   : > { %v7656_v16 = vpop.f32.mrb[28].mxu0 }
 0xa1f   : > { %9390 = vst [vmem:[#allocation14_spill] sm:$0xff] %v7656_v16  ;;  %v2849_v35 = vpop.f32.mrb[29].mxu0 }
 0xa20   : > { %v2850_v52 = vadd.f32 %v2849_v35, %v9380_v62  ;;  %v2851_v50 = vpop.f32.mrb[30].mxu0 }
 0xa21   : > { %v2852_v2 = vpop.f32.mrb[31].mxu0 }
 0xa22   : > { %v2855_v40 = vpack.c.bf16 %v2850_v52, %v2850_v52 }
 0xa24   : > { %3679 = vmatprep.mubr.bf16.mxu0 %v2855_v40 }
 0xa82   : > { %v2864_v13 = vpop.trf.xlu0 }
 0xa83   : > { %5374 = vmatmul.mubr.msk.bf16.vlgmr.msra.gmra.mrb[152].mxu1 %vm481_vm2, %v2864_v13  ;;  %v2880_v61 = vpop.trf.xlu1 }
 0xa84   : > { %2984 = vmatprep.mubr.bf16.mxu1 %v9384_v12  ;;  %3785 = vmatpush1.bf16.msra.mxu1 %v3780_v41 }
 0xa85   : > { %3786 = vmatprep.subr.bf16.mxu1 %v3783_v45 }
 0xa86   : > { %v2865_v57 = vpop.trf.xlu0 }
 0xa87   : > { %v2881_v33 = vpop.trf.xlu1 }
 0xa88   : > { %3787 = vmatpush1.bf16.msra.mxu1 %v3782_v44 }
 0xa8a   : > { %v2866_v43 = vpop.trf.xlu0 }
 0xa8b   : > { %5375 = vmatmul.mubr.msk.bf16.gmra.mrb[156].mxu1 %vm481_vm2, %v2865_v57  ;;  %v2882_v49 = vpop.trf.xlu1 }
 0xa8c   : > { %2994 = vmatprep.mubr.bf16.mxu1 %v9384_v12 }
 0xa8e   : > { %v2867_v37 = vpop.trf.xlu0 }
 0xa8f   : > { %v2883_v10 = vpop.trf.xlu1 }
 0xa92   : > { %v2868_v63 = vpop.trf.xlu0 }
 0xa93   : > { %5376 = vmatmul.mubr.msk.bf16.gmra.mrb[160].mxu1 %vm481_vm2, %v2866_v43  ;;  %v2884_v31 = vpop.trf.xlu1 }
 0xa94   : > { %3004 = vmatprep.mubr.bf16.mxu1 %v9384_v12 }
 0xa96   : > { %v2869_v15 = vpop.trf.xlu0 }
 0xa97   : > { %v2885_v26 = vpop.trf.xlu1 }
 0xa9a   : > { %v2870_v29 = vpop.trf.xlu0 }
 0xa9b   : > { %5377 = vmatmul.mubr.msk.bf16.gmra.mrb[164].mxu1 %vm481_vm2, %v2867_v37  ;;  %v2886_v4 = vpop.trf.xlu1 }
 0xa9c   : > { %3014 = vmatprep.mubr.bf16.mxu1 %v9384_v12 }
 0xa9e   : > { %v2871_v9 = vpop.trf.xlu0 }
 0xa9f   : > { %v2887_v39 = vpop.trf.xlu1 }
 0xaa3   : > { %5378 = vmatmul.mubr.msk.bf16.gmra.mrb[168].mxu1 %vm481_vm2, %v2868_v63 }
 0xaa4   : > { %3024 = vmatprep.mubr.bf16.mxu1 %v9384_v12 }
 0xaab   : > { %5379 = vmatmul.mubr.msk.bf16.gmra.mrb[172].mxu1 %vm481_vm2, %v2869_v15 }
 0xaac   : > { %3034 = vmatprep.mubr.bf16.mxu1 %v9384_v12 }
 0xab3   : > { %5380 = vmatmul.mubr.msk.bf16.gmra.mrb[176].mxu1 %vm481_vm2, %v2870_v29 }
 0xab4   : > { %3044 = vmatprep.mubr.bf16.mxu1 %v9384_v12 }
 0xabb   : > { %5381 = vmatmul.mubr.msk.bf16.gmra.mrb[180].mxu1 %vm481_vm2, %v2871_v9 }
 0xabc   : > { %3054 = vmatprep.mubr.bf16.mxu1 %v9384_v12 }
 0xac3   : > { %5382 = vmatmul.mubr.msk.bf16.gmra.mrb[184].mxu1 %vm481_vm2, %v2880_v61 }
 0xac4   : > { %3064 = vmatprep.mubr.bf16.mxu1 %v9384_v12 }
 0xacb   : > { %5383 = vmatmul.mubr.msk.bf16.gmra.mrb[188].mxu1 %vm481_vm2, %v2881_v33 }
 0xacc   : > { %3074 = vmatprep.mubr.bf16.mxu1 %v9384_v12 }
 0xad3   : > { %5384 = vmatmul.mubr.msk.bf16.gmra.mrb[192].mxu1 %vm481_vm2, %v2882_v49 }
 0xad4   : > { %3084 = vmatprep.mubr.bf16.mxu1 %v9384_v12 }
 0xadb   : > { %5385 = vmatmul.mubr.msk.bf16.gmra.mrb[196].mxu1 %vm481_vm2, %v2883_v10 }
 0xadc   : > { %3094 = vmatprep.mubr.bf16.mxu1 %v9384_v12 }
 0xae3   : > { %5386 = vmatmul.mubr.msk.bf16.gmra.mrb[200].mxu1 %vm481_vm2, %v2884_v31 }
 0xae4   : > { %3104 = vmatprep.mubr.bf16.mxu1 %v9384_v12 }
 0xaeb   : > { %5387 = vmatmul.mubr.msk.bf16.gmra.mrb[204].mxu1 %vm481_vm2, %v2885_v26 }
 0xaec   : > { %3114 = vmatprep.mubr.bf16.mxu1 %v9384_v12 }
 0xaf3   : > { %5388 = vmatmul.mubr.msk.bf16.gmra.mrb[208].mxu1 %vm481_vm2, %v2886_v4 }
 0xaf4   : > { %3124 = vmatprep.mubr.bf16.mxu1 %v9384_v12 }
 0xafb   : > { %5389 = vmatmul.mubr.msk.bf16.gmra.mrb[212].mxu1 %vm481_vm2, %v2887_v39 }
 0xafc   : > { %3816 = vmatprep.mubr.bf16.mxu1 %v9384_v12 }
 0xb03   : > { %5390 = vmatmul.mubr.msk.bf16.vlgmr.msra.gmra.mrb[216].mxu1 %vm427_vm0, %v9391_v28 }
 0xb04   : > { %3910 = vmatprep.mubr.bf16.mxu1 %v9384_v12 }
 0xb56   : > { %v7702_v53 = vpop.f32.mrb[152].mxu1 }
 0xb57   : > { %v7704_v34 = vpop.f32.mrb[153].mxu1 }
 0xb58   : > { %v3135_v38 = vmax.f32 %v7702_v53, %v7704_v34  ;;  %v7708_v56 = vpop.f32.mrb[154].mxu1 }
 0xb59   : > { %v7710_v23 = vpop.f32.mrb[155].mxu1 }
 0xb5a   : > { %v3138_v18 = vmax.f32 %v7708_v56, %v7710_v23  ;;  %3136 = vmax.xlane.f32.xlu0 %v3135_v38 }
 0xb5c   : > { %3139 = vmax.xlane.f32.xlu1 %v3138_v18 }
 0xb5e   : > { %v7714_v55 = vpop.f32.mrb[156].mxu1 }
 0xb5f   : > { %v7716_v7 = vpop.f32.mrb[157].mxu1 }
 0xb60   : > { %v3141_v14 = vmax.f32 %v7714_v55, %v7716_v7  ;;  %v7720_v46 = vpop.f32.mrb[158].mxu1 }
 0xb61   : > { %v7722_v36 = vpop.f32.mrb[159].mxu1 }
 0xb62   : > { %v3144_v21 = vmax.f32 %v7720_v46, %v7722_v36  ;;  %3142 = vmax.xlane.f32.xlu0 %v3141_v14 }
 0xb64   : > { %3145 = vmax.xlane.f32.xlu1 %v3144_v21 }
 0xb66   : > { %v7726_v24 = vpop.f32.mrb[160].mxu1 }
 0xb67   : > { %v7728_v59 = vpop.f32.mrb[161].mxu1 }
 0xb68   : > { %v3147_v51 = vmax.f32 %v7726_v24, %v7728_v59  ;;  %v7732_v47 = vpop.f32.mrb[162].mxu1 }
 0xb69   : > { %v7734_v6 = vpop.f32.mrb[163].mxu1 }
 0xb6a   : > { %v3150_v42 = vmax.f32 %v7732_v47, %v7734_v6  ;;  %3148 = vmax.xlane.f32.xlu0 %v3147_v51 }
 0xb6c   : > { %3151 = vmax.xlane.f32.xlu1 %v3150_v42 }
 0xb6e   : > { %v7738_v17 = vpop.f32.mrb[164].mxu1 }
 0xb6f   : > { %v7740_v54 = vpop.f32.mrb[165].mxu1 }
 0xb70   : > { %v3153_v11 = vmax.f32 %v7738_v17, %v7740_v54  ;;  %v7744_v35 = vpop.f32.mrb[166].mxu1 }
 0xb71   : > { %v7746_v52 = vpop.f32.mrb[167].mxu1 }
 0xb72   : > { %v3156_v50 = vmax.f32 %v7744_v35, %v7746_v52  ;;  %3154 = vmax.xlane.f32.xlu0 %v3153_v11 }
 0xb74   : > { %3157 = vmax.xlane.f32.xlu1 %v3156_v50 }
 0xb76   : > { %v7750_v2 = vpop.f32.mrb[168].mxu1 }
 0xb77   : > { %v7752_v40 = vpop.f32.mrb[169].mxu1 }
 0xb78   : > { %v3159_v27 = vmax.f32 %v7750_v2, %v7752_v40  ;;  %v7756_v8 = vpop.f32.mrb[170].mxu1 }
 0xb79   : > { %v7758_v32 = vpop.f32.mrb[171].mxu1 }
 0xb7a   : > { %v3162_v0 = vmax.f32 %v7756_v8, %v7758_v32  ;;  %3160 = vmax.xlane.f32.xlu0 %v3159_v27 }
 0xb7c   : > { %3163 = vmax.xlane.f32.xlu1 %v3162_v0 }
 0xb7e   : > { %v7762_v3 = vpop.f32.mrb[172].mxu1 }
 0xb7f   : > { %v7764_v48 = vpop.f32.mrb[173].mxu1 }
 0xb80   : > { %v3165_v60 = vmax.f32 %v7762_v3, %v7764_v48  ;;  %v7768_v41 = vpop.f32.mrb[174].mxu1 }
 0xb81   : > { %v7770_v45 = vpop.f32.mrb[175].mxu1 }
 0xb82   : > { %v3168_v5 = vmax.f32 %v7768_v41, %v7770_v45  ;;  %3166 = vmax.xlane.f32.xlu0 %v3165_v60 }
 0xb84   : > { %3169 = vmax.xlane.f32.xlu1 %v3168_v5 }
 0xb86   : > { %v7774_v1 = vpop.f32.mrb[176].mxu1 }
 0xb87   : > { %v7776_v13 = vpop.f32.mrb[177].mxu1 }
 0xb88   : > { %v3171_v44 = vmax.f32 %v7774_v1, %v7776_v13  ;;  %v7780_v57 = vpop.f32.mrb[178].mxu1 }
 0xb89   : > { %v7782_v43 = vpop.f32.mrb[179].mxu1 }
 0xb8a   : > { %v3174_v37 = vmax.f32 %v7780_v57, %v7782_v43  ;;  %3172 = vmax.xlane.f32.xlu0 %v3171_v44 }
 0xb8c   : > { %3175 = vmax.xlane.f32.xlu1 %v3174_v37 }
 0xb8e   : > { %v7786_v63 = vpop.f32.mrb[180].mxu1 }
 0xb8f   : > { %v7788_v15 = vpop.f32.mrb[181].mxu1 }
 0xb90   : > { %v3177_v29 = vmax.f32 %v7786_v63, %v7788_v15  ;;  %v7792_v9 = vpop.f32.mrb[182].mxu1 }
 0xb91   : > { %v7794_v61 = vpop.f32.mrb[183].mxu1 }
 0xb92   : > { %v3180_v33 = vmax.f32 %v7792_v9, %v7794_v61  ;;  %3178 = vmax.xlane.f32.xlu0 %v3177_v29 }
 0xb94   : > { %3181 = vmax.xlane.f32.xlu1 %v3180_v33 }
 0xb96   : > { %v7798_v49 = vpop.f32.mrb[184].mxu1 }
 0xb97   : > { %v7800_v10 = vpop.f32.mrb[185].mxu1 }
 0xb98   : > { %v3183_v31 = vmax.f32 %v7798_v49, %v7800_v10  ;;  %v7804_v26 = vpop.f32.mrb[186].mxu1 }
 0xb99   : > { %9392 = vst [vmem:[#allocation15_spill] sm:$0xff] %v7804_v26  ;;  %v7806_v4 = vpop.f32.mrb[187].mxu1 }
 0xb9a   : > { %9393 = vst [vmem:[#allocation13_spill] sm:$0xff] %v7806_v4  ;;  %v3186_v39 = vmax.f32 %v7804_v26, %v7806_v4  ;;  %3184 = vmax.xlane.f32.xlu0 %v3183_v31 }
 0xb9c   : > { %3187 = vmax.xlane.f32.xlu1 %v3186_v39 }
 0xb9e   : > { %v7810_v28 = vpop.f32.mrb[188].mxu1 }
 0xb9f   : > { %9394 = vst [vmem:[#allocation18_spill] sm:$0xff] %v7810_v28  ;;  %v7812_v38 = vpop.f32.mrb[189].mxu1 }
 0xba0   : > { %9395 = vst [vmem:[#allocation16_spill] sm:$0xff] %v7812_v38  ;;  %v3189_v18 = vmax.f32 %v7810_v28, %v7812_v38  ;;  %v7816_v14 = vpop.f32.mrb[190].mxu1 }
 0xba1   : > { %9396 = vst [vmem:[#allocation17_spill] sm:$0xff] %v7816_v14  ;;  %v7818_v21 = vpop.f32.mrb[191].mxu1 }
 0xba2   : > { %9397 = vst [vmem:[#allocation12_spill] sm:$0xff] %v7818_v21  ;;  %v3192_v51 = vmax.f32 %v7816_v14, %v7818_v21  ;;  %3190 = vmax.xlane.f32.xlu0 %v3189_v18 }
 0xba4   : > { %3193 = vmax.xlane.f32.xlu1 %v3192_v51 }
 0xba6   : > { %v7822_v42 = vpop.f32.mrb[192].mxu1 }
 0xba7   : > { %9398 = vst [vmem:[#allocation21_spill] sm:$0xff] %v7822_v42  ;;  %v7824_v11 = vpop.f32.mrb[193].mxu1 }
 0xba8   : > { %9399 = vst [vmem:[#allocation22_spill] sm:$0xff] %v7824_v11  ;;  %v3195_v50 = vmax.f32 %v7822_v42, %v7824_v11  ;;  %v7828_v27 = vpop.f32.mrb[194].mxu1 }
 0xba9   : > { %9400 = vst [vmem:[#allocation20_spill] sm:$0xff] %v7828_v27  ;;  %v7830_v0 = vpop.f32.mrb[195].mxu1 }
 0xbaa   : > { %9401 = vst [vmem:[#allocation25_spill] sm:$0xff] %v7830_v0  ;;  %v3198_v60 = vmax.f32 %v7828_v27, %v7830_v0  ;;  %3196 = vmax.xlane.f32.xlu0 %v3195_v50  ;;  %v9406_v27 = vld [vmem:[#allocation4_spill] sm:$0xff] }
 0xbac   : > { %3199 = vmax.xlane.f32.xlu1 %v3198_v60 }
 0xbae   : > { %v7834_v5 = vpop.f32.mrb[196].mxu1 }
 0xbaf   : > { %9402 = vst [vmem:[#allocation27_spill] sm:$0xff] %v7834_v5  ;;  %v7836_v44 = vpop.f32.mrb[197].mxu1 }
 0xbb0   : > { %9403 = vst [vmem:[#allocation26_spill] sm:$0xff] %v7836_v44  ;;  %v3201_v37 = vmax.f32 %v7834_v5, %v7836_v44  ;;  %v7840_v29 = vpop.f32.mrb[198].mxu1 }
 0xbb1   : > { %9404 = vst [vmem:[#allocation19_spill] sm:$0xff] %v7840_v29  ;;  %v7842_v33 = vpop.f32.mrb[199].mxu1 }
 0xbb2   : > { %9405 = vst [vmem:[#allocation9_spill] sm:$0xff] %v7842_v33  ;;  %v3204_v31 = vmax.f32 %v7840_v29, %v7842_v33  ;;  %3202 = vmax.xlane.f32.xlu0 %v3201_v37 }
 0xbb4   : > { %3205 = vmax.xlane.f32.xlu1 %v3204_v31 }
 0xbb6   : > { %v7846_v39 = vpop.f32.mrb[200].mxu1 }
 0xbb7   : > { %v7848_v18 = vpop.f32.mrb[201].mxu1 }
 0xbb8   : > { %v7852_v50 = vpop.f32.mrb[202].mxu1 }
 0xbb9   : > { %v7854_v60 = vpop.f32.mrb[203].mxu1 }
 0xbbe   : > { %v7858_v19 = vpop.f32.mrb[204].mxu1 }
 0xbbf   : > { %v7860_v25 = vpop.f32.mrb[205].mxu1 }
 0xbc0   : > { %v7864_v31 = vpop.f32.mrb[206].mxu1 }
 0xbc1   : > { %v7866_v22 = vpop.f32.mrb[207].mxu1 }
 0xbc6   : > { %v7870_v30 = vpop.f32.mrb[208].mxu1 }
 0xbc7   : > { %v7872_v16 = vpop.f32.mrb[209].mxu1 }
 0xbc8   : > { %v7876_v62 = vpop.f32.mrb[210].mxu1 }
 0xbc9   : > { %v7878_v58 = vpop.f32.mrb[211].mxu1 }
 0xbce   : > { %v7882_v33 = vpop.f32.mrb[212].mxu1 }
 0xbcf   : > { %v7884_v29 = vpop.f32.mrb[213].mxu1 }
 0xbd0   : > { %v7888_v44 = vpop.f32.mrb[214].mxu1 }
 0xbd1   : > { %v7890_v5 = vpop.f32.mrb[215].mxu1 }
 0xbd6   : > { %v3818_v0 = vpop.f32.mrb[216].mxu1 }
 0xbd7   : > { %v3819_v11 = vadd.f32 %v3818_v0, %v9406_v27  ;;  %v3820_v42 = vpop.f32.mrb[217].mxu1 }
 0xbd8   : > { %v3821_v37 = vadd.f32 %v3820_v42, %v9406_v27  ;;  %v3822_v21 = vpop.f32.mrb[218].mxu1 }
 0xbd9   : > { %v3825_v14 = vmax.f32 %v3819_v11, 0.0  ;;  %v3823_v38 = vpop.f32.mrb[219].mxu1 }
 0xbda   : > { %v3826_v28 = vmax.f32 %v3821_v37, 0.0 }
 0xbdb   : > { %v3827_v4 = vpack.c.bf16 %v3825_v14, %v3825_v14 }
 0xbdc   : > { %v7896_v26 = vpack.c.bf16 %v3826_v28, %v3826_v28 }
 0xbdd   : > { %v7899_v51 = vsel %vm485_vm1, %v3827_v4, 0 }
 0xbde   : > { %9407 = vst [vmem:[#allocation28_spill] sm:$0xff] %v7896_v26  ;;  %9408 = vst [vmem:[#allocation29_spill] sm:$0xff] %v7899_v51  ;;  %5393 = vmatprep.subr.msk.bf16.mxu1 %vm485_vm1, %v7896_v26  ;;  %v9433_v26 = vld [vmem:[#allocation20_spill] sm:$0xff] }
 0xbdf   : > { %3879 = vmatpush1.bf16.msra.mxu1 %v7899_v51 }
 0xbe2   : > { %5394 = vmatmul.mubr.msk.bf16.vlgmr.msra.gmra.mrb[220].mxu1 %vm481_vm2, %v9409_v20 }
 0xbe3   : > { %4082 = vmatprep.mubr.bf16.mxu1 %v9384_v12 }
 0xbe7   : > { %v3137_v21 = vpop.xlane.xlu0 %3136 }
 0xbe8   : > { %v3231_v38 = vsub.f32 %v7702_v53, %v3137_v21  ;;  %v3232_v14 = vsub.f32 %v7704_v34, %v3137_v21 }
 0xbe9   : > { %v3140_v28 = vpop.xlane.xlu1 %3139 }
 0xbea   : > { %v3295_v42 = vmul.f32 1.442695, %v3231_v38  ;;  %v3297_v11 = vmul.f32 1.442695, %v3232_v14  ;;  %v3233_v4 = vsub.f32 %v7708_v56, %v3140_v28  ;;  %v3234_v27 = vsub.f32 %v7710_v23, %v3140_v28 }
 0xbec   : > { %5826 = vpow2.f32 %v3295_v42  ;;  %v3299_v0 = vmul.f32 1.442695, %v3233_v4  ;;  %v3301_v37 = vmul.f32 1.442695, %v3234_v27 }
 0xbed   : > { %5828 = vpow2.f32 %v3297_v11 }
 0xbee   : > { %5830 = vpow2.f32 %v3299_v0 }
 0xbef   : > { %5832 = vpow2.f32 %v3301_v37  ;;  %v3143_v20 = vpop.xlane.xlu0 %3142 }
 0xbf0   : > { %v3235_v12 = vsub.f32 %v7714_v55, %v3143_v20  ;;  %v3236_v53 = vsub.f32 %v7716_v7, %v3143_v20 }
 0xbf1   : > { %v3146_v51 = vpop.xlane.xlu1 %3145 }
 0xbf2   : > { %v3303_v34 = vmul.f32 1.442695, %v3235_v12  ;;  %v3305_v21 = vmul.f32 1.442695, %v3236_v53  ;;  %v3237_v38 = vsub.f32 %v7720_v46, %v3146_v51  ;;  %v3238_v56 = vsub.f32 %v7722_v36, %v3146_v51 }
 0xbf4   : > { %5834 = vpow2.f32 %v3303_v34  ;;  %v3307_v23 = vmul.f32 1.442695, %v3237_v38  ;;  %v3309_v14 = vmul.f32 1.442695, %v3238_v56  ;;  %v9410_v34 = vmax.f32 %v7846_v39, %v7848_v18 }
 0xbf5   : > { %5836 = vpow2.f32 %v3305_v21 }
 0xbf6   : > { %v7915_v28 = vpop.eup %5826  ;;  %5838 = vpow2.f32 %v3307_v23 }
 0xbf7   : > { %v7917_v42 = vpop.eup %5828  ;;  %5840 = vpow2.f32 %v3309_v14  ;;  %v3149_v55 = vpop.xlane.xlu0 %3148 }
 0xbf8   : > { %v7919_v11 = vpop.eup %5830  ;;  %v3239_v12 = vsub.f32 %v7726_v24, %v3149_v55  ;;  %v3240_v7 = vsub.f32 %v7728_v59, %v3149_v55  ;;  %v3423_v46 = vadd.f32 %v7917_v42, %v7915_v28  ;;  %v9411_v55 = vmax.f32 %v7852_v50, %v7854_v60 }
 0xbf9   : > { %v7925_v36 = vpop.eup %5832  ;;  %v3152_v51 = vpop.xlane.xlu1 %3151 }
 0xbfa   : > { %v3311_v4 = vmul.f32 1.442695, %v3239_v12  ;;  %v3313_v27 = vmul.f32 1.442695, %v3240_v7  ;;  %v3241_v0 = vsub.f32 %v7732_v47, %v3152_v51  ;;  %v3242_v37 = vsub.f32 %v7734_v6, %v3152_v51  ;;  %3424 = vadd.xlane.f32.xlu0 %v3423_v46 }
 0xbfb   : > { %v3426_v20 = vadd.f32 %v7925_v36, %v7919_v11 }
 0xbfc   : > { %5842 = vpow2.f32 %v3311_v4  ;;  %v3315_v24 = vmul.f32 1.442695, %v3241_v0  ;;  %v3317_v53 = vmul.f32 1.442695, %v3242_v37  ;;  %v9412_v37 = vmax.f32 %v7858_v19, %v7860_v25 }
 0xbfd   : > { %5844 = vpow2.f32 %v3313_v27  ;;  %3427 = vadd.xlane.f32.xlu1 %v3426_v20 }
 0xbfe   : > { %v7931_v59 = vpop.eup %5834  ;;  %5846 = vpow2.f32 %v3315_v24  ;;  %3208 = vmax.xlane.f32.xlu0 %v9410_v34 }
 0xbff   : > { %v7936_v21 = vpop.eup %5836  ;;  %5848 = vpow2.f32 %v3317_v53  ;;  %v3155_v47 = vpop.xlane.xlu0 %3154 }
 0xc00   : > { %v7938_v6 = vpop.eup %5838  ;;  %v3243_v38 = vsub.f32 %v7738_v17, %v3155_v47  ;;  %v3244_v56 = vsub.f32 %v7740_v54, %v3155_v47  ;;  %v3429_v23 = vadd.f32 %v7936_v21, %v7931_v59 }
 0xc01   : > { %v7944_v14 = vpop.eup %5840  ;;  %3211 = vmax.xlane.f32.xlu1 %v9411_v55  ;;  %v3158_v12 = vpop.xlane.xlu1 %3157 }
 0xc02   : > { %v3319_v7 = vmul.f32 1.442695, %v3243_v38  ;;  %v3321_v46 = vmul.f32 1.442695, %v3244_v56  ;;  %v3245_v51 = vsub.f32 %v7744_v35, %v3158_v12  ;;  %v3246_v4 = vsub.f32 %v7746_v52, %v3158_v12  ;;  %3430 = vadd.xlane.f32.xlu0 %v3429_v23 }
 0xc03   : > { %v3432_v17 = vadd.f32 %v7944_v14, %v7938_v6  ;;  %v9413_v38 = vmax.f32 %v7864_v31, %v7866_v22 }
 0xc04   : > { %5850 = vpow2.f32 %v3319_v7  ;;  %v3323_v54 = vmul.f32 1.442695, %v3245_v51  ;;  %v3325_v27 = vmul.f32 1.442695, %v3246_v4  ;;  %v9414_v4 = vmax.f32 %v7870_v30, %v7872_v16 }
 0xc05   : > { %5852 = vpow2.f32 %v3321_v46  ;;  %3433 = vadd.xlane.f32.xlu1 %v3432_v17 }
 0xc06   : > { %v7953_v0 = vpop.eup %5842  ;;  %5854 = vpow2.f32 %v3323_v54  ;;  %3214 = vmax.xlane.f32.xlu0 %v9412_v37 }
 0xc07   : > { %v7958_v20 = vpop.eup %5844  ;;  %5856 = vpow2.f32 %v3325_v27  ;;  %v3161_v35 = vpop.xlane.xlu0 %3160 }
 0xc08   : > { %v7960_v52 = vpop.eup %5846  ;;  %v3247_v24 = vsub.f32 %v7750_v2, %v3161_v35  ;;  %v3248_v53 = vsub.f32 %v7752_v40, %v3161_v35  ;;  %v3435_v34 = vadd.f32 %v7958_v20, %v7953_v0 }
 0xc09   : > { %v7966_v47 = vpop.eup %5848  ;;  %3217 = vmax.xlane.f32.xlu1 %v9413_v38  ;;  %v3164_v56 = vpop.xlane.xlu1 %3163 }
 0xc0a   : > { %v3327_v23 = vmul.f32 1.442695, %v3247_v24  ;;  %v3329_v55 = vmul.f32 1.442695, %v3248_v53  ;;  %v3249_v12 = vsub.f32 %v7756_v8, %v3164_v56  ;;  %v3250_v7 = vsub.f32 %v7758_v32, %v3164_v56  ;;  %3436 = vadd.xlane.f32.xlu0 %v3435_v34 }
 0xc0b   : > { %v3438_v2 = vadd.f32 %v7966_v47, %v7960_v52  ;;  %v9415_v24 = vmax.f32 %v7876_v62, %v7878_v58 }
 0xc0c   : > { %5858 = vpow2.f32 %v3327_v23  ;;  %v3331_v40 = vmul.f32 1.442695, %v3249_v12  ;;  %v3333_v46 = vmul.f32 1.442695, %v3250_v7  ;;  %v9416_v7 = vmax.f32 %v7882_v33, %v7884_v29 }
 0xc0d   : > { %5860 = vpow2.f32 %v3329_v55  ;;  %3439 = vadd.xlane.f32.xlu1 %v3438_v2 }
 0xc0e   : > { %v7975_v51 = vpop.eup %5850  ;;  %5862 = vpow2.f32 %v3331_v40  ;;  %3220 = vmax.xlane.f32.xlu0 %v9414_v4 }
 0xc0f   : > { %v7980_v17 = vpop.eup %5852  ;;  %5864 = vpow2.f32 %v3333_v46  ;;  %v3167_v8 = vpop.xlane.xlu0 %3166 }
 0xc10   : > { %v7982_v32 = vpop.eup %5854  ;;  %v3251_v54 = vsub.f32 %v7762_v3, %v3167_v8  ;;  %v3252_v27 = vsub.f32 %v7764_v48, %v3167_v8  ;;  %v3441_v37 = vadd.f32 %v7980_v17, %v7975_v51 }
 0xc11   : > { %v7988_v35 = vpop.eup %5856  ;;  %3223 = vmax.xlane.f32.xlu1 %v9415_v24  ;;  %v3170_v53 = vpop.xlane.xlu1 %3169 }
 0xc12   : > { %v3335_v34 = vmul.f32 1.442695, %v3251_v54  ;;  %v3337_v38 = vmul.f32 1.442695, %v3252_v27  ;;  %v3253_v56 = vsub.f32 %v7768_v41, %v3170_v53  ;;  %v3254_v23 = vsub.f32 %v7770_v45, %v3170_v53  ;;  %3442 = vadd.xlane.f32.xlu0 %v3441_v37 }
 0xc13   : > { %v3444_v3 = vadd.f32 %v7988_v35, %v7982_v32  ;;  %v9417_v54 = vmax.f32 %v7888_v44, %v7890_v5 }
 0xc14   : > { %5866 = vpow2.f32 %v3335_v34  ;;  %v3339_v48 = vmul.f32 1.442695, %v3253_v56  ;;  %v3341_v55 = vmul.f32 1.442695, %v3254_v23 }
 0xc15   : > { %5868 = vpow2.f32 %v3337_v38  ;;  %3445 = vadd.xlane.f32.xlu1 %v3444_v3 }
 0xc16   : > { %v7997_v12 = vpop.eup %5858  ;;  %5870 = vpow2.f32 %v3339_v48  ;;  %3226 = vmax.xlane.f32.xlu0 %v9416_v7 }
 0xc17   : > { %v8002_v2 = vpop.eup %5860  ;;  %5872 = vpow2.f32 %v3341_v55  ;;  %v3173_v41 = vpop.xlane.xlu0 %3172 }
 0xc18   : > { %v8004_v45 = vpop.eup %5862  ;;  %v3255_v40 = vsub.f32 %v7774_v1, %v3173_v41  ;;  %v3256_v46 = vsub.f32 %v7776_v13, %v3173_v41  ;;  %v3447_v4 = vadd.f32 %v8002_v2, %v7997_v12 }
 0xc19   : > { %v8010_v8 = vpop.eup %5864  ;;  %3229 = vmax.xlane.f32.xlu1 %v9417_v54  ;;  %v3176_v27 = vpop.xlane.xlu1 %3175 }
 0xc1a   : > { %v3343_v37 = vmul.f32 1.442695, %v3255_v40  ;;  %v3345_v24 = vmul.f32 1.442695, %v3256_v46  ;;  %v3257_v53 = vsub.f32 %v7780_v57, %v3176_v27  ;;  %v3258_v34 = vsub.f32 %v7782_v43, %v3176_v27  ;;  %3448 = vadd.xlane.f32.xlu0 %v3447_v4 }
 0xc1b   : > { %v3450_v1 = vadd.f32 %v8010_v8, %v8004_v45 }
 0xc1c   : > { %5874 = vpow2.f32 %v3343_v37  ;;  %v3347_v13 = vmul.f32 1.442695, %v3257_v53  ;;  %v3349_v38 = vmul.f32 1.442695, %v3258_v34 }
 0xc1d   : > { %5876 = vpow2.f32 %v3345_v24  ;;  %3451 = vadd.xlane.f32.xlu1 %v3450_v1 }
 0xc1e   : > { %v8019_v56 = vpop.eup %5866  ;;  %5878 = vpow2.f32 %v3347_v13 }
 0xc1f   : > { %v8021_v23 = vpop.eup %5868  ;;  %5880 = vpow2.f32 %v3349_v38  ;;  %v3179_v3 = vpop.xlane.xlu0 %3178 }
 0xc20   : > { %v8023_v48 = vpop.eup %5870  ;;  %v3259_v57 = vsub.f32 %v7786_v63, %v3179_v3  ;;  %v3260_v43 = vsub.f32 %v7788_v15, %v3179_v3  ;;  %v3453_v55 = vadd.f32 %v8021_v23, %v8019_v56 }
 0xc21   : > { %v8029_v7 = vpop.eup %5872  ;;  %v3182_v41 = vpop.xlane.xlu1 %3181 }
 0xc22   : > { %v3351_v40 = vmul.f32 1.442695, %v3259_v57  ;;  %v3353_v46 = vmul.f32 1.442695, %v3260_v43  ;;  %v3261_v4 = vsub.f32 %v7792_v9, %v3182_v41  ;;  %v3262_v54 = vsub.f32 %v7794_v61, %v3182_v41  ;;  %3454 = vadd.xlane.f32.xlu0 %v3453_v55  ;;  %v9418_v43 = vld [vmem:[#allocation15_spill] sm:$0xff]  ;;  %v9419_v41 = vld [vmem:[#allocation13_spill] sm:$0xff] }
 0xc23   : > { %v3456_v27 = vadd.f32 %v8029_v7, %v8023_v48 }
 0xc24   : > { %5882 = vpow2.f32 %v3351_v40  ;;  %v3355_v63 = vmul.f32 1.442695, %v3261_v4  ;;  %v3357_v37 = vmul.f32 1.442695, %v3262_v54 }
 0xc25   : > { %5884 = vpow2.f32 %v3353_v46  ;;  %3457 = vadd.xlane.f32.xlu1 %v3456_v27 }
 0xc26   : > { %v8035_v15 = vpop.eup %5874  ;;  %5886 = vpow2.f32 %v3355_v63 }
 0xc27   : > { %v8037_v24 = vpop.eup %5876  ;;  %5888 = vpow2.f32 %v3357_v37  ;;  %v3185_v53 = vpop.xlane.xlu0 %3184  ;;  %v9422_v37 = vld [vmem:[#allocation18_spill] sm:$0xff] }
 0xc28   : > { %v8039_v34 = vpop.eup %5878  ;;  %v3263_v9 = vsub.f32 %v7798_v49, %v3185_v53  ;;  %v3264_v61 = vsub.f32 %v7800_v10, %v3185_v53  ;;  %v3459_v1 = vadd.f32 %v8037_v24, %v8035_v15 }
 0xc29   : > { %v8045_v13 = vpop.eup %5880  ;;  %v3188_v38 = vpop.xlane.xlu1 %3187 }
 0xc2a   : > { %v3359_v3 = vmul.f32 1.442695, %v3263_v9  ;;  %v3361_v57 = vmul.f32 1.442695, %v3264_v61  ;;  %v3265_v55 = vsub.f32 %v9418_v43, %v3188_v38  ;;  %v3266_v40 = vsub.f32 %v9419_v41, %v3188_v38  ;;  %3460 = vadd.xlane.f32.xlu0 %v3459_v1  ;;  %v9423_v9 = vld [vmem:[#allocation16_spill] sm:$0xff] }
 0xc2b   : > { %v3462_v46 = vadd.f32 %v8045_v13, %v8039_v34 }
 0xc2c   : > { %5890 = vpow2.f32 %v3359_v3  ;;  %v3363_v49 = vmul.f32 1.442695, %v3265_v55  ;;  %v3365_v4 = vmul.f32 1.442695, %v3266_v40  ;;  %v9425_v55 = vld [vmem:[#allocation17_spill] sm:$0xff]  ;;  %v9426_v40 = vld [vmem:[#allocation12_spill] sm:$0xff] }
 0xc2d   : > { %5892 = vpow2.f32 %v3361_v57  ;;  %3463 = vadd.xlane.f32.xlu1 %v3462_v46 }
 0xc2e   : > { %v8051_v10 = vpop.eup %5882  ;;  %5894 = vpow2.f32 %v3363_v49 }
 0xc2f   : > { %9420 = vst [vmem:[#allocation3_spill] sm:$0xff] %v8051_v10  ;;  %v8053_v54 = vpop.eup %5884  ;;  %5896 = vpow2.f32 %v3365_v4  ;;  %v3191_v27 = vpop.xlane.xlu0 %3190 }
 0xc30   : > { %v8055_v63 = vpop.eup %5886  ;;  %v3267_v53 = vsub.f32 %v9422_v37, %v3191_v27  ;;  %v3268_v61 = vsub.f32 %v9423_v9, %v3191_v27  ;;  %v3465_v1 = vadd.f32 %v8053_v54, %v8051_v10  ;;  %v9434_v10 = vld [vmem:[#allocation25_spill] sm:$0xff] }
 0xc31   : > { %9421 = vst [vmem:[#allocation4_spill] sm:$0xff] %v8055_v63  ;;  %v8061_v38 = vpop.eup %5888  ;;  %v3194_v3 = vpop.xlane.xlu1 %3193 }
 0xc32   : > { %9424 = vst [vmem:[#allocation6_spill] sm:$0xff] %v8061_v38  ;;  %v3367_v57 = vmul.f32 1.442695, %v3267_v53  ;;  %v3369_v43 = vmul.f32 1.442695, %v3268_v61  ;;  %v3269_v41 = vsub.f32 %v9425_v55, %v3194_v3  ;;  %v3270_v46 = vsub.f32 %v9426_v40, %v3194_v3  ;;  %3466 = vadd.xlane.f32.xlu0 %v3465_v1  ;;  %v9430_v55 = vld [vmem:[#allocation21_spill] sm:$0xff] }
 0xc33   : > { %v3468_v49 = vadd.f32 %v8061_v38, %v8055_v63  ;;  %v9431_v1 = vld [vmem:[#allocation22_spill] sm:$0xff] }
 0xc34   : > { %5898 = vpow2.f32 %v3367_v57  ;;  %v3371_v4 = vmul.f32 1.442695, %v3269_v41  ;;  %v3373_v37 = vmul.f32 1.442695, %v3270_v46 }
 0xc35   : > { %5900 = vpow2.f32 %v3369_v43  ;;  %3469 = vadd.xlane.f32.xlu1 %v3468_v49 }
 0xc36   : > { %v8067_v27 = vpop.eup %5890  ;;  %5902 = vpow2.f32 %v3371_v4 }
 0xc37   : > { %9427 = vst [vmem:[#allocation15_spill] sm:$0xff] %v8067_v27  ;;  %v8069_v9 = vpop.eup %5892  ;;  %5904 = vpow2.f32 %v3373_v37  ;;  %v3197_v53 = vpop.xlane.xlu0 %3196 }
 0xc38   : > { %9428 = vst [vmem:[#allocation13_spill] sm:$0xff] %v8069_v9  ;;  %v8071_v61 = vpop.eup %5894  ;;  %v3271_v3 = vsub.f32 %v9430_v55, %v3197_v53  ;;  %v3272_v40 = vsub.f32 %v9431_v1, %v3197_v53  ;;  %v3471_v57 = vadd.f32 %v8069_v9, %v8067_v27  ;;  %v9437_v27 = vld [vmem:[#allocation19_spill] sm:$0xff] }
 0xc39   : > { %9429 = vst [vmem:[#allocation18_spill] sm:$0xff] %v8071_v61  ;;  %v8077_v41 = vpop.eup %5896  ;;  %v3200_v43 = vpop.xlane.xlu1 %3199 }
 0xc3a   : > { %9432 = vst [vmem:[#allocation16_spill] sm:$0xff] %v8077_v41  ;;  %v3375_v46 = vmul.f32 1.442695, %v3271_v3  ;;  %v3377_v49 = vmul.f32 1.442695, %v3272_v40  ;;  %v3273_v4 = vsub.f32 %v9433_v26, %v3200_v43  ;;  %v3274_v63 = vsub.f32 %v9434_v10, %v3200_v43  ;;  %3472 = vadd.xlane.f32.xlu0 %v3471_v57  ;;  %v9435_v26 = vld [vmem:[#allocation27_spill] sm:$0xff] }
 0xc3b   : > { %v3474_v37 = vadd.f32 %v8077_v41, %v8071_v61  ;;  %v9436_v57 = vld [vmem:[#allocation26_spill] sm:$0xff]  ;;  %v9438_v61 = vld [vmem:[#allocation9_spill] sm:$0xff] }
 0xc3c   : > { %5906 = vpow2.f32 %v3375_v46  ;;  %v3379_v55 = vmul.f32 1.442695, %v3273_v4  ;;  %v3381_v38 = vmul.f32 1.442695, %v3274_v63 }
 0xc3d   : > { %5908 = vpow2.f32 %v3377_v49  ;;  %3475 = vadd.xlane.f32.xlu1 %v3474_v37 }
 0xc3e   : > { %v8083_v53 = vpop.eup %5898  ;;  %5910 = vpow2.f32 %v3379_v55 }
 0xc3f   : > { %v8085_v1 = vpop.eup %5900  ;;  %5912 = vpow2.f32 %v3381_v38  ;;  %v3203_v3 = vpop.xlane.xlu0 %3202 }
 0xc40   : > { %v8087_v40 = vpop.eup %5902  ;;  %v3275_v10 = vsub.f32 %v9435_v26, %v3203_v3  ;;  %v3276_v43 = vsub.f32 %v9436_v57, %v3203_v3  ;;  %v3477_v46 = vadd.f32 %v8085_v1, %v8083_v53 }
 0xc41   : > { %v8093_v4 = vpop.eup %5904  ;;  %v3206_v63 = vpop.xlane.xlu1 %3205 }
 0xc42   : > { %v3383_v49 = vmul.f32 1.442695, %v3275_v10  ;;  %v3385_v37 = vmul.f32 1.442695, %v3276_v43  ;;  %v3277_v55 = vsub.f32 %v9437_v27, %v3206_v63  ;;  %v3278_v41 = vsub.f32 %v9438_v61, %v3206_v63  ;;  %3478 = vadd.xlane.f32.xlu0 %v3477_v46 }
 0xc43   : > { %v3480_v38 = vadd.f32 %v8093_v4, %v8087_v40 }
 0xc44   : > { %5914 = vpow2.f32 %v3383_v49  ;;  %v3387_v26 = vmul.f32 1.442695, %v3277_v55  ;;  %v3389_v9 = vmul.f32 1.442695, %v3278_v41 }
 0xc45   : > { %5916 = vpow2.f32 %v3385_v37  ;;  %3481 = vadd.xlane.f32.xlu1 %v3480_v38 }
 0xc46   : > { %v8099_v3 = vpop.eup %5906  ;;  %5918 = vpow2.f32 %v3387_v26 }
 0xc47   : > { %9439 = vst [vmem:[#allocation17_spill] sm:$0xff] %v8099_v3  ;;  %v8101_v57 = vpop.eup %5908  ;;  %5920 = vpow2.f32 %v3389_v9 }
 0xc48   : > { %v8103_v10 = vpop.eup %5910  ;;  %v3483_v27 = vadd.f32 %v8101_v57, %v8099_v3 }
 0xc49   : > { %9440 = vst [vmem:[#allocation12_spill] sm:$0xff] %v8103_v10  ;;  %v8107_v61 = vpop.eup %5912 }
 0xc4a   : > { %9441 = vst [vmem:[#allocation21_spill] sm:$0xff] %v8107_v61  ;;  %3484 = vadd.xlane.f32.xlu0 %v3483_v27  ;;  %v3486_v43 = vadd.f32 %v8107_v61, %v8103_v10 }
 0xc4c   : > { %3487 = vadd.xlane.f32.xlu1 %v3486_v43 }
 0xc4e   : > { %v8111_v41 = vpop.eup %5914 }
 0xc4f   : > { %9442 = vst [vmem:[#allocation22_spill] sm:$0xff] %v8111_v41  ;;  %v8113_v46 = vpop.eup %5916 }
 0xc50   : > { %9443 = vst [vmem:[#allocation20_spill] sm:$0xff] %v8113_v46  ;;  %v8115_v63 = vpop.eup %5918  ;;  %v3489_v9 = vadd.f32 %v8113_v46, %v8111_v41 }
 0xc51   : > { %9444 = vst [vmem:[#allocation25_spill] sm:$0xff] %v8115_v63  ;;  %v8119_v49 = vpop.eup %5920 }
 0xc52   : > { %9445 = vst [vmem:[#allocation27_spill] sm:$0xff] %v8119_v49  ;;  %3490 = vadd.xlane.f32.xlu0 %v3489_v9  ;;  %v3492_v37 = vadd.f32 %v8119_v49, %v8115_v63 }
 0xc54   : > { %3493 = vadd.xlane.f32.xlu1 %v3492_v37 }
 0xc87   : > { %v3425_v55 = vpop.xlane.xlu0 %3424 }
 0xc88   : > { %5922 = vrcp.f32 %v3425_v55 }
 0xc8a   : > { %v3428_v38 = vpop.xlane.xlu1 %3427 }
 0xc8b   : > { %5924 = vrcp.f32 %v3428_v38  ;;  %v3209_v26 = vpop.xlane.xlu0 %3208 }
 0xc8c   : > { %v3279_v27 = vsub.f32 %v7846_v39, %v3209_v26  ;;  %v3280_v43 = vsub.f32 %v7848_v18, %v3209_v26 }
 0xc8e   : > { %v3391_v3 = vmul.f32 1.442695, %v3279_v27  ;;  %v3393_v10 = vmul.f32 1.442695, %v3280_v43  ;;  %v3212_v61 = vpop.xlane.xlu1 %3211 }
 0xc8f   : > { %v3281_v41 = vsub.f32 %v7852_v50, %v3212_v61  ;;  %v3282_v9 = vsub.f32 %v7854_v60, %v3212_v61  ;;  %v3431_v46 = vpop.xlane.xlu0 %3430 }
 0xc90   : > { %5926 = vpow2.f32 %v3391_v3 }
 0xc91   : > { %5928 = vpow2.f32 %v3393_v10  ;;  %v3395_v37 = vmul.f32 1.442695, %v3281_v41  ;;  %v3397_v63 = vmul.f32 1.442695, %v3282_v9 }
 0xc92   : > { %v5923_v55 = vpop.eup %5922  ;;  %5930 = vrcp.f32 %v3431_v46  ;;  %v3434_v38 = vpop.xlane.xlu1 %3433 }
 0xc93   : > { %5932 = vpow2.f32 %v3395_v37  ;;  %v3215_v49 = vpop.xlane.xlu0 %3214  ;;  %v3552_v50 = vmul.f32 %v5923_v55, %v7917_v42  ;;  %v3551_v60 = vmul.f32 %v5923_v55, %v7915_v28 }
 0xc94   : > { %5934 = vpow2.f32 %v3397_v63  ;;  %v3283_v39 = vsub.f32 %v7858_v19, %v3215_v49  ;;  %v3284_v18 = vsub.f32 %v7860_v25, %v3215_v49 }
 0xc95   : > { %v5925_v26 = vpop.eup %5924  ;;  %5936 = vrcp.f32 %v3434_v38 }
 0xc96   : > { %v3399_v3 = vmul.f32 1.442695, %v3283_v39  ;;  %v3401_v10 = vmul.f32 1.442695, %v3284_v18  ;;  %v3218_v61 = vpop.xlane.xlu1 %3217  ;;  %v3554_v41 = vmul.f32 %v5925_v26, %v7925_v36  ;;  %v3553_v46 = vmul.f32 %v5925_v26, %v7919_v11 }
 0xc97   : > { %v3285_v27 = vsub.f32 %v7864_v31, %v3218_v61  ;;  %v3286_v63 = vsub.f32 %v7866_v22, %v3218_v61  ;;  %v3437_v19 = vpop.xlane.xlu0 %3436 }
 0xc98   : > { %5938 = vpow2.f32 %v3399_v3  ;;  %v3616_v25 = vpack.c.bf16 %v3554_v41, %v3552_v50  ;;  %v3615_v49 = vpack.c.bf16 %v3553_v46, %v3551_v60 }
 0xc99   : > { %5940 = vpow2.f32 %v3401_v10  ;;  %v3403_v43 = vmul.f32 1.442695, %v3285_v27  ;;  %v3405_v42 = vmul.f32 1.442695, %v3286_v63 }
 0xc9a   : > { %v8135_v9 = vpop.eup %5926  ;;  %5942 = vrcp.f32 %v3437_v19  ;;  %v3440_v28 = vpop.xlane.xlu1 %3439  ;;  %3647 = vmatprep.subr.bf16.mxu0 %v3616_v25 }
 0xc9b   : > { %v8137_v37 = vpop.eup %5928  ;;  %5944 = vpow2.f32 %v3403_v43  ;;  %3648 = vmatpush1.bf16.xpose.msra.mxu0 %v3615_v49  ;;  %v3221_v11 = vpop.xlane.xlu0 %3220 }
 0xc9c   : > { %v5931_v31 = vpop.eup %5930  ;;  %5946 = vpow2.f32 %v3405_v42  ;;  %v3287_v22 = vsub.f32 %v7870_v30, %v3221_v11  ;;  %v3288_v36 = vsub.f32 %v7872_v16, %v3221_v11  ;;  %v3495_v55 = vadd.f32 %v8137_v37, %v8135_v9 }
 0xc9d   : > { %v8143_v38 = vpop.eup %5932  ;;  %5948 = vrcp.f32 %v3440_v28  ;;  %v3556_v61 = vmul.f32 %v5931_v31, %v7936_v21  ;;  %v3555_v46 = vmul.f32 %v5931_v31, %v7931_v59 }
 0xc9e   : > { %v8145_v39 = vpop.eup %5934  ;;  %v3407_v18 = vmul.f32 1.442695, %v3287_v22  ;;  %v3409_v26 = vmul.f32 1.442695, %v3288_v36  ;;  %v3224_v50 = vpop.xlane.xlu1 %3223  ;;  %3496 = vadd.xlane.f32.xlu0 %v3495_v55 }
 0xc9f   : > { %v5937_v60 = vpop.eup %5936  ;;  %v3289_v3 = vsub.f32 %v7876_v62, %v3224_v50  ;;  %v3290_v10 = vsub.f32 %v7878_v58, %v3224_v50  ;;  %v3498_v30 = vadd.f32 %v8145_v39, %v8143_v38  ;;  %v3443_v16 = vpop.xlane.xlu0 %3442 }
 0xca0   : > { %5950 = vpow2.f32 %v3407_v18  ;;  %v3558_v41 = vmul.f32 %v5937_v60, %v7944_v14  ;;  %v3557_v27 = vmul.f32 %v5937_v60, %v7938_v6 }
 0xca1   : > { %5952 = vpow2.f32 %v3409_v26  ;;  %v3411_v63 = vmul.f32 1.442695, %v3289_v3  ;;  %v3413_v19 = vmul.f32 1.442695, %v3290_v10  ;;  %3499 = vadd.xlane.f32.xlu1 %v3498_v30 }
 0xca2   : > { %v8155_v62 = vpop.eup %5938  ;;  %5954 = vrcp.f32 %v3443_v16  ;;  %v3446_v58 = vpop.xlane.xlu1 %3445  ;;  %v3618_v25 = vpack.c.bf16 %v3558_v41, %v3556_v61  ;;  %v3617_v49 = vpack.c.bf16 %v3557_v27, %v3555_v46 }
 0xca3   : > { %v8157_v43 = vpop.eup %5940  ;;  %5956 = vpow2.f32 %v3411_v63  ;;  %v3227_v21 = vpop.xlane.xlu0 %3226 }
 0xca4   : > { %v5943_v42 = vpop.eup %5942  ;;  %5958 = vpow2.f32 %v3413_v19  ;;  %3649 = vmatprep.subr.bf16.mxu0 %v3618_v25  ;;  %v3291_v59 = vsub.f32 %v7882_v33, %v3227_v21  ;;  %v3292_v6 = vsub.f32 %v7884_v29, %v3227_v21  ;;  %v3501_v14 = vadd.f32 %v8157_v43, %v8155_v62 }
 0xca5   : > { %v8163_v28 = vpop.eup %5944  ;;  %5960 = vrcp.f32 %v3446_v58  ;;  %3650 = vmatpush1.bf16.xpose.msra.mxu0 %v3617_v49  ;;  %v3560_v50 = vmul.f32 %v5943_v42, %v7958_v20  ;;  %v3559_v3 = vmul.f32 %v5943_v42, %v7953_v0 }
 0xca6   : > { %v8165_v11 = vpop.eup %5946  ;;  %v3415_v31 = vmul.f32 1.442695, %v3291_v59  ;;  %v3417_v22 = vmul.f32 1.442695, %v3292_v6  ;;  %v3230_v36 = vpop.xlane.xlu1 %3229  ;;  %3502 = vadd.xlane.f32.xlu0 %v3501_v14 }
 0xca7   : > { %v5949_v55 = vpop.eup %5948  ;;  %v3293_v18 = vsub.f32 %v7888_v44, %v3230_v36  ;;  %v3294_v33 = vsub.f32 %v7890_v5, %v3230_v36  ;;  %v3504_v29 = vadd.f32 %v8165_v11, %v8163_v28  ;;  %v3449_v26 = vpop.xlane.xlu0 %3448  ;;  %v9446_v36 = vld [vmem:[#allocation8_spill] sm:$0xff] }
 0xca8   : > { %5962 = vpow2.f32 %v3415_v31  ;;  %v3562_v60 = vmul.f32 %v5949_v55, %v7966_v47  ;;  %v3561_v10 = vmul.f32 %v5949_v55, %v7960_v52 }
 0xca9   : > { %5964 = vpow2.f32 %v3417_v22  ;;  %v3419_v30 = vmul.f32 1.442695, %v3293_v18  ;;  %v3421_v16 = vmul.f32 1.442695, %v3294_v33  ;;  %3505 = vadd.xlane.f32.xlu1 %v3504_v29 }
 0xcaa   : > { %v8175_v44 = vpop.eup %5950  ;;  %5966 = vrcp.f32 %v3449_v26  ;;  %v3452_v5 = vpop.xlane.xlu1 %3451  ;;  %v3620_v61 = vpack.c.bf16 %v3562_v60, %v3560_v50  ;;  %v3619_v41 = vpack.c.bf16 %v3561_v10, %v3559_v3 }
 0xcab   : > { %v8177_v46 = vpop.eup %5952  ;;  %5968 = vpow2.f32 %v3419_v30 }
 0xcac   : > { %v5955_v20 = vpop.eup %5954  ;;  %5970 = vpow2.f32 %v3421_v16  ;;  %3651 = vmatprep.subr.bf16.mxu0 %v3620_v61  ;;  %v3507_v0 = vadd.f32 %v8177_v46, %v8175_v44 }
 0xcad   : > { %v8181_v52 = vpop.eup %5956  ;;  %5972 = vrcp.f32 %v3452_v5  ;;  %3652 = vmatpush1.bf16.xpose.msra.mxu0 %v3619_v41  ;;  %v3564_v58 = vmul.f32 %v5955_v20, %v7980_v17  ;;  %v3563_v49 = vmul.f32 %v5955_v20, %v7975_v51 }
 0xcae   : > { %v8183_v47 = vpop.eup %5958  ;;  %3508 = vadd.xlane.f32.xlu0 %v3507_v0 }
 0xcaf   : > { %v5961_v27 = vpop.eup %5960  ;;  %v3510_v63 = vadd.f32 %v8183_v47, %v8181_v52  ;;  %v3455_v19 = vpop.xlane.xlu0 %3454 }
 0xcb0   : > { %v3566_v25 = vmul.f32 %v5961_v27, %v7988_v35  ;;  %v3565_v21 = vmul.f32 %v5961_v27, %v7982_v32  ;;  %5974 = vrcp.f32 %v3455_v19 }
 0xcb1   : > { %3511 = vadd.xlane.f32.xlu1 %v3510_v63 }
 0xcb2   : > { %v8191_v42 = vpop.eup %5962  ;;  %v3458_v59 = vpop.xlane.xlu1 %3457  ;;  %v3622_v6 = vpack.c.bf16 %v3566_v25, %v3564_v58  ;;  %v3621_v14 = vpack.c.bf16 %v3565_v21, %v3563_v49 }
 0xcb3   : > { %v8193_v31 = vpop.eup %5964  ;;  %5976 = vrcp.f32 %v3458_v59 }
 0xcb4   : > { %v5967_v22 = vpop.eup %5966  ;;  %3653 = vmatprep.subr.bf16.mxu0 %v3622_v6  ;;  %v3513_v17 = vadd.f32 %v8193_v31, %v8191_v42 }
 0xcb5   : > { %v8197_v35 = vpop.eup %5968  ;;  %3654 = vmatpush1.bf16.xpose.msra.mxu0 %v3621_v14  ;;  %v3912_v51 = vpop.f32.mrb[220].mxu1  ;;  %v3568_v60 = vmul.f32 %v5967_v22, %v8002_v2  ;;  %v3567_v16 = vmul.f32 %v5967_v22, %v7997_v12 }
 0xcb6   : > { %v8199_v32 = vpop.eup %5970  ;;  %3514 = vadd.xlane.f32.xlu0 %v3513_v17  ;;  %v3913_v55 = vadd.f32 %v3912_v51, %v9446_v36  ;;  %v3914_v18 = vpop.f32.mrb[221].mxu1 }
 0xcb7   : > { %v5973_v33 = vpop.eup %5972  ;;  %v3915_v29 = vadd.f32 %v3914_v18, %v9446_v36  ;;  %v3516_v26 = vadd.f32 %v8199_v32, %v8197_v35  ;;  %v3461_v50 = vpop.xlane.xlu0 %3460 }
 0xcb8   : > { %v3916_v3 = vpop.f32.mrb[222].mxu1  ;;  %v3919_v10 = vpack.c.bf16 %v3913_v55, %v3913_v55  ;;  %v3570_v30 = vmul.f32 %v5973_v33, %v8010_v8  ;;  %v3569_v5 = vmul.f32 %v5973_v33, %v8004_v45  ;;  %5978 = vrcp.f32 %v3461_v50 }
 0xcb9   : > { %v3917_v61 = vpop.f32.mrb[223].mxu1  ;;  %v3920_v41 = vpack.c.bf16 %v3915_v29, %v3915_v29  ;;  %3517 = vadd.xlane.f32.xlu1 %v3516_v26  ;;  %v9447_v29 = vld [vmem:[#allocation6_spill] sm:$0xff]  ;;  %v9448_v26 = vld [vmem:[#allocation4_spill] sm:$0xff] }
 0xcba   : > { %v4045_v20 = vsel %vm485_vm1, %v3919_v10, 0  ;;  %v3464_v0 = vpop.xlane.xlu1 %3463  ;;  %v3624_v27 = vpack.c.bf16 %v3570_v30, %v3568_v60  ;;  %v3623_v63 = vpack.c.bf16 %v3569_v5, %v3567_v16  ;;  %v5975_v19 = vpop.eup %5974  ;;  %v9450_v5 = vld [vmem:[#allocation13_spill] sm:$0xff] }
 0xcbb   : > { %5980 = vrcp.f32 %v3464_v0  ;;  %5397 = vmatprep.subr.msk.bf16.mxu1 %vm485_vm1, %v3920_v41  ;;  %v3572_v12 = vmul.f32 %v5975_v19, %v8021_v23  ;;  %v3571_v25 = vmul.f32 %v5975_v19, %v8019_v56  ;;  %v9451_v41 = vld [vmem:[#allocation16_spill] sm:$0xff] }
 0xcbc   : > { %3655 = vmatprep.subr.bf16.mxu0 %v3624_v27  ;;  %4051 = vmatpush1.bf16.msra.mxu1 %v4045_v20  ;;  %v9452_v20 = vld [vmem:[#allocation18_spill] sm:$0xff] }
 0xcbd   : > { %v5977_v2 = vpop.eup %5976  ;;  %3656 = vmatpush1.bf16.xpose.msra.mxu0 %v3623_v63  ;;  %v9453_v63 = vld [vmem:[#allocation15_spill] sm:$0xff] }
 0xcbe   : > { %v3574_v45 = vmul.f32 %v5977_v2, %v8029_v7  ;;  %v3573_v8 = vmul.f32 %v5977_v2, %v8023_v48 }
 0xcbf   : > { %v3467_v58 = vpop.xlane.xlu0 %3466 }
 0xcc0   : > { %v3626_v49 = vpack.c.bf16 %v3574_v45, %v3572_v12  ;;  %5982 = vrcp.f32 %v3467_v58  ;;  %v3625_v21 = vpack.c.bf16 %v3573_v8, %v3571_v25 }
 0xcc2   : > { %v3470_v59 = vpop.xlane.xlu1 %3469  ;;  %3657 = vmatprep.subr.bf16.mxu0 %v3626_v49  ;;  %v5979_v6 = vpop.eup %5978 }
 0xcc3   : > { %5984 = vrcp.f32 %v3470_v59  ;;  %v3576_v22 = vmul.f32 %v5979_v6, %v8037_v24  ;;  %v3575_v48 = vmul.f32 %v5979_v6, %v8035_v15 }
 0xcc5   : > { %v5981_v14 = vpop.eup %5980  ;;  %3658 = vmatpush1.bf16.xpose.msra.mxu0 %v3625_v21 }
 0xcc6   : > { %v3578_v23 = vmul.f32 %v5981_v14, %v8045_v13  ;;  %v3577_v7 = vmul.f32 %v5981_v14, %v8039_v34  ;;  %v9449_v34 = vld [vmem:[#allocation3_spill] sm:$0xff] }
 0xcc7   : > { %v3473_v17 = vpop.xlane.xlu0 %3472 }
 0xcc8   : > { %v3628_v51 = vpack.c.bf16 %v3578_v23, %v3576_v22  ;;  %5986 = vrcp.f32 %v3473_v17  ;;  %v3627_v56 = vpack.c.bf16 %v3577_v7, %v3575_v48 }
 0xcca   : > { %v3476_v36 = vpop.xlane.xlu1 %3475  ;;  %3659 = vmatprep.subr.bf16.mxu0 %v3628_v51  ;;  %v5983_v55 = vpop.eup %5982  ;;  %v9454_v51 = vld [vmem:[#allocation21_spill] sm:$0xff] }
 0xccb   : > { %5988 = vrcp.f32 %v3476_v36  ;;  %v3580_v33 = vmul.f32 %v5983_v55, %v8053_v54  ;;  %v3579_v60 = vmul.f32 %v5983_v55, %v9449_v34 }
 0xccd   : > { %v5985_v18 = vpop.eup %5984  ;;  %3660 = vmatpush1.bf16.xpose.msra.mxu0 %v3627_v56  ;;  %v9455_v56 = vld [vmem:[#allocation12_spill] sm:$0xff] }
 0xcce   : > { %v3582_v24 = vmul.f32 %v5985_v18, %v9447_v29  ;;  %v3581_v13 = vmul.f32 %v5985_v18, %v9448_v26  ;;  %v9457_v29 = vld [vmem:[#allocation20_spill] sm:$0xff]  ;;  %v9458_v26 = vld [vmem:[#allocation27_spill] sm:$0xff] }
 0xccf   : > { %v3479_v50 = vpop.xlane.xlu0 %3478 }
 0xcd0   : > { %v3630_v3 = vpack.c.bf16 %v3582_v24, %v3580_v33  ;;  %5990 = vrcp.f32 %v3479_v50  ;;  %v3629_v15 = vpack.c.bf16 %v3581_v13, %v3579_v60  ;;  %v9459_v50 = vld [vmem:[#allocation25_spill] sm:$0xff] }
 0xcd2   : > { %v3482_v10 = vpop.xlane.xlu1 %3481  ;;  %3661 = vmatprep.subr.bf16.mxu0 %v3630_v3  ;;  %v5987_v30 = vpop.eup %5986 }
 0xcd3   : > { %5992 = vrcp.f32 %v3482_v10  ;;  %v3584_v61 = vmul.f32 %v5987_v30, %v9450_v5  ;;  %v3583_v19 = vmul.f32 %v5987_v30, %v9453_v63 }
 0xcd5   : > { %v5989_v16 = vpop.eup %5988  ;;  %3662 = vmatpush1.bf16.xpose.msra.mxu0 %v3629_v15 }
 0xcd6   : > { %v3586_v54 = vmul.f32 %v5989_v16, %v9451_v41  ;;  %v3585_v0 = vmul.f32 %v5989_v16, %v9452_v20 }
 0xcd7   : > { %v3485_v27 = vpop.xlane.xlu0 %3484 }
 0xcd8   : > { %5994 = vrcp.f32 %v3485_v27  ;;  %v3632_v2 = vpack.c.bf16 %v3586_v54, %v3584_v61  ;;  %v3631_v45 = vpack.c.bf16 %v3585_v0, %v3583_v19 }
 0xcd9   : > { %v3488_v12 = vpop.xlane.xlu1 %3487 }
 0xcda   : > { %5996 = vrcp.f32 %v3488_v12  ;;  %3663 = vmatprep.subr.bf16.mxu0 %v3632_v2  ;;  %v5991_v8 = vpop.eup %5990 }
 0xcdb   : > { %v3588_v25 = vmul.f32 %v5991_v8, %v8085_v1  ;;  %v3587_v6 = vmul.f32 %v5991_v8, %v8083_v53 }
 0xcdd   : > { %v5993_v58 = vpop.eup %5992  ;;  %3664 = vmatpush1.bf16.xpose.msra.mxu0 %v3631_v45 }
 0xcde   : > { %v3590_v49 = vmul.f32 %v5993_v58, %v8093_v4  ;;  %v3589_v21 = vmul.f32 %v5993_v58, %v8087_v40  ;;  %v9456_v40 = vld [vmem:[#allocation17_spill] sm:$0xff] }
 0xcdf   : > { %v3491_v59 = vpop.xlane.xlu0 %3490 }
 0xce0   : > { %5998 = vrcp.f32 %v3491_v59  ;;  %v3634_v14 = vpack.c.bf16 %v3590_v49, %v3588_v25  ;;  %v3633_v23 = vpack.c.bf16 %v3589_v21, %v3587_v6 }
 0xce1   : > { %v3494_v22 = vpop.xlane.xlu1 %3493 }
 0xce2   : > { %v5995_v7 = vpop.eup %5994  ;;  %6000 = vrcp.f32 %v3494_v22  ;;  %3665 = vmatprep.subr.bf16.mxu0 %v3634_v14 }
 0xce3   : > { %v3592_v48 = vmul.f32 %v5995_v7, %v8101_v57  ;;  %v3591_v55 = vmul.f32 %v5995_v7, %v9456_v40  ;;  %v9460_v57 = vld [vmem:[#allocation22_spill] sm:$0xff]  ;;  %v9464_v40 = vld [vmem:[#allocation29_spill] sm:$0xff] }
 0xce4   : > { %v5997_v17 = vpop.eup %5996 }
 0xce5   : > { %3666 = vmatpush1.bf16.xpose.msra.mxu0 %v3633_v23  ;;  %v3594_v1 = vmul.f32 %v5997_v17, %v9454_v51  ;;  %v3593_v4 = vmul.f32 %v5997_v17, %v9455_v56 }
 0xce7   : > { %v3636_v36 = vpack.c.bf16 %v3594_v1, %v3592_v48  ;;  %v3635_v53 = vpack.c.bf16 %v3593_v4, %v3591_v55  ;;  %v9463_v4 = vld [vmem:[#allocation28_spill] sm:$0xff] }
 0xce9   : > { %3667 = vmatprep.subr.bf16.mxu0 %v3636_v36 }
 0xcea   : > { %v5999_v18 = vpop.eup %5998 }
 0xceb   : > { %v3596_v24 = vmul.f32 %v5999_v18, %v9457_v29  ;;  %v3595_v3 = vmul.f32 %v5999_v18, %v9460_v57 }
 0xcec   : > { %v6001_v33 = vpop.eup %6000 }
 0xced   : > { %3668 = vmatpush1.bf16.xpose.msra.mxu0 %v3635_v53  ;;  %v3598_v13 = vmul.f32 %v6001_v33, %v9458_v26  ;;  %v3597_v34 = vmul.f32 %v6001_v33, %v9459_v50 }
 0xcef   : > { %v3638_v60 = vpack.c.bf16 %v3598_v13, %v3596_v24  ;;  %v3637_v15 = vpack.c.bf16 %v3597_v34, %v3595_v3  ;;  %v9468_v24 = vld [vmem:[#allocation11_spill] sm:$0xff] }
 0xcf1   : > { %3669 = vmatprep.subr.bf16.mxu0 %v3638_v60 }
 0xcf5   : > { %3670 = vmatpush1.bf16.xpose.msra.mxu0 %v3637_v15 }
 0xd2b   : > { %v3497_v10 = vpop.xlane.xlu0 %3496 }
 0xd2c   : > { %6002 = vrcp.f32 %v3497_v10 }
 0xd2e   : > { %v3500_v30 = vpop.xlane.xlu1 %3499 }
 0xd2f   : > { %6004 = vrcp.f32 %v3500_v30 }
 0xd33   : > { %v3503_v16 = vpop.xlane.xlu0 %3502 }
 0xd34   : > { %6006 = vrcp.f32 %v3503_v16 }
 0xd36   : > { %v3506_v5 = vpop.xlane.xlu1 %3505  ;;  %v6003_v61 = vpop.eup %6002 }
 0xd37   : > { %6008 = vrcp.f32 %v3506_v5  ;;  %v3600_v54 = vmul.f32 %v6003_v61, %v8137_v37  ;;  %v3599_v0 = vmul.f32 %v6003_v61, %v8135_v9  ;;  %v9470_v61 = vld [vmem:[#allocation7_spill] sm:$0xff] }
 0xd39   : > { %v6005_v41 = vpop.eup %6004 }
 0xd3a   : > { %v3602_v20 = vmul.f32 %v6005_v41, %v8145_v39  ;;  %v3601_v27 = vmul.f32 %v6005_v41, %v8143_v38 }
 0xd3b   : > { %v3509_v63 = vpop.xlane.xlu0 %3508 }
 0xd3c   : > { %v3640_v19 = vpack.c.bf16 %v3602_v20, %v3600_v54  ;;  %v3639_v2 = vpack.c.bf16 %v3601_v27, %v3599_v0  ;;  %6010 = vrcp.f32 %v3509_v63 }
 0xd3e   : > { %v3512_v12 = vpop.xlane.xlu1 %3511  ;;  %3671 = vmatprep.subr.bf16.mxu0 %v3640_v19  ;;  %v6007_v45 = vpop.eup %6006 }
 0xd3f   : > { %6012 = vrcp.f32 %v3512_v12  ;;  %3672 = vmatpush1.bf16.xpose.msra.mxu0 %v3639_v2  ;;  %v3604_v58 = vmul.f32 %v6007_v45, %v8157_v43  ;;  %v3603_v39 = vmul.f32 %v6007_v45, %v8155_v62 }
 0xd41   : > { %v6009_v8 = vpop.eup %6008 }
 0xd42   : > { %v3606_v37 = vmul.f32 %v6009_v8, %v8165_v11  ;;  %v3605_v9 = vmul.f32 %v6009_v8, %v8163_v28 }
 0xd43   : > { %v3515_v25 = vpop.xlane.xlu0 %3514 }
 0xd44   : > { %v3642_v38 = vpack.c.bf16 %v3606_v37, %v3604_v58  ;;  %v3641_v49 = vpack.c.bf16 %v3605_v9, %v3603_v39  ;;  %6014 = vrcp.f32 %v3515_v25 }
 0xd46   : > { %v3518_v21 = vpop.xlane.xlu1 %3517  ;;  %3673 = vmatprep.subr.bf16.mxu0 %v3642_v38  ;;  %v6011_v59 = vpop.eup %6010 }
 0xd47   : > { %6016 = vrcp.f32 %v3518_v21  ;;  %3674 = vmatpush1.bf16.xpose.msra.mxu0 %v3641_v49  ;;  %v3608_v14 = vmul.f32 %v6011_v59, %v8177_v46  ;;  %v3607_v11 = vmul.f32 %v6011_v59, %v8175_v44  ;;  %v9461_v44 = vld [vmem:[#allocation23_spill] sm:$0xff] }
 0xd49   : > { %v6013_v6 = vpop.eup %6012 }
 0xd4a   : > { %v3610_v43 = vmul.f32 %v6013_v6, %v8183_v47  ;;  %v3609_v62 = vmul.f32 %v6013_v6, %v8181_v52  ;;  %v9462_v52 = vld [vmem:[#allocation14_spill] sm:$0xff] }
 0xd4b   : > { %v2848_v56 = vadd.f32 %v9462_v52, %v9461_v44 }
 0xd4c   : > { %v3644_v22 = vpack.c.bf16 %v3610_v43, %v3608_v14  ;;  %v3643_v28 = vpack.c.bf16 %v3609_v62, %v3607_v11 }
 0xd4d   : > { %v2854_v36 = vpack.c.bf16 %v2848_v56, %v2848_v56 }
 0xd4e   : > { %3675 = vmatprep.subr.bf16.mxu0 %v3644_v22  ;;  %v6015_v23 = vpop.eup %6014 }
 0xd4f   : > { %3676 = vmatpush1.bf16.xpose.msra.mxu0 %v3643_v28  ;;  %v3612_v17 = vmul.f32 %v6015_v23, %v8193_v31  ;;  %v3611_v51 = vmul.f32 %v6015_v23, %v8191_v42  ;;  %v9465_v31 = vmov 0   ;;  %v9466_v42 = vld [vmem:[#allocation5_spill] sm:$0xff] }
 0xd51   : > { %v6017_v7 = vpop.eup %6016 }
 0xd52   : > { %v3614_v48 = vmul.f32 %v6017_v7, %v8199_v32  ;;  %v3613_v46 = vmul.f32 %v6017_v7, %v8197_v35  ;;  %v9467_v35 = vld [vmem:[#allocation24_spill] sm:$0xff] }
 0xd54   : > { %v3646_v1 = vpack.c.bf16 %v3614_v48, %v3612_v17  ;;  %v3645_v47 = vpack.c.bf16 %v3613_v46, %v3611_v51 }
 0xd56   : > { %3677 = vmatprep.subr.bf16.mxu0 %v3646_v1 }
 0xd57   : > { %3678 = vmatpush1.bf16.xpose.msra.mxu0 %v3645_v47 }
 0xd58   : > { %5391 = vmatprep.subr.msk.bf16.mxu0 %vm485_vm1, %v9463_v4 }
 0xd5e   : > { %3680 = vmatmul.mubr.bf16.vlgmr.msra.gmra.mrb[32].mxu0 %v2854_v36 }
 0xd5f   : > { %3836 = vmatpush1.bf16.msra.mxu0 %v9464_v40  ;;  %3867 = vmatprep.mubr.bf16.mxu0 %v9465_v31 }
 0xd60   : > { %5395 = vmatprep.subr.msk.bf16.mxu0 %vm485_vm1, %v9463_v4 }
 0xd66   : > { %5392 = vmatmul.mubr.msk.bf16.vlgmr.msra.gmra.mrb[36].mxu0 %vm481_vm2, %v9466_v42 }
 0xd67   : > { %3922 = vmatpush1.bf16.msra.mxu0 %v9464_v40  ;;  %3953 = vmatprep.mubr.bf16.mxu0 %v9465_v31 }
 0xd6e   : > { %5396 = vmatmul.mubr.msk.bf16.vlgmr.msra.gmra.mrb[40].mxu0 %vm481_vm2, %v9467_v35 }
 0xe31   : > { %v3681_v32 = vpop.f32.mrb[32].mxu0 }
 0xe32   : > { %v3683_v55 = vpop.f32.mrb[33].mxu0 }
 0xe33   : > { %v3690_v53 = vcombine.low %v3681_v32, %v3683_v55  ;;  %v3731_v18 = vcombine.high %v3681_v32, %v3683_v55  ;;  %v3685_v33 = vpop.f32.mrb[34].mxu0 }
 0xe34   : > { %v3686_v29 = vpop.f32.mrb[35].mxu0 }
 0xe35   : > { %v3697_v26 = vrot.slane %v3690_v53, %v9468_v24  ;;  %v3738_v13 = vrot.slane %v3731_v18, %v9468_v24 }
 0xe37   : > { %v3704_v50 = vrot.slane %v3697_v26, %v9468_v24  ;;  %v3709_v34 = vcombine.high %v3697_v26, %v3697_v26  ;;  %v3745_v60 = vrot.slane %v3738_v13, %v9468_v24  ;;  %v3750_v57 = vcombine.high %v3738_v13, %v3738_v13 }
 0xe39   : > { %3707 = vst.msk [vmem:[#allocation2 + $0x2] ss:$8 sm:$0x3] %vm6993_vm3, %v3704_v50  ;;  %v3716_v15 = vrot.slane %v3709_v34, %v9468_v24  ;;  %v3721_v10 = vcombine.high %v3704_v50, %v3704_v50  ;;  %3748 = vst.msk [vmem:[#allocation2 + $0x22] ss:$8 sm:$0x3] %vm6993_vm3, %v3745_v60  ;;  %v3757_v30 = vrot.slane %v3750_v57, %v9468_v24 }
 0xe3a   : > { %v3762_v16 = vcombine.high %v3745_v60, %v3745_v60  ;;  %v3869_v5 = vpop.f32.mrb[36].mxu0 }
 0xe3b   : > { %v3870_v41 = vadd.f32 %v3869_v5, %v9470_v61  ;;  %v3871_v54 = vpop.f32.mrb[37].mxu0  ;;  %3719 = vst.msk [vmem:[#allocation2 + $0x6] ss:$8 sm:$0x3] %vm6993_vm3, %v3716_v15  ;;  %v3726_v20 = vcombine.high %v3716_v15, %v3716_v15  ;;  %v3767_v0 = vcombine.high %v3757_v30, %v3757_v30 }
 0xe3c   : > { %3724 = vst.msk [vmem:[#allocation2 + $0x12] ss:$8 sm:$0x3] %vm6993_vm3, %v3721_v10  ;;  %3760 = vst.msk [vmem:[#allocation2 + $0x26] ss:$8 sm:$0x3] %vm6993_vm3, %v3757_v30  ;;  %v3872_v27 = vadd.f32 %v3871_v54, %v9470_v61 }
 0xe3d   : > { %3765 = vst.msk [vmem:[#allocation2 + $0x32] ss:$8 sm:$0x3] %vm6993_vm3, %v3762_v16  ;;  %v3873_v63 = vpop.f32.mrb[38].mxu0  ;;  %v3876_v19 = vpack.c.bf16 %v3870_v41, %v3870_v41 }
 0xe3e   : > { %v3874_v2 = vpop.f32.mrb[39].mxu0  ;;  %3729 = vst.msk [vmem:[#allocation2 + $0x16] ss:$8 sm:$0x3] %vm6993_vm3, %v3726_v20  ;;  %v3877_v12 = vpack.c.bf16 %v3872_v27, %v3872_v27 }
 0xe3f   : > { %3770 = vst.msk [vmem:[#allocation2 + $0x36] ss:$8 sm:$0x3] %vm6993_vm3, %v3767_v0  ;;  %3964 = vxpose.xlu0.c.b16.start.end [1/1] (short) %v3876_v19, 128 }
 0xe40   : > { %3980 = vxpose.xlu1.c.b16.start.end [1/1] (short) %v3877_v12, 128 }
 0xe41   : > { %v8293_v45 = vpop.f32.mrb[40].mxu0 }
 0xe42   : > { %9471 = vst [vmem:[#allocation26_spill] sm:$0xff] %v8293_v45  ;;  %v3957_v8 = vpop.f32.mrb[41].mxu0 }
 0xe43   : > { %v3958_v58 = vadd.f32 %v3957_v8, %v9461_v44  ;;  %v3959_v37 = vpop.f32.mrb[42].mxu0 }
 0xe44   : > { %v3960_v39 = vpop.f32.mrb[43].mxu0 }
 0xe45   : > { %v3963_v9 = vpack.c.bf16 %v3958_v58, %v3958_v58 }
 0xe47   : > { %4787 = vmatprep.mubr.bf16.mxu0 %v3963_v9 }
 0xea5   : > { %v3972_v25 = vpop.trf.xlu0 }
 0xea6   : > { %5398 = vmatmul.mubr.msk.bf16.vlgmr.msra.gmra.mrb[224].mxu1 %vm481_vm2, %v3972_v25  ;;  %v3988_v11 = vpop.trf.xlu1 }
 0xea7   : > { %4092 = vmatprep.mubr.bf16.mxu1 %v9465_v31 }
 0xea9   : > { %v3973_v38 = vpop.trf.xlu0 }
 0xeaa   : > { %v3989_v62 = vpop.trf.xlu1 }
 0xead   : > { %v3974_v49 = vpop.trf.xlu0 }
 0xeae   : > { %5399 = vmatmul.mubr.msk.bf16.gmra.mrb[228].mxu1 %vm481_vm2, %v3973_v38  ;;  %v3990_v22 = vpop.trf.xlu1 }
 0xeaf   : > { %4102 = vmatprep.mubr.bf16.mxu1 %v9465_v31 }
 0xeb1   : > { %v3975_v21 = vpop.trf.xlu0 }
 0xeb2   : > { %v3991_v28 = vpop.trf.xlu1 }
 0xeb5   : > { %v3976_v59 = vpop.trf.xlu0 }
 0xeb6   : > { %5400 = vmatmul.mubr.msk.bf16.gmra.mrb[232].mxu1 %vm481_vm2, %v3974_v49  ;;  %v3992_v23 = vpop.trf.xlu1 }
 0xeb7   : > { %4112 = vmatprep.mubr.bf16.mxu1 %v9465_v31 }
 0xeb9   : > { %v3977_v6 = vpop.trf.xlu0 }
 0xeba   : > { %v3993_v7 = vpop.trf.xlu1 }
 0xebd   : > { %v3978_v14 = vpop.trf.xlu0 }
 0xebe   : > { %5401 = vmatmul.mubr.msk.bf16.gmra.mrb[236].mxu1 %vm481_vm2, %v3975_v21  ;;  %v3994_v17 = vpop.trf.xlu1 }
 0xebf   : > { %4122 = vmatprep.mubr.bf16.mxu1 %v9465_v31 }
 0xec1   : > { %v3979_v43 = vpop.trf.xlu0 }
 0xec2   : > { %v3995_v48 = vpop.trf.xlu1 }
 0xec6   : > { %5402 = vmatmul.mubr.msk.bf16.gmra.mrb[240].mxu1 %vm481_vm2, %v3976_v59 }
 0xec7   : > { %4132 = vmatprep.mubr.bf16.mxu1 %v9465_v31 }
 0xece   : > { %5403 = vmatmul.mubr.msk.bf16.gmra.mrb[244].mxu1 %vm481_vm2, %v3977_v6 }
 0xecf   : > { %4142 = vmatprep.mubr.bf16.mxu1 %v9465_v31 }
 0xed6   : > { %5404 = vmatmul.mubr.msk.bf16.gmra.mrb[248].mxu1 %vm481_vm2, %v3978_v14 }
 0xed7   : > { %4152 = vmatprep.mubr.bf16.mxu1 %v9465_v31 }
 0xede   : > { %5405 = vmatmul.mubr.msk.bf16.gmra.mrb[252].mxu1 %vm481_vm2, %v3979_v43 }
 0xedf   : > { %4162 = vmatprep.mubr.bf16.mxu1 %v9465_v31 }
 0xee6   : > { %5406 = vmatmul.mubr.msk.bf16.gmra.mrb[0].mxu1 %vm481_vm2, %v3988_v11 }
 0xee7   : > { %4172 = vmatprep.mubr.bf16.mxu1 %v9465_v31 }
 0xeee   : > { %5407 = vmatmul.mubr.msk.bf16.gmra.mrb[4].mxu1 %vm481_vm2, %v3989_v62 }
 0xeef   : > { %4182 = vmatprep.mubr.bf16.mxu1 %v9465_v31 }
 0xef6   : > { %5408 = vmatmul.mubr.msk.bf16.gmra.mrb[8].mxu1 %vm481_vm2, %v3990_v22 }
 0xef7   : > { %4192 = vmatprep.mubr.bf16.mxu1 %v9465_v31 }
 0xefe   : > { %5409 = vmatmul.mubr.msk.bf16.gmra.mrb[12].mxu1 %vm481_vm2, %v3991_v28 }
 0xeff   : > { %4202 = vmatprep.mubr.bf16.mxu1 %v9465_v31 }
 0xf06   : > { %5410 = vmatmul.mubr.msk.bf16.gmra.mrb[16].mxu1 %vm481_vm2, %v3992_v23 }
 0xf07   : > { %4212 = vmatprep.mubr.bf16.mxu1 %v9465_v31 }
 0xf0e   : > { %5411 = vmatmul.mubr.msk.bf16.gmra.mrb[20].mxu1 %vm481_vm2, %v3993_v7 }
 0xf0f   : > { %4222 = vmatprep.mubr.bf16.mxu1 %v9465_v31 }
 0xf16   : > { %5412 = vmatmul.mubr.msk.bf16.gmra.mrb[24].mxu1 %vm481_vm2, %v3994_v17 }
 0xf17   : > { %4232 = vmatprep.mubr.bf16.mxu1 %v9465_v31 }
 0xf1e   : > { %5413 = vmatmul.mubr.msk.bf16.gmra.mrb[28].mxu1 %vm481_vm2, %v3995_v48 }
 0xf1f   : > { %4948 = vmatprep.mubr.bf16.mxu1 %v9465_v31 }
 0xf79   : > { %v8328_v51 = vpop.f32.mrb[224].mxu1 }
 0xf7a   : > { %v8330_v46 = vpop.f32.mrb[225].mxu1 }
 0xf7b   : > { %v4243_v1 = vmax.f32 %v8328_v51, %v8330_v46  ;;  %v8334_v47 = vpop.f32.mrb[226].mxu1 }
 0xf7c   : > { %v8336_v52 = vpop.f32.mrb[227].mxu1 }
 0xf7d   : > { %v4246_v56 = vmax.f32 %v8334_v47, %v8336_v52  ;;  %4244 = vmax.xlane.f32.xlu0 %v4243_v1 }
 0xf7f   : > { %4247 = vmax.xlane.f32.xlu1 %v4246_v56 }
 0xf81   : > { %v8340_v4 = vpop.f32.mrb[228].mxu1 }
 0xf82   : > { %v8342_v36 = vpop.f32.mrb[229].mxu1 }
 0xf83   : > { %v4249_v40 = vmax.f32 %v8340_v4, %v8342_v36  ;;  %v8346_v42 = vpop.f32.mrb[230].mxu1 }
 0xf84   : > { %v8348_v35 = vpop.f32.mrb[231].mxu1 }
 0xf85   : > { %v4252_v32 = vmax.f32 %v8346_v42, %v8348_v35  ;;  %4250 = vmax.xlane.f32.xlu0 %v4249_v40 }
 0xf87   : > { %4253 = vmax.xlane.f32.xlu1 %v4252_v32 }
 0xf89   : > { %v8352_v55 = vpop.f32.mrb[232].mxu1 }
 0xf8a   : > { %v8354_v53 = vpop.f32.mrb[233].mxu1 }
 0xf8b   : > { %v4255_v18 = vmax.f32 %v8352_v55, %v8354_v53  ;;  %v8358_v33 = vpop.f32.mrb[234].mxu1 }
 0xf8c   : > { %v8360_v29 = vpop.f32.mrb[235].mxu1 }
 0xf8d   : > { %v4258_v26 = vmax.f32 %v8358_v33, %v8360_v29  ;;  %4256 = vmax.xlane.f32.xlu0 %v4255_v18 }
 0xf8f   : > { %4259 = vmax.xlane.f32.xlu1 %v4258_v26 }
 0xf91   : > { %v8364_v13 = vpop.f32.mrb[236].mxu1 }
 0xf92   : > { %v8366_v50 = vpop.f32.mrb[237].mxu1 }
 0xf93   : > { %v4261_v34 = vmax.f32 %v8364_v13, %v8366_v50  ;;  %v8370_v60 = vpop.f32.mrb[238].mxu1 }
 0xf94   : > { %v8372_v57 = vpop.f32.mrb[239].mxu1 }
 0xf95   : > { %v4264_v15 = vmax.f32 %v8370_v60, %v8372_v57  ;;  %4262 = vmax.xlane.f32.xlu0 %v4261_v34 }
 0xf97   : > { %4265 = vmax.xlane.f32.xlu1 %v4264_v15 }
 0xf99   : > { %v8376_v10 = vpop.f32.mrb[240].mxu1 }
 0xf9a   : > { %v8378_v30 = vpop.f32.mrb[241].mxu1 }
 0xf9b   : > { %v4267_v16 = vmax.f32 %v8376_v10, %v8378_v30  ;;  %v8382_v5 = vpop.f32.mrb[242].mxu1 }
 0xf9c   : > { %v8384_v61 = vpop.f32.mrb[243].mxu1 }
 0xf9d   : > { %v4270_v41 = vmax.f32 %v8382_v5, %v8384_v61  ;;  %4268 = vmax.xlane.f32.xlu0 %v4267_v16 }
 0xf9f   : > { %4271 = vmax.xlane.f32.xlu1 %v4270_v41 }
 0xfa1   : > { %v8388_v54 = vpop.f32.mrb[244].mxu1 }
 0xfa2   : > { %v8390_v20 = vpop.f32.mrb[245].mxu1 }
 0xfa3   : > { %v4273_v0 = vmax.f32 %v8388_v54, %v8390_v20  ;;  %v8394_v27 = vpop.f32.mrb[246].mxu1 }
 0xfa4   : > { %v8396_v63 = vpop.f32.mrb[247].mxu1 }
 0xfa5   : > { %v4276_v19 = vmax.f32 %v8394_v27, %v8396_v63  ;;  %4274 = vmax.xlane.f32.xlu0 %v4273_v0 }
 0xfa7   : > { %4277 = vmax.xlane.f32.xlu1 %v4276_v19 }
 0xfa9   : > { %v8400_v2 = vpop.f32.mrb[248].mxu1 }
 0xfaa   : > { %v8402_v12 = vpop.f32.mrb[249].mxu1 }
 0xfab   : > { %v4279_v8 = vmax.f32 %v8400_v2, %v8402_v12  ;;  %v8406_v58 = vpop.f32.mrb[250].mxu1 }
 0xfac   : > { %v8408_v37 = vpop.f32.mrb[251].mxu1 }
 0xfad   : > { %v4282_v39 = vmax.f32 %v8406_v58, %v8408_v37  ;;  %4280 = vmax.xlane.f32.xlu0 %v4279_v8 }
 0xfaf   : > { %4283 = vmax.xlane.f32.xlu1 %v4282_v39 }
 0xfb1   : > { %v8412_v9 = vpop.f32.mrb[252].mxu1 }
 0xfb2   : > { %v8414_v25 = vpop.f32.mrb[253].mxu1 }
 0xfb3   : > { %v4285_v38 = vmax.f32 %v8412_v9, %v8414_v25  ;;  %v8418_v49 = vpop.f32.mrb[254].mxu1 }
 0xfb4   : > { %v8420_v21 = vpop.f32.mrb[255].mxu1 }
 0xfb5   : > { %v4288_v59 = vmax.f32 %v8418_v49, %v8420_v21  ;;  %4286 = vmax.xlane.f32.xlu0 %v4285_v38 }
 0xfb7   : > { %4289 = vmax.xlane.f32.xlu1 %v4288_v59 }
 0xfb9   : > { %v8424_v6 = vpop.f32.mrb[0].mxu1 }
 0xfba   : > { %v8426_v14 = vpop.f32.mrb[1].mxu1 }
 0xfbb   : > { %v4291_v43 = vmax.f32 %v8424_v6, %v8426_v14  ;;  %v8430_v11 = vpop.f32.mrb[2].mxu1 }
 0xfbc   : > { %v8432_v62 = vpop.f32.mrb[3].mxu1 }
 0xfbd   : > { %9472 = vst [vmem:[#allocation19_spill] sm:$0xff] %v8432_v62  ;;  %v4294_v22 = vmax.f32 %v8430_v11, %v8432_v62  ;;  %4292 = vmax.xlane.f32.xlu0 %v4291_v43 }
 0xfbf   : > { %4295 = vmax.xlane.f32.xlu1 %v4294_v22 }
 0xfc1   : > { %v8436_v28 = vpop.f32.mrb[4].mxu1 }
 0xfc2   : > { %9473 = vst [vmem:[#allocation9_spill] sm:$0xff] %v8436_v28  ;;  %v8438_v23 = vpop.f32.mrb[5].mxu1 }
 0xfc3   : > { %9474 = vst [vmem:[#allocation8_spill] sm:$0xff] %v8438_v23  ;;  %v4297_v7 = vmax.f32 %v8436_v28, %v8438_v23  ;;  %v8442_v17 = vpop.f32.mrb[6].mxu1 }
 0xfc4   : > { %9475 = vst [vmem:[#allocation6_spill] sm:$0xff] %v8442_v17  ;;  %v8444_v48 = vpop.f32.mrb[7].mxu1 }
 0xfc5   : > { %9476 = vst [vmem:[#allocation4_spill] sm:$0xff] %v8444_v48  ;;  %v4300_v1 = vmax.f32 %v8442_v17, %v8444_v48  ;;  %4298 = vmax.xlane.f32.xlu0 %v4297_v7 }
 0xfc7   : > { %4301 = vmax.xlane.f32.xlu1 %v4300_v1 }
 0xfc9   : > { %v8448_v56 = vpop.f32.mrb[8].mxu1 }
 0xfca   : > { %9477 = vst [vmem:[#allocation3_spill] sm:$0xff] %v8448_v56  ;;  %v8450_v40 = vpop.f32.mrb[9].mxu1 }
 0xfcb   : > { %9478 = vst [vmem:[#allocation13_spill] sm:$0xff] %v8450_v40  ;;  %v4303_v32 = vmax.f32 %v8448_v56, %v8450_v40  ;;  %v8454_v18 = vpop.f32.mrb[10].mxu1 }
 0xfcc   : > { %9479 = vst [vmem:[#allocation16_spill] sm:$0xff] %v8454_v18  ;;  %v8456_v26 = vpop.f32.mrb[11].mxu1 }
 0xfcd   : > { %9480 = vst [vmem:[#allocation18_spill] sm:$0xff] %v8456_v26  ;;  %v4306_v34 = vmax.f32 %v8454_v18, %v8456_v26  ;;  %4304 = vmax.xlane.f32.xlu0 %v4303_v32 }
 0xfcf   : > { %4307 = vmax.xlane.f32.xlu1 %v4306_v34 }
 0xfd1   : > { %v8460_v15 = vpop.f32.mrb[12].mxu1 }
 0xfd2   : > { %9481 = vst [vmem:[#allocation15_spill] sm:$0xff] %v8460_v15  ;;  %v8462_v16 = vpop.f32.mrb[13].mxu1 }
 0xfd3   : > { %9482 = vst [vmem:[#allocation21_spill] sm:$0xff] %v8462_v16  ;;  %v4309_v41 = vmax.f32 %v8460_v15, %v8462_v16  ;;  %v8466_v0 = vpop.f32.mrb[14].mxu1 }
 0xfd4   : > { %9483 = vst [vmem:[#allocation12_spill] sm:$0xff] %v8466_v0  ;;  %v8468_v19 = vpop.f32.mrb[15].mxu1 }
 0xfd5   : > { %9484 = vst [vmem:[#allocation17_spill] sm:$0xff] %v8468_v19  ;;  %v4312_v8 = vmax.f32 %v8466_v0, %v8468_v19  ;;  %4310 = vmax.xlane.f32.xlu0 %v4309_v41 }
 0xfd7   : > { %4313 = vmax.xlane.f32.xlu1 %v4312_v8 }
 0xfd9   : > { %v8472_v39 = vpop.f32.mrb[16].mxu1 }
 0xfda   : > { %v8474_v38 = vpop.f32.mrb[17].mxu1 }
 0xfdb   : > { %v8478_v43 = vpop.f32.mrb[18].mxu1 }
 0xfdc   : > { %v8480_v22 = vpop.f32.mrb[19].mxu1 }
 0xfe1   : > { %v8484_v1 = vpop.f32.mrb[20].mxu1 }
 0xfe2   : > { %v8486_v32 = vpop.f32.mrb[21].mxu1 }
 0xfe3   : > { %v8490_v41 = vpop.f32.mrb[22].mxu1 }
 0xfe4   : > { %v8492_v8 = vpop.f32.mrb[23].mxu1 }
 0xfe9   : > { %v8496_v3 = vpop.f32.mrb[24].mxu1 }
 0xfea   : > { %v8498_v24 = vpop.f32.mrb[25].mxu1 }
 0xfeb   : > { %v8502_v31 = vpop.f32.mrb[26].mxu1 }
 0xfec   : > { %v8504_v45 = vpop.f32.mrb[27].mxu1 }
 0xff1   : > { %v8508_v44 = vpop.f32.mrb[28].mxu1 }
 0xff2   : > { %v8510_v19 = vpop.f32.mrb[29].mxu1 }
 0xff3   : > { %v8514_v0 = vpop.f32.mrb[30].mxu1 }
 0xff4   : > { %v8516_v16 = vpop.f32.mrb[31].mxu1 }
0x100a   : > { %v4245_v15 = vpop.xlane.xlu0 %4244 }
0x100b   : > { %v4339_v26 = vsub.f32 %v8328_v51, %v4245_v15  ;;  %v4340_v18 = vsub.f32 %v8330_v46, %v4245_v15 }
0x100c   : > { %v4248_v34 = vpop.xlane.xlu1 %4247 }
0x100d   : > { %v4403_v40 = vmul.f32 1.442695, %v4339_v26  ;;  %v4405_v56 = vmul.f32 1.442695, %v4340_v18  ;;  %v4341_v48 = vsub.f32 %v8334_v47, %v4248_v34  ;;  %v4342_v17 = vsub.f32 %v8336_v52, %v4248_v34 }
0x100f   : > { %6018 = vpow2.f32 %v4403_v40  ;;  %v4407_v59 = vmul.f32 1.442695, %v4341_v48  ;;  %v4409_v23 = vmul.f32 1.442695, %v4342_v17 }
0x1010   : > { %6020 = vpow2.f32 %v4405_v56 }
0x1011   : > { %6022 = vpow2.f32 %v4407_v59 }
0x1012   : > { %6024 = vpow2.f32 %v4409_v23  ;;  %v4251_v28 = vpop.xlane.xlu0 %4250 }
0x1013   : > { %v4343_v7 = vsub.f32 %v8340_v4, %v4251_v28  ;;  %v4344_v51 = vsub.f32 %v8342_v36, %v4251_v28 }
0x1014   : > { %v4254_v62 = vpop.xlane.xlu1 %4253 }
0x1015   : > { %v4411_v46 = vmul.f32 1.442695, %v4343_v7  ;;  %v4413_v15 = vmul.f32 1.442695, %v4344_v51  ;;  %v4345_v18 = vsub.f32 %v8346_v42, %v4254_v62  ;;  %v4346_v47 = vsub.f32 %v8348_v35, %v4254_v62 }
0x1017   : > { %6026 = vpow2.f32 %v4411_v46  ;;  %v4415_v52 = vmul.f32 1.442695, %v4345_v18  ;;  %v4417_v40 = vmul.f32 1.442695, %v4346_v47  ;;  %v9485_v46 = vmax.f32 %v8472_v39, %v8474_v38 }
0x1018   : > { %6028 = vpow2.f32 %v4413_v15 }
0x1019   : > { %v8528_v17 = vpop.eup %6018  ;;  %6030 = vpow2.f32 %v4415_v52 }
0x101a   : > { %v8530_v23 = vpop.eup %6020  ;;  %6032 = vpow2.f32 %v4417_v40  ;;  %v4257_v4 = vpop.xlane.xlu0 %4256 }
0x101b   : > { %v8532_v48 = vpop.eup %6022  ;;  %v4347_v36 = vsub.f32 %v8352_v55, %v4257_v4  ;;  %v4348_v28 = vsub.f32 %v8354_v53, %v4257_v4  ;;  %v4531_v42 = vadd.f32 %v8530_v23, %v8528_v17  ;;  %v9486_v4 = vmax.f32 %v8478_v43, %v8480_v22 }
0x101c   : > { %v8538_v35 = vpop.eup %6024  ;;  %v4260_v62 = vpop.xlane.xlu1 %4259 }
0x101d   : > { %v4419_v56 = vmul.f32 1.442695, %v4347_v36  ;;  %v4421_v26 = vmul.f32 1.442695, %v4348_v28  ;;  %v4349_v59 = vsub.f32 %v8358_v33, %v4260_v62  ;;  %v4350_v7 = vsub.f32 %v8360_v29, %v4260_v62  ;;  %4532 = vadd.xlane.f32.xlu0 %v4531_v42 }
0x101e   : > { %v4534_v34 = vadd.f32 %v8538_v35, %v8532_v48 }
0x101f   : > { %6034 = vpow2.f32 %v4419_v56  ;;  %v4423_v55 = vmul.f32 1.442695, %v4349_v59  ;;  %v4425_v51 = vmul.f32 1.442695, %v4350_v7  ;;  %v9487_v7 = vmax.f32 %v8484_v1, %v8486_v32 }
0x1020   : > { %6036 = vpow2.f32 %v4421_v26  ;;  %4535 = vadd.xlane.f32.xlu1 %v4534_v34 }
0x1021   : > { %v8544_v53 = vpop.eup %6026  ;;  %6038 = vpow2.f32 %v4423_v55  ;;  %4316 = vmax.xlane.f32.xlu0 %v9485_v46 }
0x1022   : > { %v8549_v15 = vpop.eup %6028  ;;  %6040 = vpow2.f32 %v4425_v51  ;;  %v4263_v33 = vpop.xlane.xlu0 %4262 }
0x1023   : > { %v8551_v29 = vpop.eup %6030  ;;  %v4351_v18 = vsub.f32 %v8364_v13, %v4263_v33  ;;  %v4352_v47 = vsub.f32 %v8366_v50, %v4263_v33  ;;  %v4537_v52 = vadd.f32 %v8549_v15, %v8544_v53 }
0x1024   : > { %v8557_v40 = vpop.eup %6032  ;;  %4319 = vmax.xlane.f32.xlu1 %v9486_v4  ;;  %v4266_v36 = vpop.xlane.xlu1 %4265 }
0x1025   : > { %v4427_v28 = vmul.f32 1.442695, %v4351_v18  ;;  %v4429_v42 = vmul.f32 1.442695, %v4352_v47  ;;  %v4353_v62 = vsub.f32 %v8370_v60, %v4266_v36  ;;  %v4354_v56 = vsub.f32 %v8372_v57, %v4266_v36  ;;  %4538 = vadd.xlane.f32.xlu0 %v4537_v52 }
0x1026   : > { %v4540_v13 = vadd.f32 %v8557_v40, %v8551_v29  ;;  %v9488_v18 = vmax.f32 %v8490_v41, %v8492_v8 }
0x1027   : > { %6042 = vpow2.f32 %v4427_v28  ;;  %v4431_v50 = vmul.f32 1.442695, %v4353_v62  ;;  %v4433_v26 = vmul.f32 1.442695, %v4354_v56  ;;  %v9489_v56 = vmax.f32 %v8496_v3, %v8498_v24 }
0x1028   : > { %6044 = vpow2.f32 %v4429_v42  ;;  %4541 = vadd.xlane.f32.xlu1 %v4540_v13 }
0x1029   : > { %v8566_v59 = vpop.eup %6034  ;;  %6046 = vpow2.f32 %v4431_v50  ;;  %4322 = vmax.xlane.f32.xlu0 %v9487_v7 }
0x102a   : > { %v8571_v34 = vpop.eup %6036  ;;  %6048 = vpow2.f32 %v4433_v26  ;;  %v4269_v60 = vpop.xlane.xlu0 %4268 }
0x102b   : > { %v8573_v57 = vpop.eup %6038  ;;  %v4355_v55 = vsub.f32 %v8376_v10, %v4269_v60  ;;  %v4356_v51 = vsub.f32 %v8378_v30, %v4269_v60  ;;  %v4543_v46 = vadd.f32 %v8571_v34, %v8566_v59 }
0x102c   : > { %v8579_v33 = vpop.eup %6040  ;;  %4325 = vmax.xlane.f32.xlu1 %v9488_v18  ;;  %v4272_v47 = vpop.xlane.xlu1 %4271 }
0x102d   : > { %v4435_v52 = vmul.f32 1.442695, %v4355_v55  ;;  %v4437_v4 = vmul.f32 1.442695, %v4356_v51  ;;  %v4357_v36 = vsub.f32 %v8382_v5, %v4272_v47  ;;  %v4358_v28 = vsub.f32 %v8384_v61, %v4272_v47  ;;  %4544 = vadd.xlane.f32.xlu0 %v4543_v46 }
0x102e   : > { %v4546_v10 = vadd.f32 %v8579_v33, %v8573_v57  ;;  %v9490_v55 = vmax.f32 %v8502_v31, %v8504_v45 }
0x102f   : > { %6050 = vpow2.f32 %v4435_v52  ;;  %v4439_v30 = vmul.f32 1.442695, %v4357_v36  ;;  %v4441_v42 = vmul.f32 1.442695, %v4358_v28  ;;  %v9491_v28 = vmax.f32 %v8508_v44, %v8510_v19 }
0x1030   : > { %6052 = vpow2.f32 %v4437_v4  ;;  %4547 = vadd.xlane.f32.xlu1 %v4546_v10 }
0x1031   : > { %v8588_v62 = vpop.eup %6042  ;;  %6054 = vpow2.f32 %v4439_v30  ;;  %4328 = vmax.xlane.f32.xlu0 %v9489_v56 }
0x1032   : > { %v8593_v13 = vpop.eup %6044  ;;  %6056 = vpow2.f32 %v4441_v42  ;;  %v4275_v5 = vpop.xlane.xlu0 %4274 }
0x1033   : > { %v8595_v61 = vpop.eup %6046  ;;  %v4359_v50 = vsub.f32 %v8388_v54, %v4275_v5  ;;  %v4360_v26 = vsub.f32 %v8390_v20, %v4275_v5  ;;  %v4549_v7 = vadd.f32 %v8593_v13, %v8588_v62 }
0x1034   : > { %v8601_v60 = vpop.eup %6048  ;;  %4331 = vmax.xlane.f32.xlu1 %v9490_v55  ;;  %v4278_v51 = vpop.xlane.xlu1 %4277 }
0x1035   : > { %v4443_v46 = vmul.f32 1.442695, %v4359_v50  ;;  %v4445_v18 = vmul.f32 1.442695, %v4360_v26  ;;  %v4361_v47 = vsub.f32 %v8394_v27, %v4278_v51  ;;  %v4362_v52 = vsub.f32 %v8396_v63, %v4278_v51  ;;  %4550 = vadd.xlane.f32.xlu0 %v4549_v7 }
0x1036   : > { %v4552_v54 = vadd.f32 %v8601_v60, %v8595_v61  ;;  %v9492_v50 = vmax.f32 %v8514_v0, %v8516_v16 }
0x1037   : > { %6058 = vpow2.f32 %v4443_v46  ;;  %v4447_v20 = vmul.f32 1.442695, %v4361_v47  ;;  %v4449_v4 = vmul.f32 1.442695, %v4362_v52 }
0x1038   : > { %6060 = vpow2.f32 %v4445_v18  ;;  %4553 = vadd.xlane.f32.xlu1 %v4552_v54 }
0x1039   : > { %v8610_v36 = vpop.eup %6050  ;;  %6062 = vpow2.f32 %v4447_v20  ;;  %4334 = vmax.xlane.f32.xlu0 %v9491_v28 }
0x103a   : > { %v8615_v10 = vpop.eup %6052  ;;  %6064 = vpow2.f32 %v4449_v4  ;;  %v4281_v27 = vpop.xlane.xlu0 %4280 }
0x103b   : > { %v8617_v63 = vpop.eup %6054  ;;  %v4363_v30 = vsub.f32 %v8400_v2, %v4281_v27  ;;  %v4364_v42 = vsub.f32 %v8402_v12, %v4281_v27  ;;  %v4555_v56 = vadd.f32 %v8615_v10, %v8610_v36 }
0x103c   : > { %v8623_v5 = vpop.eup %6056  ;;  %4337 = vmax.xlane.f32.xlu1 %v9492_v50  ;;  %v4284_v26 = vpop.xlane.xlu1 %4283 }
0x103d   : > { %v4451_v7 = vmul.f32 1.442695, %v4363_v30  ;;  %v4453_v55 = vmul.f32 1.442695, %v4364_v42  ;;  %v4365_v51 = vsub.f32 %v8406_v58, %v4284_v26  ;;  %v4366_v46 = vsub.f32 %v8408_v37, %v4284_v26  ;;  %4556 = vadd.xlane.f32.xlu0 %v4555_v56 }
0x103e   : > { %v4558_v2 = vadd.f32 %v8623_v5, %v8617_v63 }
0x103f   : > { %6066 = vpow2.f32 %v4451_v7  ;;  %v4455_v12 = vmul.f32 1.442695, %v4365_v51  ;;  %v4457_v18 = vmul.f32 1.442695, %v4366_v46 }
0x1040   : > { %6068 = vpow2.f32 %v4453_v55  ;;  %4559 = vadd.xlane.f32.xlu1 %v4558_v2 }
0x1041   : > { %v8632_v47 = vpop.eup %6058  ;;  %6070 = vpow2.f32 %v4455_v12 }
0x1042   : > { %v8634_v52 = vpop.eup %6060  ;;  %6072 = vpow2.f32 %v4457_v18  ;;  %v4287_v54 = vpop.xlane.xlu0 %4286 }
0x1043   : > { %v8636_v20 = vpop.eup %6062  ;;  %v4367_v58 = vsub.f32 %v8412_v9, %v4287_v54  ;;  %v4368_v37 = vsub.f32 %v8414_v25, %v4287_v54  ;;  %v4561_v4 = vadd.f32 %v8634_v52, %v8632_v47 }
0x1044   : > { %v8642_v28 = vpop.eup %6064  ;;  %v4290_v27 = vpop.xlane.xlu1 %4289 }
0x1045   : > { %v4459_v30 = vmul.f32 1.442695, %v4367_v58  ;;  %v4461_v42 = vmul.f32 1.442695, %v4368_v37  ;;  %v4369_v56 = vsub.f32 %v8418_v49, %v4290_v27  ;;  %v4370_v50 = vsub.f32 %v8420_v21, %v4290_v27  ;;  %4562 = vadd.xlane.f32.xlu0 %v4561_v4  ;;  %v9493_v4 = vld [vmem:[#allocation19_spill] sm:$0xff] }
0x1046   : > { %v4564_v26 = vadd.f32 %v8642_v28, %v8636_v20 }
0x1047   : > { %6074 = vpow2.f32 %v4459_v30  ;;  %v4463_v9 = vmul.f32 1.442695, %v4369_v56  ;;  %v4465_v7 = vmul.f32 1.442695, %v4370_v50 }
0x1048   : > { %6076 = vpow2.f32 %v4461_v42  ;;  %4565 = vadd.xlane.f32.xlu1 %v4564_v26 }
0x1049   : > { %v8648_v25 = vpop.eup %6066  ;;  %6078 = vpow2.f32 %v4463_v9 }
0x104a   : > { %v8650_v55 = vpop.eup %6068  ;;  %6080 = vpow2.f32 %v4465_v7  ;;  %v4293_v51 = vpop.xlane.xlu0 %4292  ;;  %v9497_v7 = vld [vmem:[#allocation8_spill] sm:$0xff] }
0x104b   : > { %v8652_v46 = vpop.eup %6070  ;;  %v4371_v49 = vsub.f32 %v8424_v6, %v4293_v51  ;;  %v4372_v21 = vsub.f32 %v8426_v14, %v4293_v51  ;;  %v4567_v2 = vadd.f32 %v8650_v55, %v8648_v25 }
0x104c   : > { %v8658_v12 = vpop.eup %6072  ;;  %v4296_v18 = vpop.xlane.xlu1 %4295 }
0x104d   : > { %v4467_v54 = vmul.f32 1.442695, %v4371_v49  ;;  %v4469_v58 = vmul.f32 1.442695, %v4372_v21  ;;  %v4373_v37 = vsub.f32 %v8430_v11, %v4296_v18  ;;  %v4374_v27 = vsub.f32 %v9493_v4, %v4296_v18  ;;  %4568 = vadd.xlane.f32.xlu0 %v4567_v2  ;;  %v9496_v11 = vld [vmem:[#allocation9_spill] sm:$0xff]  ;;  %v9500_v4 = vld [vmem:[#allocation4_spill] sm:$0xff] }
0x104e   : > { %v4570_v30 = vadd.f32 %v8658_v12, %v8652_v46 }
0x104f   : > { %6082 = vpow2.f32 %v4467_v54  ;;  %v4471_v6 = vmul.f32 1.442695, %v4373_v37  ;;  %v4473_v42 = vmul.f32 1.442695, %v4374_v27 }
0x1050   : > { %6084 = vpow2.f32 %v4469_v58  ;;  %4571 = vadd.xlane.f32.xlu1 %v4570_v30  ;;  %v9499_v58 = vld [vmem:[#allocation6_spill] sm:$0xff] }
0x1051   : > { %v8664_v14 = vpop.eup %6074  ;;  %6086 = vpow2.f32 %v4471_v6 }
0x1052   : > { %9494 = vst [vmem:[#allocation20_spill] sm:$0xff] %v8664_v14  ;;  %v8666_v56 = vpop.eup %6076  ;;  %6088 = vpow2.f32 %v4473_v42  ;;  %v4299_v50 = vpop.xlane.xlu0 %4298 }
0x1053   : > { %v8668_v26 = vpop.eup %6078  ;;  %v4375_v9 = vsub.f32 %v9496_v11, %v4299_v50  ;;  %v4376_v51 = vsub.f32 %v9497_v7, %v4299_v50  ;;  %v4573_v49 = vadd.f32 %v8666_v56, %v8664_v14  ;;  %v9508_v14 = vld [vmem:[#allocation18_spill] sm:$0xff] }
0x1054   : > { %9495 = vst [vmem:[#allocation27_spill] sm:$0xff] %v8668_v26  ;;  %v8674_v21 = vpop.eup %6080  ;;  %v4302_v2 = vpop.xlane.xlu1 %4301 }
0x1055   : > { %9498 = vst [vmem:[#allocation25_spill] sm:$0xff] %v8674_v21  ;;  %v4475_v18 = vmul.f32 1.442695, %v4375_v9  ;;  %v4477_v54 = vmul.f32 1.442695, %v4376_v51  ;;  %v4377_v37 = vsub.f32 %v9499_v58, %v4302_v2  ;;  %v4378_v27 = vsub.f32 %v9500_v4, %v4302_v2  ;;  %4574 = vadd.xlane.f32.xlu0 %v4573_v49  ;;  %v9504_v51 = vld [vmem:[#allocation3_spill] sm:$0xff] }
0x1056   : > { %v4576_v30 = vadd.f32 %v8674_v21, %v8668_v26  ;;  %v9505_v49 = vld [vmem:[#allocation13_spill] sm:$0xff] }
0x1057   : > { %6090 = vpow2.f32 %v4475_v18  ;;  %v4479_v6 = vmul.f32 1.442695, %v4377_v37  ;;  %v4481_v42 = vmul.f32 1.442695, %v4378_v27 }
0x1058   : > { %6092 = vpow2.f32 %v4477_v54  ;;  %4577 = vadd.xlane.f32.xlu1 %v4576_v30  ;;  %v9507_v30 = vld [vmem:[#allocation16_spill] sm:$0xff] }
0x1059   : > { %v8680_v50 = vpop.eup %6082  ;;  %6094 = vpow2.f32 %v4479_v6 }
0x105a   : > { %9501 = vst [vmem:[#allocation22_spill] sm:$0xff] %v8680_v50  ;;  %v8682_v11 = vpop.eup %6084  ;;  %6096 = vpow2.f32 %v4481_v42  ;;  %v4305_v9 = vpop.xlane.xlu0 %4304 }
0x105b   : > { %9502 = vst [vmem:[#allocation14_spill] sm:$0xff] %v8682_v11  ;;  %v8684_v7 = vpop.eup %6086  ;;  %v4379_v2 = vsub.f32 %v9504_v51, %v4305_v9  ;;  %v4380_v58 = vsub.f32 %v9505_v49, %v4305_v9  ;;  %v4579_v18 = vadd.f32 %v8682_v11, %v8680_v50  ;;  %v9511_v50 = vld [vmem:[#allocation12_spill] sm:$0xff] }
0x105c   : > { %9503 = vst [vmem:[#allocation28_spill] sm:$0xff] %v8684_v7  ;;  %v8690_v37 = vpop.eup %6088  ;;  %v4308_v54 = vpop.xlane.xlu1 %4307 }
0x105d   : > { %9506 = vst [vmem:[#allocation29_spill] sm:$0xff] %v8690_v37  ;;  %v4483_v4 = vmul.f32 1.442695, %v4379_v2  ;;  %v4485_v27 = vmul.f32 1.442695, %v4380_v58  ;;  %v4381_v6 = vsub.f32 %v9507_v30, %v4308_v54  ;;  %v4382_v26 = vsub.f32 %v9508_v14, %v4308_v54  ;;  %4580 = vadd.xlane.f32.xlu0 %v4579_v18  ;;  %v9509_v30 = vld [vmem:[#allocation15_spill] sm:$0xff] }
0x105e   : > { %v4582_v42 = vadd.f32 %v8690_v37, %v8684_v7  ;;  %v9510_v18 = vld [vmem:[#allocation21_spill] sm:$0xff] }
0x105f   : > { %6098 = vpow2.f32 %v4483_v4  ;;  %v4487_v51 = vmul.f32 1.442695, %v4381_v6  ;;  %v4489_v21 = vmul.f32 1.442695, %v4382_v26  ;;  %v9512_v7 = vld [vmem:[#allocation17_spill] sm:$0xff] }
0x1060   : > { %6100 = vpow2.f32 %v4485_v27  ;;  %4583 = vadd.xlane.f32.xlu1 %v4582_v42 }
0x1061   : > { %v8696_v9 = vpop.eup %6090  ;;  %6102 = vpow2.f32 %v4487_v51 }
0x1062   : > { %v8698_v49 = vpop.eup %6092  ;;  %6104 = vpow2.f32 %v4489_v21  ;;  %v4311_v2 = vpop.xlane.xlu0 %4310 }
0x1063   : > { %v8700_v58 = vpop.eup %6094  ;;  %v4383_v14 = vsub.f32 %v9509_v30, %v4311_v2  ;;  %v4384_v54 = vsub.f32 %v9510_v18, %v4311_v2  ;;  %v4585_v4 = vadd.f32 %v8698_v49, %v8696_v9 }
0x1064   : > { %v8706_v6 = vpop.eup %6096  ;;  %v4314_v26 = vpop.xlane.xlu1 %4313 }
0x1065   : > { %v4491_v27 = vmul.f32 1.442695, %v4383_v14  ;;  %v4493_v42 = vmul.f32 1.442695, %v4384_v54  ;;  %v4385_v51 = vsub.f32 %v9511_v50, %v4314_v26  ;;  %v4386_v37 = vsub.f32 %v9512_v7, %v4314_v26  ;;  %4586 = vadd.xlane.f32.xlu0 %v4585_v4 }
0x1066   : > { %v4588_v21 = vadd.f32 %v8706_v6, %v8700_v58 }
0x1067   : > { %6106 = vpow2.f32 %v4491_v27  ;;  %v4495_v30 = vmul.f32 1.442695, %v4385_v51  ;;  %v4497_v11 = vmul.f32 1.442695, %v4386_v37 }
0x1068   : > { %6108 = vpow2.f32 %v4493_v42  ;;  %4589 = vadd.xlane.f32.xlu1 %v4588_v21 }
0x1069   : > { %v8712_v2 = vpop.eup %6098  ;;  %6110 = vpow2.f32 %v4495_v30 }
0x106a   : > { %9513 = vst [vmem:[#allocation5_spill] sm:$0xff] %v8712_v2  ;;  %v8714_v18 = vpop.eup %6100  ;;  %6112 = vpow2.f32 %v4497_v11 }
0x106b   : > { %v8716_v14 = vpop.eup %6102  ;;  %v4591_v50 = vadd.f32 %v8714_v18, %v8712_v2 }
0x106c   : > { %9514 = vst [vmem:[#allocation24_spill] sm:$0xff] %v8716_v14  ;;  %v8720_v7 = vpop.eup %6104 }
0x106d   : > { %9515 = vst [vmem:[#allocation7_spill] sm:$0xff] %v8720_v7  ;;  %4592 = vadd.xlane.f32.xlu0 %v4591_v50  ;;  %v4594_v54 = vadd.f32 %v8720_v7, %v8716_v14 }
0x106f   : > { %4595 = vadd.xlane.f32.xlu1 %v4594_v54 }
0x1071   : > { %v8724_v37 = vpop.eup %6106 }
0x1072   : > { %9516 = vst [vmem:[#allocation19_spill] sm:$0xff] %v8724_v37  ;;  %v8726_v4 = vpop.eup %6108 }
0x1073   : > { %9517 = vst [vmem:[#allocation9_spill] sm:$0xff] %v8726_v4  ;;  %v8728_v26 = vpop.eup %6110  ;;  %v4597_v11 = vadd.f32 %v8726_v4, %v8724_v37 }
0x1074   : > { %9518 = vst [vmem:[#allocation8_spill] sm:$0xff] %v8728_v26  ;;  %v8732_v27 = vpop.eup %6112 }
0x1075   : > { %9519 = vst [vmem:[#allocation6_spill] sm:$0xff] %v8732_v27  ;;  %4598 = vadd.xlane.f32.xlu0 %v4597_v11  ;;  %v4600_v42 = vadd.f32 %v8732_v27, %v8728_v26 }
0x1077   : > { %4601 = vadd.xlane.f32.xlu1 %v4600_v42 }
0x10aa   : > { %v4533_v51 = vpop.xlane.xlu0 %4532 }
0x10ab   : > { %6114 = vrcp.f32 %v4533_v51 }
0x10ad   : > { %v4536_v21 = vpop.xlane.xlu1 %4535 }
0x10ae   : > { %6116 = vrcp.f32 %v4536_v21  ;;  %v4317_v30 = vpop.xlane.xlu0 %4316 }
0x10af   : > { %v4387_v50 = vsub.f32 %v8472_v39, %v4317_v30  ;;  %v4388_v54 = vsub.f32 %v8474_v38, %v4317_v30 }
0x10b1   : > { %v4499_v2 = vmul.f32 1.442695, %v4387_v50  ;;  %v4501_v14 = vmul.f32 1.442695, %v4388_v54  ;;  %v4320_v7 = vpop.xlane.xlu1 %4319 }
0x10b2   : > { %v4389_v37 = vsub.f32 %v8478_v43, %v4320_v7  ;;  %v4390_v11 = vsub.f32 %v8480_v22, %v4320_v7  ;;  %v4539_v4 = vpop.xlane.xlu0 %4538 }
0x10b3   : > { %6118 = vpow2.f32 %v4499_v2 }
0x10b4   : > { %6120 = vpow2.f32 %v4501_v14  ;;  %v4503_v42 = vmul.f32 1.442695, %v4389_v37  ;;  %v4505_v26 = vmul.f32 1.442695, %v4390_v11 }
0x10b5   : > { %v6115_v51 = vpop.eup %6114  ;;  %6122 = vrcp.f32 %v4539_v4  ;;  %v4542_v21 = vpop.xlane.xlu1 %4541 }
0x10b6   : > { %6124 = vpow2.f32 %v4503_v42  ;;  %v4323_v27 = vpop.xlane.xlu0 %4322  ;;  %v4660_v43 = vmul.f32 %v6115_v51, %v8530_v23  ;;  %v4659_v22 = vmul.f32 %v6115_v51, %v8528_v17 }
0x10b7   : > { %6126 = vpow2.f32 %v4505_v26  ;;  %v4391_v39 = vsub.f32 %v8484_v1, %v4323_v27  ;;  %v4392_v38 = vsub.f32 %v8486_v32, %v4323_v27 }
0x10b8   : > { %v6117_v30 = vpop.eup %6116  ;;  %6128 = vrcp.f32 %v4542_v21 }
0x10b9   : > { %v4507_v2 = vmul.f32 1.442695, %v4391_v39  ;;  %v4509_v14 = vmul.f32 1.442695, %v4392_v38  ;;  %v4326_v7 = vpop.xlane.xlu1 %4325  ;;  %v4662_v37 = vmul.f32 %v6117_v30, %v8538_v35  ;;  %v4661_v4 = vmul.f32 %v6117_v30, %v8532_v48 }
0x10ba   : > { %v4393_v50 = vsub.f32 %v8490_v41, %v4326_v7  ;;  %v4394_v26 = vsub.f32 %v8492_v8, %v4326_v7  ;;  %v4545_v1 = vpop.xlane.xlu0 %4544 }
0x10bb   : > { %6130 = vpow2.f32 %v4507_v2  ;;  %v4724_v32 = vpack.c.bf16 %v4662_v37, %v4660_v43  ;;  %v4723_v27 = vpack.c.bf16 %v4661_v4, %v4659_v22 }
0x10bc   : > { %6132 = vpow2.f32 %v4509_v14  ;;  %v4511_v54 = vmul.f32 1.442695, %v4393_v50  ;;  %v4513_v23 = vmul.f32 1.442695, %v4394_v26 }
0x10bd   : > { %v8748_v11 = vpop.eup %6118  ;;  %6134 = vrcp.f32 %v4545_v1  ;;  %v4548_v17 = vpop.xlane.xlu1 %4547  ;;  %4755 = vmatprep.subr.bf16.mxu0 %v4724_v32 }
0x10be   : > { %v8750_v42 = vpop.eup %6120  ;;  %6136 = vpow2.f32 %v4511_v54  ;;  %4756 = vmatpush1.bf16.xpose.msra.mxu0 %v4723_v27  ;;  %v4329_v48 = vpop.xlane.xlu0 %4328 }
0x10bf   : > { %v6123_v41 = vpop.eup %6122  ;;  %6138 = vpow2.f32 %v4513_v23  ;;  %v4395_v8 = vsub.f32 %v8496_v3, %v4329_v48  ;;  %v4396_v35 = vsub.f32 %v8498_v24, %v4329_v48  ;;  %v4603_v51 = vadd.f32 %v8750_v42, %v8748_v11 }
0x10c0   : > { %v8756_v21 = vpop.eup %6124  ;;  %6140 = vrcp.f32 %v4548_v17  ;;  %v4664_v7 = vmul.f32 %v6123_v41, %v8549_v15  ;;  %v4663_v4 = vmul.f32 %v6123_v41, %v8544_v53 }
0x10c1   : > { %v8758_v39 = vpop.eup %6126  ;;  %v4515_v38 = vmul.f32 1.442695, %v4395_v8  ;;  %v4517_v30 = vmul.f32 1.442695, %v4396_v35  ;;  %v4332_v43 = vpop.xlane.xlu1 %4331  ;;  %4604 = vadd.xlane.f32.xlu0 %v4603_v51 }
0x10c2   : > { %v6129_v22 = vpop.eup %6128  ;;  %v4397_v2 = vsub.f32 %v8502_v31, %v4332_v43  ;;  %v4398_v14 = vsub.f32 %v8504_v45, %v4332_v43  ;;  %v4606_v24 = vadd.f32 %v8758_v39, %v8756_v21  ;;  %v4551_v3 = vpop.xlane.xlu0 %4550 }
0x10c3   : > { %6142 = vpow2.f32 %v4515_v38  ;;  %v4666_v37 = vmul.f32 %v6129_v22, %v8557_v40  ;;  %v4665_v50 = vmul.f32 %v6129_v22, %v8551_v29 }
0x10c4   : > { %6144 = vpow2.f32 %v4517_v30  ;;  %v4519_v26 = vmul.f32 1.442695, %v4397_v2  ;;  %v4521_v1 = vmul.f32 1.442695, %v4398_v14  ;;  %4607 = vadd.xlane.f32.xlu1 %v4606_v24 }
0x10c5   : > { %v8768_v31 = vpop.eup %6130  ;;  %6146 = vrcp.f32 %v4551_v3  ;;  %v4554_v45 = vpop.xlane.xlu1 %4553  ;;  %v4726_v32 = vpack.c.bf16 %v4666_v37, %v4664_v7  ;;  %v4725_v27 = vpack.c.bf16 %v4665_v50, %v4663_v4 }
0x10c6   : > { %v8770_v54 = vpop.eup %6132  ;;  %6148 = vpow2.f32 %v4519_v26  ;;  %v4335_v15 = vpop.xlane.xlu0 %4334 }
0x10c7   : > { %v6135_v23 = vpop.eup %6134  ;;  %6150 = vpow2.f32 %v4521_v1  ;;  %4757 = vmatprep.subr.bf16.mxu0 %v4726_v32  ;;  %v4399_v53 = vsub.f32 %v8508_v44, %v4335_v15  ;;  %v4400_v29 = vsub.f32 %v8510_v19, %v4335_v15  ;;  %v4609_v40 = vadd.f32 %v8770_v54, %v8768_v31 }
0x10c8   : > { %v8776_v17 = vpop.eup %6136  ;;  %6152 = vrcp.f32 %v4554_v45  ;;  %4758 = vmatpush1.bf16.xpose.msra.mxu0 %v4725_v27  ;;  %v4668_v43 = vmul.f32 %v6135_v23, %v8571_v34  ;;  %v4667_v2 = vmul.f32 %v6135_v23, %v8566_v59 }
0x10c9   : > { %v8778_v48 = vpop.eup %6138  ;;  %v4523_v41 = vmul.f32 1.442695, %v4399_v53  ;;  %v4525_v8 = vmul.f32 1.442695, %v4400_v29  ;;  %v4338_v35 = vpop.xlane.xlu1 %4337  ;;  %4610 = vadd.xlane.f32.xlu0 %v4609_v40 }
0x10ca   : > { %v6141_v51 = vpop.eup %6140  ;;  %v4401_v38 = vsub.f32 %v8514_v0, %v4338_v35  ;;  %v4402_v44 = vsub.f32 %v8516_v16, %v4338_v35  ;;  %v4612_v19 = vadd.f32 %v8778_v48, %v8776_v17  ;;  %v4557_v30 = vpop.xlane.xlu0 %4556 }
0x10cb   : > { %6154 = vpow2.f32 %v4523_v41  ;;  %v4670_v22 = vmul.f32 %v6141_v51, %v8579_v33  ;;  %v4669_v14 = vmul.f32 %v6141_v51, %v8573_v57 }
0x10cc   : > { %6156 = vpow2.f32 %v4525_v8  ;;  %v4527_v24 = vmul.f32 1.442695, %v4401_v38  ;;  %v4529_v3 = vmul.f32 1.442695, %v4402_v44  ;;  %4613 = vadd.xlane.f32.xlu1 %v4612_v19 }
0x10cd   : > { %v8788_v0 = vpop.eup %6142  ;;  %6158 = vrcp.f32 %v4557_v30  ;;  %v4560_v16 = vpop.xlane.xlu1 %4559  ;;  %v4728_v7 = vpack.c.bf16 %v4670_v22, %v4668_v43  ;;  %v4727_v37 = vpack.c.bf16 %v4669_v14, %v4667_v2 }
0x10ce   : > { %v8790_v4 = vpop.eup %6144  ;;  %6160 = vpow2.f32 %v4527_v24 }
0x10cf   : > { %v6147_v34 = vpop.eup %6146  ;;  %6162 = vpow2.f32 %v4529_v3  ;;  %4759 = vmatprep.subr.bf16.mxu0 %v4728_v7  ;;  %v4615_v59 = vadd.f32 %v8790_v4, %v8788_v0 }
0x10d0   : > { %v8794_v57 = vpop.eup %6148  ;;  %6164 = vrcp.f32 %v4560_v16  ;;  %4760 = vmatpush1.bf16.xpose.msra.mxu0 %v4727_v37  ;;  %v4672_v45 = vmul.f32 %v6147_v34, %v8593_v13  ;;  %v4671_v27 = vmul.f32 %v6147_v34, %v8588_v62 }
0x10d1   : > { %v8796_v33 = vpop.eup %6150  ;;  %4616 = vadd.xlane.f32.xlu0 %v4615_v59 }
0x10d2   : > { %v6153_v50 = vpop.eup %6152  ;;  %v4618_v26 = vadd.f32 %v8796_v33, %v8794_v57  ;;  %v4563_v1 = vpop.xlane.xlu0 %4562 }
0x10d3   : > { %v4674_v32 = vmul.f32 %v6153_v50, %v8601_v60  ;;  %v4673_v15 = vmul.f32 %v6153_v50, %v8595_v61  ;;  %6166 = vrcp.f32 %v4563_v1 }
0x10d4   : > { %4619 = vadd.xlane.f32.xlu1 %v4618_v26 }
0x10d5   : > { %v8804_v23 = vpop.eup %6154  ;;  %v4566_v53 = vpop.xlane.xlu1 %4565  ;;  %v4730_v29 = vpack.c.bf16 %v4674_v32, %v4672_v45  ;;  %v4729_v40 = vpack.c.bf16 %v4673_v15, %v4671_v27  ;;  %v406_v32 = vld [vmem:[%s9059_s10] sm:$0xff] }
0x10d6   : > { %v8806_v41 = vpop.eup %6156  ;;  %6168 = vrcp.f32 %v4566_v53  ;;  %v9520_v53 = vld [vmem:[#allocation25_spill] sm:$0xff] }
0x10d7   : > { %v6159_v8 = vpop.eup %6158  ;;  %4761 = vmatprep.subr.bf16.mxu0 %v4730_v29  ;;  %v4621_v13 = vadd.f32 %v8806_v41, %v8804_v23 }
0x10d8   : > { %v8810_v60 = vpop.eup %6160  ;;  %4762 = vmatpush1.bf16.xpose.msra.mxu0 %v4729_v40  ;;  %v4676_v38 = vmul.f32 %v6159_v8, %v8615_v10  ;;  %v4675_v19 = vmul.f32 %v6159_v8, %v8610_v36  ;;  %v9521_v40 = vld [vmem:[#allocation27_spill] sm:$0xff] }
0x10d9   : > { %v8812_v62 = vpop.eup %6162  ;;  %4622 = vadd.xlane.f32.xlu0 %v4621_v13 }
0x10da   : > { %v6165_v61 = vpop.eup %6164  ;;  %v4624_v35 = vadd.f32 %v8812_v62, %v8810_v60  ;;  %v4569_v51 = vpop.xlane.xlu0 %4568 }
0x10db   : > { %v4678_v44 = vmul.f32 %v6165_v61, %v8623_v5  ;;  %v4677_v30 = vmul.f32 %v6165_v61, %v8617_v63  ;;  %6170 = vrcp.f32 %v4569_v51  ;;  %v9522_v61 = vld [vmem:[#allocation20_spill] sm:$0xff] }
0x10dc   : > { %4625 = vadd.xlane.f32.xlu1 %v4624_v35 }
0x10dd   : > { %v4572_v43 = vpop.xlane.xlu1 %4571  ;;  %v4732_v22 = vpack.c.bf16 %v4678_v44, %v4676_v38  ;;  %v4731_v2 = vpack.c.bf16 %v4677_v30, %v4675_v19  ;;  %v6167_v14 = vpop.eup %6166 }
0x10de   : > { %6172 = vrcp.f32 %v4572_v43  ;;  %v4680_v3 = vmul.f32 %v6167_v14, %v8634_v52  ;;  %v4679_v36 = vmul.f32 %v6167_v14, %v8632_v47  ;;  %v407_v47 = vld [vmem:[%s9059_s10 + $0x8] sm:$0xff]  ;;  %v9523_v43 = vld [vmem:[#allocation14_spill] sm:$0xff] }
0x10df   : > { %4763 = vmatprep.subr.bf16.mxu0 %v4732_v22  ;;  %v9525_v14 = vld [vmem:[#allocation28_spill] sm:$0xff] }
0x10e0   : > { %v6169_v24 = vpop.eup %6168  ;;  %4764 = vmatpush1.bf16.xpose.msra.mxu0 %v4731_v2 }
0x10e1   : > { %v4682_v10 = vmul.f32 %v6169_v24, %v8642_v28  ;;  %v4681_v5 = vmul.f32 %v6169_v24, %v8636_v20 }
0x10e2   : > { %v4575_v16 = vpop.xlane.xlu0 %4574 }
0x10e3   : > { %v4734_v63 = vpack.c.bf16 %v4682_v10, %v4680_v3  ;;  %6174 = vrcp.f32 %v4575_v16  ;;  %v4733_v7 = vpack.c.bf16 %v4681_v5, %v4679_v36  ;;  %v9526_v10 = vld [vmem:[#allocation22_spill] sm:$0xff] }
0x10e5   : > { %v4578_v37 = vpop.xlane.xlu1 %4577  ;;  %4765 = vmatprep.subr.bf16.mxu0 %v4734_v63  ;;  %v6171_v34 = vpop.eup %6170 }
0x10e6   : > { %6176 = vrcp.f32 %v4578_v37  ;;  %v4684_v50 = vmul.f32 %v6171_v34, %v8650_v55  ;;  %v4683_v20 = vmul.f32 %v6171_v34, %v8648_v25  ;;  %v409_v25 = vld [vmem:[%s9059_s10 + $0x18] sm:$0xff] }
0x10e8   : > { %v6173_v59 = vpop.eup %6172  ;;  %4766 = vmatpush1.bf16.xpose.msra.mxu0 %v4733_v7 }
0x10e9   : > { %v4686_v52 = vmul.f32 %v6173_v59, %v8658_v12  ;;  %v4685_v28 = vmul.f32 %v6173_v59, %v8652_v46  ;;  %v408_v46 = vld [vmem:[%s9059_s10 + $0x10] sm:$0xff] }
0x10ea   : > { %v4581_v26 = vpop.xlane.xlu0 %4580 }
0x10eb   : > { %v4736_v1 = vpack.c.bf16 %v4686_v52, %v4684_v50  ;;  %6178 = vrcp.f32 %v4581_v26  ;;  %v4735_v45 = vpack.c.bf16 %v4685_v28, %v4683_v20 }
0x10ed   : > { %4891 = vperm.xlu1 %5441, %v407_v47   ;;  %v4584_v55 = vpop.xlane.xlu1 %4583  ;;  %4767 = vmatprep.subr.bf16.mxu0 %v4736_v1  ;;  %v6175_v12 = vpop.eup %6174 }
0x10ee   : > { %6180 = vrcp.f32 %v4584_v55  ;;  %v4688_v15 = vmul.f32 %v6175_v12, %v8666_v56  ;;  %v4687_v35 = vmul.f32 %v6175_v12, %v9522_v61  ;;  %v9524_v56 = vld [vmem:[#allocation29_spill] sm:$0xff]  ;;  %v9527_v55 = vld [vmem:[#allocation7_spill] sm:$0xff]  ;;  %v9528_v12 = vld [vmem:[#allocation24_spill] sm:$0xff] }
0x10ef   : > { %4886 = vperm.xlu0 %5440, %v406_v32  }
0x10f0   : > { %v6177_v27 = vpop.eup %6176  ;;  %4768 = vmatpush1.bf16.xpose.msra.mxu0 %v4735_v45 }
0x10f1   : > { %4896 = vperm.xlu1 %5441, %v408_v46   ;;  %v4690_v29 = vmul.f32 %v6177_v27, %v9520_v53  ;;  %v4689_v8 = vmul.f32 %v6177_v27, %v9521_v40  ;;  %v9530_v53 = vld [vmem:[#allocation9_spill] sm:$0xff]  ;;  %v9531_v40 = vld [vmem:[#allocation6_spill] sm:$0xff] }
0x10f2   : > { %v4587_v13 = vpop.xlane.xlu0 %4586 }
0x10f3   : > { %4901 = vperm.xlu0 %5440, %v409_v25   ;;  %v4738_v51 = vpack.c.bf16 %v4690_v29, %v4688_v15  ;;  %6182 = vrcp.f32 %v4587_v13  ;;  %v4737_v38 = vpack.c.bf16 %v4689_v8, %v4687_v35  ;;  %v9532_v13 = vld [vmem:[#allocation8_spill] sm:$0xff] }
0x10f5   : > { %v4590_v44 = vpop.xlane.xlu1 %4589  ;;  %4769 = vmatprep.subr.bf16.mxu0 %v4738_v51  ;;  %v6179_v19 = vpop.eup %6178 }
0x10f6   : > { %6184 = vrcp.f32 %v4590_v44  ;;  %v4692_v22 = vmul.f32 %v6179_v19, %v9523_v43  ;;  %v4691_v5 = vmul.f32 %v6179_v19, %v9526_v10 }
0x10f8   : > { %v6181_v30 = vpop.eup %6180  ;;  %4770 = vmatpush1.bf16.xpose.msra.mxu0 %v4737_v38 }
0x10f9   : > { %v4694_v2 = vmul.f32 %v6181_v30, %v9524_v56  ;;  %v4693_v24 = vmul.f32 %v6181_v30, %v9525_v14 }
0x10fa   : > { %v4593_v3 = vpop.xlane.xlu0 %4592 }
0x10fb   : > { %6186 = vrcp.f32 %v4593_v3  ;;  %v4740_v16 = vpack.c.bf16 %v4694_v2, %v4692_v22  ;;  %v4739_v63 = vpack.c.bf16 %v4693_v24, %v4691_v5 }
0x10fc   : > { %v4596_v36 = vpop.xlane.xlu1 %4595 }
0x10fd   : > { %6188 = vrcp.f32 %v4596_v36  ;;  %4771 = vmatprep.subr.bf16.mxu0 %v4740_v16  ;;  %v6183_v7 = vpop.eup %6182 }
0x10fe   : > { %v4696_v34 = vmul.f32 %v6183_v7, %v8698_v49  ;;  %v4695_v28 = vmul.f32 %v6183_v7, %v8696_v9 }
0x1100   : > { %v6185_v37 = vpop.eup %6184  ;;  %4772 = vmatpush1.bf16.xpose.msra.mxu0 %v4739_v63 }
0x1101   : > { %v4698_v59 = vmul.f32 %v6185_v37, %v8706_v6  ;;  %v4697_v50 = vmul.f32 %v6185_v37, %v8700_v58  ;;  %v9529_v58 = vld [vmem:[#allocation5_spill] sm:$0xff] }
0x1102   : > { %v4599_v52 = vpop.xlane.xlu0 %4598 }
0x1103   : > { %6190 = vrcp.f32 %v4599_v52  ;;  %v4742_v26 = vpack.c.bf16 %v4698_v59, %v4696_v34  ;;  %v4741_v20 = vpack.c.bf16 %v4697_v50, %v4695_v28 }
0x1104   : > { %v4602_v47 = vpop.xlane.xlu1 %4601 }
0x1105   : > { %v6187_v1 = vpop.eup %6186  ;;  %6192 = vrcp.f32 %v4602_v47  ;;  %4773 = vmatprep.subr.bf16.mxu0 %v4742_v26 }
0x1106   : > { %v4700_v32 = vmul.f32 %v6187_v1, %v8714_v18  ;;  %v4699_v27 = vmul.f32 %v6187_v1, %v9529_v58  ;;  %v9533_v18 = vld [vmem:[#allocation19_spill] sm:$0xff] }
0x1107   : > { %v6189_v45 = vpop.eup %6188 }
0x1108   : > { %4774 = vmatpush1.bf16.xpose.msra.mxu0 %v4741_v20  ;;  %v4702_v49 = vmul.f32 %v6189_v45, %v9527_v55  ;;  %v4701_v6 = vmul.f32 %v6189_v45, %v9528_v12 }
0x110a   : > { %v4744_v46 = vpack.c.bf16 %v4702_v49, %v4700_v32  ;;  %v4743_v9 = vpack.c.bf16 %v4701_v6, %v4699_v27 }
0x110c   : > { %4775 = vmatprep.subr.bf16.mxu0 %v4744_v46  ;;  %v9536_v46 = vmov 0  }
0x110d   : > { %v6191_v25 = vpop.eup %6190 }
0x110e   : > { %v4704_v29 = vmul.f32 %v6191_v25, %v9530_v53  ;;  %v4703_v51 = vmul.f32 %v6191_v25, %v9533_v18 }
0x110f   : > { %v6193_v15 = vpop.eup %6192 }
0x1110   : > { %4776 = vmatpush1.bf16.xpose.msra.mxu0 %v4743_v9  ;;  %v4706_v8 = vmul.f32 %v6193_v15, %v9531_v40  ;;  %v4705_v61 = vmul.f32 %v6193_v15, %v9532_v13 }
0x1112   : > { %v4746_v35 = vpack.c.bf16 %v4706_v8, %v4704_v29  ;;  %v4745_v38 = vpack.c.bf16 %v4705_v61, %v4703_v51 }
0x1114   : > { %4777 = vmatprep.subr.bf16.mxu0 %v4746_v35 }
0x1118   : > { %4778 = vmatpush1.bf16.xpose.msra.mxu0 %v4745_v38 }
0x114e   : > { %v4605_v44 = vpop.xlane.xlu0 %4604 }
0x114f   : > { %6194 = vrcp.f32 %v4605_v44 }
0x1151   : > { %v4608_v19 = vpop.xlane.xlu1 %4607 }
0x1152   : > { %6196 = vrcp.f32 %v4608_v19  ;;  %v396_v19 = vld [vmem:[%s9058_s9] sm:$0xff] }
0x1156   : > { %v4611_v30 = vpop.xlane.xlu0 %4610 }
0x1157   : > { %6198 = vrcp.f32 %v4611_v30  ;;  %v397_v30 = vld [vmem:[%s9058_s9 + $0x8] sm:$0xff] }
0x1159   : > { %v4614_v43 = vpop.xlane.xlu1 %4613  ;;  %v6195_v22 = vpop.eup %6194 }
0x115a   : > { %6200 = vrcp.f32 %v4614_v43  ;;  %v4708_v2 = vmul.f32 %v6195_v22, %v8750_v42  ;;  %v4707_v24 = vmul.f32 %v6195_v22, %v8748_v11 }
0x115c   : > { %v6197_v56 = vpop.eup %6196 }
0x115d   : > { %v4710_v14 = vmul.f32 %v6197_v56, %v8758_v39  ;;  %v4709_v3 = vmul.f32 %v6197_v56, %v8756_v21 }
0x115e   : > { %v4617_v10 = vpop.xlane.xlu0 %4616 }
0x115f   : > { %v4748_v5 = vpack.c.bf16 %v4710_v14, %v4708_v2  ;;  %v4747_v16 = vpack.c.bf16 %v4709_v3, %v4707_v24  ;;  %6202 = vrcp.f32 %v4617_v10 }
0x1161   : > { %v4620_v36 = vpop.xlane.xlu1 %4619  ;;  %4779 = vmatprep.subr.bf16.mxu0 %v4748_v5  ;;  %v6199_v63 = vpop.eup %6198 }
0x1162   : > { %6204 = vrcp.f32 %v4620_v36  ;;  %4780 = vmatpush1.bf16.xpose.msra.mxu0 %v4747_v16  ;;  %v4712_v37 = vmul.f32 %v6199_v63, %v8770_v54  ;;  %v4711_v39 = vmul.f32 %v6199_v63, %v8768_v31  ;;  %v400_v16 = vpack.c.bf16 %v397_v30, %v396_v19 }
0x1164   : > { %v6201_v7 = vpop.eup %6200 }
0x1165   : > { %v4714_v42 = vmul.f32 %v6201_v7, %v8778_v48  ;;  %v4713_v11 = vmul.f32 %v6201_v7, %v8776_v17 }
0x1166   : > { %v4623_v34 = vpop.xlane.xlu0 %4622 }
0x1167   : > { %v4750_v21 = vpack.c.bf16 %v4714_v42, %v4712_v37  ;;  %v4749_v59 = vpack.c.bf16 %v4713_v11, %v4711_v39  ;;  %6206 = vrcp.f32 %v4623_v34 }
0x1169   : > { %v4626_v50 = vpop.xlane.xlu1 %4625  ;;  %4781 = vmatprep.subr.bf16.mxu0 %v4750_v21  ;;  %v6203_v52 = vpop.eup %6202 }
0x116a   : > { %6208 = vrcp.f32 %v4626_v50  ;;  %4782 = vmatpush1.bf16.xpose.msra.mxu0 %v4749_v59  ;;  %v4716_v26 = vmul.f32 %v6203_v52, %v8790_v4  ;;  %v4715_v48 = vmul.f32 %v6203_v52, %v8788_v0  ;;  %v9534_v0 = vld [vmem:[#allocation23_spill] sm:$0xff]  ;;  %v398_v50 = vld [vmem:[%s9058_s9 + $0x10] sm:$0xff]  ;;  %v399_v52 = vld [vmem:[%s9058_s9 + $0x18] sm:$0xff] }
0x116c   : > { %v6205_v28 = vpop.eup %6204 }
0x116d   : > { %v4718_v54 = vmul.f32 %v6205_v28, %v8796_v33  ;;  %v4717_v31 = vmul.f32 %v6205_v28, %v8794_v57  ;;  %v9535_v57 = vld [vmem:[#allocation26_spill] sm:$0xff] }
0x116e   : > { %v3956_v12 = vadd.f32 %v9535_v57, %v9534_v0 }
0x116f   : > { %v4752_v47 = vpack.c.bf16 %v4718_v54, %v4716_v26  ;;  %v4751_v17 = vpack.c.bf16 %v4717_v31, %v4715_v48  ;;  %v401_v26 = vpack.c.bf16 %v399_v52, %v398_v50  ;;  %v8935_v54 = vpop.permute.xlu0 %4886  ;;  %v4969_v31 = vld [vmem:[%s6306_s26] sm:$0xff] }
0x1170   : > { %v3962_v6 = vpack.c.bf16 %v3956_v12, %v3956_v12 }
0x1171   : > { %4783 = vmatprep.subr.bf16.mxu0 %v4752_v47  ;;  %v6207_v20 = vpop.eup %6206  ;;  %v8938_v47 = vpop.permute.xlu1 %4891 }
0x1172   : > { %4784 = vmatpush1.bf16.xpose.msra.mxu0 %v4751_v17  ;;  %v4720_v45 = vmul.f32 %v6207_v20, %v8806_v41  ;;  %v4719_v55 = vmul.f32 %v6207_v20, %v8804_v23  ;;  %v9537_v23 = vld [vmem:[#allocation11_spill] sm:$0xff] }
0x1174   : > { %v6209_v1 = vpop.eup %6208 }
0x1175   : > { %v4722_v32 = vmul.f32 %v6209_v1, %v8812_v62  ;;  %v4721_v4 = vmul.f32 %v6209_v1, %v8810_v60  ;;  %v4970_v1 = vld [vmem:[%s6306_s26 + $0x8] sm:$0xff] }
0x1177   : > { %v4754_v49 = vpack.c.bf16 %v4722_v32, %v4720_v45  ;;  %v4753_v33 = vpack.c.bf16 %v4721_v4, %v4719_v55  ;;  %v4971_v55 = vld [vmem:[%s6306_s26 + $0x10] sm:$0xff] }
0x1179   : > { %4785 = vmatprep.subr.bf16.mxu0 %v4754_v49  ;;  %v5056_v49 = vld [vmem:[%s6306_s26 + $0x40] sm:$0xff] }
0x117a   : > { %4786 = vmatpush1.bf16.xpose.msra.mxu0 %v4753_v33 }
0x1181   : > { %4788 = vmatmul.mubr.bf16.vlgmr.msra.gmra.mrb[44].mxu0 %v3962_v6  ;;  %v4972_v6 = vld [vmem:[%s6306_s26 + $0x18] sm:$0xff] }
0x1182   : > { %5035 = vmatprep.mubr.bf16.mxu0 %v9536_v46 }
0x1254   : > { %v4789_v58 = vpop.f32.mrb[44].mxu0 }
0x1255   : > { %v4791_v27 = vpop.f32.mrb[45].mxu0 }
0x1256   : > { %v4798_v41 = vcombine.low %v4789_v58, %v4791_v27  ;;  %v4839_v9 = vcombine.high %v4789_v58, %v4791_v27  ;;  %v4793_v62 = vpop.f32.mrb[46].mxu0  ;;  %v5057_v58 = vld [vmem:[%s6306_s26 + $0x48] sm:$0xff] }
0x1257   : > { %v4794_v25 = vpop.f32.mrb[47].mxu0 }
0x1258   : > { %v4805_v15 = vrot.slane %v4798_v41, %v9537_v23  ;;  %v4846_v60 = vrot.slane %v4839_v9, %v9537_v23  ;;  %v5058_v25 = vld [vmem:[%s6306_s26 + $0x50] sm:$0xff] }
0x125a   : > { %v4812_v53 = vrot.slane %v4805_v15, %v9537_v23  ;;  %v4817_v29 = vcombine.high %v4805_v15, %v4805_v15  ;;  %v4853_v40 = vrot.slane %v4846_v60, %v9537_v23  ;;  %v4858_v8 = vcombine.high %v4846_v60, %v4846_v60 }
0x125c   : > { %4815 = vst.msk [vmem:[#allocation2 + $0x3] ss:$8 sm:$0x3] %vm6993_vm3, %v4812_v53  ;;  %v4824_v61 = vrot.slane %v4817_v29, %v9537_v23  ;;  %v4829_v35 = vcombine.high %v4812_v53, %v4812_v53  ;;  %4856 = vst.msk [vmem:[#allocation2 + $0x23] ss:$8 sm:$0x3] %vm6993_vm3, %v4853_v40  ;;  %v4865_v18 = vrot.slane %v4858_v8, %v9537_v23 }
0x125d   : > { %v4870_v51 = vcombine.high %v4853_v40, %v4853_v40  ;;  %v5059_v29 = vld [vmem:[%s6306_s26 + $0x58] sm:$0xff] }
0x125e   : > { %4827 = vst.msk [vmem:[#allocation2 + $0x7] ss:$8 sm:$0x3] %vm6993_vm3, %v4824_v61  ;;  %4832 = vst.msk [vmem:[#allocation2 + $0x13] ss:$8 sm:$0x3] %vm6993_vm3, %v4829_v35  ;;  %v4834_v38 = vcombine.high %v4824_v61, %v4824_v61  ;;  %v4875_v44 = vcombine.high %v4865_v18, %v4865_v18  ;;  %v8966_v35 = vpop.permute.xlu1 %4896 }
0x125f   : > { %4868 = vst.msk [vmem:[#allocation2 + $0x27] ss:$8 sm:$0x3] %vm6993_vm3, %v4865_v18  ;;  %4873 = vst.msk [vmem:[#allocation2 + $0x33] ss:$8 sm:$0x3] %vm6993_vm3, %v4870_v51 }
0x1260   : > { %4837 = vst.msk [vmem:[#allocation2 + $0x17] ss:$8 sm:$0x3] %vm6993_vm3, %v4834_v38  ;;  %4878 = vst.msk [vmem:[#allocation2 + $0x37] ss:$8 sm:$0x3] %vm6993_vm3, %v4875_v44  ;;  %v8971_v44 = vpop.permute.xlu0 %4901 }
0x1261   : > { %v4973_v38 = vld [vmem:[%s6306_s26 + $0x20] sm:$0xff] }
0x1265   : > { %v4881_v43 = vld [vmem:[#allocation2 + $0x8] sm:$0xff]  ;;  %v4880_v22 = vld [vmem:[#allocation2] sm:$0xff] }
0x1266   : > { %v5081_v56 = vld [vmem:[#allocation2 + $0x28] sm:$0xff]  ;;  %v4883_v2 = vpack.c.bf16 %v4881_v43, %v4881_v43  ;;  %v4882_v14 = vpack.c.bf16 %v4880_v22, %v4880_v22  ;;  %v5080_v24 = vld [vmem:[#allocation2 + $0x20] sm:$0xff] }
0x1267   : > { %v4994_v3 = vld [vmem:[#allocation2 + $0x18] sm:$0xff]  ;;  %v5083_v10 = vpack.c.bf16 %v5081_v56, %v5081_v56  ;;  %v4993_v5 = vld [vmem:[#allocation2 + $0x10] sm:$0xff]  ;;  %v5082_v42 = vpack.c.bf16 %v5080_v24, %v5080_v24  ;;  %v4974_v43 = vld [vmem:[%s6306_s26 + $0x28] sm:$0xff] }
0x1268   : > { %v5168_v36 = vld [vmem:[#allocation2 + $0x38] sm:$0xff]  ;;  %5414 = vmatprep.subr.msk.bf16.mxu1 %vm485_vm1, %v4883_v2  ;;  %v4911_v63 = vsel %vm485_vm1, %v4882_v14, 0  ;;  %v4996_v7 = vpack.c.bf16 %v4994_v3, %v4994_v3  ;;  %v4995_v37 = vpack.c.bf16 %v4993_v5, %v4993_v5  ;;  %v5167_v39 = vld [vmem:[#allocation2 + $0x30] sm:$0xff]  ;;  %v5060_v24 = vld [vmem:[%s6306_s26 + $0x60] sm:$0xff] }
0x1269   : > { %4917 = vmatpush1.bf16.msra.mxu1 %v4911_v63  ;;  %v5170_v34 = vpack.c.bf16 %v5168_v36, %v5168_v36  ;;  %v5169_v21 = vpack.c.bf16 %v5167_v39, %v5167_v39  ;;  %v5085_v59 = vsel %vm485_vm1, %v5082_v42, 0  ;;  %v4975_v2 = vld [vmem:[%s6306_s26 + $0x30] sm:$0xff]  ;;  %v4976_v36 = vld [vmem:[%s6306_s26 + $0x38] sm:$0xff] }
0x126a   : > { %5417 = vmatprep.subr.msk.bf16.mxu0 %vm485_vm1, %v4996_v7  ;;  %5420 = vmatprep.subr.msk.bf16.mxu1 %vm485_vm1, %v5083_v10  ;;  %v4998_v11 = vsel %vm485_vm1, %v4995_v37, 0  ;;  %v5061_v7 = vld [vmem:[%s6306_s26 + $0x68] sm:$0xff] }
0x126b   : > { %5004 = vmatpush1.bf16.msra.mxu0 %v4998_v11  ;;  %v5172_v28 = vsel %vm485_vm1, %v5169_v21, 0 }
0x126c   : > { %5415 = vmatmul.mubr.msk.bf16.vlgmr.msra.gmra.mrb[32].mxu1 %vm481_vm2, %v400_v16  ;;  %5423 = vmatprep.subr.msk.bf16.mxu0 %vm485_vm1, %v5170_v34  ;;  %v5062_v34 = vld [vmem:[%s6306_s26 + $0x70] sm:$0xff] }
0x126d   : > { %5091 = vmatpush1.bf16.msra.mxu1 %v5085_v59  ;;  %4958 = vmatprep.mubr.bf16.mxu1 %v9536_v46 }
0x126e   : > { %5418 = vmatmul.mubr.msk.bf16.vlgmr.msra.gmra.mrb[48].mxu0 %vm481_vm2, %v400_v16 }
0x126f   : > { %5178 = vmatpush1.bf16.msra.mxu0 %v5172_v28  ;;  %5045 = vmatprep.mubr.bf16.mxu0 %v9536_v46  ;;  %v5063_v28 = vld [vmem:[%s6306_s26 + $0x78] sm:$0xff] }
0x1274   : > { %5416 = vmatmul.mubr.msk.bf16.gmra.mrb[36].mxu1 %vm481_vm2, %v401_v26 }
0x1275   : > { %5122 = vmatprep.mubr.bf16.mxu1 %v9536_v46 }
0x1276   : > { %5419 = vmatmul.mubr.msk.bf16.gmra.mrb[52].mxu0 %vm481_vm2, %v401_v26 }
0x1277   : > { %5209 = vmatprep.mubr.bf16.mxu0 %v9536_v46 }
0x127c   : > { %5421 = vmatmul.mubr.msk.bf16.vlgmr.msra.gmra.mrb[40].mxu1 %vm481_vm2, %v400_v16 }
0x127d   : > { %5132 = vmatprep.mubr.bf16.mxu1 %v9536_v46 }
0x127e   : > { %5424 = vmatmul.mubr.msk.bf16.vlgmr.msra.gmra.mrb[56].mxu0 %vm481_vm2, %v400_v16 }
0x127f   : > { %5219 = vmatprep.mubr.bf16.mxu0 %v9536_v46 }
0x1284   : > { %5422 = vmatmul.mubr.msk.bf16.gmra.mrb[44].mxu1 %vm481_vm2, %v401_v26 }
0x1286   : > { %5425 = vmatmul.mubr.msk.bf16.gmra.mrb[60].mxu0 %vm481_vm2, %v401_v26 }
0x133f   : > { %v4950_v48 = vpop.f32.mrb[32].mxu1 }
0x1340   : > { %v4951_v17 = vadd.f32 %v4950_v48, %v8935_v54  ;;  %v4952_v20 = vpop.f32.mrb[33].mxu1 }
0x1341   : > { %v4953_v45 = vadd.f32 %v4952_v20, %v8935_v54  ;;  %v4954_v32 = vpop.f32.mrb[34].mxu1  ;;  %v5037_v4 = vpop.f32.mrb[48].mxu0 }
0x1342   : > { %v4977_v33 = vadd.f32 %v4969_v31, %v4951_v17  ;;  %v4955_v0 = vadd.f32 %v4954_v32, %v8938_v47  ;;  %v5038_v57 = vadd.f32 %v5037_v4, %v8935_v54  ;;  %v4956_v12 = vpop.f32.mrb[35].mxu1  ;;  %v5039_v46 = vpop.f32.mrb[49].mxu0  ;;  %v5144_v4 = vld [vmem:[%s6306_s26 + $0x88] sm:$0xff] }
0x1343   : > { %v4978_v27 = vadd.f32 %v4970_v1, %v4953_v45  ;;  %v4957_v41 = vadd.f32 %v4956_v12, %v8938_v47  ;;  %v5040_v9 = vadd.f32 %v5039_v46, %v8935_v54  ;;  %v5041_v62 = vpop.f32.mrb[50].mxu0  ;;  %v5143_v45 = vld [vmem:[%s6306_s26 + $0x80] sm:$0xff] }
0x1344   : > { %4985 = vst [vmem:[%s8947_s27] sm:$0xff] %v4977_v33  ;;  %v4979_v23 = vadd.f32 %v4971_v55, %v4955_v0  ;;  %v5064_v15 = vadd.f32 %v5056_v49, %v5038_v57  ;;  %v5042_v60 = vadd.f32 %v5041_v62, %v8938_v47  ;;  %v5043_v53 = vpop.f32.mrb[51].mxu0  ;;  %v5145_v0 = vld [vmem:[%s6306_s26 + $0x90] sm:$0xff]  ;;  %v5230_v12 = vld [vmem:[%s6306_s26 + $0xc0] sm:$0xff]  ;;  %v5231_v62 = vld [vmem:[%s6306_s26 + $0xc8] sm:$0xff] }
0x1345   : > { %4986 = vst [vmem:[%s8947_s27 + $0x8] sm:$0xff] %v4978_v27  ;;  %v4980_v40 = vadd.f32 %v4972_v6, %v4957_v41  ;;  %v5065_v8 = vadd.f32 %v5057_v58, %v5040_v9  ;;  %v5044_v13 = vadd.f32 %v5043_v53, %v8938_v47  ;;  %v5146_v41 = vld [vmem:[%s6306_s26 + $0x98] sm:$0xff]  ;;  %v5232_v53 = vld [vmem:[%s6306_s26 + $0xd0] sm:$0xff] }
0x1346   : > { %4987 = vst [vmem:[%s8947_s27 + $0x10] sm:$0xff] %v4979_v23  ;;  %5072 = vst [vmem:[%s8947_s27 + $0x40] sm:$0xff] %v5064_v15  ;;  %v5066_v61 = vadd.f32 %v5058_v25, %v5042_v60 }
0x1347   : > { %4988 = vst [vmem:[%s8947_s27 + $0x18] sm:$0xff] %v4980_v40  ;;  %5073 = vst [vmem:[%s8947_s27 + $0x48] sm:$0xff] %v5065_v8  ;;  %v5067_v18 = vadd.f32 %v5059_v29, %v5044_v13  ;;  %v4960_v51 = vpop.f32.mrb[36].mxu1 }
0x1348   : > { %5074 = vst [vmem:[%s8947_s27 + $0x50] sm:$0xff] %v5066_v61  ;;  %v4961_v19 = vadd.f32 %v4960_v51, %v8966_v35  ;;  %v4962_v30 = vpop.f32.mrb[37].mxu1  ;;  %v5233_v61 = vld [vmem:[%s6306_s26 + $0xd8] sm:$0xff] }
0x1349   : > { %5075 = vst [vmem:[%s8947_s27 + $0x58] sm:$0xff] %v5067_v18  ;;  %v4963_v22 = vadd.f32 %v4962_v30, %v8966_v35  ;;  %v4964_v56 = vpop.f32.mrb[38].mxu1  ;;  %v5047_v14 = vpop.f32.mrb[52].mxu0 }
0x134a   : > { %v4981_v3 = vadd.f32 %v4973_v38, %v4961_v19  ;;  %v4965_v10 = vadd.f32 %v4964_v56, %v8971_v44  ;;  %v5048_v5 = vadd.f32 %v5047_v14, %v8966_v35  ;;  %v4966_v16 = vpop.f32.mrb[39].mxu1  ;;  %v5049_v63 = vpop.f32.mrb[53].mxu0 }
0x134b   : > { %v4982_v37 = vadd.f32 %v4974_v43, %v4963_v22  ;;  %v4967_v42 = vadd.f32 %v4966_v16, %v8971_v44  ;;  %v5050_v39 = vadd.f32 %v5049_v63, %v8966_v35  ;;  %v5051_v11 = vpop.f32.mrb[54].mxu0  ;;  %v5147_v43 = vld [vmem:[%s6306_s26 + $0xa0] sm:$0xff] }
0x134c   : > { %4989 = vst [vmem:[%s8947_s27 + $0x20] sm:$0xff] %v4981_v3  ;;  %v4983_v21 = vadd.f32 %v4975_v2, %v4965_v10  ;;  %v5068_v59 = vadd.f32 %v5060_v24, %v5048_v5  ;;  %v5052_v50 = vadd.f32 %v5051_v11, %v8971_v44  ;;  %v5053_v52 = vpop.f32.mrb[55].mxu0  ;;  %v5148_v2 = vld [vmem:[%s6306_s26 + $0xa8] sm:$0xff]  ;;  %v5149_v24 = vld [vmem:[%s6306_s26 + $0xb0] sm:$0xff]  ;;  %v5234_v10 = vld [vmem:[%s6306_s26 + $0xe0] sm:$0xff] }
0x134d   : > { %4990 = vst [vmem:[%s8947_s27 + $0x28] sm:$0xff] %v4982_v37  ;;  %v4984_v26 = vadd.f32 %v4976_v36, %v4967_v42  ;;  %v5069_v48 = vadd.f32 %v5061_v7, %v5050_v39  ;;  %v5054_v31 = vadd.f32 %v5053_v52, %v8971_v44  ;;  %v5150_v7 = vld [vmem:[%s6306_s26 + $0xb8] sm:$0xff]  ;;  %v5235_v42 = vld [vmem:[%s6306_s26 + $0xe8] sm:$0xff] }
0x134e   : > { %4991 = vst [vmem:[%s8947_s27 + $0x30] sm:$0xff] %v4983_v21  ;;  %5076 = vst [vmem:[%s8947_s27 + $0x60] sm:$0xff] %v5068_v59  ;;  %v5070_v17 = vadd.f32 %v5062_v34, %v5052_v50  ;;  %v5236_v59 = vld [vmem:[%s6306_s26 + $0xf0] sm:$0xff] }
0x134f   : > { %4992 = vst [vmem:[%s8947_s27 + $0x38] sm:$0xff] %v4984_v26  ;;  %5077 = vst [vmem:[%s8947_s27 + $0x68] sm:$0xff] %v5069_v48  ;;  %v5071_v20 = vadd.f32 %v5063_v28, %v5054_v31  ;;  %v5124_v1 = vpop.f32.mrb[40].mxu1  ;;  %v5237_v48 = vld [vmem:[%s6306_s26 + $0xf8] sm:$0xff] }
0x1350   : > { %5078 = vst [vmem:[%s8947_s27 + $0x70] sm:$0xff] %v5070_v17  ;;  %v5125_v32 = vadd.f32 %v5124_v1, %v8935_v54  ;;  %v5126_v55 = vpop.f32.mrb[41].mxu1 }
0x1351   : > { %5079 = vst [vmem:[%s8947_s27 + $0x78] sm:$0xff] %v5071_v20  ;;  %v5127_v49 = vadd.f32 %v5126_v55, %v8935_v54  ;;  %v5128_v33 = vpop.f32.mrb[42].mxu1  ;;  %v5211_v57 = vpop.f32.mrb[56].mxu0 }
0x1352   : > { %v5151_v6 = vadd.f32 %v5143_v45, %v5125_v32  ;;  %v5129_v46 = vadd.f32 %v5128_v33, %v8938_v47  ;;  %v5212_v58 = vadd.f32 %v5211_v57, %v8935_v54  ;;  %v5130_v27 = vpop.f32.mrb[43].mxu1  ;;  %v5213_v9 = vpop.f32.mrb[57].mxu0 }
0x1353   : > { %v5152_v25 = vadd.f32 %v5144_v4, %v5127_v49  ;;  %v5131_v23 = vadd.f32 %v5130_v27, %v8938_v47  ;;  %v5214_v15 = vadd.f32 %v5213_v9, %v8935_v54  ;;  %v5215_v60 = vpop.f32.mrb[58].mxu0 }
0x1354   : > { %5159 = vst [vmem:[%s8947_s27 + $0x80] sm:$0xff] %v5151_v6  ;;  %v5153_v29 = vadd.f32 %v5145_v0, %v5129_v46  ;;  %v5238_v40 = vadd.f32 %v5230_v12, %v5212_v58  ;;  %v5216_v8 = vadd.f32 %v5215_v60, %v8938_v47  ;;  %v5217_v13 = vpop.f32.mrb[59].mxu0 }
0x1355   : > { %5160 = vst [vmem:[%s8947_s27 + $0x88] sm:$0xff] %v5152_v25  ;;  %v5154_v18 = vadd.f32 %v5146_v41, %v5131_v23  ;;  %v5239_v51 = vadd.f32 %v5231_v62, %v5214_v15  ;;  %v5218_v54 = vadd.f32 %v5217_v13, %v8938_v47 }
0x1356   : > { %5161 = vst [vmem:[%s8947_s27 + $0x90] sm:$0xff] %v5153_v29  ;;  %5246 = vst [vmem:[%s8947_s27 + $0xc0] sm:$0xff] %v5238_v40  ;;  %v5240_v38 = vadd.f32 %v5232_v53, %v5216_v8 }
0x1357   : > { %5162 = vst [vmem:[%s8947_s27 + $0x98] sm:$0xff] %v5154_v18  ;;  %5247 = vst [vmem:[%s8947_s27 + $0xc8] sm:$0xff] %v5239_v51  ;;  %v5241_v19 = vadd.f32 %v5233_v61, %v5218_v54  ;;  %v5134_v30 = vpop.f32.mrb[44].mxu1 }
0x1358   : > { %5248 = vst [vmem:[%s8947_s27 + $0xd0] sm:$0xff] %v5240_v38  ;;  %v5135_v22 = vadd.f32 %v5134_v30, %v8966_v35  ;;  %v5136_v56 = vpop.f32.mrb[45].mxu1 }
0x1359   : > { %5249 = vst [vmem:[%s8947_s27 + $0xd8] sm:$0xff] %v5241_v19  ;;  %v5137_v47 = vadd.f32 %v5136_v56, %v8966_v35  ;;  %v5138_v14 = vpop.f32.mrb[46].mxu1  ;;  %v5221_v3 = vpop.f32.mrb[60].mxu0 }
0x135a   : > { %v5155_v5 = vadd.f32 %v5147_v43, %v5135_v22  ;;  %v5139_v16 = vadd.f32 %v5138_v14, %v8971_v44  ;;  %v5222_v36 = vadd.f32 %v5221_v3, %v8966_v35  ;;  %v5140_v63 = vpop.f32.mrb[47].mxu1  ;;  %v5223_v37 = vpop.f32.mrb[61].mxu0 }
0x135b   : > { %v5156_v39 = vadd.f32 %v5148_v2, %v5137_v47  ;;  %v5141_v11 = vadd.f32 %v5140_v63, %v8971_v44  ;;  %v5224_v34 = vadd.f32 %v5223_v37, %v8966_v35  ;;  %v5225_v21 = vpop.f32.mrb[62].mxu0 }
0x135c   : > { %5163 = vst [vmem:[%s8947_s27 + $0xa0] sm:$0xff] %v5155_v5  ;;  %v5157_v50 = vadd.f32 %v5149_v24, %v5139_v16  ;;  %v5242_v52 = vadd.f32 %v5234_v10, %v5222_v36  ;;  %v5226_v28 = vadd.f32 %v5225_v21, %v8971_v44  ;;  %v5227_v26 = vpop.f32.mrb[63].mxu0 }
0x135d   : > { %5164 = vst [vmem:[%s8947_s27 + $0xa8] sm:$0xff] %v5156_v39  ;;  %v5158_v31 = vadd.f32 %v5150_v7, %v5141_v11  ;;  %v5243_v17 = vadd.f32 %v5235_v42, %v5224_v34  ;;  %v5228_v20 = vadd.f32 %v5227_v26, %v8971_v44 }
0x135e   : > { %5165 = vst [vmem:[%s8947_s27 + $0xb0] sm:$0xff] %v5157_v50  ;;  %5250 = vst [vmem:[%s8947_s27 + $0xe0] sm:$0xff] %v5242_v52  ;;  %v5244_v35 = vadd.f32 %v5236_v59, %v5226_v28 }
0x135f   : > { %5166 = vst [vmem:[%s8947_s27 + $0xb8] sm:$0xff] %v5158_v31  ;;  %5251 = vst [vmem:[%s8947_s27 + $0xe8] sm:$0xff] %v5243_v17  ;;  %v5245_v1 = vadd.f32 %v5237_v48, %v5228_v20 }
0x1360   : > { %5252 = vst [vmem:[%s8947_s27 + $0xf0] sm:$0xff] %v5244_v35 }
0x1361   : > { %5253 = vst [vmem:[%s8947_s27 + $0xf8] sm:$0xff] %v5245_v1 }
0x1362 PF: > { %s21_s17 = sadd.s32 1, %s6216_s17  }
0x1363   : > { %p18_p4 = scmp.ge.s32.totalorder %s21_s17, 4  }
0x1365   :  { %20 = sbr.rel (!%p18_p4) target bundleno = 1 (0x1), region = 125 }

</bundles_post_ra>
